<compile_context>
chip_gen: v7x
topology: tpu7x:2x2x1
jax: 0.10.0
libtpu: 0.0.40
codegen_flags: <defaults>
</compile_context>

<pallas_src>
import functools

import jax
import jax.numpy as jnp
from jax.experimental import pallas as pl
from jax.experimental.pallas import tpu as pltpu


# (K, Cin, Cout, pad, pool) of the five conv blocks.
_LAYERS = (
    (9, 1, 8, 4, 2),
    (9, 8, 12, 4, 2),
    (8, 12, 16, 3, 2),
    (8, 16, 20, 4, 3),
    (9, 20, 24, 4, 1),   # conv_block5: the AvgPool1d(57) head is handled separately
)
_AVG_K = 57


def _round8(c):
    return -(-c // 8) * 8


def _plan(L0):
    """Static geometry of the dilated (never-compacted) time axis.

    Layer i sees its zero-padded input embedded on a fixed P-lane axis: padded element m
    sits at lane stride[i]*m + off[i].  Its conv output y_i[l] lands at the same place
    (stride[i]*l + off[i]); MaxPool(pool) just multiplies the next layer's stride, so no
    data ever has to be compacted / re-laid-out.  `keep` is the half-open lane range that
    holds real payload for the NEXT layer's embedded input; everything outside it must be
    zero (that is exactly the next layer's left/right conv padding).  These ranges depend
    only on the static shapes, never on the batch element.
    """
    n = len(_LAYERS)
    L = [L0]                                       # logical input length per layer
    for (K, Ci, Co, pad, pool) in _LAYERS:
        L.append((L[-1] + 2 * pad - K + 1) // pool)
    stride = [1]
    for (K, Ci, Co, pad, pool) in _LAYERS[:-1]:
        stride.append(stride[-1] * pool)
    off = [sum(stride[j] * _LAYERS[j][3] for j in range(i + 1, n)) for i in range(n)]
    need = max(stride[i] * (L[i] + 2 * _LAYERS[i][3] - 1) + off[i] + 1 for i in range(n))
    P = -(-need // 128) * 128                      # lane width (multiple of 128)
    cpad = [_round8(cfg[2]) for cfg in _LAYERS]    # sublane-padded Cout per layer
    layers = []
    for i, (K, Ci, Co, pad, pool) in enumerate(_LAYERS):
        keep = None
        if i + 1 < n:
            keep = (off[i], stride[i + 1] * L[i + 1] + off[i])
        layers.append(dict(
            K=K, Cin=Ci, Cout=Co, pad=pad, pool=pool,
            cin_pad=(Ci if i == 0 else cpad[i - 1]), cout_pad=cpad[i],
            stride=stride[i], off=off[i],
            L_in=L[i], L_conv=L[i] + 2 * pad - K + 1, L_out=L[i + 1], keep=keep))
    return layers, P


def _lane_shifts(x, offsets):
    """In-register lane shifts: [t_d for d in offsets], t_d[:, p] = x[:, p + d].

    Implemented as static slices of a lane-aligned zero-extension of x (x has a
    multiple-of-128 lane width, so the concatenation boundary is vreg-aligned).  Lanes
    shifted in past the end are zero, which is exactly what the dilated embedding needs.
    """
    P = x.shape[1]
    dmax = max(offsets)
    if dmax == 0:
        return [x] * len(offsets)
    xw = jnp.concatenate([x, jnp.zeros((x.shape[0], dmax), x.dtype)], axis=1)
    return [x if d == 0 else xw[:, d:d + P] for d in offsets]


# ------------------------------ fused Pallas kernel ------------------------------ #

def _fused_kernel(plan, x1_ref,
                  w1, b1, w2, b2, w3, b3, w4, b4, w5, b5,
                  m2, m3, m4, m5, sel, fcw, fcb,
                  o_ref):
    ws = (w1, w2, w3, w4, w5)
    bs = (b1, b2, b3, b4, b5)
    masks = (m2, m3, m4, m5)

    x = None
    y = None
    for i, cfg in enumerate(plan):
        s, K, pool = cfg["stride"], cfg["K"], cfg["pool"]
        if i == 0:
            # Layer-1 im2col was staged in the wrapper (lane-dense DMA): (K1, P).
            S = x1_ref[0]
        else:
            # im2col: stack the K dilated tap-shifts on sublanes -> (K*Cin_pad, P).
            S = jnp.concatenate(_lane_shifts(x, [s * k for k in range(K)]), axis=0)
        # One MXU matmul per layer, f32 accumulation; + bias + ReLU on the VPU.
        y = jnp.dot(ws[i][...], S, preferred_element_type=jnp.float32) + bs[i][...]
        y = jnp.maximum(y, 0.0)                               # (Cout_pad, P)
        if pool > 1:
            # MaxPool1d (floor mode) in-register: max of dilated lane shifts.
            parts = _lane_shifts(y, [s * r for r in range(pool)])
            y = functools.reduce(jnp.maximum, parts)
        if i + 1 < len(plan):
            # Zero the (dilated) conv-padding lanes of the next layer's embedded input.
            # The payload lane range is a static property of the shapes (invariant across
            # batch steps), so the {0,1} masks are host-side constants resident in VMEM.
            x = y * masks[i][...]

    # Head: AvgPool1d(57) + Flatten (masked lane reduction; `sel` already holds 1/57),
    # Linear(24 -> 1) as a VPU multiply + sublane reduction, sigmoid via tanh (EUP).
    feat = jnp.sum(y * sel[...], axis=1, keepdims=True)       # (24, 1)
    logit = jnp.sum(feat * fcw[...], axis=0, keepdims=True) + fcb[...]   # (1, 1)
    o_ref[0] = 0.5 * (jnp.tanh(0.5 * logit) + 1.0)            # == sigmoid(logit)


# ----------------------------- host-side preparation ----------------------------- #

def _prepare_kernel_params(p, plan, P):
    """Pack torch-layout params into kernel operands (im2col weights, masks, head)."""
    kp = {}
    for i, cfg in enumerate(plan):
        w = p[f"w{i + 1}"].astype(jnp.float32)          # (Cout, Cin, K)
        b = p[f"b{i + 1}"].astype(jnp.float32)          # (Cout,)
        Co, Ci, K = w.shape
        ci_pad, co_pad = cfg["cin_pad"], cfg["cout_pad"]
        wp = jnp.zeros((co_pad, ci_pad, K), jnp.float32).at[:Co, :Ci, :].set(w)
        # im2col row index is k*ci_pad + ci  ->  W[co, k*ci_pad + ci] = w[co, ci, k]
        kp[f"w{i + 1}"] = jnp.transpose(wp, (0, 2, 1)).reshape(co_pad, K * ci_pad)
        kp[f"b{i + 1}"] = jnp.zeros((co_pad, 1), jnp.float32).at[:Co, 0].set(b)
    # Payload-lane masks for the embedded inputs of layers 2..5.
    lane = jnp.arange(P)
    for i in range(len(plan) - 1):
        lo, hi = plan[i]["keep"]
        kp[f"m{i + 2}"] = ((lane >= lo) & (lane < hi)).astype(jnp.float32).reshape(1, P)
    # AvgPool1d(57) selection/averaging vector over the dilated layer-5 output.
    s5, o5 = plan[-1]["stride"], plan[-1]["off"]
    idx = o5 + s5 * jnp.arange(_AVG_K)
    kp["sel"] = jnp.zeros((1, P), jnp.float32).at[0, idx].set(1.0 / _AVG_K)
    co5 = plan[-1]["cout_pad"]
    kp["fcw"] = jnp.zeros((co5, 1), jnp.float32).at[:p["fc_w"].shape[1], 0].set(
        p["fc_w"][0].astype(jnp.float32))
    kp["fcb"] = p["fc_b"].reshape(1, 1).astype(jnp.float32)
    return kp


def sana_forward(x_ncl, params):
    N, cin, L0 = x_ncl.shape
    assert cin == 1
    plan, P = _plan(L0)
    assert plan[-1]["L_conv"] >= _AVG_K, "AvgPool1d(57) needs >=57 samples at conv_block5"

    kp = _prepare_kernel_params(params, plan, P)

    # Layer-1 im2col built host-side: lane-dense (1, K1, P) blocks, payload at lane
    # off1 + pad1, zeros everywhere else (the layer-1 conv padding).
    K1 = plan[0]["K"]
    base = plan[0]["off"] + plan[0]["stride"] * plan[0]["pad"]
    right = P + K1 - 1 - base - L0
    assert right >= 0
    xf = x_ncl.reshape(N, L0).astype(jnp.float32)
    xw = jnp.pad(xf, ((0, 0), (base, right)))                      # (N, P + K1 - 1)
    s1 = jnp.stack([xw[:, k:k + P] for k in range(K1)], axis=1)    # (N, K1, P)

    const2d = lambda a: pl.BlockSpec(a.shape, lambda n: (0, 0))
    in_specs = [pl.BlockSpec((1, K1, P), lambda n: (n, 0, 0))]
    args = [s1]
    for i in range(5):
        in_specs += [const2d(kp[f"w{i + 1}"]), const2d(kp[f"b{i + 1}"])]
        args += [kp[f"w{i + 1}"], kp[f"b{i + 1}"]]
    for name in ("m2", "m3", "m4", "m5", "sel", "fcw", "fcb"):
        in_specs.append(const2d(kp[name]))
        args.append(kp[name])

    out = pl.pallas_call(
        functools.partial(_fused_kernel, plan),
        out_shape=jax.ShapeDtypeStruct((N, 1, 1), jnp.float32),
        grid=(N,),
        in_specs=in_specs,
        out_specs=pl.BlockSpec((1, 1, 1), lambda n: (n, 0, 0)),
        compiler_params=pltpu.CompilerParams(dimension_semantics=("parallel",)),
    )(*args)
    return out.reshape(N, 1)


def init_params(key):
    # Deterministic init mimicking PyTorch's U(-1/sqrt(fan_in), 1/sqrt(fan_in)).
    def u(k, shape, fan_in):
        bound = 1.0 / (fan_in ** 0.5)
        return jax.random.uniform(k, shape, jnp.float32, -bound, bound)
    ks = jax.random.split(key, 12)
    p = {}
    for i, (K, Ci, Co, pad, pool) in enumerate(_LAYERS):
        p[f"w{i + 1}"] = u(ks[2 * i], (Co, Ci, K), Ci * K)       # torch layout (O, I, K)
        p[f"b{i + 1}"] = u(ks[2 * i + 1], (Co,), Ci * K)
    p["fc_w"] = u(ks[10], (1, 24), 24)
    p["fc_b"] = u(ks[11], (1,), 24)
    return p


# ------------------------------ pure-JAX reference ------------------------------ #

def ref_forward(x_ncl, p):
    def conv(x, w, b, pad):
        y = jax.lax.conv_general_dilated(
            x, w, window_strides=(1,), padding=[(pad, pad)],
            dimension_numbers=("NCH", "OIH", "NCH"))
        return jax.nn.relu(y + b[None, :, None])

    def mp(x, k):
        N, C, L = x.shape
        Lc = (L // k) * k
        return x[:, :, :Lc].reshape(N, C, L // k, k).max(axis=3)

    x = x_ncl.astype(jnp.float32)
    for i, (K, Ci, Co, pad, pool) in enumerate(_LAYERS):
        x = conv(x, p[f"w{i + 1}"], p[f"b{i + 1}"], pad)
        if pool > 1:
            x = mp(x, pool)
    feat = x[:, :, :_AVG_K].mean(axis=2)                          # AvgPool1d(57) + Flatten
    return jax.nn.sigmoid(feat @ p["fc_w"].T + p["fc_b"])


if __name__ == "__main__":
    root = jax.random.PRNGKey(0)
    k_x, k_p = jax.random.split(root)
    # L0 chosen so the architecture's AvgPool1d(57) sees exactly 57 samples:
    # 1376 -> 688 -> 344 -> 171 -> 57 -> 1.   N=2: one grid step per v7x TensorCore.
    N, L0 = 2, 1376
    x = jax.random.normal(k_x, (N, 1, L0), dtype=jnp.float32)     # NCL, like PyTorch
    params = init_params(k_p)

    out = jax.block_until_ready(sana_forward(x, params))
    assert out.shape == (N, 1), out.shape

    ref = jax.block_until_ready(ref_forward(x, params))
    assert jnp.allclose(out, ref, rtol=2e-4, atol=1e-5), (out, ref)
    print("KERNEL_OK")
</pallas_src>

<mosaic_0001>
module attributes {stable_mosaic.version = 11 : i64} {
  func.func @_fused_kernel(%arg0: i32, %arg1: memref<1x9x1664xf32, #tpu.memory_space<vmem>>, %arg2: memref<8x9xf32, #tpu.memory_space<vmem>>, %arg3: memref<8x1xf32, #tpu.memory_space<vmem>>, %arg4: memref<16x72xf32, #tpu.memory_space<vmem>>, %arg5: memref<16x1xf32, #tpu.memory_space<vmem>>, %arg6: memref<16x128xf32, #tpu.memory_space<vmem>>, %arg7: memref<16x1xf32, #tpu.memory_space<vmem>>, %arg8: memref<24x128xf32, #tpu.memory_space<vmem>>, %arg9: memref<24x1xf32, #tpu.memory_space<vmem>>, %arg10: memref<24x216xf32, #tpu.memory_space<vmem>>, %arg11: memref<24x1xf32, #tpu.memory_space<vmem>>, %arg12: memref<1x1664xf32, #tpu.memory_space<vmem>>, %arg13: memref<1x1664xf32, #tpu.memory_space<vmem>>, %arg14: memref<1x1664xf32, #tpu.memory_space<vmem>>, %arg15: memref<1x1664xf32, #tpu.memory_space<vmem>>, %arg16: memref<1x1664xf32, #tpu.memory_space<vmem>>, %arg17: memref<24x1xf32, #tpu.memory_space<vmem>>, %arg18: memref<1x1xf32, #tpu.memory_space<vmem>>, %arg19: memref<1x1x1xf32, #tpu.memory_space<vmem>>) attributes {dimension_semantics = [#tpu.dimension_semantics<parallel>], iteration_bounds = array<i64: 2>, scalar_prefetch = 0 : i64, scratch_operands = 0 : i64, tpu.core_type = #tpu.core_type<tc>, window_params = [{transform_indices = @transform_0, window_bounds = array<i64: 1, 9, 1664>}, {pipeline_mode = #tpu.pipeline_mode<synchronous>, transform_indices = @transform_1, window_bounds = array<i64: 8, 9>}, {pipeline_mode = #tpu.pipeline_mode<synchronous>, transform_indices = @transform_2, window_bounds = array<i64: 8, 1>}, {pipeline_mode = #tpu.pipeline_mode<synchronous>, transform_indices = @transform_3, window_bounds = array<i64: 16, 72>}, {pipeline_mode = #tpu.pipeline_mode<synchronous>, transform_indices = @transform_4, window_bounds = array<i64: 16, 1>}, {pipeline_mode = #tpu.pipeline_mode<synchronous>, transform_indices = @transform_5, window_bounds = array<i64: 16, 128>}, {pipeline_mode = #tpu.pipeline_mode<synchronous>, transform_indices = @transform_6, window_bounds = array<i64: 16, 1>}, {pipeline_mode = #tpu.pipeline_mode<synchronous>, transform_indices = @transform_7, window_bounds = array<i64: 24, 128>}, {pipeline_mode = #tpu.pipeline_mode<synchronous>, transform_indices = @transform_8, window_bounds = array<i64: 24, 1>}, {pipeline_mode = #tpu.pipeline_mode<synchronous>, transform_indices = @transform_9, window_bounds = array<i64: 24, 216>}, {pipeline_mode = #tpu.pipeline_mode<synchronous>, transform_indices = @transform_10, window_bounds = array<i64: 24, 1>}, {pipeline_mode = #tpu.pipeline_mode<synchronous>, transform_indices = @transform_11, window_bounds = array<i64: 1, 1664>}, {pipeline_mode = #tpu.pipeline_mode<synchronous>, transform_indices = @transform_12, window_bounds = array<i64: 1, 1664>}, {pipeline_mode = #tpu.pipeline_mode<synchronous>, transform_indices = @transform_13, window_bounds = array<i64: 1, 1664>}, {pipeline_mode = #tpu.pipeline_mode<synchronous>, transform_indices = @transform_14, window_bounds = array<i64: 1, 1664>}, {pipeline_mode = #tpu.pipeline_mode<synchronous>, transform_indices = @transform_15, window_bounds = array<i64: 1, 1664>}, {pipeline_mode = #tpu.pipeline_mode<synchronous>, transform_indices = @transform_16, window_bounds = array<i64: 24, 1>}, {pipeline_mode = #tpu.pipeline_mode<synchronous>, transform_indices = @transform_17, window_bounds = array<i64: 1, 1>}, {transform_indices = @transform_18, window_bounds = array<i64: 1, 1, 1>}]} {
    %c0 = arith.constant 0 : index
    %c0_0 = arith.constant 0 : index
    %c0_1 = arith.constant 0 : index
    %0 = vector.load %arg1[%c0, %c0_0, %c0_1] : memref<1x9x1664xf32, #tpu.memory_space<vmem>>, vector<1x9x1664xf32>
    %1 = vector.shape_cast %0 : vector<1x9x1664xf32> to vector<9x1664xf32>
    %c0_2 = arith.constant 0 : index
    %c0_3 = arith.constant 0 : index
    %2 = vector.load %arg2[%c0_2, %c0_3] : memref<8x9xf32, #tpu.memory_space<vmem>>, vector<8x9xf32>
    %cst = arith.constant dense<0.000000e+00> : vector<8x1664xf32>
    %3 = tpu.matmul %2, %1, %cst {dimension_numbers = #tpu.dot_dimension_numbers<[1], [0], [0], [1], [0, 0, 1, 1], [], []>} : vector<8x9xf32>, vector<9x1664xf32>, vector<8x1664xf32> -> vector<8x1664xf32>
    %c0_4 = arith.constant 0 : index
    %c0_5 = arith.constant 0 : index
    %4 = vector.load %arg3[%c0_4, %c0_5] : memref<8x1xf32, #tpu.memory_space<vmem>>, vector<8x1xf32>
    %5 = vector.broadcast %4 : vector<8x1xf32> to vector<8x1664xf32>
    %6 = arith.addf %3, %5 : vector<8x1664xf32>
    %cst_6 = arith.constant 0.000000e+00 : f32
    %7 = vector.broadcast %cst_6 : f32 to vector<8x1664xf32>
    %8 = arith.maximumf %6, %7 : vector<8x1664xf32>
    %cst_7 = arith.constant 0.000000e+00 : f32
    %9 = vector.broadcast %cst_7 : f32 to vector<8x1xf32>
    %10 = tpu.concatenate %8, %9 in 1 : vector<8x1664xf32>, vector<8x1xf32> -> vector<8x1665xf32>
    %11 = vector.extract_strided_slice %10 {offsets = [0, 1], sizes = [8, 1664], strides = [1, 1]} : vector<8x1665xf32> to vector<8x1664xf32>
    %12 = arith.maximumf %8, %11 : vector<8x1664xf32>
    %c0_8 = arith.constant 0 : index
    %c0_9 = arith.constant 0 : index
    %13 = vector.load %arg12[%c0_8, %c0_9] : memref<1x1664xf32, #tpu.memory_space<vmem>>, vector<1x1664xf32>
    %14 = vector.broadcast %13 : vector<1x1664xf32> to vector<8x1664xf32>
    %15 = arith.mulf %12, %14 : vector<8x1664xf32>
    %cst_10 = arith.constant 0.000000e+00 : f32
    %16 = vector.broadcast %cst_10 : f32 to vector<8x16xf32>
    %17 = tpu.concatenate %15, %16 in 1 : vector<8x1664xf32>, vector<8x16xf32> -> vector<8x1680xf32>
    %18 = vector.extract_strided_slice %17 {offsets = [0, 2], sizes = [8, 1664], strides = [1, 1]} : vector<8x1680xf32> to vector<8x1664xf32>
    %19 = vector.extract_strided_slice %17 {offsets = [0, 4], sizes = [8, 1664], strides = [1, 1]} : vector<8x1680xf32> to vector<8x1664xf32>
    %20 = vector.extract_strided_slice %17 {offsets = [0, 6], sizes = [8, 1664], strides = [1, 1]} : vector<8x1680xf32> to vector<8x1664xf32>
    %21 = vector.extract_strided_slice %17 {offsets = [0, 8], sizes = [8, 1664], strides = [1, 1]} : vector<8x1680xf32> to vector<8x1664xf32>
    %22 = vector.extract_strided_slice %17 {offsets = [0, 10], sizes = [8, 1664], strides = [1, 1]} : vector<8x1680xf32> to vector<8x1664xf32>
    %23 = vector.extract_strided_slice %17 {offsets = [0, 12], sizes = [8, 1664], strides = [1, 1]} : vector<8x1680xf32> to vector<8x1664xf32>
    %24 = vector.extract_strided_slice %17 {offsets = [0, 14], sizes = [8, 1664], strides = [1, 1]} : vector<8x1680xf32> to vector<8x1664xf32>
    %25 = vector.extract_strided_slice %17 {offsets = [0, 16], sizes = [8, 1664], strides = [1, 1]} : vector<8x1680xf32> to vector<8x1664xf32>
    %26 = tpu.concatenate %15, %18, %19, %20, %21, %22, %23, %24, %25 in 0 : vector<8x1664xf32>, vector<8x1664xf32>, vector<8x1664xf32>, vector<8x1664xf32>, vector<8x1664xf32>, vector<8x1664xf32>, vector<8x1664xf32>, vector<8x1664xf32>, vector<8x1664xf32> -> vector<72x1664xf32>
    %c0_11 = arith.constant 0 : index
    %c0_12 = arith.constant 0 : index
    %27 = vector.load %arg4[%c0_11, %c0_12] : memref<16x72xf32, #tpu.memory_space<vmem>>, vector<16x72xf32>
    %cst_13 = arith.constant dense<0.000000e+00> : vector<16x1664xf32>
    %28 = tpu.matmul %27, %26, %cst_13 {dimension_numbers = #tpu.dot_dimension_numbers<[1], [0], [0], [1], [0, 0, 1, 1], [], []>} : vector<16x72xf32>, vector<72x1664xf32>, vector<16x1664xf32> -> vector<16x1664xf32>
    %c0_14 = arith.constant 0 : index
    %c0_15 = arith.constant 0 : index
    %29 = vector.load %arg5[%c0_14, %c0_15] : memref<16x1xf32, #tpu.memory_space<vmem>>, vector<16x1xf32>
    %30 = vector.broadcast %29 : vector<16x1xf32> to vector<16x1664xf32>
    %31 = arith.addf %28, %30 : vector<16x1664xf32>
    %cst_16 = arith.constant 0.000000e+00 : f32
    %32 = vector.broadcast %cst_16 : f32 to vector<16x1664xf32>
    %33 = arith.maximumf %31, %32 : vector<16x1664xf32>
    %cst_17 = arith.constant 0.000000e+00 : f32
    %34 = vector.broadcast %cst_17 : f32 to vector<16x2xf32>
    %35 = tpu.concatenate %33, %34 in 1 : vector<16x1664xf32>, vector<16x2xf32> -> vector<16x1666xf32>
    %36 = vector.extract_strided_slice %35 {offsets = [0, 2], sizes = [16, 1664], strides = [1, 1]} : vector<16x1666xf32> to vector<16x1664xf32>
    %37 = arith.maximumf %33, %36 : vector<16x1664xf32>
    %c0_18 = arith.constant 0 : index
    %c0_19 = arith.constant 0 : index
    %38 = vector.load %arg13[%c0_18, %c0_19] : memref<1x1664xf32, #tpu.memory_space<vmem>>, vector<1x1664xf32>
    %39 = vector.broadcast %38 : vector<1x1664xf32> to vector<16x1664xf32>
    %40 = arith.mulf %37, %39 : vector<16x1664xf32>
    %cst_20 = arith.constant 0.000000e+00 : f32
    %41 = vector.broadcast %cst_20 : f32 to vector<16x28xf32>
    %42 = tpu.concatenate %40, %41 in 1 : vector<16x1664xf32>, vector<16x28xf32> -> vector<16x1692xf32>
    %43 = vector.extract_strided_slice %42 {offsets = [0, 4], sizes = [16, 1664], strides = [1, 1]} : vector<16x1692xf32> to vector<16x1664xf32>
    %44 = vector.extract_strided_slice %42 {offsets = [0, 8], sizes = [16, 1664], strides = [1, 1]} : vector<16x1692xf32> to vector<16x1664xf32>
    %45 = vector.extract_strided_slice %42 {offsets = [0, 12], sizes = [16, 1664], strides = [1, 1]} : vector<16x1692xf32> to vector<16x1664xf32>
    %46 = vector.extract_strided_slice %42 {offsets = [0, 16], sizes = [16, 1664], strides = [1, 1]} : vector<16x1692xf32> to vector<16x1664xf32>
    %47 = vector.extract_strided_slice %42 {offsets = [0, 20], sizes = [16, 1664], strides = [1, 1]} : vector<16x1692xf32> to vector<16x1664xf32>
    %48 = vector.extract_strided_slice %42 {offsets = [0, 24], sizes = [16, 1664], strides = [1, 1]} : vector<16x1692xf32> to vector<16x1664xf32>
    %49 = vector.extract_strided_slice %42 {offsets = [0, 28], sizes = [16, 1664], strides = [1, 1]} : vector<16x1692xf32> to vector<16x1664xf32>
    %50 = tpu.concatenate %40, %43, %44, %45, %46, %47, %48, %49 in 0 : vector<16x1664xf32>, vector<16x1664xf32>, vector<16x1664xf32>, vector<16x1664xf32>, vector<16x1664xf32>, vector<16x1664xf32>, vector<16x1664xf32>, vector<16x1664xf32> -> vector<128x1664xf32>
    %c0_21 = arith.constant 0 : index
    %c0_22 = arith.constant 0 : index
    %51 = vector.load %arg6[%c0_21, %c0_22] : memref<16x128xf32, #tpu.memory_space<vmem>>, vector<16x128xf32>
    %cst_23 = arith.constant dense<0.000000e+00> : vector<16x1664xf32>
    %52 = tpu.matmul %51, %50, %cst_23 {dimension_numbers = #tpu.dot_dimension_numbers<[1], [0], [0], [1], [0, 0, 1, 1], [], []>} : vector<16x128xf32>, vector<128x1664xf32>, vector<16x1664xf32> -> vector<16x1664xf32>
    %c0_24 = arith.constant 0 : index
    %c0_25 = arith.constant 0 : index
    %53 = vector.load %arg7[%c0_24, %c0_25] : memref<16x1xf32, #tpu.memory_space<vmem>>, vector<16x1xf32>
    %54 = vector.broadcast %53 : vector<16x1xf32> to vector<16x1664xf32>
    %55 = arith.addf %52, %54 : vector<16x1664xf32>
    %cst_26 = arith.constant 0.000000e+00 : f32
    %56 = vector.broadcast %cst_26 : f32 to vector<16x1664xf32>
    %57 = arith.maximumf %55, %56 : vector<16x1664xf32>
    %cst_27 = arith.constant 0.000000e+00 : f32
    %58 = vector.broadcast %cst_27 : f32 to vector<16x4xf32>
    %59 = tpu.concatenate %57, %58 in 1 : vector<16x1664xf32>, vector<16x4xf32> -> vector<16x1668xf32>
    %60 = vector.extract_strided_slice %59 {offsets = [0, 4], sizes = [16, 1664], strides = [1, 1]} : vector<16x1668xf32> to vector<16x1664xf32>
    %61 = arith.maximumf %57, %60 : vector<16x1664xf32>
    %c0_28 = arith.constant 0 : index
    %c0_29 = arith.constant 0 : index
    %62 = vector.load %arg14[%c0_28, %c0_29] : memref<1x1664xf32, #tpu.memory_space<vmem>>, vector<1x1664xf32>
    %63 = vector.broadcast %62 : vector<1x1664xf32> to vector<16x1664xf32>
    %64 = arith.mulf %61, %63 : vector<16x1664xf32>
    %cst_30 = arith.constant 0.000000e+00 : f32
    %65 = vector.broadcast %cst_30 : f32 to vector<16x56xf32>
    %66 = tpu.concatenate %64, %65 in 1 : vector<16x1664xf32>, vector<16x56xf32> -> vector<16x1720xf32>
    %67 = vector.extract_strided_slice %66 {offsets = [0, 8], sizes = [16, 1664], strides = [1, 1]} : vector<16x1720xf32> to vector<16x1664xf32>
    %68 = vector.extract_strided_slice %66 {offsets = [0, 16], sizes = [16, 1664], strides = [1, 1]} : vector<16x1720xf32> to vector<16x1664xf32>
    %69 = vector.extract_strided_slice %66 {offsets = [0, 24], sizes = [16, 1664], strides = [1, 1]} : vector<16x1720xf32> to vector<16x1664xf32>
    %70 = vector.extract_strided_slice %66 {offsets = [0, 32], sizes = [16, 1664], strides = [1, 1]} : vector<16x1720xf32> to vector<16x1664xf32>
    %71 = vector.extract_strided_slice %66 {offsets = [0, 40], sizes = [16, 1664], strides = [1, 1]} : vector<16x1720xf32> to vector<16x1664xf32>
    %72 = vector.extract_strided_slice %66 {offsets = [0, 48], sizes = [16, 1664], strides = [1, 1]} : vector<16x1720xf32> to vector<16x1664xf32>
    %73 = vector.extract_strided_slice %66 {offsets = [0, 56], sizes = [16, 1664], strides = [1, 1]} : vector<16x1720xf32> to vector<16x1664xf32>
    %74 = tpu.concatenate %64, %67, %68, %69, %70, %71, %72, %73 in 0 : vector<16x1664xf32>, vector<16x1664xf32>, vector<16x1664xf32>, vector<16x1664xf32>, vector<16x1664xf32>, vector<16x1664xf32>, vector<16x1664xf32>, vector<16x1664xf32> -> vector<128x1664xf32>
    %c0_31 = arith.constant 0 : index
    %c0_32 = arith.constant 0 : index
    %75 = vector.load %arg8[%c0_31, %c0_32] : memref<24x128xf32, #tpu.memory_space<vmem>>, vector<24x128xf32>
    %cst_33 = arith.constant dense<0.000000e+00> : vector<24x1664xf32>
    %76 = tpu.matmul %75, %74, %cst_33 {dimension_numbers = #tpu.dot_dimension_numbers<[1], [0], [0], [1], [0, 0, 1, 1], [], []>} : vector<24x128xf32>, vector<128x1664xf32>, vector<24x1664xf32> -> vector<24x1664xf32>
    %c0_34 = arith.constant 0 : index
    %c0_35 = arith.constant 0 : index
    %77 = vector.load %arg9[%c0_34, %c0_35] : memref<24x1xf32, #tpu.memory_space<vmem>>, vector<24x1xf32>
    %78 = vector.broadcast %77 : vector<24x1xf32> to vector<24x1664xf32>
    %79 = arith.addf %76, %78 : vector<24x1664xf32>
    %cst_36 = arith.constant 0.000000e+00 : f32
    %80 = vector.broadcast %cst_36 : f32 to vector<24x1664xf32>
    %81 = arith.maximumf %79, %80 : vector<24x1664xf32>
    %cst_37 = arith.constant 0.000000e+00 : f32
    %82 = vector.broadcast %cst_37 : f32 to vector<24x16xf32>
    %83 = tpu.concatenate %81, %82 in 1 : vector<24x1664xf32>, vector<24x16xf32> -> vector<24x1680xf32>
    %84 = vector.extract_strided_slice %83 {offsets = [0, 8], sizes = [24, 1664], strides = [1, 1]} : vector<24x1680xf32> to vector<24x1664xf32>
    %85 = vector.extract_strided_slice %83 {offsets = [0, 16], sizes = [24, 1664], strides = [1, 1]} : vector<24x1680xf32> to vector<24x1664xf32>
    %86 = arith.maximumf %81, %84 : vector<24x1664xf32>
    %87 = arith.maximumf %86, %85 : vector<24x1664xf32>
    %c0_38 = arith.constant 0 : index
    %c0_39 = arith.constant 0 : index
    %88 = vector.load %arg15[%c0_38, %c0_39] : memref<1x1664xf32, #tpu.memory_space<vmem>>, vector<1x1664xf32>
    %89 = vector.broadcast %88 : vector<1x1664xf32> to vector<24x1664xf32>
    %90 = arith.mulf %87, %89 : vector<24x1664xf32>
    %cst_40 = arith.constant 0.000000e+00 : f32
    %91 = vector.broadcast %cst_40 : f32 to vector<24x192xf32>
    %92 = tpu.concatenate %90, %91 in 1 : vector<24x1664xf32>, vector<24x192xf32> -> vector<24x1856xf32>
    %93 = vector.extract_strided_slice %92 {offsets = [0, 24], sizes = [24, 1664], strides = [1, 1]} : vector<24x1856xf32> to vector<24x1664xf32>
    %94 = vector.extract_strided_slice %92 {offsets = [0, 48], sizes = [24, 1664], strides = [1, 1]} : vector<24x1856xf32> to vector<24x1664xf32>
    %95 = vector.extract_strided_slice %92 {offsets = [0, 72], sizes = [24, 1664], strides = [1, 1]} : vector<24x1856xf32> to vector<24x1664xf32>
    %96 = vector.extract_strided_slice %92 {offsets = [0, 96], sizes = [24, 1664], strides = [1, 1]} : vector<24x1856xf32> to vector<24x1664xf32>
    %97 = vector.extract_strided_slice %92 {offsets = [0, 120], sizes = [24, 1664], strides = [1, 1]} : vector<24x1856xf32> to vector<24x1664xf32>
    %98 = vector.extract_strided_slice %92 {offsets = [0, 144], sizes = [24, 1664], strides = [1, 1]} : vector<24x1856xf32> to vector<24x1664xf32>
    %99 = vector.extract_strided_slice %92 {offsets = [0, 168], sizes = [24, 1664], strides = [1, 1]} : vector<24x1856xf32> to vector<24x1664xf32>
    %100 = vector.extract_strided_slice %92 {offsets = [0, 192], sizes = [24, 1664], strides = [1, 1]} : vector<24x1856xf32> to vector<24x1664xf32>
    %101 = tpu.concatenate %90, %93, %94, %95, %96, %97, %98, %99, %100 in 0 : vector<24x1664xf32>, vector<24x1664xf32>, vector<24x1664xf32>, vector<24x1664xf32>, vector<24x1664xf32>, vector<24x1664xf32>, vector<24x1664xf32>, vector<24x1664xf32>, vector<24x1664xf32> -> vector<216x1664xf32>
    %c0_41 = arith.constant 0 : index
    %c0_42 = arith.constant 0 : index
    %102 = vector.load %arg10[%c0_41, %c0_42] : memref<24x216xf32, #tpu.memory_space<vmem>>, vector<24x216xf32>
    %cst_43 = arith.constant dense<0.000000e+00> : vector<24x1664xf32>
    %103 = tpu.matmul %102, %101, %cst_43 {dimension_numbers = #tpu.dot_dimension_numbers<[1], [0], [0], [1], [0, 0, 1, 1], [], []>} : vector<24x216xf32>, vector<216x1664xf32>, vector<24x1664xf32> -> vector<24x1664xf32>
    %c0_44 = arith.constant 0 : index
    %c0_45 = arith.constant 0 : index
    %104 = vector.load %arg11[%c0_44, %c0_45] : memref<24x1xf32, #tpu.memory_space<vmem>>, vector<24x1xf32>
    %105 = vector.broadcast %104 : vector<24x1xf32> to vector<24x1664xf32>
    %106 = arith.addf %103, %105 : vector<24x1664xf32>
    %cst_46 = arith.constant 0.000000e+00 : f32
    %107 = vector.broadcast %cst_46 : f32 to vector<24x1664xf32>
    %108 = arith.maximumf %106, %107 : vector<24x1664xf32>
    %c0_47 = arith.constant 0 : index
    %c0_48 = arith.constant 0 : index
    %109 = vector.load %arg16[%c0_47, %c0_48] : memref<1x1664xf32, #tpu.memory_space<vmem>>, vector<1x1664xf32>
    %110 = vector.broadcast %109 : vector<1x1664xf32> to vector<24x1664xf32>
    %111 = arith.mulf %108, %110 : vector<24x1664xf32>
    %cst_49 = arith.constant dense<0.000000e+00> : vector<24xf32>
    %112 = vector.multi_reduction <add>, %111, %cst_49 [1] : vector<24x1664xf32> to vector<24xf32>
    %113 = vector.shape_cast %112 : vector<24xf32> to vector<24x1xf32>
    %c0_50 = arith.constant 0 : index
    %c0_51 = arith.constant 0 : index
    %114 = vector.load %arg17[%c0_50, %c0_51] : memref<24x1xf32, #tpu.memory_space<vmem>>, vector<24x1xf32>
    %115 = arith.mulf %113, %114 : vector<24x1xf32>
    %cst_52 = arith.constant dense<0.000000e+00> : vector<1xf32>
    %116 = vector.multi_reduction <add>, %115, %cst_52 [0] : vector<24x1xf32> to vector<1xf32>
    %117 = vector.shape_cast %116 : vector<1xf32> to vector<1x1xf32>
    %c0_53 = arith.constant 0 : index
    %c0_54 = arith.constant 0 : index
    %118 = vector.load %arg18[%c0_53, %c0_54] : memref<1x1xf32, #tpu.memory_space<vmem>>, vector<1x1xf32>
    %119 = arith.addf %117, %118 : vector<1x1xf32>
    %cst_55 = arith.constant 5.000000e-01 : f32
    %120 = vector.broadcast %cst_55 : f32 to vector<1x1xf32>
    %121 = arith.mulf %120, %119 : vector<1x1xf32>
    %122 = math.tanh %121 : vector<1x1xf32>
    %cst_56 = arith.constant 1.000000e+00 : f32
    %123 = vector.broadcast %cst_56 : f32 to vector<1x1xf32>
    %124 = arith.addf %122, %123 : vector<1x1xf32>
    %cst_57 = arith.constant 5.000000e-01 : f32
    %125 = vector.broadcast %cst_57 : f32 to vector<1x1xf32>
    %126 = arith.mulf %125, %124 : vector<1x1xf32>
    %c0_58 = arith.constant 0 : index
    %c0_59 = arith.constant 0 : index
    %c0_60 = arith.constant 0 : index
    %127 = vector.load %arg19[%c0_58, %c0_59, %c0_60] : memref<1x1x1xf32, #tpu.memory_space<vmem>>, vector<1x1x1xf32>
    %128 = vector.shape_cast %127 : vector<1x1x1xf32> to vector<1x1xf32>
    %129 = vector.shape_cast %126 : vector<1x1xf32> to vector<1x1x1xf32>
    tpu.vector_store %arg19[%c0_58, %c0_59, %c0_60], %129 {strides = array<i32>} : memref<1x1x1xf32, #tpu.memory_space<vmem>>, vector<1x1x1xf32>,
    return
  }
  func.func @transform_0(%arg0: i32) -> (i32, i32, i32) {
    %c0_i32 = arith.constant 0 : i32
    %c0_i32_0 = arith.constant 0 : i32
    %c0_i32_1 = arith.constant 0 : i32
    return %arg0, %c0_i32, %c0_i32_0 : i32, i32, i32
  }
  func.func @transform_1(%arg0: i32) -> (i32, i32) {
    %c0_i32 = arith.constant 0 : i32
    %c0_i32_0 = arith.constant 0 : i32
    %c0_i32_1 = arith.constant 0 : i32
    return %c0_i32, %c0_i32_0 : i32, i32
  }
  func.func @transform_2(%arg0: i32) -> (i32, i32) {
    %c0_i32 = arith.constant 0 : i32
    %c0_i32_0 = arith.constant 0 : i32
    %c0_i32_1 = arith.constant 0 : i32
    return %c0_i32, %c0_i32_0 : i32, i32
  }
  func.func @transform_3(%arg0: i32) -> (i32, i32) {
    %c0_i32 = arith.constant 0 : i32
    %c0_i32_0 = arith.constant 0 : i32
    %c0_i32_1 = arith.constant 0 : i32
    return %c0_i32, %c0_i32_0 : i32, i32
  }
  func.func @transform_4(%arg0: i32) -> (i32, i32) {
    %c0_i32 = arith.constant 0 : i32
    %c0_i32_0 = arith.constant 0 : i32
    %c0_i32_1 = arith.constant 0 : i32
    return %c0_i32, %c0_i32_0 : i32, i32
  }
  func.func @transform_5(%arg0: i32) -> (i32, i32) {
    %c0_i32 = arith.constant 0 : i32
    %c0_i32_0 = arith.constant 0 : i32
    %c0_i32_1 = arith.constant 0 : i32
    return %c0_i32, %c0_i32_0 : i32, i32
  }
  func.func @transform_6(%arg0: i32) -> (i32, i32) {
    %c0_i32 = arith.constant 0 : i32
    %c0_i32_0 = arith.constant 0 : i32
    %c0_i32_1 = arith.constant 0 : i32
    return %c0_i32, %c0_i32_0 : i32, i32
  }
  func.func @transform_7(%arg0: i32) -> (i32, i32) {
    %c0_i32 = arith.constant 0 : i32
    %c0_i32_0 = arith.constant 0 : i32
    %c0_i32_1 = arith.constant 0 : i32
    return %c0_i32, %c0_i32_0 : i32, i32
  }
  func.func @transform_8(%arg0: i32) -> (i32, i32) {
    %c0_i32 = arith.constant 0 : i32
    %c0_i32_0 = arith.constant 0 : i32
    %c0_i32_1 = arith.constant 0 : i32
    return %c0_i32, %c0_i32_0 : i32, i32
  }
  func.func @transform_9(%arg0: i32) -> (i32, i32) {
    %c0_i32 = arith.constant 0 : i32
    %c0_i32_0 = arith.constant 0 : i32
    %c0_i32_1 = arith.constant 0 : i32
    return %c0_i32, %c0_i32_0 : i32, i32
  }
  func.func @transform_10(%arg0: i32) -> (i32, i32) {
    %c0_i32 = arith.constant 0 : i32
    %c0_i32_0 = arith.constant 0 : i32
    %c0_i32_1 = arith.constant 0 : i32
    return %c0_i32, %c0_i32_0 : i32, i32
  }
  func.func @transform_11(%arg0: i32) -> (i32, i32) {
    %c0_i32 = arith.constant 0 : i32
    %c0_i32_0 = arith.constant 0 : i32
    %c0_i32_1 = arith.constant 0 : i32
    return %c0_i32, %c0_i32_0 : i32, i32
  }
  func.func @transform_12(%arg0: i32) -> (i32, i32) {
    %c0_i32 = arith.constant 0 : i32
    %c0_i32_0 = arith.constant 0 : i32
    %c0_i32_1 = arith.constant 0 : i32
    return %c0_i32, %c0_i32_0 : i32, i32
  }
  func.func @transform_13(%arg0: i32) -> (i32, i32) {
    %c0_i32 = arith.constant 0 : i32
    %c0_i32_0 = arith.constant 0 : i32
    %c0_i32_1 = arith.constant 0 : i32
    return %c0_i32, %c0_i32_0 : i32, i32
  }
  func.func @transform_14(%arg0: i32) -> (i32, i32) {
    %c0_i32 = arith.constant 0 : i32
    %c0_i32_0 = arith.constant 0 : i32
    %c0_i32_1 = arith.constant 0 : i32
    return %c0_i32, %c0_i32_0 : i32, i32
  }
  func.func @transform_15(%arg0: i32) -> (i32, i32) {
    %c0_i32 = arith.constant 0 : i32
    %c0_i32_0 = arith.constant 0 : i32
    %c0_i32_1 = arith.constant 0 : i32
    return %c0_i32, %c0_i32_0 : i32, i32
  }
  func.func @transform_16(%arg0: i32) -> (i32, i32) {
    %c0_i32 = arith.constant 0 : i32
    %c0_i32_0 = arith.constant 0 : i32
    %c0_i32_1 = arith.constant 0 : i32
    return %c0_i32, %c0_i32_0 : i32, i32
  }
  func.func @transform_17(%arg0: i32) -> (i32, i32) {
    %c0_i32 = arith.constant 0 : i32
    %c0_i32_0 = arith.constant 0 : i32
    %c0_i32_1 = arith.constant 0 : i32
    return %c0_i32, %c0_i32_0 : i32, i32
  }
  func.func @transform_18(%arg0: i32) -> (i32, i32, i32) {
    %c0_i32 = arith.constant 0 : i32
    %c0_i32_0 = arith.constant 0 : i32
    %c0_i32_1 = arith.constant 0 : i32
    return %arg0, %c0_i32, %c0_i32_0 : i32, i32, i32
  }
}

</mosaic_0001>

<bundles_post_ra>
// kernel: tpu_custom_call.1
= control target key start
LH: loop header
LB: loop body
LE: loop exit
PB: predicated region body
PF: predicated region fallthrough
CT: control target
= control target key end

     0   :  { %s11479_s29 = smov 0   ;;  %s19335_s0 = inlined_call_operand.vmem [shape: f32[2,9,1664], index: 0, kind: input, shape index: {}]   ;;  %s19336_s1 = inlined_call_operand.vmem [shape: f32[8,9], index: 1, kind: input, shape index: {}]   ;;  %s19337_s2 = inlined_call_operand.vmem [shape: f32[8,1], index: 2, kind: input, shape index: {}]   ;;  %s19338_s3 = inlined_call_operand.vmem [shape: f32[16,72], index: 3, kind: input, shape index: {}]   ;;  %s19339_s4 = inlined_call_operand.vmem [shape: f32[16,1], index: 4, kind: input, shape index: {}]   ;;  %s19340_s5 = inlined_call_operand.vmem [shape: f32[16,128], index: 5, kind: input, shape index: {}]   ;;  %s19341_s6 = inlined_call_operand.vmem [shape: f32[16,1], index: 6, kind: input, shape index: {}]   ;;  %s19342_s7 = inlined_call_operand.vmem [shape: f32[24,128], index: 7, kind: input, shape index: {}]   ;;  %s19343_s8 = inlined_call_operand.vmem [shape: f32[24,1], index: 8, kind: input, shape index: {}]   ;;  %s19344_s9 = inlined_call_operand.vmem [shape: f32[24,216], index: 9, kind: input, shape index: {}]   ;;  %s19345_s10 = inlined_call_operand.vmem [shape: f32[24,1], index: 10, kind: input, shape index: {}]   ;;  %s19346_s11 = inlined_call_operand.vmem [shape: f32[1,1664], index: 11, kind: input, shape index: {}]   ;;  %s19347_s12 = inlined_call_operand.vmem [shape: f32[1,1664], index: 12, kind: input, shape index: {}]   ;;  %s19348_s13 = inlined_call_operand.vmem [shape: f32[1,1664], index: 13, kind: input, shape index: {}]   ;;  %s19349_s14 = inlined_call_operand.vmem [shape: f32[1,1664], index: 14, kind: input, shape index: {}]   ;;  %s19350_s15 = inlined_call_operand.vmem [shape: f32[1,1664], index: 15, kind: input, shape index: {}]   ;;  %s19351_s16 = inlined_call_operand.vmem [shape: f32[24,1], index: 16, kind: input, shape index: {}]   ;;  %s19352_s17 = inlined_call_operand.<no memory space> [shape: f32[1,1], index: 17, kind: input, shape index: {}]   ;;  %s19353_s18 = inlined_call_operand.vmem [shape: f32[2,1,1], index: 18, kind: output, shape index: {}]  }
   0x1   :  { %19969 = sst [smem:[#allocation168_spill]] %s19335_s0  ;;  %v23_v0 = vstv %s19352_s17 }
   0x2   :  { %19970 = sst [smem:[#allocation169_spill]] %s19336_s1  ;;  %24 = vst [vmem:[#allocation2] sm:$0x1] %v23_v0 }
   0x3   :  { %19971 = sst [smem:[#allocation170_spill]] %s19337_s2 }
   0x4 LB: > { %s8282_s30 = sadd.s32 4294967295, %s11354_s29   ;;  %p8286_p0 = scmp.ge.s32.totalorder %s11354_s29, 1  ;;  %s11354_s29 = sphi %s11479_s29, %s30_s29  }
   0x5   : > { %p514_p1 = scmp.lt.s32.totalorder %s11354_s29, 3 }
   0x7   : > { %p515_p2 = pnand %p8286_p0, %p514_p1 }
   0x9   : > { %518 = sbr.rel (%p515_p2) target bundleno = 3264 (0xcc0), region = 92 }
  0x10   : > { %p566_p3 = scmp.lt.s32.totalorder %s8282_s30, 1  ;;  %v19356_v1 = vmov 0.0   ;;  %s19972_s19 = sld [smem:[#allocation170_spill]]  ;;  %v11357_v3 = vmov 0   ;;  %vm611_vm0 = vcmask 1040384   ;;  %vm11358_vm1 = vmmov 1  }
  0x11   : > { %715 = vmatprep.mubr.f32.mxu0 %v19356_v1  ;;  %786 = vmatprep.mubr.f32.mxu1 %v19356_v1  ;;  %s19973_s22 = sld [smem:[#allocation168_spill]]  ;;  %vm11500_vm2 = vmpackc.low %vm611_vm0, %vm11358_vm1  ;;  %s19976_s25 = sld [smem:[#allocation169_spill]]  ;;  %vm607_vm3 = vcmask 72704   ;;  %v19354_v45 = vmov 0.0|0.0   ;;  %vm11360_vm4 = vmmov 0   ;;  %vm1202_vm5 = vcmask 1039360  }
  0x12   : > { %s21371_s30 = smov (!%p566_p3, %s8282_s30), 1  ;;  %9477 = vset.pattern.permute.xlu0 %v11357_v3  ;;  %9723 = vset.pattern.permute.xlu1 %v11357_v3  ;;  %s11361_s26 = smov 127   ;;  %vm1365_vm6 = vcmask 1031168   ;;  %vm1475_vm7 = vcmask 998400   ;;  %vm1420_vm8 = vcmask 1014784   ;;  %vm1530_vm9 = vcmask 982016  }
  0x13   : > { %s9443_s1 = smul.u32 208, %s21371_s30  ;;  %s11362_s17 = smov 124   ;;  %vm1585_vm10 = vcmask 965632   ;;  %vm1640_vm11 = vcmask 949248   ;;  %vm1695_vm12 = vcmask 932864   ;;  %vm1750_vm13 = vcmask 916480  }
  0x14   : > { %s11363_s0 = smov 126   ;;  %s11366_s20 = smov 116   ;;  %vm1791_vm14 = vcmask 588800   ;;  %vm3215_vm15 = vcmask 850944   ;;  %vm3108_vm0 = vcmask 883712   ;;  %vm3322_vm1 = vcmask 818176  }
  0x15   : > { %s11367_s21 = smov 118   ;;  %s11372_s27 = smov 108  }
  0x16   : > { %v601_v2 = vld [vmem:[%s19972_s19] sm:$0xff]  ;;  %s11364_s19 = smov 120   ;;  %s11373_s24 = smov 88  }
  0x17   : > { %604 = vperm.xlu0 %9477, %v601_v2   ;;  %s11498_s2 = scalar_lea.vmem %s19973_s22, %s9443_s1  ;;  %v600_v16 = vld [vmem:[%s19976_s25] sm:$0xff]  ;;  %s11365_s1 = smov 122  }
  0x18   : > { %v575_v5 = vld [vmem:[%s11498_s2 + $0x8] sm:$0xff]  ;;  %v588_v6 = vld [vmem:[%s11498_s2 + $0x70] sm:$0x1]  ;;  %v577_v7 = vld [vmem:[%s11498_s2 + $0x18] sm:$0xff]  ;;  %s11368_s22 = smov 114   ;;  %s11374_s25 = smov 80  }
  0x19   : > { %v8500_v8 = vpack.c.bf16 %v588_v6, %v575_v5  ;;  %v590_v9 = vld [vmem:[%s11498_s2 + $0x80] sm:$0x1]  ;;  %v587_v11 = vld [vmem:[%s11498_s2 + $0x68] sm:$0x1]  ;;  %v576_v14 = vld [vmem:[%s11498_s2 + $0x10] sm:$0xff]  ;;  %s11375_s28 = smov 72  }
  0x1a   : > { %v574_v10 = vld [vmem:[%s11498_s2] sm:$0xff]  ;;  %v8506_v12 = vpack.c.bf16 %v590_v9, %v577_v7  ;;  %v589_v15 = vld [vmem:[%s11498_s2 + $0x78] sm:$0x1]  ;;  %v579_v17 = vld [vmem:[%s11498_s2 + $0x28] sm:$0xff]  ;;  %s11378_s23 = smov 56  }
  0x1b   : > { %v8503_v13 = vpack.c.bf16 %v587_v11, %v574_v10  ;;  %8502 = vmatprep.subr.msk.bf16.mxu0 %vm11500_vm2, %v8500_v8  ;;  %v8509_v18 = vpack.c.bf16 %v589_v15, %v576_v14  ;;  %v592_v19 = vld [vmem:[%s11498_s2 + $0x90] sm:$0x1]  ;;  %v581_v20 = vld [vmem:[%s11498_s2 + $0x38] sm:$0xff]  ;;  %v594_v21 = vld [vmem:[%s11498_s2 + $0xa0] sm:$0x1] }
  0x1c   : > { %8508 = vmatprep.subr.msk.bf16.mxu1 %vm11500_vm2, %v8506_v12  ;;  %v8512_v22 = vpack.c.bf16 %v592_v19, %v579_v17  ;;  %v8518_v23 = vpack.c.bf16 %v594_v21, %v581_v20  ;;  %v578_v24 = vld [vmem:[%s11498_s2 + $0x20] sm:$0xff]  ;;  %v591_v25 = vld [vmem:[%s11498_s2 + $0x88] sm:$0x1]  ;;  %v580_v26 = vld [vmem:[%s11498_s2 + $0x30] sm:$0xff] }
  0x1d   : > { %8505 = vmatpush1.bf16.msk.msra.mxu0 %vm11500_vm2, %v8503_v13  ;;  %8511 = vmatpush1.bf16.msk.msra.mxu1 %vm11500_vm2, %v8509_v18  ;;  %v8515_v27 = vpack.c.bf16 %v591_v25, %v578_v24  ;;  %v593_v28 = vld [vmem:[%s11498_s2 + $0x98] sm:$0x1]  ;;  %v583_v29 = vld [vmem:[%s11498_s2 + $0x48] sm:$0xff]  ;;  %v596_v30 = vld [vmem:[%s11498_s2 + $0xb0] sm:$0x1]  ;;  %v1246_v24 = vlaneseq }
  0x1e   : > { %8514 = vmatprep.subr.msk.bf16.mxu0 %vm11500_vm2, %v8512_v22  ;;  %8520 = vmatprep.subr.msk.bf16.mxu1 %vm11500_vm2, %v8518_v23  ;;  %v8521_v31 = vpack.c.bf16 %v593_v28, %v580_v26  ;;  %v8524_v32 = vpack.c.bf16 %v596_v30, %v583_v29  ;;  %v585_v33 = vld [vmem:[%s11498_s2 + $0x58] sm:$0xff]  ;;  %v598_v34 = vld [vmem:[%s11498_s2 + $0xc0] sm:$0x1]  ;;  %v595_v37 = vld [vmem:[%s11498_s2 + $0xa8] sm:$0x1] }
  0x1f   : > { %v582_v35 = vld [vmem:[%s11498_s2 + $0x40] sm:$0xff]  ;;  %v8530_v36 = vpack.c.bf16 %v598_v34, %v585_v33  ;;  %v584_v38 = vld [vmem:[%s11498_s2 + $0x50] sm:$0xff]  ;;  %v597_v39 = vld [vmem:[%s11498_s2 + $0xb8] sm:$0x1]  ;;  %v11651_v25 = vshrl.u32 %v1246_v24, 7 }
  0x20   : > { %8290 = vmatmul.mubr.msk.f32.vlgmr.msra.gmra.mrb[0].mxu0 %vm607_vm3, %v600_v16  ;;  %8293 = vmatmul.mubr.msk.f32.vlgmr.msra.gmra.mrb[0].mxu1 %vm607_vm3, %v600_v16  ;;  %v8527_v40 = vpack.c.bf16 %v595_v37, %v582_v35  ;;  %v8533_v41 = vpack.c.bf16 %v597_v39, %v584_v38  ;;  %v586_v42 = vld [vmem:[%s11498_s2 + $0x60] sm:$0xff]  ;;  %v599_v43 = vld [vmem:[%s11498_s2 + $0xc8] sm:$0x1]  ;;  %s11369_s2 = smov 112  }
  0x21   : > { %8517 = vmatpush1.bf16.msk.msra.mxu0 %vm11500_vm2, %v8515_v27  ;;  %8523 = vmatpush1.bf16.msk.msra.mxu1 %vm11500_vm2, %v8521_v31  ;;  %v8537_v44 = vpack.c.bf16 %v599_v43, %v586_v42  ;;  %v11654_v27 = vsub.s32 0, %v11651_v25  ;;  %v11657_v29 = vsub.s32 1, %v11651_v25  ;;  %v11662_v30 = vld [vmem:[%s19346_s11] sm:$0xff]  ;;  %v11675_v42 = vsub.s32 2, %v11651_v25 }
  0x22   : > { %857 = vmatprep.mubr.f32.mxu0 %v19356_v1  ;;  %928 = vmatprep.mubr.f32.mxu1 %v19356_v1  ;;  %v11678_v43 = vsub.s32 3, %v11651_v25  ;;  %v11748_v24 = vsub.s32 6, %v11651_v25 }
  0x23   : > { %8526 = vmatprep.subr.msk.bf16.mxu0 %vm11500_vm2, %v8524_v32  ;;  %8532 = vmatprep.subr.msk.bf16.mxu1 %vm11500_vm2, %v8530_v36  ;;  %19977 = vst [vmem:[#allocation3_spill] sm:$0xff] %v11654_v27  ;;  %19978 = vst [vmem:[#allocation4_spill] sm:$0xff] %v11657_v29  ;;  %v1249_v32 = vrot.slane %v11662_v30, %v11654_v27  ;;  %v1253_v34 = vrot.slane %v11662_v30, %v11657_v29 }
  0x24   : > { %8296 = vmatmul.mubr.msk.f32.vlgmr.msra.gmra.mrb[2].mxu0 %vm607_vm3, %v600_v16  ;;  %8299 = vmatmul.mubr.msk.f32.vlgmr.msra.gmra.mrb[2].mxu1 %vm607_vm3, %v600_v16  ;;  %19979 = vst [vmem:[#allocation5_spill] sm:$0xff] %v11675_v42  ;;  %19980 = vst [vmem:[#allocation6_spill] sm:$0xff] %v11678_v43 }
  0x25   : > { %8529 = vmatpush1.bf16.msk.msra.mxu0 %vm11500_vm2, %v8527_v40  ;;  %8535 = vmatpush1.bf16.msk.msra.mxu1 %vm11500_vm2, %v8533_v41  ;;  %19983 = vst [vmem:[#allocation9_spill] sm:$0xff] %v11748_v24 }
  0x26   : > { %999 = vmatprep.mubr.f32.mxu0 %v19356_v1  ;;  %1070 = vmatprep.mubr.f32.mxu1 %v19356_v1 }
  0x27   : > { %8536 = vmatprep.subr.bf16.mxu0 %v19354_v45 }
  0x28   : > { %8302 = vmatmul.mubr.msk.f32.vlgmr.msra.gmra.mrb[4].mxu0 %vm607_vm3, %v600_v16  ;;  %8305 = vmatmul.mubr.msk.f32.vlgmr.msra.gmra.mrb[4].mxu1 %vm607_vm3, %v600_v16 }
  0x29   : > { %8539 = vmatpush3.bf16.msk.msra.mxu0 %vm11500_vm2, %v8537_v44  ;;  %8400 = vmatprep.mubr.msk.f32.mxu0 %vm11360_vm4, %v19356_v1  ;;  %vm4809_vm2 = vcmask 654336  }
  0x2a   : > { %1862 = vmatprep.mubr.f32.mxu1 %v19356_v1 }
  0x2c   : > { %8401 = vmatmul.mubr.msk.f32.vlgmr.msra.gmra.mrb[6].mxu0 %vm607_vm3, %v600_v16  ;;  %vm4702_vm3 = vcmask 719872  }
  0x2d   : > { %2093 = vmatprep.mubr.f32.mxu0 %v19356_v1 }
  0x96   : > { %v605_v46 = vpop.permute.xlu0 %604 }
  0xf3   : > { %v717_v47 = vpop.f32.mrb[0].mxu0  ;;  %v788_v49 = vpop.f32.mrb[0].mxu1 }
  0xf4   : > { %v11575_v48 = vadd.f32 %v717_v47, %v605_v46  ;;  %v719_v50 = vpop.f32.mrb[1].mxu0  ;;  %v790_v52 = vpop.f32.mrb[1].mxu1  ;;  %v11582_v55 = vadd.f32 %v788_v49, %v605_v46  ;;  %v1261_v49 = vrot.slane %v11662_v30, %v11678_v43 }
  0xf5   : > { %v11577_v51 = vadd.f32 %v719_v50, %v605_v46  ;;  %v11580_v54 = vadd.f32 %v790_v52, %v605_v46 }
  0xf6   : > { %v1147_v53 = vmax.f32 %v11575_v48, 0.0  ;;  %v1149_v63 = vmax.f32 %v11582_v55, 0.0  ;;  %v1257_v48 = vrot.slane %v11662_v30, %v11675_v42 }
  0xf7   : > { %v1148_v56 = vmax.f32 %v11577_v51, 0.0  ;;  %v859_v57 = vpop.f32.mrb[2].mxu0  ;;  %v930_v58 = vpop.f32.mrb[2].mxu1  ;;  %v1150_v61 = vmax.f32 %v11580_v54, 0.0 }
  0xf8   : > { %v861_v59 = vpop.f32.mrb[3].mxu0  ;;  %1174 = vrot.lane.b32.xlu0 %v1147_v53, %s11361_s26  ;;  %v932_v60 = vpop.f32.mrb[3].mxu1  ;;  %v11591_v0 = vadd.f32 %v859_v57, %v605_v46  ;;  %v11601_v8 = vadd.f32 %v930_v58, %v605_v46  ;;  %v11711_v58 = vsub.s32 5, %v11651_v25 }
  0xf9   : > { %1176 = vrot.lane.b32.xlu1 %v1148_v56, %s11361_s26  ;;  %v11588_v62 = vadd.f32 %v861_v59, %v605_v46  ;;  %v11609_v11 = vadd.f32 %v932_v60, %v605_v46  ;;  %v11715_v60 = vsub.s32 4, %v11651_v25 }
  0xfa   : > { %v1151_v7 = vmax.f32 %v11591_v0, 0.0  ;;  %v1153_v12 = vmax.f32 %v11601_v8, 0.0  ;;  %19981 = vst [vmem:[#allocation7_spill] sm:$0xff] %v11711_v58  ;;  %v1243_v8 = vld [vmem:[%s19346_s11 + $0x8] sm:$0x1f] }
  0xfb   : > { %v1001_v2 = vpop.f32.mrb[4].mxu0  ;;  %v1072_v3 = vpop.f32.mrb[4].mxu1  ;;  %v1152_v6 = vmax.f32 %v11588_v62, 0.0  ;;  %v1154_v14 = vmax.f32 %v11609_v11, 0.0  ;;  %19982 = vst [vmem:[#allocation8_spill] sm:$0xff] %v11715_v60 }
  0xfc   : > { %v1003_v4 = vpop.f32.mrb[5].mxu0  ;;  %1180 = vrot.lane.b32.xlu0 %v1150_v61, %s11361_s26  ;;  %v1074_v5 = vpop.f32.mrb[5].mxu1  ;;  %v11612_v13 = vadd.f32 %v1001_v2, %v605_v46  ;;  %v11623_v17 = vadd.f32 %v1072_v3, %v605_v46  ;;  %v1265_v3 = vrot.slane %v11662_v30, %v11715_v60 }
  0xfd   : > { %1178 = vrot.lane.b32.xlu1 %v1149_v63, %s11361_s26  ;;  %v11620_v15 = vadd.f32 %v1003_v4, %v605_v46  ;;  %v11632_v19 = vadd.f32 %v1074_v5, %v605_v46 }
  0xfe   : > { %v1155_v16 = vmax.f32 %v11612_v13, 0.0  ;;  %v1157_v20 = vmax.f32 %v11623_v17, 0.0 }
  0xff   : > { %v1143_v9 = vpop.f32.mrb[6].mxu0  ;;  %v1156_v18 = vmax.f32 %v11620_v15, 0.0  ;;  %v1158_v22 = vmax.f32 %v11632_v19, 0.0 }
 0x100   : > { %1184 = vrot.lane.b32.xlu0 %v1152_v6, %s11361_s26  ;;  %v8402_v10 = vpop.f32.mrb[7].mxu0  ;;  %v11635_v21 = vadd.f32 %v1143_v9, %v605_v46 }
 0x101   : > { %1182 = vrot.lane.b32.xlu1 %v1151_v7, %s11361_s26 }
 0x102   : > { %v1159_v23 = vmax.f32 %v11635_v21, 0.0 }
 0x104   : > { %1200 = vrot.lane.b32.xlu0 %v19356_v1, %s11361_s26 }
 0x105   : > { %1186 = vrot.lane.b32.xlu1 %v1153_v12, %s11361_s26 }
 0x108   : > { %1188 = vrot.lane.b32.xlu0 %v1154_v14, %s11361_s26 }
 0x109   : > { %1190 = vrot.lane.b32.xlu1 %v1155_v16, %s11361_s26 }
 0x10c   : > { %1192 = vrot.lane.b32.xlu0 %v1156_v18, %s11361_s26 }
 0x10d   : > { %1194 = vrot.lane.b32.xlu1 %v1157_v20, %s11361_s26 }
 0x110   : > { %1196 = vrot.lane.b32.xlu0 %v1158_v22, %s11361_s26 }
 0x111   : > { %1198 = vrot.lane.b32.xlu1 %v1159_v23, %s11361_s26  ;;  %s11371_s26 = smov 104  }
 0x16a   : > { %v1175_v26 = vpop.permute.xlu0 %1174 }
 0x16b   : > { %v1177_v28 = vpop.permute.xlu1 %1176 }
 0x16c   : > { %v1203_v31 = vsel %vm1202_vm5, %v1175_v26, %v1177_v28  ;;  %v11751_v26 = vsub.s32 7, %v11651_v25 }
 0x16d   : > { %v1229_v33 = vmax.f32 %v1147_v53, %v1203_v31 }
 0x16e   : > { %v1181_v39 = vpop.permute.xlu0 %1180  ;;  %19984 = vst [vmem:[#allocation10_spill] sm:$0xff] %v11751_v26 }
 0x16f   : > { %v1179_v35 = vpop.permute.xlu1 %1178  ;;  %v11670_v38 = vmul.f32 %v1249_v32, %v1229_v33  ;;  %v1273_v32 = vrot.slane %v11662_v30, %v11748_v24  ;;  %v1277_v33 = vrot.slane %v11662_v30, %v11751_v26 }
 0x170   : > { %v1204_v36 = vsel %vm1202_vm5, %v1177_v28, %v1179_v35  ;;  %v1205_v46 = vsel %vm1202_vm5, %v1179_v35, %v1181_v39 }
 0x171   : > { %v1230_v37 = vmax.f32 %v1148_v56, %v1204_v36  ;;  %v1231_v50 = vmax.f32 %v1149_v63, %v1205_v46  ;;  %v1269_v63 = vrot.slane %v11662_v30, %v11711_v58  ;;  %v1281_v30 = vrot.slane %v1243_v8, %v11654_v27 }
 0x172   : > { %v1185_v57 = vpop.permute.xlu0 %1184 }
 0x173   : > { %v11672_v40 = vmul.f32 %v1253_v34, %v1230_v37  ;;  %v1183_v41 = vpop.permute.xlu1 %1182  ;;  %v11696_v52 = vmul.f32 %v1257_v48, %v1231_v50 }
 0x174   : > { %v1206_v47 = vsel %vm1202_vm5, %v1181_v39, %v1183_v41 }
 0x175   : > { %v9483_v44 = vpack.i.bf16 %v11672_v40, %v11670_v38  ;;  %v1232_v51 = vmax.f32 %v1150_v61, %v1206_v47  ;;  %v9508_v55 = vpack.i.bf16 %v11696_v52, %v11672_v40  ;;  %v1207_v61 = vsel %vm1202_vm5, %v1183_v41, %v1185_v57 }
 0x176   : > { %v1233_v4 = vmax.f32 %v1151_v7, %v1207_v61  ;;  %v1201_v62 = vpop.permute.xlu0 %1200  ;;  %v1285_v41 = vrot.slane %v1243_v8, %v11657_v29 }
 0x177   : > { %9484 = vrot.lane.b32.xlu0 %v9483_v44, %s11362_s17  ;;  %9479 = vrot.lane.b32.xlu1 %v9483_v44, %s11363_s0  ;;  %v11698_v53 = vmul.f32 %v1261_v49, %v1232_v51  ;;  %v1187_v56 = vpop.permute.xlu1 %1186  ;;  %v1289_v51 = vrot.slane %v1243_v8, %v11675_v42 }
 0x178   : > { %v1208_v59 = vsel %vm1202_vm5, %v1185_v57, %v1187_v56  ;;  %v11735_v10 = vmul.f32 %v1265_v3, %v1233_v4  ;;  %v1779_v3 = vld [vmem:[%s19339_s4] sm:$0xff] }
 0x179   : > { %v9518_v54 = vpack.i.bf16 %v11698_v53, %v11696_v52  ;;  %v1234_v2 = vmax.f32 %v1152_v6, %v1208_v59  ;;  %v9543_v9 = vpack.i.bf16 %v11698_v53, %v11670_v38 }
 0x17a   : > { %v1189_v6 = vpop.permute.xlu0 %1188 }
 0x17b   : > { %9494 = vrot.lane.b32.xlu0 %v9483_v44, %s11364_s19  ;;  %9489 = vrot.lane.b32.xlu1 %v9483_v44, %s11365_s1  ;;  %v11731_v5 = vmul.f32 %v1269_v63, %v1234_v2  ;;  %v1191_v7 = vpop.permute.xlu1 %1190  ;;  %v1209_v28 = vsel %vm1202_vm5, %v1187_v56, %v1189_v6  ;;  %v1297_v56 = vrot.slane %v1243_v8, %v11715_v60 }
 0x17c   : > { %v1210_v31 = vsel %vm1202_vm5, %v1189_v6, %v1191_v7  ;;  %v1235_v34 = vmax.f32 %v1153_v12, %v1209_v28 }
 0x17d   : > { %v9548_v0 = vpack.i.bf16 %v11731_v5, %v11735_v10  ;;  %v1236_v25 = vmax.f32 %v1154_v14, %v1210_v31 }
 0x17e   : > { %v11767_v35 = vmul.f32 %v1273_v32, %v1235_v34  ;;  %v1193_v37 = vpop.permute.xlu0 %1192 }
 0x17f   : > { %9504 = vrot.lane.b32.xlu0 %v9483_v44, %s11366_s20  ;;  %9499 = vrot.lane.b32.xlu1 %v9483_v44, %s11367_s21  ;;  %v11769_v36 = vmul.f32 %v1277_v33, %v1236_v25  ;;  %v1195_v39 = vpop.permute.xlu1 %1194  ;;  %v1211_v12 = vsel %vm1202_vm5, %v1191_v7, %v1193_v37 }
 0x180   : > { %v1212_v14 = vsel %vm1202_vm5, %v1193_v37, %v1195_v39  ;;  %v1237_v44 = vmax.f32 %v1155_v16, %v1211_v12 }
 0x181   : > { %v9588_v11 = vpack.i.bf16 %v11769_v36, %v11767_v35  ;;  %v1238_v46 = vmax.f32 %v1156_v18, %v1212_v14 }
 0x182   : > { %v11792_v47 = vmul.f32 %v1281_v30, %v1237_v44  ;;  %v1197_v13 = vpop.permute.xlu0 %1196 }
 0x183   : > { %9519 = vrot.lane.b32.xlu1 %v9518_v54, %s11362_s17  ;;  %9509 = vrot.lane.b32.xlu0 %v9508_v55, %s11368_s22  ;;  %v11794_v48 = vmul.f32 %v1285_v41, %v1238_v46  ;;  %v1199_v15 = vpop.permute.xlu1 %1198  ;;  %v1213_v16 = vsel %vm1202_vm5, %v1195_v39, %v1197_v13 }
 0x184   : > { %v1214_v18 = vsel %vm1202_vm5, %v1197_v13, %v1199_v15  ;;  %v1215_v50 = vsel %vm1202_vm5, %v1199_v15, %v1201_v62  ;;  %v1239_v55 = vmax.f32 %v1157_v20, %v1213_v16  ;;  %v1780_v62 = vld [vmem:[%s19339_s4 + $0x8] sm:$0xff]  ;;  %vm4595_vm5 = vcmask 785408  }
 0x185   : > { %v9618_v49 = vpack.i.bf16 %v11794_v48, %v11792_v47  ;;  %v1240_v57 = vmax.f32 %v1158_v22, %v1214_v18  ;;  %v1241_v59 = vmax.f32 %v1159_v23, %v1215_v50 }
 0x186   : > { %v11824_v61 = vmul.f32 %v1289_v51, %v1239_v55 }
 0x187   : > { %9529 = vrot.lane.b32.xlu1 %v9518_v54, %s11364_s19  ;;  %9514 = vrot.lane.b32.xlu0 %v9518_v54, %s11363_s0  ;;  %v11828_v17 = vmul.f32 %v1297_v56, %v1241_v59 }
 0x189   : > { %v9658_v19 = vpack.i.bf16 %v19356_v1, %v11828_v17 }
 0x18b   : > { %1726 = vrot.lane.b32.xlu1 %v11696_v52, %s11369_s2  ;;  %9524 = vrot.lane.b32.xlu0 %v9518_v54, %s11365_s1 }
 0x18f   : > { %9539 = vrot.lane.b32.xlu1 %v9518_v54, %s11366_s20  ;;  %9534 = vrot.lane.b32.xlu0 %v9518_v54, %s11367_s21  ;;  %v1293_v54 = vrot.slane %v1243_v8, %v11678_v43 }
 0x191   : > { %v11826_v63 = vmul.f32 %v1293_v54, %v1240_v57 }
 0x193   : > { %9544 = vrot.lane.b32.xlu1 %v9543_v9, %s11368_s22  ;;  %1724 = vrot.lane.b32.xlu0 %v11672_v40, %s11369_s2  ;;  %v9653_v20 = vpack.i.bf16 %v11826_v63, %v11824_v61 }
 0x197   : > { %1722 = vrot.lane.b32.xlu0 %v11670_v38, %s11369_s2  ;;  %9549 = vrot.lane.b32.xlu1 %v9548_v0, %s11363_s0 }
 0x19b   : > { %9554 = vrot.lane.b32.xlu0 %v9548_v0, %s11362_s17  ;;  %9559 = vrot.lane.b32.xlu1 %v9548_v0, %s11365_s1 }
 0x19f   : > { %9564 = vrot.lane.b32.xlu0 %v9548_v0, %s11364_s19  ;;  %9569 = vrot.lane.b32.xlu1 %v9548_v0, %s11367_s21 }
 0x1a3   : > { %9579 = vrot.lane.b32.xlu0 %v9548_v0, %s11368_s22  ;;  %9574 = vrot.lane.b32.xlu1 %v9548_v0, %s11366_s20 }
 0x1a7   : > { %1730 = vrot.lane.b32.xlu0 %v11735_v10, %s11369_s2  ;;  %1728 = vrot.lane.b32.xlu1 %v11698_v53, %s11369_s2 }
 0x1ab   : > { %9589 = vrot.lane.b32.xlu1 %v9588_v11, %s11362_s17  ;;  %9584 = vrot.lane.b32.xlu0 %v9588_v11, %s11363_s0 }
 0x1af   : > { %9599 = vrot.lane.b32.xlu1 %v9588_v11, %s11364_s19  ;;  %9594 = vrot.lane.b32.xlu0 %v9588_v11, %s11365_s1 }
 0x1b3   : > { %9609 = vrot.lane.b32.xlu1 %v9588_v11, %s11366_s20  ;;  %9604 = vrot.lane.b32.xlu0 %v9588_v11, %s11367_s21 }
 0x1b7   : > { %9619 = vrot.lane.b32.xlu0 %v9618_v49, %s11362_s17  ;;  %9614 = vrot.lane.b32.xlu1 %v9618_v49, %s11363_s0 }
 0x1bb   : > { %9629 = vrot.lane.b32.xlu0 %v9618_v49, %s11364_s19  ;;  %9624 = vrot.lane.b32.xlu1 %v9618_v49, %s11365_s1 }
 0x1bf   : > { %9644 = vrot.lane.b32.xlu0 %v9618_v49, %s11366_s20  ;;  %9634 = vrot.lane.b32.xlu1 %v9618_v49, %s11367_s21 }
 0x1c3   : > { %9649 = vrot.lane.b32.xlu0 %v9618_v49, %s11368_s22  ;;  %9639 = vrot.lane.b32.xlu1 %v9588_v11, %s11368_s22 }
 0x1c7   : > { %1734 = vrot.lane.b32.xlu0 %v11767_v35, %s11369_s2  ;;  %1732 = vrot.lane.b32.xlu1 %v11731_v5, %s11369_s2 }
 0x1cb   : > { %1738 = vrot.lane.b32.xlu0 %v11792_v47, %s11369_s2  ;;  %1736 = vrot.lane.b32.xlu1 %v11769_v36, %s11369_s2 }
 0x1cf   : > { %9659 = vrot.lane.b32.xlu1 %v9658_v19, %s11363_s0  ;;  %9654 = vrot.lane.b32.xlu0 %v9653_v20, %s11363_s0 }
 0x1d3   : > { %9664 = vrot.lane.b32.xlu1 %v9653_v20, %s11362_s17  ;;  %9669 = vrot.lane.b32.xlu0 %v9658_v19, %s11362_s17 }
 0x1d7   : > { %9679 = vrot.lane.b32.xlu1 %v9658_v19, %s11365_s1  ;;  %9674 = vrot.lane.b32.xlu0 %v9653_v20, %s11365_s1 }
 0x1db   : > { %9684 = vrot.lane.b32.xlu1 %v9653_v20, %s11364_s19  ;;  %9689 = vrot.lane.b32.xlu0 %v9658_v19, %s11364_s19 }
 0x1df   : > { %9699 = vrot.lane.b32.xlu1 %v9658_v19, %s11367_s21  ;;  %9694 = vrot.lane.b32.xlu0 %v9653_v20, %s11367_s21 }
 0x1e3   : > { %9704 = vrot.lane.b32.xlu1 %v9653_v20, %s11366_s20  ;;  %9709 = vrot.lane.b32.xlu0 %v9658_v19, %s11366_s20 }
 0x1e7   : > { %9714 = vrot.lane.b32.xlu1 %v9653_v20, %s11368_s22  ;;  %9719 = vrot.lane.b32.xlu0 %v9658_v19, %s11368_s22 }
 0x1e9   : > { %v9480_v21 = vpop.permute.xlu1 %9479  ;;  %v9485_v22 = vpop.permute.xlu0 %9484 }
 0x1ea   : > { %v9482_v7 = vunpack.i.h.bf16 %v9480_v21  ;;  %v9481_v28 = vunpack.i.l.bf16 %v9480_v21  ;;  %v9487_v39 = vunpack.i.h.bf16 %v9485_v22  ;;  %v9486_v8 = vunpack.i.l.bf16 %v9485_v22 }
 0x1eb   : > { %1740 = vrot.lane.b32.xlu1 %v11794_v48, %s11369_s2  ;;  %1742 = vrot.lane.b32.xlu0 %v11824_v61, %s11369_s2 }
 0x1ec   : > { %v1366_v37 = vsel %vm1365_vm6, %v9481_v28, %v9482_v7  ;;  %v1421_v13 = vsel %vm1420_vm8, %v9486_v8, %v9487_v39 }
 0x1ed   : > { %v9490_v23 = vpop.permute.xlu1 %9489  ;;  %v11856_v2 = vpop.permute.xlu0 %9494  ;;  %v8542_v49 = vpack.c.bf16 %v1366_v37, %v11670_v38 }
 0x1ee   : > { %v9492_v33 = vunpack.i.h.bf16 %v9490_v23  ;;  %v9491_v34 = vunpack.i.l.bf16 %v9490_v23  ;;  %v9497_v18 = vunpack.i.h.bf16 %v11856_v2  ;;  %v9496_v38 = vunpack.i.l.bf16 %v11856_v2 }
 0x1ef   : > { %1744 = vrot.lane.b32.xlu1 %v11826_v63, %s11369_s2  ;;  %1746 = vrot.lane.b32.xlu0 %v11828_v17, %s11369_s2 }
 0x1f0   : > { %v1476_v44 = vsel %vm1475_vm7, %v9491_v34, %v9492_v33 }
 0x1f1   : > { %v9500_v4 = vpop.permute.xlu1 %9499  ;;  %v11865_v9 = vpop.permute.xlu0 %9504  ;;  %v8546_v59 = vpack.c.bf16 %v1476_v44, %v1421_v13 }
 0x1f2   : > { %v9502_v15 = vunpack.i.h.bf16 %v9500_v4  ;;  %v9501_v16 = vunpack.i.l.bf16 %v9500_v4  ;;  %v9507_v54 = vunpack.i.h.bf16 %v11865_v9  ;;  %v9506_v2 = vunpack.i.l.bf16 %v11865_v9 }
 0x1f3   : > { %1748 = vrot.lane.b32.xlu1 %v19356_v1, %s11369_s2  ;;  %1783 = vperm.xlu0 %9477, %v1779_v3  }
 0x1f4   : > { %v1586_v23 = vsel %vm1585_vm10, %v9501_v16, %v9502_v15 }
 0x1f5   : > { %v11872_v0 = vpop.permute.xlu1 %9519  ;;  %v11874_v6 = vpop.permute.xlu0 %9509 }
 0x1f6   : > { %v9521_v11 = vunpack.i.l.bf16 %v11872_v0  ;;  %v9512_v19 = vunpack.i.h.bf16 %v11874_v6  ;;  %v9511_v20 = vunpack.i.l.bf16 %v11874_v6 }
 0x1f7   : > { %1788 = vperm.xlu1 %9723, %v1780_v62  }
 0x1f9   : > { %v11876_v31 = vpop.permute.xlu1 %9529  ;;  %v11878_v32 = vpop.permute.xlu0 %9514 }
 0x1fa   : > { %v9516_v25 = vunpack.i.l.bf16 %v11878_v32  ;;  %v9531_v50 = vunpack.i.l.bf16 %v11876_v31  ;;  %v9517_v44 = vunpack.i.h.bf16 %v11878_v32 }
 0x1fc   : > { %v1367_v12 = vsel %vm1365_vm6, %v9482_v7, %v9516_v25  ;;  %v1532_v3 = vsel %vm1530_vm9, %v9497_v18, %v9531_v50  ;;  %v1531_v7 = vsel %vm1530_vm9, %v9496_v38, %v9497_v18 }
 0x1fd   : > { %v11886_v14 = vpop.permute.xlu1 %1726  ;;  %v11888_v30 = vpop.permute.xlu0 %9524  ;;  %v8540_v41 = vpack.c.bf16 %v1367_v12, %v11672_v40  ;;  %v1422_v40 = vsel %vm1420_vm8, %v9487_v39, %v9521_v11  ;;  %v8550_v37 = vpack.c.bf16 %v1586_v23, %v1531_v7  ;;  %v1697_v39 = vsel %vm1695_vm12, %v9511_v20, %v9512_v19 }
 0x1fe   : > { %v9526_v46 = vunpack.i.l.bf16 %v11888_v30  ;;  %v1641_v12 = vsel %vm1640_vm11, %v9506_v2, %v9507_v54  ;;  %v9527_v38 = vunpack.i.h.bf16 %v11888_v30  ;;  %v11956_v2 = vld [vmem:[%s19338_s3] sm:$0xff]  ;;  %v11984_v30 = vld [vmem:[%s19338_s3 + $0x8] sm:$0xff] }
 0x1ff   : > { %8541 = vmatprep.subr.bf16.mxu1 %v8540_v41 }
 0x200   : > { %8543 = vmatpush1.bf16.msra.mxu1 %v8542_v49  ;;  %v1477_v51 = vsel %vm1475_vm7, %v9492_v33, %v9526_v46  ;;  %v1478_v7 = vsel %vm1475_vm7, %v9526_v46, %v9527_v38 }
 0x201   : > { %v11905_v55 = vpop.permute.xlu1 %9539  ;;  %v11907_v56 = vpop.permute.xlu0 %9534  ;;  %v8544_v57 = vpack.c.bf16 %v1477_v51, %v1422_v40  ;;  %v1368_v51 = vsel %vm1365_vm6, %v9516_v25, %v9517_v44 }
 0x202   : > { %v9541_v21 = vunpack.i.l.bf16 %v11905_v55  ;;  %v9536_v22 = vunpack.i.l.bf16 %v11907_v56 }
 0x203   : > { %8545 = vmatprep.subr.bf16.mxu1 %v8544_v57 }
 0x204   : > { %8547 = vmatpush1.bf16.msra.mxu1 %v8546_v59  ;;  %v1587_v4 = vsel %vm1585_vm10, %v9502_v15, %v9536_v22  ;;  %v1642_v62 = vsel %vm1640_vm11, %v9507_v54, %v9541_v21  ;;  %v9522_v59 = vunpack.i.h.bf16 %v11872_v0 }
 0x205   : > { %v11925_v28 = vpop.permute.xlu1 %9544  ;;  %v1725_v33 = vpop.permute.xlu0 %1724  ;;  %v8548_v34 = vpack.c.bf16 %v1587_v4, %v1532_v3  ;;  %v8552_v8 = vpack.c.bf16 %v1697_v39, %v1642_v62  ;;  %v8558_v3 = vpack.c.bf16 %v1368_v51, %v11696_v52 }
 0x206   : > { %v9546_v9 = vunpack.i.l.bf16 %v11925_v28  ;;  %v1752_v18 = vsel %vm1750_vm13, %v1725_v33, %v11886_v14  ;;  %v1423_v46 = vsel %vm1420_vm8, %v9521_v11, %v9522_v59 }
 0x207   : > { %8549 = vmatprep.subr.bf16.mxu1 %v8548_v34  ;;  %v9537_v34 = vunpack.i.h.bf16 %v11907_v56 }
 0x208   : > { %v1696_v41 = vsel %vm1695_vm12, %v9546_v9, %v9511_v20  ;;  %8551 = vmatpush1.bf16.msra.mxu1 %v8550_v37  ;;  %v9532_v9 = vunpack.i.h.bf16 %v11876_v31 }
 0x209   : > { %v11934_v49 = vpop.permute.xlu1 %9549  ;;  %v1723_v13 = vpop.permute.xlu0 %1722  ;;  %8553 = vmatprep.subr.bf16.mxu1 %v8552_v8  ;;  %v8554_v15 = vpack.c.bf16 %v1696_v41, %v1641_v12  ;;  %v8562_v8 = vpack.c.bf16 %v1478_v7, %v1423_v46 }
 0x20a   : > { %v9551_v16 = vunpack.i.l.bf16 %v11934_v49  ;;  %v1751_v32 = vsel %vm1750_vm13, %v1723_v13, %v1725_v33  ;;  %v9547_v13 = vunpack.i.h.bf16 %v11925_v28  ;;  %v1533_v56 = vsel %vm1530_vm9, %v9531_v50, %v9532_v9 }
 0x20c   : > { %8555 = vmatpush1.bf16.msra.mxu1 %v8554_v15  ;;  %v1369_v40 = vsel %vm1365_vm6, %v9517_v44, %v9551_v16  ;;  %v1588_v44 = vsel %vm1585_vm10, %v9536_v22, %v9537_v34 }
 0x20d   : > { %v11946_v54 = vpop.permute.xlu1 %9559  ;;  %v11948_v57 = vpop.permute.xlu0 %9554  ;;  %1814 = vmatprep.subr.mxu1 %v1752_v18  ;;  %v8556_v25 = vpack.c.bf16 %v1369_v40, %v11698_v53  ;;  %v9542_v18 = vunpack.i.h.bf16 %v11905_v55  ;;  %v8566_v22 = vpack.c.bf16 %v1588_v44, %v1533_v56 }
 0x20e   : > { %v9561_v20 = vunpack.i.l.bf16 %v11946_v54  ;;  %v9556_v23 = vunpack.i.l.bf16 %v11948_v57  ;;  %v9562_v55 = vunpack.i.h.bf16 %v11946_v54 }
 0x20f   : > { %v1643_v50 = vsel %vm1640_vm11, %v9541_v21, %v9542_v18  ;;  %v9557_v21 = vunpack.i.h.bf16 %v11948_v57 }
 0x210   : > { %1815 = vmatpush1.msra.mxu1 %v1751_v32  ;;  %v1424_v4 = vsel %vm1420_vm8, %v9522_v59, %v9556_v23  ;;  %v1479_v62 = vsel %vm1475_vm7, %v9527_v38, %v9561_v20  ;;  %v1698_v59 = vsel %vm1695_vm12, %v9512_v19, %v9547_v13  ;;  %v1480_v44 = vsel %vm1475_vm7, %v9561_v20, %v9562_v55 }
 0x211   : > { %v11971_v33 = vpop.permute.xlu1 %9569  ;;  %v11973_v53 = vpop.permute.xlu0 %9564  ;;  %8308 = vmatmul.mubr.msk.f32.vlgmr.msra.gmra.mrb[6].mxu1 %vm1791_vm14, %v11956_v2  ;;  %8557 = vmatprep.subr.bf16.mxu1 %v8556_v25  ;;  %v8560_v52 = vpack.c.bf16 %v1479_v62, %v1424_v4  ;;  %v8570_v4 = vpack.c.bf16 %v1698_v59, %v1643_v50 }
 0x212   : > { %v9571_v37 = vunpack.i.l.bf16 %v11971_v33  ;;  %v9566_v39 = vunpack.i.l.bf16 %v11973_v53  ;;  %8559 = vmatpush1.bf16.msra.mxu1 %v8558_v3  ;;  %1868 = vmatprep.mubr.f32.mxu1 %v19356_v1  ;;  %v9552_v3 = vunpack.i.h.bf16 %v11934_v49 }
 0x213   : > { %8561 = vmatprep.subr.bf16.mxu1 %v8560_v52 }
 0x214   : > { %v1534_v12 = vsel %vm1530_vm9, %v9532_v9, %v9566_v39  ;;  %v1589_v41 = vsel %vm1585_vm10, %v9537_v34, %v9571_v37  ;;  %v1370_v19 = vsel %vm1365_vm6, %v9551_v16, %v9552_v3 }
 0x215   : > { %v11999_v15 = vpop.permute.xlu1 %9574  ;;  %v12001_v0 = vpop.permute.xlu0 %9579  ;;  %8309 = vmatmul.mubr.msk.f32.gmra.mrb[8].mxu1 %vm1791_vm14, %v11984_v30  ;;  %v8564_v11 = vpack.c.bf16 %v1589_v41, %v1534_v12  ;;  %v8574_v16 = vpack.c.bf16 %v1370_v19, %v11735_v10 }
 0x216   : > { %v9576_v40 = vunpack.i.l.bf16 %v11999_v15  ;;  %v9581_v51 = vunpack.i.l.bf16 %v12001_v0  ;;  %8563 = vmatpush1.bf16.msra.mxu1 %v8562_v8  ;;  %1939 = vmatprep.mubr.f32.mxu1 %v19356_v1 }
 0x217   : > { %8565 = vmatprep.subr.bf16.mxu1 %v8564_v11  ;;  %v9572_v11 = vunpack.i.h.bf16 %v11971_v33 }
 0x218   : > { %v1644_v28 = vsel %vm1640_vm11, %v9542_v18, %v9576_v40  ;;  %v1699_v38 = vsel %vm1695_vm12, %v9547_v13, %v9581_v51  ;;  %v1425_v13 = vsel %vm1420_vm8, %v9556_v23, %v9557_v21  ;;  %v9567_v18 = vunpack.i.h.bf16 %v11973_v53 }
 0x219   : > { %v1729_v32 = vpop.permute.xlu1 %1728  ;;  %v12021_v25 = vpop.permute.xlu0 %1730  ;;  %v8568_v31 = vpack.c.bf16 %v1699_v38, %v1644_v28  ;;  %v8578_v56 = vpack.c.bf16 %v1480_v44, %v1425_v13 }
 0x21a   : > { %8567 = vmatpush1.bf16.msra.mxu1 %v8566_v22  ;;  %v1754_v6 = vsel %vm1750_vm13, %v1729_v32, %v12021_v25  ;;  %v1753_v12 = vsel %vm1750_vm13, %v11886_v14, %v1729_v32  ;;  %v1590_v22 = vsel %vm1585_vm10, %v9571_v37, %v9572_v11  ;;  %v1535_v28 = vsel %vm1530_vm9, %v9566_v39, %v9567_v18 }
 0x21b   : > { %8569 = vmatprep.subr.bf16.mxu1 %v8568_v31  ;;  %v8582_v37 = vpack.c.bf16 %v1590_v22, %v1535_v28 }
 0x21d   : > { %v12027_v62 = vpop.permute.xlu1 %9589  ;;  %v9585_v7 = vpop.permute.xlu0 %9584 }
 0x21e   : > { %v9586_v34 = vunpack.i.l.bf16 %v9585_v7  ;;  %8571 = vmatpush1.bf16.msra.mxu1 %v8570_v4  ;;  %v9591_v52 = vunpack.i.l.bf16 %v12027_v62  ;;  %v9587_v38 = vunpack.i.h.bf16 %v9585_v7 }
 0x21f   : > { %1891 = vmatprep.subr.mxu1 %v1754_v6  ;;  %v9592_v6 = vunpack.i.h.bf16 %v12027_v62 }
 0x220   : > { %v1371_v9 = vsel %vm1365_vm6, %v9552_v3, %v9586_v34  ;;  %v1426_v10 = vsel %vm1420_vm8, %v9557_v21, %v9591_v52  ;;  %v1372_v39 = vsel %vm1365_vm6, %v9586_v34, %v9587_v38 }
 0x221   : > { %v12038_v46 = vpop.permute.xlu1 %9599  ;;  %v9595_v8 = vpop.permute.xlu0 %9594  ;;  %v8572_v41 = vpack.c.bf16 %v1371_v9, %v11731_v5  ;;  %v8590_v34 = vpack.c.bf16 %v1372_v39, %v11767_v35 }
 0x222   : > { %v9596_v49 = vunpack.i.l.bf16 %v9595_v8  ;;  %1892 = vmatpush1.msra.mxu1 %v1753_v12  ;;  %v9601_v5 = vunpack.i.l.bf16 %v12038_v46  ;;  %v9597_v3 = vunpack.i.h.bf16 %v9595_v8  ;;  %v9602_v44 = vunpack.i.h.bf16 %v12038_v46 }
 0x223   : > { %8310 = vmatmul.mubr.msk.f32.vlgmr.msra.gmra.mrb[10].mxu1 %vm1791_vm14, %v11956_v2  ;;  %8573 = vmatprep.subr.bf16.mxu1 %v8572_v41 }
 0x224   : > { %8575 = vmatpush1.bf16.msra.mxu1 %v8574_v16  ;;  %v1481_v14 = vsel %vm1475_vm7, %v9562_v55, %v9596_v49  ;;  %1945 = vmatprep.mubr.f32.mxu1 %v19356_v1  ;;  %v1536_v59 = vsel %vm1530_vm9, %v9567_v18, %v9601_v5  ;;  %v1482_v8 = vsel %vm1475_vm7, %v9596_v49, %v9597_v3 }
 0x225   : > { %v12057_v54 = vpop.permute.xlu1 %9609  ;;  %v9605_v57 = vpop.permute.xlu0 %9604  ;;  %v8576_v20 = vpack.c.bf16 %v1481_v14, %v1426_v10  ;;  %v9582_v14 = vunpack.i.h.bf16 %v12001_v0  ;;  %v1537_v28 = vsel %vm1530_vm9, %v9601_v5, %v9602_v44 }
 0x226   : > { %v9606_v23 = vunpack.i.l.bf16 %v9605_v57  ;;  %v9607_v12 = vunpack.i.h.bf16 %v9605_v57  ;;  %v9612_v57 = vunpack.i.h.bf16 %v12057_v54 }
 0x227   : > { %8577 = vmatprep.subr.bf16.mxu1 %v8576_v20  ;;  %8311 = vmatmul.mubr.msk.f32.gmra.mrb[12].mxu1 %vm1791_vm14, %v11984_v30  ;;  %v9611_v20 = vunpack.i.l.bf16 %v12057_v54 }
 0x228   : > { %8579 = vmatpush1.bf16.msra.mxu1 %v8578_v56  ;;  %v1591_v32 = vsel %vm1585_vm10, %v9572_v11, %v9606_v23  ;;  %2016 = vmatprep.mubr.f32.mxu1 %v19356_v1  ;;  %v9577_v11 = vunpack.i.h.bf16 %v11999_v15 }
 0x229   : > { %v12070_v31 = vpop.permute.xlu1 %9614  ;;  %v12072_v50 = vpop.permute.xlu0 %9619  ;;  %v8580_v33 = vpack.c.bf16 %v1591_v32, %v1536_v59 }
 0x22a   : > { %v9616_v53 = vunpack.i.l.bf16 %v12070_v31  ;;  %v9621_v4 = vunpack.i.l.bf16 %v12072_v50  ;;  %v1645_v39 = vsel %vm1640_vm11, %v9576_v40, %v9577_v11  ;;  %v1646_v5 = vsel %vm1640_vm11, %v9577_v11, %v9611_v20 }
 0x22b   : > { %8581 = vmatprep.subr.bf16.mxu1 %v8580_v33 }
 0x22c   : > { %8583 = vmatpush1.bf16.msra.mxu1 %v8582_v37  ;;  %v1373_v7 = vsel %vm1365_vm6, %v9587_v38, %v9616_v53  ;;  %v1428_v62 = vsel %vm1420_vm8, %v9592_v6, %v9621_v4 }
 0x22d   : > { %v12082_v19 = vpop.permute.xlu1 %9624  ;;  %v12084_v55 = vpop.permute.xlu0 %9629  ;;  %v8588_v21 = vpack.c.bf16 %v1373_v7, %v11769_v36  ;;  %v1427_v36 = vsel %vm1420_vm8, %v9591_v52, %v9592_v6  ;;  %v1592_v52 = vsel %vm1585_vm10, %v9606_v23, %v9607_v12  ;;  %v1647_v7 = vsel %vm1640_vm11, %v9611_v20, %v9612_v57 }
 0x22e   : > { %v9626_v9 = vunpack.i.l.bf16 %v12082_v19  ;;  %v9631_v41 = vunpack.i.l.bf16 %v12084_v55  ;;  %v8594_v10 = vpack.c.bf16 %v1482_v8, %v1427_v36  ;;  %v8598_v37 = vpack.c.bf16 %v1592_v52, %v1537_v28 }
 0x22f   : > { %8589 = vmatprep.subr.bf16.mxu0 %v8588_v21 }
 0x230   : > { %8591 = vmatpush1.bf16.msra.mxu0 %v8590_v34  ;;  %v1483_v16 = vsel %vm1475_vm7, %v9597_v3, %v9626_v9  ;;  %v1538_v56 = vsel %vm1530_vm9, %v9602_v44, %v9631_v41  ;;  %v1700_v3 = vsel %vm1695_vm12, %v9581_v51, %v9582_v14 }
 0x231   : > { %v12099_v35 = vpop.permute.xlu1 %9634  ;;  %v12101_v49 = vpop.permute.xlu0 %9644  ;;  %v8592_v13 = vpack.c.bf16 %v1483_v16, %v1428_v62  ;;  %v8586_v62 = vpack.c.bf16 %v1700_v3, %v1645_v39  ;;  %v9627_v3 = vunpack.i.h.bf16 %v12082_v19 }
 0x232   : > { %v9636_v18 = vunpack.i.l.bf16 %v12099_v35  ;;  %v9646_v46 = vunpack.i.l.bf16 %v12101_v49 }
 0x233   : > { %8593 = vmatprep.subr.bf16.mxu0 %v8592_v13 }
 0x234   : > { %8595 = vmatpush1.bf16.msra.mxu0 %v8594_v10  ;;  %v1593_v22 = vsel %vm1585_vm10, %v9607_v12, %v9636_v18  ;;  %v1648_v15 = vsel %vm1640_vm11, %v9612_v57, %v9646_v46  ;;  %v9617_v10 = vunpack.i.h.bf16 %v12070_v31 }
 0x235   : > { %v9640_v38 = vpop.permute.xlu1 %9639  ;;  %v12117_v59 = vpop.permute.xlu0 %9649  ;;  %v8596_v54 = vpack.c.bf16 %v1593_v22, %v1538_v56 }
 0x236   : > { %v9642_v32 = vunpack.i.h.bf16 %v9640_v38  ;;  %v9641_v23 = vunpack.i.l.bf16 %v9640_v38  ;;  %v9651_v33 = vunpack.i.l.bf16 %v12117_v59 }
 0x237   : > { %8597 = vmatprep.subr.bf16.mxu0 %v8596_v54 }
 0x238   : > { %v1702_v6 = vsel %vm1695_vm12, %v9641_v23, %v9642_v32  ;;  %8599 = vmatpush1.bf16.msra.mxu0 %v8598_v37  ;;  %v1701_v21 = vsel %vm1695_vm12, %v9582_v14, %v9641_v23  ;;  %v1703_v0 = vsel %vm1695_vm12, %v9642_v32, %v9651_v33 }
 0x239   : > { %v1733_v40 = vpop.permute.xlu1 %1732  ;;  %v1735_v51 = vpop.permute.xlu0 %1734  ;;  %v8584_v34 = vpack.c.bf16 %v1701_v21, %v1646_v5  ;;  %v8600_v8 = vpack.c.bf16 %v1703_v0, %v1648_v15  ;;  %v8602_v12 = vpack.c.bf16 %v1702_v6, %v1647_v7  ;;  %v1484_v0 = vsel %vm1475_vm7, %v9626_v9, %v9627_v3 }
 0x23a   : > { %v1756_v16 = vsel %vm1750_vm13, %v1733_v40, %v1735_v51  ;;  %v1755_v14 = vsel %vm1750_vm13, %v12021_v25, %v1733_v40  ;;  %v1374_v25 = vsel %vm1365_vm6, %v9616_v53, %v9617_v10 }
 0x23b   : > { %8585 = vmatprep.subr.bf16.mxu1 %v8584_v34  ;;  %8601 = vmatprep.subr.bf16.mxu0 %v8600_v8  ;;  %v8606_v39 = vpack.c.bf16 %v1374_v25, %v11792_v47 }
 0x23c   : > { %8587 = vmatpush1.bf16.msra.mxu1 %v8586_v62  ;;  %8603 = vmatpush1.bf16.msra.mxu0 %v8602_v12 }
 0x23d   : > { %v1737_v36 = vpop.permute.xlu1 %1736  ;;  %v12137_v44 = vpop.permute.xlu0 %1738  ;;  %1968 = vmatprep.subr.mxu1 %v1756_v16 }
 0x23e   : > { %v1758_v13 = vsel %vm1750_vm13, %v1737_v36, %v12137_v44  ;;  %v1757_v11 = vsel %vm1750_vm13, %v1735_v51, %v1737_v36 }
 0x23f   : > { %2045 = vmatprep.subr.mxu0 %v1758_v13 }
 0x240   : > { %1969 = vmatpush1.msra.mxu1 %v1755_v14  ;;  %2046 = vmatpush1.msra.mxu0 %v1757_v11  ;;  %v9637_v14 = vunpack.i.h.bf16 %v12099_v35 }
 0x241   : > { %v12145_v57 = vpop.permute.xlu1 %9659  ;;  %v9655_v20 = vpop.permute.xlu0 %9654  ;;  %8312 = vmatmul.mubr.msk.f32.vlgmr.msra.gmra.mrb[14].mxu1 %vm1791_vm14, %v11956_v2  ;;  %8314 = vmatmul.mubr.msk.f32.vlgmr.msra.gmra.mrb[8].mxu0 %vm1791_vm14, %v11956_v2 }
 0x242   : > { %v9661_v52 = vunpack.i.l.bf16 %v12145_v57  ;;  %v9657_v56 = vunpack.i.h.bf16 %v9655_v20  ;;  %v9656_v22 = vunpack.i.l.bf16 %v9655_v20  ;;  %2022 = vmatprep.mubr.f32.mxu1 %v19356_v1  ;;  %2099 = vmatprep.mubr.f32.mxu0 %v19356_v1 }
 0x244   : > { %v1376_v28 = vsel %vm1365_vm6, %v9656_v22, %v9657_v56  ;;  %v1375_v38 = vsel %vm1365_vm6, %v9617_v10, %v9656_v22  ;;  %v1377_v54 = vsel %vm1365_vm6, %v9657_v56, %v9661_v52 }
 0x245   : > { %v9665_v32 = vpop.permute.xlu1 %9664  ;;  %v12162_v23 = vpop.permute.xlu0 %9669  ;;  %8313 = vmatmul.mubr.msk.f32.gmra.mrb[16].mxu1 %vm1791_vm14, %v11984_v30  ;;  %8315 = vmatmul.mubr.msk.f32.gmra.mrb[10].mxu0 %vm1791_vm14, %v11984_v30  ;;  %v8604_v31 = vpack.c.bf16 %v1375_v38, %v11794_v48  ;;  %v8620_v53 = vpack.c.bf16 %v1377_v54, %v11826_v63  ;;  %v8622_v37 = vpack.c.bf16 %v1376_v28, %v11824_v61  ;;  %v9622_v48 = vunpack.i.h.bf16 %v12072_v50 }
 0x246   : > { %2170 = vmatprep.mubr.f32.mxu1 %v19356_v1  ;;  %2247 = vmatprep.mubr.f32.mxu0 %v19356_v1  ;;  %v9667_v7 = vunpack.i.h.bf16 %v9665_v32  ;;  %v9666_v5 = vunpack.i.l.bf16 %v9665_v32  ;;  %v9671_v6 = vunpack.i.l.bf16 %v12162_v23  ;;  %v9632_v50 = vunpack.i.h.bf16 %v12084_v55 }
 0x247   : > { %8605 = vmatprep.subr.bf16.mxu1 %v8604_v31  ;;  %8621 = vmatprep.subr.bf16.mxu0 %v8620_v53  ;;  %v1429_v19 = vsel %vm1420_vm8, %v9621_v4, %v9622_v48  ;;  %v1594_v32 = vsel %vm1585_vm10, %v9636_v18, %v9637_v14 }
 0x248   : > { %8607 = vmatpush1.bf16.msra.mxu1 %v8606_v39  ;;  %8623 = vmatpush1.bf16.msra.mxu0 %v8622_v37  ;;  %v1431_v40 = vsel %vm1420_vm8, %v9666_v5, %v9667_v7  ;;  %v1430_v51 = vsel %vm1420_vm8, %v9622_v48, %v9666_v5  ;;  %v1432_v12 = vsel %vm1420_vm8, %v9667_v7, %v9671_v6 }
 0x249   : > { %v12177_v63 = vpop.permute.xlu1 %9679  ;;  %v9675_v61 = vpop.permute.xlu0 %9674  ;;  %v8610_v10 = vpack.c.bf16 %v1484_v0, %v1429_v19  ;;  %v1539_v35 = vsel %vm1530_vm9, %v9631_v41, %v9632_v50  ;;  %v9647_v0 = vunpack.i.h.bf16 %v12101_v49 }
 0x24a   : > { %v9681_v47 = vunpack.i.l.bf16 %v12177_v63  ;;  %v9677_v21 = vunpack.i.h.bf16 %v9675_v61  ;;  %v9676_v15 = vunpack.i.l.bf16 %v9675_v61 }
 0x24c   : > { %v1486_v34 = vsel %vm1475_vm7, %v9676_v15, %v9677_v21  ;;  %v1485_v8 = vsel %vm1475_vm7, %v9627_v3, %v9676_v15  ;;  %v1487_v62 = vsel %vm1475_vm7, %v9677_v21, %v9681_v47  ;;  %v8614_v15 = vpack.c.bf16 %v1594_v32, %v1539_v35 }
 0x24d   : > { %v9685_v9 = vpop.permute.xlu1 %9684  ;;  %v12196_v16 = vpop.permute.xlu0 %9689  ;;  %v8608_v36 = vpack.c.bf16 %v1485_v8, %v1430_v51  ;;  %v8624_v13 = vpack.c.bf16 %v1487_v62, %v1432_v12  ;;  %v8626_v11 = vpack.c.bf16 %v1486_v34, %v1431_v40  ;;  %v9652_v40 = vunpack.i.h.bf16 %v12117_v59 }
 0x24e   : > { %v9687_v20 = vunpack.i.h.bf16 %v9685_v9  ;;  %v9686_v56 = vunpack.i.l.bf16 %v9685_v9  ;;  %v9691_v22 = vunpack.i.l.bf16 %v12196_v16  ;;  %v1649_v9 = vsel %vm1640_vm11, %v9646_v46, %v9647_v0 }
 0x24f   : > { %8609 = vmatprep.subr.bf16.mxu1 %v8608_v36  ;;  %8625 = vmatprep.subr.bf16.mxu0 %v8624_v13  ;;  %v1704_v36 = vsel %vm1695_vm12, %v9651_v33, %v9652_v40  ;;  %v12240_v46 = vunpack.i.h.bf16 %v12145_v57 }
 0x250   : > { %8611 = vmatpush1.bf16.msra.mxu1 %v8610_v10  ;;  %8627 = vmatpush1.bf16.msra.mxu0 %v8626_v11  ;;  %v1541_v31 = vsel %vm1530_vm9, %v9686_v56, %v9687_v20  ;;  %v1540_v53 = vsel %vm1530_vm9, %v9632_v50, %v9686_v56  ;;  %v1542_v3 = vsel %vm1530_vm9, %v9687_v20, %v9691_v22 }
 0x251   : > { %v12201_v4 = vpop.permute.xlu1 %9699  ;;  %v9695_v25 = vpop.permute.xlu0 %9694 }
 0x252   : > { %v9701_v28 = vunpack.i.l.bf16 %v12201_v4  ;;  %v9697_v38 = vunpack.i.h.bf16 %v9695_v25  ;;  %v9696_v54 = vunpack.i.l.bf16 %v9695_v25  ;;  %v9702_v35 = vunpack.i.h.bf16 %v12201_v4 }
 0x254   : > { %v1596_v37 = vsel %vm1585_vm10, %v9696_v54, %v9697_v38  ;;  %v1595_v39 = vsel %vm1585_vm10, %v9637_v14, %v9696_v54  ;;  %v1597_v7 = vsel %vm1585_vm10, %v9697_v38, %v9701_v28  ;;  %v8618_v38 = vpack.c.bf16 %v1704_v36, %v1649_v9 }
 0x255   : > { %v9705_v18 = vpop.permute.xlu1 %9704  ;;  %v12220_v5 = vpop.permute.xlu0 %9709  ;;  %v8612_v48 = vpack.c.bf16 %v1595_v39, %v1540_v53  ;;  %v8628_v61 = vpack.c.bf16 %v1597_v7, %v1542_v3  ;;  %v8630_v21 = vpack.c.bf16 %v1596_v37, %v1541_v31  ;;  %v9682_v54 = vunpack.i.h.bf16 %v12177_v63 }
 0x256   : > { %v9707_v51 = vunpack.i.h.bf16 %v9705_v18  ;;  %v9706_v34 = vunpack.i.l.bf16 %v9705_v18  ;;  %v9711_v8 = vunpack.i.l.bf16 %v12220_v5  ;;  %v12245_v31 = vunpack.i.h.bf16 %v12162_v23 }
 0x257   : > { %8613 = vmatprep.subr.bf16.mxu1 %v8612_v48  ;;  %8629 = vmatprep.subr.bf16.mxu0 %v8628_v61  ;;  %v1378_v39 = vsel %vm1365_vm6, %v9661_v52, %v12240_v46  ;;  %v1488_v48 = vsel %vm1475_vm7, %v9681_v47, %v9682_v54  ;;  %v12261_v52 = vunpack.i.h.bf16 %v12196_v16  ;;  %v12277_v61 = vunpack.i.h.bf16 %v12220_v5 }
 0x258   : > { %8615 = vmatpush1.bf16.msra.mxu1 %v8614_v15  ;;  %8631 = vmatpush1.bf16.msra.mxu0 %v8630_v21  ;;  %v1651_v13 = vsel %vm1640_vm11, %v9706_v34, %v9707_v51  ;;  %v1650_v11 = vsel %vm1640_vm11, %v9647_v0, %v9706_v34  ;;  %v1652_v20 = vsel %vm1640_vm11, %v9707_v51, %v9711_v8  ;;  %vm6574_vm7 = vcmask 457728  }
 0x259   : > { %v9715_v55 = vpop.permute.xlu1 %9714  ;;  %v9720_v41 = vpop.permute.xlu0 %9719  ;;  %v8636_v57 = vpack.c.bf16 %v1378_v39, %v11828_v17  ;;  %19985 = vst [vmem:[#allocation11_spill] sm:$0xff] %v12261_v52  ;;  %v1598_v17 = vsel %vm1585_vm10, %v9701_v28, %v9702_v35  ;;  %19986 = vst [vmem:[#allocation12_spill] sm:$0xff] %v12277_v61  ;;  %v1543_v23 = vsel %vm1530_vm9, %v9691_v22, %v12261_v52  ;;  %vm8233_vm10 = vcmask 0  }
 0x25a   : > { %v9717_v12 = vunpack.i.h.bf16 %v9715_v55  ;;  %v9716_v62 = vunpack.i.l.bf16 %v9715_v55  ;;  %v9721_v19 = vunpack.i.l.bf16 %v9720_v41  ;;  %v9722_v47 = vunpack.i.h.bf16 %v9720_v41 }
 0x25b   : > { %v1653_v28 = vsel %vm1640_vm11, %v9711_v8, %v12277_v61 }
 0x25c   : > { %v1706_v10 = vsel %vm1695_vm12, %v9716_v62, %v9717_v12  ;;  %v1705_v14 = vsel %vm1695_vm12, %v9652_v40, %v9716_v62  ;;  %v1707_v49 = vsel %vm1695_vm12, %v9717_v12, %v9721_v19  ;;  %v1708_v4 = vsel %vm1695_vm12, %v9721_v19, %v9722_v47 }
 0x25d   : > { %v1741_v59 = vpop.permute.xlu1 %1740  ;;  %v1743_v56 = vpop.permute.xlu0 %1742  ;;  %v8616_v33 = vpack.c.bf16 %v1705_v14, %v1650_v11  ;;  %v8632_v50 = vpack.c.bf16 %v1707_v49, %v1652_v20  ;;  %v8634_v25 = vpack.c.bf16 %v1706_v10, %v1651_v13  ;;  %v8648_v21 = vpack.c.bf16 %v1708_v4, %v1653_v28 }
 0x25e   : > { %v1760_v32 = vsel %vm1750_vm13, %v1741_v59, %v1743_v56  ;;  %v1759_v18 = vsel %vm1750_vm13, %v12137_v44, %v1741_v59  ;;  %v1433_v44 = vsel %vm1420_vm8, %v9671_v6, %v12245_v31  ;;  %v8644_v6 = vpack.c.bf16 %v1598_v17, %v1543_v23 }
 0x25f   : > { %8617 = vmatprep.subr.bf16.mxu1 %v8616_v33  ;;  %8633 = vmatprep.subr.bf16.mxu0 %v8632_v50  ;;  %v8640_v63 = vpack.c.bf16 %v1488_v48, %v1433_v44 }
 0x260   : > { %8619 = vmatpush1.bf16.msra.mxu1 %v8618_v38  ;;  %8635 = vmatpush1.bf16.msra.mxu0 %v8634_v25 }
 0x261   : > { %v1745_v53 = vpop.permute.xlu1 %1744  ;;  %v1747_v37 = vpop.permute.xlu0 %1746  ;;  %2122 = vmatprep.subr.mxu1 %v1760_v32 }
 0x262   : > { %v1762_v3 = vsel %vm1750_vm13, %v1745_v53, %v1747_v37  ;;  %v1761_v7 = vsel %vm1750_vm13, %v1743_v56, %v1745_v53 }
 0x263   : > { %2199 = vmatprep.subr.mxu0 %v1762_v3 }
 0x264   : > { %2123 = vmatpush1.msra.mxu1 %v1759_v18  ;;  %2200 = vmatpush1.msra.mxu0 %v1761_v7 }
 0x265   : > { %8316 = vmatmul.mubr.msk.f32.vlgmr.msra.gmra.mrb[18].mxu1 %vm1791_vm14, %v11956_v2  ;;  %8318 = vmatmul.mubr.msk.f32.vlgmr.msra.gmra.mrb[12].mxu0 %vm1791_vm14, %v11956_v2  ;;  %v12295_v16 = vpop.permute.xlu1 %1748 }
 0x266   : > { %8637 = vmatprep.subr.bf16.mxu1 %v8636_v57  ;;  %2176 = vmatprep.mubr.f32.mxu1 %v19356_v1  ;;  %19987 = vst [vmem:[#allocation13_spill] sm:$0xff] %v12295_v16 }
 0x267   : > { %8639 = vmatpush3.bf16.msra.mxu1 %v8636_v57  ;;  %2253 = vmatprep.mubr.f32.mxu0 %v19356_v1 }
 0x268   : > { %8641 = vmatprep.subr.bf16.mxu1 %v8640_v63 }
 0x269   : > { %8317 = vmatmul.mubr.msk.f32.gmra.mrb[20].mxu1 %vm1791_vm14, %v11984_v30  ;;  %8319 = vmatmul.mubr.msk.f32.gmra.mrb[14].mxu0 %vm1791_vm14, %v11984_v30 }
 0x26a   : > { %8421 = vmatprep.mubr.msk.f32.mxu1 %vm1791_vm14, %v11956_v2  ;;  %3453 = vmatprep.mubr.f32.mxu0 %v19356_v1  ;;  %v1763_v2 = vsel %vm1750_vm13, %v1747_v37, %v12295_v16 }
 0x26b   : > { %8643 = vmatpush3.bf16.msra.mxu1 %v8640_v63 }
 0x26c   : > { %8645 = vmatprep.subr.bf16.mxu1 %v8644_v6 }
 0x26f   : > { %8647 = vmatpush3.bf16.msra.mxu1 %v8644_v6 }
 0x270   : > { %8649 = vmatprep.subr.bf16.mxu1 %v8648_v21 }
 0x272   : > { %v12302_v22 = vpop.permute.xlu0 %1783 }
 0x273   : > { %8651 = vmatpush3.bf16.msra.mxu1 %v8648_v21 }
 0x274   : > { %8419 = vmatprep.subr.mxu1 %v1763_v2 }
 0x276   : > { %v12310_v51 = vpop.permute.xlu1 %1788 }
 0x277   : > { %8420 = vmatpush3.msra.mxu1 %v1763_v2 }
 0x278   : > { %8422 = vmatmul.mubr.msk.f32.vlgmr.msra.gmra.mrb[22].mxu1 %vm1791_vm14, %v11984_v30 }
 0x279   : > { %3530 = vmatprep.mubr.f32.mxu1 %v19356_v1 }
 0x2e4   : > { %v1864_v5 = vpop.f32.mrb[6].mxu1 }
 0x2e5   : > { %v12305_v15 = vadd.f32 %v1864_v5, %v12302_v22  ;;  %v1866_v0 = vpop.f32.mrb[7].mxu1 }
 0x2e6   : > { %v12308_v40 = vadd.f32 %v1866_v0, %v12302_v22 }
 0x2e7   : > { %v2335_v34 = vmax.f32 %v12305_v15, 0.0 }
 0x2e8   : > { %v2336_v8 = vmax.f32 %v12308_v40, 0.0  ;;  %v1870_v55 = vpop.f32.mrb[8].mxu1 }
 0x2e9   : > { %v1872_v30 = vpop.f32.mrb[9].mxu1  ;;  %2387 = vrot.lane.b32.xlu0 %v2335_v34, %s11363_s0  ;;  %v12318_v41 = vadd.f32 %v1870_v55, %v12310_v51 }
 0x2ea   : > { %v12321_v12 = vadd.f32 %v1872_v30, %v12310_v51  ;;  %2389 = vrot.lane.b32.xlu1 %v2336_v8, %s11363_s0 }
 0x2eb   : > { %v2348_v62 = vmax.f32 %v12318_v41, 0.0 }
 0x2ec   : > { %v2349_v19 = vmax.f32 %v12321_v12, 0.0 }
 0x2ee   : > { %2413 = vrot.lane.b32.xlu1 %v2348_v62, %s11363_s0  ;;  %2415 = vrot.lane.b32.xlu0 %v2349_v19, %s11363_s0 }
 0x2f6   : > { %v1941_v9 = vpop.f32.mrb[10].mxu1 }
 0x2f7   : > { %v1943_v36 = vpop.f32.mrb[11].mxu1  ;;  %v12356_v3 = vadd.f32 %v1941_v9, %v12302_v22 }
 0x2f8   : > { %v12359_v7 = vadd.f32 %v1943_v36, %v12302_v22 }
 0x2f9   : > { %v2337_v18 = vmax.f32 %v12356_v3, 0.0 }
 0x2fa   : > { %v1947_v13 = vpop.f32.mrb[12].mxu1  ;;  %v19373_v48 = vmax.f32 %v12359_v7, 0.0 }
 0x2fb   : > { %v1949_v11 = vpop.f32.mrb[13].mxu1  ;;  %v12371_v57 = vadd.f32 %v1947_v13, %v12310_v51 }
 0x2fc   : > { %v12374_v44 = vadd.f32 %v1949_v11, %v12310_v51 }
 0x2fd   : > { %v2350_v63 = vmax.f32 %v12371_v57, 0.0 }
 0x2fe   : > { %v19370_v47 = vmax.f32 %v12374_v44, 0.0 }
 0x314   : > { %v2018_v10 = vpop.f32.mrb[14].mxu1  ;;  %v2095_v14 = vpop.f32.mrb[8].mxu0 }
 0x315   : > { %v12335_v20 = vadd.f32 %v2095_v14, %v12302_v22  ;;  %v2020_v49 = vpop.f32.mrb[15].mxu1  ;;  %v2097_v59 = vpop.f32.mrb[9].mxu0  ;;  %v12412_v14 = vadd.f32 %v2018_v10, %v12302_v22 }
 0x316   : > { %v12338_v56 = vadd.f32 %v2097_v59, %v12302_v22  ;;  %v12415_v59 = vadd.f32 %v2020_v49, %v12302_v22 }
 0x317   : > { %v2341_v33 = vmax.f32 %v12335_v20, 0.0 }
 0x318   : > { %v19358_v50 = vmax.f32 %v12338_v56, 0.0  ;;  %v2024_v25 = vpop.f32.mrb[16].mxu1  ;;  %v2101_v38 = vpop.f32.mrb[10].mxu0 }
 0x319   : > { %v12343_v54 = vadd.f32 %v2101_v38, %v12310_v51  ;;  %v2026_v32 = vpop.f32.mrb[17].mxu1  ;;  %v2103_v53 = vpop.f32.mrb[11].mxu0  ;;  %2399 = vrot.lane.b32.xlu0 %v2341_v33, %s11363_s0  ;;  %v12427_v10 = vadd.f32 %v2024_v25, %v12310_v51 }
 0x31a   : > { %v12349_v37 = vadd.f32 %v2103_v53, %v12310_v51  ;;  %2401 = vrot.lane.b32.xlu1 %v19358_v50, %s11363_s0  ;;  %v19371_v53 = vmax.f32 %v12412_v14, 0.0  ;;  %v12430_v49 = vadd.f32 %v2026_v32, %v12310_v51 }
 0x31b   : > { %v2354_v39 = vmax.f32 %v12343_v54, 0.0 }
 0x31c   : > { %v19367_v35 = vmax.f32 %v12349_v37, 0.0 }
 0x31e   : > { %2425 = vrot.lane.b32.xlu1 %v2354_v39, %s11363_s0  ;;  %2427 = vrot.lane.b32.xlu0 %v19367_v35, %s11363_s0 }
 0x322   : > { %2393 = vrot.lane.b32.xlu1 %v19373_v48, %s11363_s0  ;;  %2391 = vrot.lane.b32.xlu0 %v2337_v18, %s11363_s0 }
 0x326   : > { %2417 = vrot.lane.b32.xlu1 %v2350_v63, %s11363_s0  ;;  %2419 = vrot.lane.b32.xlu0 %v19370_v47, %s11363_s0 }
 0x338   : > { %v2172_v17 = vpop.f32.mrb[18].mxu1  ;;  %v2249_v23 = vpop.f32.mrb[12].mxu0 }
 0x339   : > { %v12391_v6 = vadd.f32 %v2249_v23, %v12302_v22  ;;  %v2174_v4 = vpop.f32.mrb[19].mxu1  ;;  %v2251_v28 = vpop.f32.mrb[13].mxu0  ;;  %v19372_v23 = vmax.f32 %v12415_v59, 0.0 }
 0x33a   : > { %v12394_v21 = vadd.f32 %v2251_v28, %v12302_v22  ;;  %v19359_v28 = vmax.f32 %v12427_v10, 0.0  ;;  %v12444_v25 = vadd.f32 %v2174_v4, %v12302_v22 }
 0x33b   : > { %v2345_v2 = vmax.f32 %v12391_v6, 0.0 }
 0x33c   : > { %v19361_v5 = vmax.f32 %v12394_v21, 0.0  ;;  %v2178_v0 = vpop.f32.mrb[20].mxu1  ;;  %v2255_v55 = vpop.f32.mrb[14].mxu0  ;;  %v19363_v1 = vmax.f32 %v12444_v25, 0.0 }
 0x33d   : > { %v12399_v30 = vadd.f32 %v2255_v55, %v12310_v51  ;;  %v2180_v9 = vpop.f32.mrb[21].mxu1  ;;  %v2257_v36 = vpop.f32.mrb[15].mxu0  ;;  %2407 = vrot.lane.b32.xlu0 %v2345_v2, %s11363_s0  ;;  %v19360_v55 = vmax.f32 %v12430_v49, 0.0  ;;  %v12455_v50 = vadd.f32 %v2178_v0, %v12310_v51 }
 0x33e   : > { %v12405_v13 = vadd.f32 %v2257_v36, %v12310_v51  ;;  %2409 = vrot.lane.b32.xlu1 %v19361_v5, %s11363_s0  ;;  %v12441_v36 = vadd.f32 %v2172_v17, %v12302_v22  ;;  %v12458_v17 = vadd.f32 %v2180_v9, %v12310_v51 }
 0x33f   : > { %v2358_v11 = vmax.f32 %v12399_v30, 0.0 }
 0x340   : > { %v19366_v38 = vmax.f32 %v12405_v13, 0.0  ;;  %v19362_v45 = vmax.f32 %v12441_v36, 0.0 }
 0x342   : > { %2433 = vrot.lane.b32.xlu1 %v2358_v11, %s11363_s0  ;;  %2435 = vrot.lane.b32.xlu0 %v19366_v38, %s11363_s0 }
 0x346   : > { %2397 = vrot.lane.b32.xlu1 %v19372_v23, %s11363_s0  ;;  %2395 = vrot.lane.b32.xlu0 %v19371_v53, %s11363_s0 }
 0x34a   : > { %2421 = vrot.lane.b32.xlu1 %v19359_v28, %s11363_s0  ;;  %2423 = vrot.lane.b32.xlu0 %v19360_v55, %s11363_s0  ;;  %v19364_v28 = vmax.f32 %v12455_v50, 0.0  ;;  %v19369_v55 = vmax.f32 %v12458_v17, 0.0 }
 0x34b   : > { %v8423_v32 = vpop.f32.mrb[22].mxu1 }
 0x34c   : > { %v2326_v4 = vpop.f32.mrb[23].mxu1  ;;  %v12469_v5 = vadd.f32 %v8423_v32, %v12310_v51  ;;  %v12491_v32 = vld [vmem:[%s19347_s12] sm:$0xff] }
 0x34d   : > { %v12472_v0 = vadd.f32 %v2326_v4, %v12302_v22  ;;  %v2528_v20 = vrot.slane %v12491_v32, %v11657_v29  ;;  %v2536_v6 = vrot.slane %v12491_v32, %v11678_v43 }
 0x34e   : > { %2405 = vrot.lane.b32.xlu1 %v19363_v1, %s11363_s0  ;;  %2403 = vrot.lane.b32.xlu0 %v19362_v45, %s11363_s0  ;;  %v19365_v9 = vmax.f32 %v12469_v5, 0.0  ;;  %v2524_v1 = vrot.slane %v12491_v32, %v11654_v27 }
 0x34f   : > { %v19368_v45 = vmax.f32 %v12472_v0, 0.0 }
 0x352   : > { %2429 = vrot.lane.b32.xlu1 %v19364_v28, %s11363_s0  ;;  %2431 = vrot.lane.b32.xlu0 %v19369_v55, %s11363_s0 }
 0x356   : > { %2437 = vrot.lane.b32.xlu1 %v19365_v9, %s11363_s0  ;;  %2411 = vrot.lane.b32.xlu0 %v19368_v45, %s11363_s0  ;;  %s11370_s0 = smov 100  }
 0x35b   : > { %v2388_v22 = vpop.permute.xlu0 %2387 }
 0x35c   : > { %v2390_v51 = vpop.permute.xlu1 %2389 }
 0x35d   : > { %v2439_v4 = vsel %vm1365_vm6, %v2388_v22, %v2390_v51 }
 0x35e   : > { %v2491_v28 = vmax.f32 %v2335_v34, %v2439_v4 }
 0x360   : > { %v2414_v9 = vpop.permute.xlu1 %2413  ;;  %v2416_v38 = vpop.permute.xlu0 %2415  ;;  %v2586_v55 = vmul.f32 %v2524_v1, %v2491_v28 }
 0x361   : > { %v2452_v35 = vsel %vm1365_vm6, %v2414_v9, %v2416_v38 }
 0x362   : > { %v2504_v45 = vmax.f32 %v2348_v62, %v2452_v35 }
 0x364   : > { %v12501_v47 = vmul.f32 %v2524_v1, %v2504_v45  ;;  %v2548_v1 = vrot.slane %v12491_v32, %v11748_v24  ;;  %v19998_v24 = vmax.f32 %v12394_v21, 0.0  ;;  %v20001_v21 = vmax.f32 %v12338_v56, 0.0 }
 0x366   : > { %v9729_v53 = vpack.i.bf16 %v12501_v47, %v2586_v55  ;;  %v8654_v3 = vpack.c.bf16 %v12501_v47, %v2586_v55 }
 0x368   : > { %9730 = vrot.lane.b32.xlu1 %v9729_v53, %s11370_s0  ;;  %9725 = vrot.lane.b32.xlu0 %v9729_v53, %s11371_s26 }
 0x38b   : > { %v12506_v15 = vpop.permute.xlu0 %2399 }
 0x38c   : > { %v12508_v34 = vpop.permute.xlu1 %2401 }
 0x38d   : > { %v2445_v41 = vsel %vm1365_vm6, %v12506_v15, %v12508_v34 }
 0x38e   : > { %v2497_v45 = vmax.f32 %v2341_v33, %v2445_v41 }
 0x390   : > { %v12517_v62 = vpop.permute.xlu1 %2425  ;;  %v12519_v35 = vpop.permute.xlu0 %2427  ;;  %v12526_v9 = vmul.f32 %v2548_v1, %v2497_v45 }
 0x391   : > { %v2458_v53 = vsel %vm1365_vm6, %v12517_v62, %v12519_v35 }
 0x392   : > { %v2510_v28 = vmax.f32 %v2354_v39, %v2458_v53 }
 0x394   : > { %v12528_v22 = vmul.f32 %v2548_v1, %v2510_v28  ;;  %v2394_v4 = vpop.permute.xlu1 %2393  ;;  %v2392_v33 = vpop.permute.xlu0 %2391  ;;  %v2532_v1 = vrot.slane %v12491_v32, %v11675_v42 }
 0x395   : > { %v2440_v41 = vsel %vm1365_vm6, %v2390_v51, %v2392_v33  ;;  %v2441_v54 = vsel %vm1365_vm6, %v2392_v33, %v2394_v4 }
 0x396   : > { %v2492_v23 = vmax.f32 %v2336_v8, %v2440_v41  ;;  %v2493_v28 = vmax.f32 %v2337_v18, %v2441_v54 }
 0x398   : > { %v2587_v39 = vmul.f32 %v2528_v20, %v2492_v23  ;;  %v2418_v45 = vpop.permute.xlu1 %2417  ;;  %v2420_v41 = vpop.permute.xlu0 %2419  ;;  %v12547_v23 = vmul.f32 %v2532_v1, %v2493_v28 }
 0x399   : > { %v2453_v53 = vsel %vm1365_vm6, %v2416_v38, %v2418_v45  ;;  %v2454_v48 = vsel %vm1365_vm6, %v2418_v45, %v2420_v41 }
 0x39a   : > { %v2505_v51 = vmax.f32 %v2349_v19, %v2453_v53  ;;  %v9739_v40 = vpack.i.bf16 %v2587_v39, %v2586_v55  ;;  %v2506_v12 = vmax.f32 %v2350_v63, %v2454_v48  ;;  %v9764_v19 = vpack.i.bf16 %v12547_v23, %v2587_v39  ;;  %v12573_v63 = vld [vmem:[%s19347_s12 + $0x8] sm:$0x1f] }
 0x39b   : > { %v2564_v54 = vrot.slane %v12573_v63, %v11675_v42 }
 0x39c   : > { %v2600_v8 = vmul.f32 %v2528_v20, %v2505_v51  ;;  %9740 = vrot.lane.b32.xlu1 %v9739_v40, %s11364_s19  ;;  %9735 = vrot.lane.b32.xlu0 %v9739_v40, %s11362_s17  ;;  %v12558_v18 = vmul.f32 %v2532_v1, %v2506_v12 }
 0x39e   : > { %v8652_v33 = vpack.c.bf16 %v2600_v8, %v2587_v39  ;;  %v9769_v38 = vpack.i.bf16 %v2600_v8, %v12501_v47  ;;  %v9779_v55 = vpack.i.bf16 %v12558_v18, %v2600_v8 }
 0x3a0   : > { %9750 = vrot.lane.b32.xlu1 %v9739_v40, %s11369_s2  ;;  %9745 = vrot.lane.b32.xlu0 %v9739_v40, %s11366_s20 }
 0x3a1   : > { %8653 = vmatprep.subr.bf16.mxu0 %v8652_v33 }
 0x3a2   : > { %8655 = vmatpush1.bf16.msra.mxu0 %v8654_v3  ;;  %v19989_v3 = vmax.f32 %v12359_v7, 0.0 }
 0x3a4   : > { %9765 = vrot.lane.b32.xlu1 %v9764_v19, %s11370_s0  ;;  %9755 = vrot.lane.b32.xlu0 %v9739_v40, %s11372_s27 }
 0x3a8   : > { %9770 = vrot.lane.b32.xlu1 %v9769_v38, %s11372_s27  ;;  %9760 = vrot.lane.b32.xlu0 %v9764_v19, %s11371_s26 }
 0x3ac   : > { %9780 = vrot.lane.b32.xlu0 %v9779_v55, %s11364_s19  ;;  %9775 = vrot.lane.b32.xlu1 %v9779_v55, %s11362_s17 }
 0x3af   : > { %v12566_v48 = vpop.permute.xlu0 %2407 }
 0x3b0   : > { %v2410_v57 = vpop.permute.xlu1 %2409  ;;  %9790 = vrot.lane.b32.xlu0 %v9779_v55, %s11369_s2  ;;  %9785 = vrot.lane.b32.xlu1 %v9779_v55, %s11366_s20 }
 0x3b1   : > { %v2449_v20 = vsel %vm1365_vm6, %v12566_v48, %v2410_v57 }
 0x3b2   : > { %v2501_v39 = vmax.f32 %v2345_v2, %v2449_v20 }
 0x3b4   : > { %v2434_v45 = vpop.permute.xlu1 %2433  ;;  %9800 = vrot.lane.b32.xlu0 %v9779_v55, %s11370_s0  ;;  %9795 = vrot.lane.b32.xlu1 %v9779_v55, %s11371_s26  ;;  %v2436_v1 = vpop.permute.xlu0 %2435  ;;  %v12586_v51 = vmul.f32 %v2564_v54, %v2501_v39  ;;  %v19990_v39 = vmax.f32 %v12415_v59, 0.0 }
 0x3b5   : > { %v2462_v53 = vsel %vm1365_vm6, %v2434_v45, %v2436_v1 }
 0x3b6   : > { %v2514_v28 = vmax.f32 %v2358_v11, %v2462_v53  ;;  %19988 = vst [vmem:[#allocation14_spill] sm:$0xff] %v12586_v51 }
 0x3b8   : > { %v12588_v40 = vmul.f32 %v2564_v54, %v2514_v28  ;;  %v2398_v8 = vpop.permute.xlu1 %2397  ;;  %v2396_v2 = vpop.permute.xlu0 %2395  ;;  %v12602_v54 = vrot.slane %v12491_v32, %v11711_v58 }
 0x3b9   : > { %v2442_v33 = vsel %vm1365_vm6, %v2394_v4, %v2396_v2  ;;  %v2444_v30 = vsel %vm1365_vm6, %v2398_v8, %v12506_v15  ;;  %v2443_v11 = vsel %vm1365_vm6, %v2396_v2, %v2398_v8  ;;  %v12606_v4 = vrot.slane %v12491_v32, %v11715_v60 }
 0x3ba   : > { %v2494_v12 = vmax.f32 %v19989_v3, %v2442_v33  ;;  %v2496_v53 = vmax.f32 %v19990_v39, %v2444_v30  ;;  %v19991_v15 = vmax.f32 %v12412_v14, 0.0  ;;  %v19992_v8 = vmax.f32 %v12374_v44, 0.0 }
 0x3bb   : > { %v8686_v44 = vpack.c.bf16 %v12558_v18, %v12547_v23 }
 0x3bc   : > { %v2589_v38 = vmul.f32 %v2536_v6, %v2494_v12  ;;  %v2422_v55 = vpop.permute.xlu1 %2421  ;;  %v2424_v20 = vpop.permute.xlu0 %2423  ;;  %v2495_v28 = vmax.f32 %v19991_v15, %v2443_v11 }
 0x3bd   : > { %v2455_v7 = vsel %vm1365_vm6, %v2420_v41, %v2422_v55  ;;  %v12621_v41 = vmul.f32 %v12602_v54, %v2496_v53 }
 0x3be   : > { %v2507_v2 = vmax.f32 %v19992_v8, %v2455_v7  ;;  %v9809_v33 = vpack.i.bf16 %v2589_v38, %v12547_v23  ;;  %v12624_v59 = vmul.f32 %v12606_v4, %v2495_v28  ;;  %v2456_v8 = vsel %vm1365_vm6, %v2422_v55, %v2424_v20 }
 0x3bf   : > { %19993 = vst [vmem:[#allocation15_spill] sm:$0xff] %v12621_v41  ;;  %v19995_v55 = vmax.f32 %v12458_v17, 0.0  ;;  %v2560_v17 = vrot.slane %v12573_v63, %v11657_v29 }
 0x3c0   : > { %v12616_v3 = vmul.f32 %v2536_v6, %v2507_v2  ;;  %v2406_v12 = vpop.permute.xlu1 %2405  ;;  %9810 = vrot.lane.b32.xlu0 %v9809_v33, %s11364_s19  ;;  %v2404_v19 = vpop.permute.xlu0 %2403  ;;  %9805 = vrot.lane.b32.xlu1 %v9809_v33, %s11362_s17  ;;  %19994 = vst [vmem:[#allocation16_spill] sm:$0xff] %v12624_v59  ;;  %v9829_v11 = vpack.i.bf16 %v12621_v41, %v12624_v59 }
 0x3c1   : > { %v2457_v2 = vsel %vm1365_vm6, %v2424_v20, %v12517_v62  ;;  %v19996_v62 = vmax.f32 %v12349_v37, 0.0  ;;  %v19997_v20 = vmax.f32 %v12405_v13, 0.0  ;;  %v20000_v37 = vmax.f32 %v12427_v10, 0.0 }
 0x3c2   : > { %v8684_v14 = vpack.c.bf16 %v12616_v3, %v2589_v38  ;;  %v2552_v13 = vrot.slane %v12491_v32, %v11751_v26  ;;  %v20004_v10 = vmax.f32 %v12441_v36, 0.0 }
 0x3c4   : > { %9820 = vrot.lane.b32.xlu0 %v9809_v33, %s11369_s2  ;;  %8685 = vmatprep.subr.bf16.mxu1 %v8684_v14  ;;  %v2430_v6 = vpop.permute.xlu1 %2429  ;;  %v2432_v30 = vpop.permute.xlu0 %2431 }
 0x3c5   : > { %9815 = vrot.lane.b32.xlu1 %v9809_v33, %s11366_s20  ;;  %8687 = vmatpush1.bf16.msra.mxu1 %v8686_v44  ;;  %v2461_v23 = vsel %vm1365_vm6, %v2432_v30, %v2434_v45  ;;  %v2459_v53 = vsel %vm1365_vm6, %v12519_v35, %v2430_v6  ;;  %v2568_v45 = vrot.slane %v12573_v63, %v11678_v43 }
 0x3c6   : > { %v2446_v35 = vsel %vm1365_vm6, %v12508_v34, %v2404_v19  ;;  %v2513_v14 = vmax.f32 %v19995_v55, %v2461_v23  ;;  %v9854_v34 = vpack.i.bf16 %v12624_v59, %v2589_v38  ;;  %v20002_v38 = vmax.f32 %v12455_v50, 0.0 }
 0x3c8   : > { %9830 = vrot.lane.b32.xlu0 %v9829_v11, %s11362_s17  ;;  %v12635_v7 = vpop.permute.xlu1 %2437  ;;  %v12637_v39 = vpop.permute.xlu0 %2411 }
 0x3c9   : > { %9825 = vrot.lane.b32.xlu1 %v9809_v33, %s11372_s27  ;;  %v2463_v15 = vsel %vm1365_vm6, %v2436_v1, %v12635_v7  ;;  %v2450_v28 = vsel %vm1365_vm6, %v2410_v57, %v12637_v39  ;;  %v2448_v33 = vsel %vm1365_vm6, %v2406_v12, %v12566_v48  ;;  %v2447_v1 = vsel %vm1365_vm6, %v2404_v19, %v2406_v12 }
 0x3ca   : > { %v2460_v57 = vsel %vm1365_vm6, %v2430_v6, %v2432_v30  ;;  %v2511_v48 = vmax.f32 %v19996_v62, %v2459_v53  ;;  %v2515_v44 = vmax.f32 %v19997_v20, %v2463_v15  ;;  %v2502_v58 = vmax.f32 %v19998_v24, %v2450_v28 }
 0x3cb   : > { %v19999_v19 = vmax.f32 %v12430_v49, 0.0  ;;  %v9859_v6 = vpack.i.bf16 %v12526_v9, %v12621_v41  ;;  %v2508_v30 = vmax.f32 %v20000_v37, %v2456_v8  ;;  %v2498_v24 = vmax.f32 %v20001_v21, %v2446_v35 }
 0x3cc   : > { %9840 = vrot.lane.b32.xlu0 %v9829_v11, %s11366_s20  ;;  %v20003_v49 = vmax.f32 %v12444_v25, 0.0  ;;  %v2556_v53 = vrot.slane %v12573_v63, %v11654_v27  ;;  %v2499_v15 = vmax.f32 %v20004_v10, %v2447_v1  ;;  %v12691_v28 = vmul.f32 %v2560_v17, %v2513_v14 }
 0x3cd   : > { %9835 = vrot.lane.b32.xlu1 %v9829_v11, %s11364_s19  ;;  %v2509_v12 = vmax.f32 %v19999_v19, %v2457_v2  ;;  %v12694_v56 = vmul.f32 %v2552_v13, %v2511_v48  ;;  %v12696_v32 = vmul.f32 %v2568_v45, %v2515_v44  ;;  %v12698_v50 = vmul.f32 %v2568_v45, %v2502_v58 }
 0x3ce   : > { %v2500_v23 = vmax.f32 %v20003_v49, %v2448_v33  ;;  %20005 = vst [vmem:[#allocation17_spill] sm:$0xff] %v12691_v28  ;;  %v12704_v25 = vmul.f32 %v12606_v4, %v2508_v30  ;;  %v12706_v2 = vmul.f32 %v2552_v13, %v2498_v24  ;;  %v12716_v58 = vpack.i.bf16 %v12588_v40, %v12691_v28 }
 0x3cf   : > { %v12701_v8 = vmul.f32 %v12602_v54, %v2509_v12  ;;  %v12718_v45 = vmul.f32 %v2556_v53, %v2499_v15  ;;  %v9874_v54 = vpack.i.bf16 %v12616_v3, %v12558_v18  ;;  %v9984_v44 = vpack.i.bf16 %v12694_v56, %v12528_v22 }
 0x3d0   : > { %9850 = vrot.lane.b32.xlu0 %v9829_v11, %s11372_s27  ;;  %20007 = vst [vmem:[#allocation19_spill] sm:$0xff] %v12704_v25  ;;  %v12711_v33 = vmul.f32 %v2560_v17, %v2500_v23  ;;  %v9879_v62 = vpack.i.bf16 %v12704_v25, %v12616_v3  ;;  %v9939_v3 = vpack.i.bf16 %v12706_v2, %v12526_v9  ;;  %v20018_v10 = vmax.f32 %v12469_v5, 0.0 }
 0x3d1   : > { %9845 = vrot.lane.b32.xlu1 %v9829_v11, %s11369_s2  ;;  %v2512_v11 = vmax.f32 %v20002_v38, %v2460_v57  ;;  %20006 = vst [vmem:[#allocation18_spill] sm:$0xff] %v12701_v8  ;;  %20010 = vst [vmem:[#allocation22_spill] sm:$0xff] %v12718_v45  ;;  %v9884_v1 = vpack.i.bf16 %v12528_v22, %v12701_v8  ;;  %v9919_v48 = vpack.i.bf16 %v12701_v8, %v12704_v25 }
 0x3d2   : > { %20009 = vst [vmem:[#allocation21_spill] sm:$0xff] %v12711_v33  ;;  %v9959_v20 = vpack.i.bf16 %v12711_v33, %v12718_v45 }
 0x3d3   : > { %v12708_v36 = vmul.f32 %v2556_v53, %v2512_v11  ;;  %v2464_v11 = vsel %vm1365_vm6, %v12635_v7, %v12240_v46  ;;  %v2572_v53 = vrot.slane %v12573_v63, %v11715_v60 }
 0x3d4   : > { %9855 = vrot.lane.b32.xlu0 %v9854_v34, %s11371_s26  ;;  %v2516_v15 = vmax.f32 %v20018_v10, %v2464_v11 }
 0x3d5   : > { %9860 = vrot.lane.b32.xlu1 %v9859_v6, %s11371_s26  ;;  %20008 = vst [vmem:[#allocation20_spill] sm:$0xff] %v12708_v36  ;;  %v10019_v37 = vpack.i.bf16 %v12708_v36, %v12694_v56  ;;  %v10049_v49 = vpack.i.bf16 %v12691_v28, %v12708_v36 }
 0x3d6   : > { %v12820_v7 = vmul.f32 %v2572_v53, %v2516_v15 }
 0x3d8   : > { %9865 = vrot.lane.b32.xlu0 %v9854_v34, %s11370_s0  ;;  %20019 = vst [vmem:[#allocation30_spill] sm:$0xff] %v12820_v7 }
 0x3d9   : > { %9870 = vrot.lane.b32.xlu1 %v9859_v6, %s11370_s0  ;;  %v9999_v6 = vpack.i.bf16 %v12718_v45, %v12706_v2 }
 0x3da   : > { %v12770_v34 = vpop.permute.xlu1 %9730  ;;  %v12772_v19 = vpop.permute.xlu0 %9725 }
 0x3db   : > { %20011 = vst [vmem:[#allocation23_spill] sm:$0xff] %v12770_v34  ;;  %20012 = vst [vmem:[#allocation24_spill] sm:$0xff] %v12772_v19 }
 0x3dc   : > { %9875 = vrot.lane.b32.xlu0 %v9874_v54, %s11372_s27 }
 0x3dd   : > { %9885 = vrot.lane.b32.xlu1 %v9884_v1, %s11362_s17 }
 0x3e0   : > { %9880 = vrot.lane.b32.xlu0 %v9879_v62, %s11362_s17 }
 0x3e1   : > { %9890 = vrot.lane.b32.xlu1 %v9879_v62, %s11364_s19 }
 0x3e4   : > { %9895 = vrot.lane.b32.xlu0 %v9884_v1, %s11364_s19 }
 0x3e5   : > { %9905 = vrot.lane.b32.xlu1 %v9884_v1, %s11366_s20 }
 0x3e8   : > { %9900 = vrot.lane.b32.xlu0 %v9879_v62, %s11366_s20 }
 0x3e9   : > { %9910 = vrot.lane.b32.xlu1 %v9879_v62, %s11369_s2 }
 0x3ec   : > { %9915 = vrot.lane.b32.xlu0 %v9884_v1, %s11369_s2 }
 0x3ed   : > { %9920 = vrot.lane.b32.xlu1 %v9919_v48, %s11372_s27  ;;  %v2451_v48 = vsel %vm1365_vm6, %v12637_v39, %v12240_v46  ;;  %vm7335_vm6 = vcmask 523264  }
 0x3f0   : > { %9925 = vrot.lane.b32.xlu0 %v9879_v62, %s11371_s26 }
 0x3f1   : > { %9930 = vrot.lane.b32.xlu1 %v9884_v1, %s11371_s26 }
 0x3f4   : > { %9940 = vrot.lane.b32.xlu0 %v9939_v3, %s11364_s19 }
 0x3f5   : > { %9935 = vrot.lane.b32.xlu1 %v9939_v3, %s11362_s17 }
 0x3f8   : > { %9950 = vrot.lane.b32.xlu0 %v9939_v3, %s11369_s2 }
 0x3f9   : > { %9945 = vrot.lane.b32.xlu1 %v9939_v3, %s11366_s20 }
 0x3fc   : > { %9960 = vrot.lane.b32.xlu0 %v9959_v20, %s11362_s17 }
 0x3fd   : > { %9955 = vrot.lane.b32.xlu1 %v9939_v3, %s11372_s27  ;;  %v20020_v3 = vmax.f32 %v12472_v0, 0.0 }
 0x400   : > { %9970 = vrot.lane.b32.xlu0 %v9959_v20, %s11366_s20 }
 0x401   : > { %9965 = vrot.lane.b32.xlu1 %v9959_v20, %s11364_s19 }
 0x404   : > { %9980 = vrot.lane.b32.xlu0 %v9959_v20, %s11372_s27 }
 0x405   : > { %9975 = vrot.lane.b32.xlu1 %v9959_v20, %s11369_s2  ;;  %v2503_v20 = vmax.f32 %v20020_v3, %v2451_v48  ;;  %v10084_v3 = vpack.i.bf16 %v12698_v50, %v12586_v51 }
 0x408   : > { %9985 = vrot.lane.b32.xlu0 %v9984_v44, %s11372_s27 }
 0x409   : > { %9995 = vrot.lane.b32.xlu1 %v9884_v1, %s11370_s0 }
 0x40c   : > { %9990 = vrot.lane.b32.xlu0 %v9879_v62, %s11370_s0 }
 0x40d   : > { %10015 = vrot.lane.b32.xlu1 %v12716_v58, %s11362_s17 }
 0x40e   : > { %v12777_v12 = vpop.permute.xlu1 %9740  ;;  %v12779_v17 = vpop.permute.xlu0 %9735 }
 0x40f   : > { %v19384_v55 = vunpack.i.h.bf16 %v12777_v12  ;;  %v19390_v10 = vunpack.i.h.bf16 %v12779_v17 }
 0x410   : > { %10000 = vrot.lane.b32.xlu0 %v9999_v6, %s11371_s26 }
 0x411   : > { %10020 = vrot.lane.b32.xlu1 %v10019_v37, %s11364_s19 }
 0x412   : > { %v12787_v30 = vpop.permute.xlu1 %9750  ;;  %v12789_v13 = vpop.permute.xlu0 %9745 }
 0x413   : > { %20013 = vst [vmem:[#allocation25_spill] sm:$0xff] %v12787_v30  ;;  %v19394_v35 = vunpack.i.h.bf16 %v12787_v30 }
 0x414   : > { %10005 = vrot.lane.b32.xlu0 %v9999_v6, %s11370_s0  ;;  %v10064_v6 = vpack.i.bf16 %v12820_v7, %v12696_v32 }
 0x415   : > { %10035 = vrot.lane.b32.xlu1 %v12716_v58, %s11366_s20 }
 0x416   : > { %v12794_v21 = vpop.permute.xlu1 %9765  ;;  %v12796_v24 = vpop.permute.xlu0 %9755 }
 0x417   : > { %20014 = vst [vmem:[#allocation26_spill] sm:$0xff] %v12794_v21  ;;  %20015 = vst [vmem:[#allocation27_spill] sm:$0xff] %v12796_v24 }
 0x418   : > { %10010 = vrot.lane.b32.xlu0 %v10019_v37, %s11362_s17 }
 0x419   : > { %10040 = vrot.lane.b32.xlu1 %v10019_v37, %s11369_s2 }
 0x41a   : > { %v12800_v38 = vpop.permute.xlu1 %9770  ;;  %v12807_v23 = vpop.permute.xlu0 %9760 }
 0x41b   : > { %20016 = vst [vmem:[#allocation28_spill] sm:$0xff] %v12800_v38  ;;  %20017 = vst [vmem:[#allocation29_spill] sm:$0xff] %v12807_v23  ;;  %v19380_v5 = vunpack.i.h.bf16 %v12807_v23  ;;  %v19378_v63 = vunpack.i.l.bf16 %v12807_v23 }
 0x41c   : > { %10025 = vrot.lane.b32.xlu0 %v12716_v58, %s11364_s19 }
 0x41d   : > { %10050 = vrot.lane.b32.xlu1 %v10049_v49, %s11372_s27  ;;  %v12851_v0 = vsel %vm3215_vm15, %v19378_v63, %v19380_v5  ;;  %v12860_v49 = vmul.f32 %v2572_v53, %v2503_v20 }
 0x41e   : > { %v12816_v54 = vpop.permute.xlu1 %9775  ;;  %v12822_v1 = vpop.permute.xlu0 %9780  ;;  %20022 = vst [vmem:[#allocation32_spill] sm:$0xff] %v12851_v0 }
 0x41f   : > { %20024 = vst [vmem:[#allocation34_spill] sm:$0xff] %v12860_v49  ;;  %v10089_v48 = vpack.i.bf16 %v12501_v47, %v12860_v49  ;;  %v19383_v14 = vunpack.i.h.bf16 %v12816_v54  ;;  %v19382_v53 = vunpack.i.l.bf16 %v12816_v54  ;;  %v19389_v20 = vunpack.i.h.bf16 %v12822_v1 }
 0x420   : > { %10030 = vrot.lane.b32.xlu0 %v10019_v37, %s11366_s20  ;;  %v19388_v18 = vunpack.i.l.bf16 %v12822_v1  ;;  %v10164_v25 = vpack.i.bf16 %v12860_v49, %v12698_v50 }
 0x421   : > { %10055 = vrot.lane.b32.xlu1 %v10019_v37, %s11371_s26 }
 0x422   : > { %v12824_v62 = vpop.permute.xlu1 %9785  ;;  %v12842_v11 = vpop.permute.xlu0 %9790 }
 0x423   : > { %v20031_v60 = vunpack.i.h.bf16 %v12824_v62 }
 0x424   : > { %10045 = vrot.lane.b32.xlu0 %v12716_v58, %s11369_s2 }
 0x425   : > { %10060 = vrot.lane.b32.xlu1 %v10019_v37, %s11370_s0 }
 0x426   : > { %v12836_v44 = vpop.permute.xlu1 %9795  ;;  %v12866_v15 = vpop.permute.xlu0 %9800 }
 0x427   : > { %20021 = vst [vmem:[#allocation31_spill] sm:$0xff] %v12836_v44  ;;  %v19381_v46 = vunpack.i.h.bf16 %v12836_v44  ;;  %v19379_v39 = vunpack.i.l.bf16 %v12836_v44 }
 0x428   : > { %10065 = vrot.lane.b32.xlu0 %v10064_v6, %s11362_s17 }
 0x429   : > { %10070 = vrot.lane.b32.xlu1 %v10064_v6, %s11364_s19  ;;  %v12858_v37 = vsel %vm3215_vm15, %v19379_v39, %v19381_v46  ;;  %v2704_v39 = vsel %vm1420_vm8, %v19382_v53, %v19383_v14  ;;  %v12907_v46 = vsel %vm1530_vm9, %v19388_v18, %v19389_v20  ;;  %v19399_v14 = vunpack.i.h.bf16 %v12789_v13 }
 0x42a   : > { %20023 = vst [vmem:[#allocation33_spill] sm:$0xff] %v12858_v37  ;;  %v20043_v37 = vunpack.i.h.bf16 %v12796_v24 }
 0x42c   : > { %10075 = vrot.lane.b32.xlu0 %v10064_v6, %s11366_s20 }
 0x42d   : > { %10080 = vrot.lane.b32.xlu1 %v10064_v6, %s11369_s2 }
 0x430   : > { %10090 = vrot.lane.b32.xlu0 %v10089_v48, %s11362_s17 }
 0x431   : > { %10085 = vrot.lane.b32.xlu1 %v10084_v3, %s11362_s17 }
 0x432   : > { %v12878_v6 = vpop.permute.xlu0 %9810  ;;  %v12881_v47 = vpop.permute.xlu1 %9805 }
 0x433   : > { %v19385_v57 = vunpack.i.l.bf16 %v12878_v6  ;;  %v19391_v63 = vunpack.i.l.bf16 %v12881_v47  ;;  %v20041_v41 = vunpack.i.l.bf16 %v12878_v6 }
 0x434   : > { %10095 = vrot.lane.b32.xlu0 %v10084_v3, %s11364_s19 }
 0x435   : > { %10100 = vrot.lane.b32.xlu1 %v10089_v48, %s11364_s19  ;;  %v12900_v5 = vsel %vm1530_vm9, %v19384_v55, %v19385_v57  ;;  %v2691_v55 = vsel %vm1420_vm8, %v19390_v10, %v19391_v63  ;;  %v20026_v10 = vunpack.i.h.bf16 %v12842_v11  ;;  %v20027_v63 = vunpack.i.l.bf16 %v12842_v11 }
 0x436   : > { %v12911_v4 = vpop.permute.xlu0 %9820  ;;  %v8656_v20 = vpack.c.bf16 %v2704_v39, %v2691_v55 }
 0x437   : > { %v12921_v26 = vpop.permute.xlu1 %9815  ;;  %v9822_v18 = vunpack.i.l.bf16 %v12911_v4  ;;  %v12938_v55 = vsel %vm1750_vm13, %v20027_v63, %v20026_v10  ;;  %v10124_v63 = vpack.i.bf16 %v12586_v51, %v12711_v33  ;;  %v9813_v33 = vunpack.i.h.bf16 %v12878_v6 }
 0x438   : > { %v19400_v53 = vunpack.i.l.bf16 %v12921_v26  ;;  %10110 = vrot.lane.b32.xlu0 %v10089_v48, %s11366_s20  ;;  %8657 = vmatprep.subr.bf16.mxu0 %v8656_v20  ;;  %20028 = vst [vmem:[#allocation36_spill] sm:$0xff] %v12938_v55  ;;  %v9818_v6 = vunpack.i.h.bf16 %v12921_v26 }
 0x439   : > { %10105 = vrot.lane.b32.xlu1 %v10084_v3, %s11366_s20  ;;  %v12931_v57 = vsel %vm1750_vm13, %v19394_v35, %v9822_v18  ;;  %v20032_v35 = vunpack.i.l.bf16 %v12824_v62 }
 0x43a   : > { %20025 = vst [vmem:[#allocation35_spill] sm:$0xff] %v12931_v57  ;;  %v12940_v39 = vpop.permute.xlu0 %9830  ;;  %v12947_v20 = vsel %vm1640_vm11, %v19399_v14, %v19400_v53  ;;  %v10119_v53 = vpack.i.bf16 %v12696_v32, %v12588_v40  ;;  %v20050_v57 = vunpack.i.h.bf16 %v12816_v54 }
 0x43b   : > { %20029 = vst [vmem:[#allocation37_spill] sm:$0xff] %v12940_v39  ;;  %20030 = vst [vmem:[#allocation38_spill] sm:$0xff] %v12947_v20  ;;  %v12954_v43 = vsel %vm1640_vm11, %v20032_v35, %v20031_v60  ;;  %v12958_v10 = vpop.permute.xlu1 %9825  ;;  %v20051_v61 = vunpack.i.h.bf16 %v12940_v39 }
 0x43c   : > { %20033 = vst [vmem:[#allocation39_spill] sm:$0xff] %v12954_v43  ;;  %10115 = vrot.lane.b32.xlu0 %v10084_v3, %s11369_s2  ;;  %v20042_v0 = vunpack.i.l.bf16 %v12958_v10 }
 0x43d   : > { %3106 = vrot.lane.b32.xlu1 %v12820_v7, %s11372_s27 }
 0x43e   : > { %v12965_v14 = vpop.permute.xlu0 %9840  ;;  %v13028_v19 = vsel %vm3108_vm0, %v20043_v37, %v20042_v0 }
 0x43f   : > { %20034 = vst [vmem:[#allocation40_spill] sm:$0xff] %v12965_v14  ;;  %v12969_v60 = vpop.permute.xlu1 %9835  ;;  %20044 = vst [vmem:[#allocation45_spill] sm:$0xff] %v13028_v19  ;;  %v9842_v30 = vunpack.i.l.bf16 %v12965_v14 }
 0x440   : > { %20035 = vst [vmem:[#allocation41_spill] sm:$0xff] %v12969_v60  ;;  %10120 = vrot.lane.b32.xlu0 %v10119_v53, %s11372_s27  ;;  %v20038_v53 = vmov 0.0   ;;  %v9837_v37 = vunpack.i.l.bf16 %v12969_v60  ;;  %v20055_v51 = vunpack.i.h.bf16 %v12969_v60 }
 0x441   : > { %10130 = vrot.lane.b32.xlu1 %v10089_v48, %s11369_s2  ;;  %v10159_v45 = vpack.i.bf16 %v20038_v53, %v12860_v49  ;;  %v10154_v28 = vpack.i.bf16 %v12696_v32, %v20038_v53 }
 0x442   : > { %v12973_v35 = vpop.permute.xlu0 %9850 }
 0x443   : > { %20036 = vst [vmem:[#allocation42_spill] sm:$0xff] %v12973_v35  ;;  %v12977_v42 = vpop.permute.xlu1 %9845 }
 0x444   : > { %20037 = vst [vmem:[#allocation43_spill] sm:$0xff] %v12977_v42  ;;  %10125 = vrot.lane.b32.xlu0 %v10124_v63, %s11371_s26 }
 0x445   : > { %10135 = vrot.lane.b32.xlu1 %v10084_v3, %s11372_s27  ;;  %v9808_v3 = vunpack.i.h.bf16 %v12881_v47 }
 0x446   : > { %v12981_v29 = vpop.permute.xlu0 %9855 }
 0x447   : > { %v12983_v27 = vpop.permute.xlu1 %9860 }
 0x448   : > { %10145 = vrot.lane.b32.xlu0 %v10124_v63, %s11370_s0  ;;  %v20040_v63 = vunpack.i.l.bf16 %v12881_v47  ;;  %v20046_v47 = vunpack.i.h.bf16 %v12800_v38 }
 0x449   : > { %10140 = vrot.lane.b32.xlu1 %v12716_v58, %s11371_s26 }
 0x44a   : > { %v12988_v48 = vpop.permute.xlu0 %9865  ;;  %v2692_v49 = vsel %vm1420_vm8, %v20040_v63, %v9808_v3 }
 0x44b   : > { %v12992_v36 = vpop.permute.xlu1 %9870 }
 0x44c   : > { %10160 = vrot.lane.b32.xlu0 %v10159_v45, %s11372_s27  ;;  %v13020_v45 = vsel %vm1530_vm9, %v20041_v41, %v9813_v33  ;;  %v20048_v41 = vunpack.i.h.bf16 %v12911_v4 }
 0x44d   : > { %10150 = vrot.lane.b32.xlu1 %v12716_v58, %s11370_s0  ;;  %v9832_v58 = vunpack.i.l.bf16 %v12940_v39 }
 0x44e   : > { %v13001_v59 = vpop.permute.xlu0 %9875  ;;  %v13041_v16 = vsel %vm1750_vm13, %v9822_v18, %v20048_v41 }
 0x44f   : > { %v13007_v8 = vpop.permute.xlu1 %9885  ;;  %v20045_v34 = vunpack.i.l.bf16 %v13001_v59  ;;  %v2693_v18 = vsel %vm1420_vm8, %v9808_v3, %v9832_v58 }
 0x450   : > { %20039 = vst [vmem:[#allocation44_spill] sm:$0xff] %v13007_v8  ;;  %10165 = vrot.lane.b32.xlu0 %v10164_v25, %s11371_s26  ;;  %v19434_v55 = vunpack.i.l.bf16 %v13007_v8 }
 0x451   : > { %10155 = vrot.lane.b32.xlu1 %v10154_v28, %s11371_s26  ;;  %v13035_v63 = vsel %vm3108_vm0, %v20046_v47, %v20045_v34 }
 0x452   : > { %20047 = vst [vmem:[#allocation46_spill] sm:$0xff] %v13035_v63  ;;  %v9881_v24 = vpop.permute.xlu0 %9880 }
 0x453   : > { %v9891_v38 = vpop.permute.xlu1 %9890  ;;  %v9883_v34 = vunpack.i.h.bf16 %v9881_v24  ;;  %v9882_v47 = vunpack.i.l.bf16 %v9881_v24 }
 0x454   : > { %v9893_v20 = vunpack.i.h.bf16 %v9891_v38  ;;  %v9892_v43 = vunpack.i.l.bf16 %v9891_v38  ;;  %3213 = vrot.lane.b32.xlu0 %v12820_v7, %s11371_s26 }
 0x455   : > { %v13056_v0 = vsel %vm1420_vm8, %v9883_v34, %v19434_v55  ;;  %v2705_v24 = vsel %vm1420_vm8, %v20050_v57, %v9882_v47  ;;  %10175 = vrot.lane.b32.xlu1 %v10164_v25, %s11370_s0  ;;  %v2706_v38 = vsel %vm1420_vm8, %v9882_v47, %v9883_v34  ;;  %v13070_v55 = vsel %vm1420_vm8, %v9832_v58, %v20051_v61 }
 0x456   : > { %20049 = vst [vmem:[#allocation47_spill] sm:$0xff] %v13056_v0  ;;  %v13064_v19 = vpop.permute.xlu0 %9895  ;;  %v8688_v3 = vpack.c.bf16 %v2706_v38, %v2693_v18  ;;  %v8690_v63 = vpack.c.bf16 %v2705_v24, %v2692_v49  ;;  %v2810_v41 = vsel %vm1530_vm9, %v9892_v43, %v9893_v20  ;;  %20052 = vst [vmem:[#allocation48_spill] sm:$0xff] %v13070_v55  ;;  %v9852_v47 = vunpack.i.l.bf16 %v12973_v35 }
 0x457   : > { %v13073_v57 = vpop.permute.xlu1 %9905  ;;  %v19436_v25 = vunpack.i.l.bf16 %v13064_v19  ;;  %v2797_v34 = vsel %vm1530_vm9, %v9813_v33, %v9837_v37  ;;  %v20053_v18 = vunpack.i.h.bf16 %v12822_v1  ;;  %v20054_v58 = vunpack.i.l.bf16 %v12921_v26  ;;  %v3377_v26 = vld [vmem:[%s19341_s6] sm:$0xff] }
 0x458   : > { %10170 = vrot.lane.b32.xlu0 %v10154_v28, %s11370_s0  ;;  %8689 = vmatprep.subr.bf16.mxu1 %v8688_v3  ;;  %v8692_v24 = vpack.c.bf16 %v2810_v41, %v2797_v34  ;;  %v13090_v33 = vsel %vm1530_vm9, %v9837_v37, %v20055_v51  ;;  %v20058_v41 = vunpack.i.h.bf16 %v12965_v14  ;;  %v9847_v37 = vunpack.i.l.bf16 %v12977_v42 }
 0x459   : > { %v2809_v49 = vsel %vm1530_vm9, %v20053_v18, %v9892_v43  ;;  %v2900_v38 = vsel %vm1640_vm11, %v20054_v58, %v9818_v6  ;;  %20056 = vst [vmem:[#allocation49_spill] sm:$0xff] %v13090_v33  ;;  %v13095_v43 = vsel %vm1530_vm9, %v9893_v20, %v19436_v25  ;;  %3320 = vrot.lane.b32.xlu1 %v12820_v7, %s11370_s0  ;;  %v3378_v20 = vld [vmem:[%s19341_s6 + $0x8] sm:$0xff]  ;;  %v19440_v34 = vunpack.i.l.bf16 %v13073_v57  ;;  %s11380_s0 = smov 64  }
 0x45a   : > { %20057 = vst [vmem:[#allocation50_spill] sm:$0xff] %v13095_v43  ;;  %8691 = vmatpush1.bf16.msra.mxu1 %v8690_v63  ;;  %v13106_v51 = vsel %vm1640_vm11, %v9842_v30, %v20058_v41  ;;  %v9901_v3 = vpop.permute.xlu0 %9900  ;;  %v8694_v25 = vpack.c.bf16 %v2809_v49, %v13020_v45  ;;  %v20060_v41 = vunpack.i.h.bf16 %v12973_v35  ;;  %v2901_v55 = vsel %vm1640_vm11, %v9818_v6, %v9842_v30 }
 0x45b   : > { %20059 = vst [vmem:[#allocation51_spill] sm:$0xff] %v13106_v51  ;;  %8693 = vmatprep.subr.bf16.mxu1 %v8692_v24  ;;  %v9911_v18 = vpop.permute.xlu1 %9910  ;;  %v9903_v58 = vunpack.i.h.bf16 %v9901_v3  ;;  %v9902_v61 = vunpack.i.l.bf16 %v9901_v3  ;;  %v20063_v3 = vunpack.i.h.bf16 %v12824_v62  ;;  %v20064_v6 = vunpack.i.h.bf16 %v12958_v10 }
 0x45c   : > { %v13119_v28 = vsel %vm3108_vm0, %v9852_v47, %v20060_v41  ;;  %v9913_v24 = vunpack.i.h.bf16 %v9911_v18  ;;  %v9912_v7 = vunpack.i.l.bf16 %v9911_v18  ;;  %3381 = vperm.xlu0 %9477, %v3377_v26   ;;  %v20065_v35 = vunpack.i.h.bf16 %v12842_v11 }
 0x45d   : > { %20061 = vst [vmem:[#allocation52_spill] sm:$0xff] %v13119_v28  ;;  %v13126_v63 = vsel %vm1640_vm11, %v9903_v58, %v19440_v34  ;;  %v2913_v45 = vsel %vm1640_vm11, %v20063_v3, %v9902_v61  ;;  %3386 = vperm.xlu1 %9723, %v3378_v20   ;;  %v2914_v49 = vsel %vm1640_vm11, %v9902_v61, %v9903_v58  ;;  %v9878_v34 = vunpack.i.h.bf16 %v13001_v59 }
 0x45e   : > { %20062 = vst [vmem:[#allocation53_spill] sm:$0xff] %v13126_v63  ;;  %8695 = vmatpush1.bf16.msra.mxu1 %v8694_v25  ;;  %v13132_v41 = vpop.permute.xlu0 %9915  ;;  %v8696_v26 = vpack.c.bf16 %v2914_v49, %v2901_v55  ;;  %v8698_v18 = vpack.c.bf16 %v2913_v45, %v2900_v38  ;;  %v3018_v30 = vsel %vm1750_vm13, %v9912_v7, %v9913_v24  ;;  %v20067_v61 = vunpack.i.h.bf16 %v12911_v4 }
 0x45f   : > { %v3112_v0 = vsel %vm3108_vm0, %v20064_v6, %v9852_v47  ;;  %v3017_v3 = vsel %vm1750_vm13, %v20065_v35, %v9912_v7  ;;  %v13142_v20 = vpop.permute.xlu1 %9920  ;;  %v19443_v25 = vunpack.i.l.bf16 %v13132_v41  ;;  %v20068_v35 = vunpack.i.h.bf16 %v12977_v42 }
 0x460   : > { %20066 = vst [vmem:[#allocation54_spill] sm:$0xff] %v13142_v20  ;;  %v3005_v55 = vsel %vm1750_vm13, %v20067_v61, %v9847_v37  ;;  %v19442_v38 = vunpack.i.h.bf16 %v13142_v20  ;;  %v9922_v58 = vunpack.i.l.bf16 %v13142_v20  ;;  %4674 = vrot.lane.b32.xlu0 %v20038_v53, %s11373_s24  ;;  %8697 = vmatprep.subr.bf16.mxu1 %v8696_v26  ;;  %v9858_v4 = vunpack.i.h.bf16 %v12981_v29 }
 0x461   : > { %v8700_v47 = vpack.c.bf16 %v3018_v30, %v3005_v55  ;;  %v13157_v45 = vsel %vm1750_vm13, %v9847_v37, %v20068_v35  ;;  %v9857_v49 = vunpack.i.l.bf16 %v12981_v29  ;;  %v13164_v6 = vsel %vm1750_vm13, %v9913_v24, %v19443_v25  ;;  %4781 = vrot.lane.b32.xlu1 %v20038_v53, %s11374_s25  ;;  %v4971_v29 = vld [vmem:[%s19343_s8] sm:$0xff] }
 0x462   : > { %20069 = vst [vmem:[#allocation55_spill] sm:$0xff] %v13157_v45  ;;  %20070 = vst [vmem:[#allocation56_spill] sm:$0xff] %v13164_v6  ;;  %8699 = vmatpush1.bf16.msra.mxu1 %v8698_v18  ;;  %v13172_v37 = vsel %vm3108_vm0, %v9922_v58, %v19442_v38  ;;  %v9926_v30 = vpop.permute.xlu0 %9925  ;;  %v3125_v24 = vsel %vm3108_vm0, %v9878_v34, %v9922_v58  ;;  %v8702_v7 = vpack.c.bf16 %v3017_v3, %v13041_v16  ;;  %v4972_v16 = vld [vmem:[%s19343_s8 + $0x8] sm:$0xff] }
 0x463   : > { %20071 = vst [vmem:[#allocation57_spill] sm:$0xff] %v13172_v37  ;;  %8701 = vmatprep.subr.bf16.mxu1 %v8700_v47  ;;  %v13180_v55 = vpop.permute.xlu1 %9930  ;;  %v9928_v18 = vunpack.i.h.bf16 %v9926_v30  ;;  %v9927_v35 = vunpack.i.l.bf16 %v9926_v30  ;;  %v20072_v47 = vunpack.i.l.bf16 %v13001_v59  ;;  %v8704_v58 = vpack.c.bf16 %v3125_v24, %v3112_v0 }
 0x464   : > { %v19444_v26 = vunpack.i.l.bf16 %v13180_v55  ;;  %4888 = vrot.lane.b32.xlu0 %v20038_v53, %s11375_s28  ;;  %v20073_v30 = vunpack.i.h.bf16 %v12958_v10  ;;  %v20074_v59 = vunpack.i.l.bf16 %v12958_v10  ;;  %v20089_v20 = vunpack.i.h.bf16 %v12866_v15 }
 0x465   : > { %v3124_v25 = vsel %vm3108_vm0, %v20072_v47, %v9878_v34  ;;  %4976 = vperm.xlu1 %9723, %v4971_v29   ;;  %v3232_v3 = vsel %vm3215_vm15, %v9927_v35, %v9928_v18  ;;  %v20075_v47 = vunpack.i.l.bf16 %v12983_v27  ;;  %v4973_v29 = vld [vmem:[%s19343_s8 + $0x10] sm:$0xff] }
 0x466   : > { %8703 = vmatpush1.bf16.msra.mxu1 %v8702_v7  ;;  %v3111_v34 = vsel %vm3108_vm0, %v20074_v59, %v20073_v30  ;;  %v13208_v0 = vsel %vm3215_vm15, %v9928_v18, %v19444_v26  ;;  %v13210_v7 = vpop.permute.xlu0 %9940  ;;  %v3219_v30 = vsel %vm3215_vm15, %v9857_v49, %v9858_v4 }
 0x467   : > { %v13203_v38 = vsel %vm3215_vm15, %v9858_v4, %v20075_v47  ;;  %20077 = vst [vmem:[#allocation59_spill] sm:$0xff] %v13208_v0  ;;  %20078 = vst [vmem:[#allocation60_spill] sm:$0xff] %v13210_v7  ;;  %8705 = vmatprep.subr.bf16.mxu1 %v8704_v58  ;;  %v13215_v10 = vpop.permute.xlu1 %9935  ;;  %v8706_v24 = vpack.c.bf16 %v3124_v25, %v3111_v34  ;;  %v20080_v47 = vunpack.i.h.bf16 %v12836_v44  ;;  %v20081_v58 = vunpack.i.h.bf16 %v12807_v23 }
 0x468   : > { %20076 = vst [vmem:[#allocation58_spill] sm:$0xff] %v13203_v38  ;;  %20079 = vst [vmem:[#allocation61_spill] sm:$0xff] %v13215_v10  ;;  %4981 = vperm.xlu0 %9477, %v4972_v16   ;;  %v8708_v26 = vpack.c.bf16 %v3232_v3, %v3219_v30  ;;  %v19456_v30 = vunpack.i.l.bf16 %v12992_v36  ;;  %v20092_v42 = vunpack.i.l.bf16 %v13215_v10 }
 0x469   : > { %v3231_v18 = vsel %vm3215_vm15, %v20080_v47, %v9927_v35  ;;  %4986 = vperm.xlu1 %9723, %v4973_v29   ;;  %v3218_v61 = vsel %vm3215_vm15, %v20081_v58, %v9857_v49  ;;  %v19454_v47 = vunpack.i.h.bf16 %v12794_v21 }
 0x46a   : > { %8707 = vmatpush1.bf16.msra.mxu1 %v8706_v24  ;;  %v13226_v28 = vpop.permute.xlu0 %9950  ;;  %v8710_v4 = vpack.c.bf16 %v3231_v18, %v3218_v61  ;;  %v9867_v61 = vunpack.i.l.bf16 %v12988_v48 }
 0x46b   : > { %8709 = vmatprep.subr.bf16.mxu1 %v8708_v26  ;;  %v13228_v25 = vpop.permute.xlu1 %9945  ;;  %v9868_v26 = vunpack.i.h.bf16 %v12988_v48 }
 0x46c   : > { %v3325_v45 = vsel %vm3322_vm1, %v19454_v47, %v9867_v61 }
 0x46d   : > { %v3326_v48 = vsel %vm3322_vm1, %v9867_v61, %v9868_v26  ;;  %v13261_v6 = vsel %vm3322_vm1, %v9868_v26, %v19456_v30  ;;  %v13281_v30 = vld [vmem:[%s19340_s5] sm:$0xff] }
 0x46e   : > { %8711 = vmatpush1.bf16.msra.mxu1 %v8710_v4  ;;  %v13230_v34 = vpop.permute.xlu0 %9960  ;;  %20087 = vst [vmem:[#allocation67_spill] sm:$0xff] %v13261_v6 }
 0x46f   : > { %20082 = vst [vmem:[#allocation62_spill] sm:$0xff] %v13230_v34  ;;  %v13232_v59 = vpop.permute.xlu1 %9955 }
 0x472   : > { %v13234_v35 = vpop.permute.xlu0 %9970 }
 0x473   : > { %20083 = vst [vmem:[#allocation63_spill] sm:$0xff] %v13234_v35  ;;  %v13236_v16 = vpop.permute.xlu1 %9965 }
 0x474   : > { %20084 = vst [vmem:[#allocation64_spill] sm:$0xff] %v13236_v16  ;;  %v20096_v60 = vunpack.i.h.bf16 %v13236_v16 }
 0x476   : > { %v13238_v3 = vpop.permute.xlu0 %9980 }
 0x477   : > { %20085 = vst [vmem:[#allocation65_spill] sm:$0xff] %v13238_v3  ;;  %v13240_v29 = vpop.permute.xlu1 %9975 }
 0x478   : > { %20086 = vst [vmem:[#allocation66_spill] sm:$0xff] %v13240_v29 }
 0x47a   : > { %v13242_v49 = vpop.permute.xlu0 %9985 }
 0x47b   : > { %v13244_v24 = vpop.permute.xlu1 %9995 }
 0x47c   : > { %v19457_v4 = vunpack.i.l.bf16 %v13244_v24 }
 0x47e   : > { %v9991_v18 = vpop.permute.xlu0 %9990 }
 0x47f   : > { %v13252_v38 = vpop.permute.xlu1 %10015  ;;  %v9993_v0 = vunpack.i.h.bf16 %v9991_v18  ;;  %v9992_v37 = vunpack.i.l.bf16 %v9991_v18 }
 0x480   : > { %v19470_v33 = vunpack.i.l.bf16 %v13252_v38 }
 0x481   : > { %v13266_v58 = vsel %vm3322_vm1, %v9993_v0, %v19457_v4  ;;  %v3338_v18 = vsel %vm3322_vm1, %v20089_v20, %v9992_v37  ;;  %v3339_v51 = vsel %vm3322_vm1, %v9992_v37, %v9993_v0  ;;  %v9938_v20 = vunpack.i.h.bf16 %v13215_v10  ;;  %v13312_v4 = vld [vmem:[%s19340_s5 + $0x8] sm:$0xff] }
 0x482   : > { %20088 = vst [vmem:[#allocation68_spill] sm:$0xff] %v13266_v58  ;;  %v13272_v63 = vpop.permute.xlu0 %10000  ;;  %v8712_v47 = vpack.c.bf16 %v3339_v51, %v3326_v48  ;;  %v8714_v61 = vpack.c.bf16 %v3338_v18, %v3325_v45  ;;  %v9943_v0 = vunpack.i.h.bf16 %v13210_v7  ;;  %v20090_v48 = vpack.c.bf16 %v12694_v56, %v12706_v2 }
 0x483   : > { %v13276_v26 = vpop.permute.xlu1 %10020  ;;  %v9962_v18 = vunpack.i.l.bf16 %v13230_v34  ;;  %v9967_v51 = vunpack.i.l.bf16 %v13236_v16  ;;  %v2696_v6 = vsel %vm1420_vm8, %v20092_v42, %v9938_v20  ;;  %v20093_v56 = vunpack.i.l.bf16 %v13210_v7 }
 0x484   : > { %8713 = vmatprep.subr.bf16.mxu1 %v8712_v47  ;;  %v10023_v2 = vunpack.i.h.bf16 %v13276_v26  ;;  %v20091_v47 = vpack.c.bf16 %v12528_v22, %v12526_v9  ;;  %v9972_v9 = vunpack.i.l.bf16 %v13234_v35 }
 0x485   : > { %8715 = vmatpush1.bf16.msra.mxu1 %v8714_v61  ;;  %v2800_v37 = vsel %vm1530_vm9, %v20093_v56, %v9943_v0  ;;  %v13333_v56 = vsel %vm1530_vm9, %v9967_v51, %v20096_v60 }
 0x486   : > { %v13287_v45 = vpop.permute.xlu0 %10005  ;;  %8749 = vmatprep.subr.bf16.mxu1 %v20090_v48  ;;  %v10022_v48 = vunpack.i.l.bf16 %v13276_v26  ;;  %v9948_v26 = vunpack.i.h.bf16 %v13228_v25  ;;  %20097 = vst [vmem:[#allocation70_spill] sm:$0xff] %v13333_v56  ;;  %v20112_v56 = vunpack.i.h.bf16 %v13240_v29 }
 0x487   : > { %v13294_v61 = vpop.permute.xlu1 %10035 }
 0x488   : > { %3531 = vmatmul.mubr.f32.vlgmr.msra.gmra.mrb[24].mxu1 %v13281_v30  ;;  %v2814_v39 = vsel %vm1530_vm9, %v10022_v48, %v10023_v2 }
 0x489   : > { %8751 = vmatpush1.bf16.msra.mxu1 %v20091_v47  ;;  %3536 = vmatprep.mubr.f32.mxu1 %v20038_v53  ;;  %v20094_v47 = vunpack.i.h.bf16 %v13230_v34 }
 0x48a   : > { %v10011_v22 = vpop.permute.xlu0 %10010 }
 0x48b   : > { %v13325_v58 = vsel %vm1420_vm8, %v9962_v18, %v20094_v47  ;;  %v13328_v43 = vpop.permute.xlu1 %10040  ;;  %v10013_v14 = vunpack.i.h.bf16 %v10011_v22  ;;  %v10012_v42 = vunpack.i.l.bf16 %v10011_v22  ;;  %v2697_v47 = vsel %vm1420_vm8, %v9938_v20, %v9962_v18 }
 0x48c   : > { %20095 = vst [vmem:[#allocation69_spill] sm:$0xff] %v13325_v58  ;;  %3537 = vmatmul.mubr.f32.gmra.mrb[26].mxu1 %v13312_v4  ;;  %v20099_v22 = vunpack.i.h.bf16 %v13007_v8  ;;  %v20100_v8 = vunpack.i.h.bf16 %v13064_v19 }
 0x48d   : > { %v13342_v34 = vsel %vm1420_vm8, %v10013_v14, %v19470_v33  ;;  %v2710_v60 = vsel %vm1420_vm8, %v10012_v42, %v10013_v14  ;;  %3684 = vmatprep.mubr.f32.mxu1 %v20038_v53  ;;  %v9953_v33 = vunpack.i.h.bf16 %v13226_v28 }
 0x48e   : > { %20098 = vst [vmem:[#allocation71_spill] sm:$0xff] %v13342_v34  ;;  %v2709_v16 = vsel %vm1420_vm8, %v20099_v22, %v10012_v42  ;;  %v13352_v20 = vpop.permute.xlu0 %10025  ;;  %v8752_v18 = vpack.c.bf16 %v2710_v60, %v2697_v47  ;;  %v2813_v22 = vsel %vm1530_vm9, %v20100_v8, %v10022_v48  ;;  %v2801_v42 = vsel %vm1530_vm9, %v9943_v0, %v9967_v51 }
 0x48f   : > { %v8754_v23 = vpack.c.bf16 %v2709_v16, %v2696_v6  ;;  %v13358_v44 = vpop.permute.xlu1 %10050  ;;  %v19476_v14 = vunpack.i.l.bf16 %v13352_v20  ;;  %v8756_v21 = vpack.c.bf16 %v2814_v39, %v2801_v42  ;;  %v9977_v16 = vunpack.i.l.bf16 %v13240_v29 }
 0x490   : > { %20101 = vst [vmem:[#allocation72_spill] sm:$0xff] %v13358_v44  ;;  %v19477_v7 = vunpack.i.h.bf16 %v13358_v44  ;;  %v10052_v10 = vunpack.i.l.bf16 %v13358_v44  ;;  %8753 = vmatprep.subr.bf16.mxu1 %v8752_v18  ;;  %v10043_v47 = vunpack.i.h.bf16 %v13328_v43  ;;  %v10042_v8 = vunpack.i.l.bf16 %v13328_v43 }
 0x491   : > { %v13372_v48 = vsel %vm1530_vm9, %v10023_v2, %v19476_v14  ;;  %8755 = vmatpush1.bf16.msra.mxu1 %v8754_v23  ;;  %v20103_v0 = vunpack.i.h.bf16 %v13238_v3  ;;  %v20104_v51 = vunpack.i.l.bf16 %v13238_v3  ;;  %v8758_v43 = vpack.c.bf16 %v2813_v22, %v2800_v37 }
 0x492   : > { %20102 = vst [vmem:[#allocation73_spill] sm:$0xff] %v13372_v48  ;;  %v13384_v60 = vsel %vm3108_vm0, %v10052_v10, %v19477_v7  ;;  %v10031_v18 = vpop.permute.xlu0 %10030  ;;  %8757 = vmatprep.subr.bf16.mxu1 %v8756_v21  ;;  %v19480_v23 = vunpack.i.l.bf16 %v13294_v61  ;;  %v2905_v37 = vsel %vm1640_vm11, %v9948_v26, %v9972_v9  ;;  %v20110_v21 = vunpack.i.h.bf16 %v13234_v35 }
 0x493   : > { %v13379_v39 = vsel %vm3108_vm0, %v20104_v51, %v20103_v0  ;;  %20106 = vst [vmem:[#allocation75_spill] sm:$0xff] %v13384_v60  ;;  %v13389_v42 = vpop.permute.xlu1 %10055  ;;  %v10033_v6 = vunpack.i.h.bf16 %v10031_v18  ;;  %v10032_v14 = vunpack.i.l.bf16 %v10031_v18  ;;  %v20107_v51 = vunpack.i.l.bf16 %v13228_v25 }
 0x494   : > { %20105 = vst [vmem:[#allocation74_spill] sm:$0xff] %v13379_v39  ;;  %v20109_v18 = vunpack.i.h.bf16 %v13073_v57  ;;  %v9958_v39 = vunpack.i.h.bf16 %v13232_v59  ;;  %v3009_v48 = vsel %vm1750_vm13, %v9953_v33, %v9977_v16  ;;  %v19496_v35 = vunpack.i.h.bf16 %v12992_v36 }
 0x495   : > { %v2904_v7 = vsel %vm1640_vm11, %v20107_v51, %v9948_v26  ;;  %v13402_v22 = vsel %vm1640_vm11, %v10033_v6, %v19480_v23  ;;  %8759 = vmatpush1.bf16.msra.mxu1 %v8758_v43  ;;  %v2918_v0 = vsel %vm1640_vm11, %v10032_v14, %v10033_v6  ;;  %v3022_v51 = vsel %vm1750_vm13, %v10042_v8, %v10043_v47 }
 0x496   : > { %20108 = vst [vmem:[#allocation76_spill] sm:$0xff] %v13402_v22  ;;  %v2917_v2 = vsel %vm1640_vm11, %v20109_v18, %v10032_v14  ;;  %v13413_v26 = vsel %vm1640_vm11, %v9972_v9, %v20110_v21  ;;  %v13415_v60 = vpop.permute.xlu0 %10045  ;;  %v8760_v23 = vpack.c.bf16 %v2918_v0, %v2905_v37  ;;  %v13420_v18 = vsel %vm1750_vm13, %v9977_v16, %v20112_v56 }
 0x497   : > { %20111 = vst [vmem:[#allocation77_spill] sm:$0xff] %v13413_v26  ;;  %v8762_v44 = vpack.c.bf16 %v2917_v2, %v2904_v7  ;;  %20113 = vst [vmem:[#allocation78_spill] sm:$0xff] %v13420_v18  ;;  %v9988_v14 = vunpack.i.h.bf16 %v13242_v49  ;;  %v13423_v6 = vpop.permute.xlu1 %10060  ;;  %v19485_v43 = vunpack.i.l.bf16 %v13415_v60  ;;  %v20114_v21 = vunpack.i.h.bf16 %v13132_v41 }
 0x498   : > { %8761 = vmatprep.subr.bf16.mxu1 %v8760_v23  ;;  %v8764_v7 = vpack.c.bf16 %v3022_v51, %v3009_v48  ;;  %v19487_v2 = vunpack.i.h.bf16 %v13389_v42  ;;  %v10057_v37 = vunpack.i.l.bf16 %v13389_v42  ;;  %v20116_v9 = vunpack.i.l.bf16 %v13226_v28 }
 0x499   : > { %v3021_v0 = vsel %vm1750_vm13, %v20114_v21, %v10042_v8  ;;  %v13438_v29 = vsel %vm1750_vm13, %v10043_v47, %v19485_v43  ;;  %8763 = vmatpush1.bf16.msra.mxu1 %v8762_v44  ;;  %v3129_v16 = vsel %vm3108_vm0, %v9988_v14, %v10052_v10  ;;  %v10002_v47 = vunpack.i.l.bf16 %v13272_v63 }
 0x49a   : > { %20115 = vst [vmem:[#allocation79_spill] sm:$0xff] %v13438_v29  ;;  %v3008_v8 = vsel %vm1750_vm13, %v20116_v9, %v9953_v33  ;;  %v13445_v23 = vpop.permute.xlu0 %10065  ;;  %8765 = vmatprep.subr.bf16.mxu1 %v8764_v7  ;;  %v20117_v10 = vunpack.i.l.bf16 %v13238_v3  ;;  %v20118_v33 = vunpack.i.l.bf16 %v13242_v49  ;;  %v10062_v51 = vunpack.i.l.bf16 %v13423_v6 }
 0x49b   : > { %v13451_v56 = vpop.permute.xlu1 %10070  ;;  %v8766_v44 = vpack.c.bf16 %v3021_v0, %v3008_v8  ;;  %v3236_v21 = vsel %vm3215_vm15, %v10057_v37, %v19487_v2  ;;  %v20119_v8 = vunpack.i.l.bf16 %v13232_v59  ;;  %v9737_v7 = vunpack.i.l.bf16 %v12779_v17 }
 0x49c   : > { %v3116_v43 = vsel %vm3108_vm0, %v9958_v39, %v20117_v10  ;;  %v3128_v9 = vsel %vm3108_vm0, %v20118_v33, %v9988_v14  ;;  %v10007_v14 = vunpack.i.l.bf16 %v13287_v45  ;;  %v20120_v33 = vunpack.i.h.bf16 %v13272_v63 }
 0x49d   : > { %v8768_v48 = vpack.c.bf16 %v3129_v16, %v3116_v43  ;;  %8767 = vmatpush1.bf16.msra.mxu1 %v8766_v44  ;;  %v3115_v10 = vsel %vm3108_vm0, %v20119_v8, %v9958_v39  ;;  %v19493_v0 = vunpack.i.h.bf16 %v12983_v27  ;;  %v20121_v39 = vunpack.i.h.bf16 %v13180_v55 }
 0x49e   : > { %v13470_v43 = vpop.permute.xlu0 %10075  ;;  %v8770_v44 = vpack.c.bf16 %v3128_v9, %v3115_v10  ;;  %v3223_v2 = vsel %vm3215_vm15, %v10002_v47, %v20120_v33  ;;  %v20122_v29 = vunpack.i.h.bf16 %v13423_v6  ;;  %v9742_v9 = vunpack.i.l.bf16 %v12777_v12 }
 0x49f   : > { %8769 = vmatprep.subr.bf16.mxu1 %v8768_v48  ;;  %v13472_v16 = vpop.permute.xlu1 %10080  ;;  %v3235_v8 = vsel %vm3215_vm15, %v20121_v39, %v10057_v37  ;;  %v8772_v18 = vpack.c.bf16 %v3236_v21, %v3223_v2  ;;  %v3222_v33 = vsel %vm3215_vm15, %v19493_v0, %v10002_v47  ;;  %v20123_v26 = vunpack.i.h.bf16 %v13287_v45 }
 0x4a0   : > { %v3343_v48 = vsel %vm3322_vm1, %v10062_v51, %v20122_v29  ;;  %v10068_v2 = vunpack.i.h.bf16 %v13445_v23  ;;  %v8774_v39 = vpack.c.bf16 %v3235_v8, %v3222_v33  ;;  %v20124_v22 = vunpack.i.h.bf16 %v12779_v17 }
 0x4a1   : > { %8771 = vmatpush1.bf16.msra.mxu1 %v8770_v44  ;;  %v3330_v37 = vsel %vm3322_vm1, %v10007_v14, %v20123_v26  ;;  %v20125_v47 = vunpack.i.h.bf16 %v13244_v24  ;;  %v9747_v26 = vunpack.i.l.bf16 %v12789_v13  ;;  %v20126_v34 = vunpack.i.l.bf16 %v12816_v54 }
 0x4a2   : > { %v10091_v3 = vpop.permute.xlu0 %10090  ;;  %8773 = vmatprep.subr.bf16.mxu1 %v8772_v18  ;;  %v2690_v10 = vsel %vm1420_vm8, %v9737_v7, %v20124_v22  ;;  %v8776_v0 = vpack.c.bf16 %v3343_v48, %v3330_v37  ;;  %v3329_v22 = vsel %vm3322_vm1, %v19496_v35, %v10007_v14  ;;  %v10073_v7 = vunpack.i.h.bf16 %v13451_v56 }
 0x4a3   : > { %v13494_v21 = vpop.permute.xlu1 %10085  ;;  %v10093_v44 = vunpack.i.h.bf16 %v10091_v3  ;;  %v10092_v29 = vunpack.i.l.bf16 %v10091_v3  ;;  %v3342_v18 = vsel %vm3322_vm1, %v20125_v47, %v10062_v51  ;;  %v10067_v51 = vunpack.i.l.bf16 %v13445_v23 }
 0x4a4   : > { %v10088_v58 = vunpack.i.h.bf16 %v13494_v21  ;;  %v20127_v54 = vunpack.i.h.bf16 %v12777_v12  ;;  %v19504_v33 = vunpack.i.l.bf16 %v13494_v21 }
 0x4a5   : > { %v2703_v3 = vsel %vm1420_vm8, %v10093_v44, %v20126_v34  ;;  %8775 = vmatpush1.bf16.msra.mxu1 %v8774_v39  ;;  %v2702_v17 = vsel %vm1420_vm8, %v10092_v29, %v12245_v31  ;;  %v8778_v44 = vpack.c.bf16 %v3342_v18, %v3329_v22  ;;  %v2715_v39 = vsel %vm1420_vm8, %v10068_v2, %v12245_v31 }
 0x4a6   : > { %v13515_v8 = vpop.permute.xlu0 %10095  ;;  %8777 = vmatprep.subr.bf16.mxu1 %v8776_v0  ;;  %v8658_v48 = vpack.c.bf16 %v2703_v3, %v2690_v10  ;;  %v2794_v34 = vsel %vm1530_vm9, %v9742_v9, %v20127_v54  ;;  %v13524_v23 = vpack.c.bf16 %v2715_v39, %v2702_v17  ;;  %v20128_v0 = vunpack.i.h.bf16 %v12789_v13 }
 0x4a7   : > { %v10101_v37 = vpop.permute.xlu1 %10100  ;;  %v10098_v35 = vunpack.i.h.bf16 %v13515_v8  ;;  %v19502_v9 = vunpack.i.h.bf16 %v13252_v38  ;;  %v10072_v10 = vunpack.i.l.bf16 %v13451_v56  ;;  %v20129_v18 = vpack.c.bf16 %v12907_v46, %v12900_v5 }
 0x4a8   : > { %v10103_v14 = vunpack.i.h.bf16 %v10101_v37  ;;  %v10102_v47 = vunpack.i.l.bf16 %v10101_v37  ;;  %8659 = vmatpush1.bf16.msra.mxu0 %v8658_v48  ;;  %v2898_v12 = vsel %vm1640_vm11, %v9747_v26, %v20128_v0  ;;  %v2701_v3 = vsel %vm1420_vm8, %v10088_v58, %v10092_v29  ;;  %v20133_v0 = vld [vmem:[#allocation14_spill] sm:$0xff] }
 0x4a9   : > { %8661 = vmatprep.subr.bf16.mxu0 %v20129_v18  ;;  %8779 = vmatpush1.bf16.msra.mxu1 %v8778_v44  ;;  %v10078_v22 = vunpack.i.h.bf16 %v13470_v43  ;;  %v20130_v17 = vunpack.i.l.bf16 %v12822_v1  ;;  %v20131_v26 = vpack.c.bf16 %v12696_v32, %v12698_v50  ;;  %v2714_v56 = vsel %vm1420_vm8, %v10067_v51, %v10068_v2 }
 0x4aa   : > { %v10111_v13 = vpop.permute.xlu0 %10110  ;;  %v2819_v5 = vsel %vm1530_vm9, %v10073_v7, %v12261_v52  ;;  %v2700_v46 = vsel %vm1420_vm8, %v19504_v33, %v10088_v58  ;;  %v19498_v44 = vunpack.i.l.bf16 %v13515_v8  ;;  %v8816_v32 = vpack.c.bf16 %v2714_v56, %v2701_v3 }
 0x4ab   : > { %v2807_v48 = vsel %vm1530_vm9, %v10103_v14, %v20130_v17  ;;  %8813 = vmatprep.subr.bf16.mxu1 %v20131_v26  ;;  %v13548_v29 = vpop.permute.xlu1 %10105  ;;  %v10113_v54 = vunpack.i.h.bf16 %v10111_v13  ;;  %v10112_v1 = vunpack.i.l.bf16 %v10111_v13  ;;  %v2805_v50 = vsel %vm1530_vm9, %v10098_v35, %v10102_v47  ;;  %v20135_v17 = vld [vmem:[#allocation12_spill] sm:$0xff]  ;;  %v20137_v13 = vld [vmem:[#allocation38_spill] sm:$0xff] }
 0x4ac   : > { %v8662_v37 = vpack.c.bf16 %v2807_v48, %v2794_v34  ;;  %3685 = vmatmul.mubr.f32.vlgmr.msra.gmra.mrb[28].mxu1 %v13281_v30  ;;  %v2806_v2 = vsel %vm1530_vm9, %v10102_v47, %v12261_v52  ;;  %v10108_v39 = vunpack.i.h.bf16 %v13548_v29  ;;  %v20132_v14 = vunpack.i.l.bf16 %v12824_v62  ;;  %v20136_v48 = vld [vmem:[#allocation39_spill] sm:$0xff] }
 0x4ad   : > { %v20134_v34 = vpack.c.bf16 %v12588_v40, %v20133_v0  ;;  %v13562_v18 = vpack.c.bf16 %v2819_v5, %v2806_v2  ;;  %v2910_v3 = vsel %vm1640_vm11, %v10112_v1, %v20135_v17  ;;  %v2713_v47 = vsel %vm1420_vm8, %v19502_v9, %v10067_v51  ;;  %3690 = vmatprep.mubr.f32.mxu1 %v20038_v53  ;;  %v20140_v0 = vld [vmem:[#allocation28_spill] sm:$0xff] }
 0x4ae   : > { %v2911_v58 = vsel %vm1640_vm11, %v10113_v54, %v20132_v14  ;;  %8663 = vmatpush1.bf16.msra.mxu0 %v8662_v37  ;;  %v20138_v26 = vpack.c.bf16 %v20136_v48, %v20137_v13  ;;  %v13572_v62 = vpop.permute.xlu0 %10115  ;;  %v2818_v40 = vsel %vm1530_vm9, %v10072_v10, %v10073_v7  ;;  %v10077_v5 = vunpack.i.l.bf16 %v13470_v43  ;;  %v20142_v48 = vld [vmem:[#allocation35_spill] sm:$0xff] }
 0x4af   : > { %8815 = vmatpush1.bf16.msra.mxu1 %v20134_v34  ;;  %v8666_v56 = vpack.c.bf16 %v2911_v58, %v2898_v12  ;;  %v19499_v54 = vunpack.i.l.bf16 %v13548_v29  ;;  %v13577_v37 = vpop.permute.xlu1 %3106  ;;  %v8818_v2 = vpack.c.bf16 %v2713_v47, %v2700_v46  ;;  %v2923_v51 = vsel %vm1640_vm11, %v10078_v22, %v20135_v17 }
 0x4b0   : > { %8665 = vmatprep.subr.bf16.mxu0 %v20138_v26  ;;  %8817 = vmatprep.subr.bf16.mxu1 %v8816_v32  ;;  %v19497_v14 = vunpack.i.h.bf16 %v13352_v20  ;;  %v2804_v12 = vsel %vm1530_vm9, %v19498_v44, %v10098_v35  ;;  %v8820_v7 = vpack.c.bf16 %v2818_v40, %v2805_v50  ;;  %v13587_v43 = vpack.c.bf16 %v2923_v51, %v2910_v3  ;;  %v20139_v32 = vld [vmem:[#allocation25_spill] sm:$0xff]  ;;  %v20141_v3 = vld [vmem:[#allocation36_spill] sm:$0xff] }
 0x4b1   : > { %3691 = vmatmul.mubr.f32.gmra.mrb[30].mxu1 %v13312_v4  ;;  %v9752_v58 = vunpack.i.l.bf16 %v20139_v32  ;;  %v9772_v34 = vunpack.i.l.bf16 %v20140_v0  ;;  %v2909_v46 = vsel %vm1640_vm11, %v10108_v39, %v10112_v1  ;;  %v19501_v17 = vunpack.i.h.bf16 %v13294_v61 }
 0x4b2   : > { %8667 = vmatpush1.bf16.msra.mxu0 %v8666_v56  ;;  %v2817_v47 = vsel %vm1530_vm9, %v19497_v14, %v10072_v10  ;;  %v10083_v35 = vunpack.i.h.bf16 %v13472_v16  ;;  %v10082_v50 = vunpack.i.l.bf16 %v13472_v16  ;;  %v20143_v13 = vpack.c.bf16 %v20141_v3, %v20142_v48  ;;  %v13601_v26 = vpop.permute.xlu0 %10120  ;;  %3838 = vmatprep.mubr.f32.mxu1 %v20038_v53  ;;  %v20145_v14 = vld [vmem:[#allocation27_spill] sm:$0xff] }
 0x4b3   : > { %8819 = vmatpush1.bf16.msra.mxu1 %v8818_v2  ;;  %v2908_v1 = vsel %vm1640_vm11, %v19499_v54, %v10108_v39  ;;  %v10118_v56 = vunpack.i.h.bf16 %v13572_v62  ;;  %v10131_v40 = vpop.permute.xlu1 %10130  ;;  %v8822_v2 = vpack.c.bf16 %v2817_v47, %v2804_v12  ;;  %v2922_v10 = vsel %vm1640_vm11, %v10077_v5, %v10078_v22 }
 0x4b4   : > { %8669 = vmatprep.subr.bf16.mxu0 %v20143_v13  ;;  %8821 = vmatprep.subr.bf16.mxu1 %v8820_v7  ;;  %v19500_v16 = vunpack.i.l.bf16 %v13572_v62  ;;  %v10133_v51 = vunpack.i.h.bf16 %v10131_v40  ;;  %v10132_v3 = vunpack.i.l.bf16 %v10131_v40  ;;  %v8824_v48 = vpack.c.bf16 %v2922_v10, %v2909_v46 }
 0x4b5   : > { %v20144_v13 = vunpack.i.h.bf16 %v20139_v32  ;;  %v9757_v44 = vunpack.i.l.bf16 %v20145_v14  ;;  %v20146_v39 = vunpack.i.h.bf16 %v20140_v0  ;;  %v2921_v22 = vsel %vm1640_vm11, %v19501_v17, %v10077_v5  ;;  %v20156_v17 = vld [vmem:[#allocation31_spill] sm:$0xff] }
 0x4b6   : > { %v20147_v12 = vunpack.i.l.bf16 %v12842_v11  ;;  %v13623_v46 = vpop.permute.xlu0 %10125  ;;  %v3013_v32 = vsel %vm1750_vm13, %v10118_v56, %v10132_v3  ;;  %v3026_v10 = vsel %vm1750_vm13, %v10082_v50, %v10083_v35  ;;  %v19503_v11 = vunpack.i.h.bf16 %v13415_v60 }
 0x4b7   : > { %v3002_v7 = vsel %vm1750_vm13, %v9752_v58, %v20144_v13  ;;  %v3122_v54 = vsel %vm3108_vm0, %v9772_v34, %v20146_v39  ;;  %8823 = vmatpush1.bf16.msra.mxu1 %v8822_v2  ;;  %v20148_v58 = vld [vmem:[#allocation13_spill] sm:$0xff]  ;;  %v13628_v0 = vpop.permute.xlu1 %10135  ;;  %v8826_v2 = vpack.c.bf16 %v2921_v22, %v2908_v1  ;;  %v20149_v39 = vld [vmem:[#allocation23_spill] sm:$0xff]  ;;  %v9802_v1 = vunpack.i.l.bf16 %v12866_v15 }
 0x4b8   : > { %v3015_v47 = vsel %vm1750_vm13, %v10133_v51, %v20147_v12  ;;  %8825 = vmatprep.subr.bf16.mxu1 %v8824_v48  ;;  %v3014_v40 = vsel %vm1750_vm13, %v10132_v3, %v20148_v58  ;;  %v3027_v5 = vsel %vm1750_vm13, %v10083_v35, %v20148_v58  ;;  %v3012_v51 = vsel %vm1750_vm13, %v19500_v16, %v10118_v56 }
 0x4b9   : > { %v8670_v34 = vpack.c.bf16 %v3015_v47, %v3002_v7  ;;  %v8828_v48 = vpack.c.bf16 %v3026_v10, %v3013_v32  ;;  %v13637_v13 = vpack.c.bf16 %v3027_v5, %v3014_v40  ;;  %v9733_v3 = vunpack.i.h.bf16 %v20149_v39  ;;  %v20150_v7 = vld [vmem:[#allocation24_spill] sm:$0xff]  ;;  %v20152_v40 = vld [vmem:[#allocation46_spill] sm:$0xff]  ;;  %v20153_v10 = vld [vmem:[#allocation45_spill] sm:$0xff] }
 0x4ba   : > { %v9732_v12 = vunpack.i.l.bf16 %v20149_v39  ;;  %v9728_v22 = vunpack.i.h.bf16 %v20150_v7  ;;  %v20151_v35 = vunpack.i.h.bf16 %v20145_v14  ;;  %v3025_v56 = vsel %vm1750_vm13, %v19503_v11, %v10082_v50  ;;  %v13653_v39 = vpop.permute.xlu0 %10145 }
 0x4bb   : > { %8671 = vmatpush1.bf16.msra.mxu0 %v8670_v34  ;;  %8827 = vmatpush1.bf16.msra.mxu1 %v8826_v2  ;;  %v20154_v5 = vpack.c.bf16 %v20152_v40, %v20153_v10  ;;  %v9727_v34 = vunpack.i.l.bf16 %v20150_v7  ;;  %v20155_v2 = vld [vmem:[#allocation26_spill] sm:$0xff]  ;;  %v13657_v14 = vpop.permute.xlu1 %10140  ;;  %v20157_v9 = vunpack.i.l.bf16 %v20156_v17  ;;  %v10138_v11 = vunpack.i.h.bf16 %v13628_v0 }
 0x4bc   : > { %v3109_v47 = vsel %vm3108_vm0, %v9757_v44, %v20151_v35  ;;  %8829 = vmatprep.subr.bf16.mxu1 %v8828_v48  ;;  %v9767_v16 = vunpack.i.l.bf16 %v20155_v2  ;;  %v8830_v35 = vpack.c.bf16 %v3025_v56, %v3012_v51  ;;  %v19512_v40 = vunpack.i.l.bf16 %v13628_v0 }
 0x4bd   : > { %8673 = vmatprep.subr.bf16.mxu0 %v20154_v5  ;;  %v8674_v44 = vpack.c.bf16 %v3122_v54, %v3109_v47  ;;  %v3229_v50 = vsel %vm3215_vm15, %v9728_v22, %v20157_v9  ;;  %v19509_v10 = vunpack.i.l.bf16 %v13657_v14  ;;  %v20158_v5 = vld [vmem:[#allocation29_spill] sm:$0xff]  ;;  %v3336_v33 = vsel %vm3322_vm1, %v9733_v3, %v9802_v1 }
 0x4be   : > { %v20159_v48 = vunpack.i.l.bf16 %v20158_v5  ;;  %v10123_v32 = vunpack.i.h.bf16 %v13601_v26  ;;  %v20160_v54 = vunpack.i.h.bf16 %v12866_v15  ;;  %v19511_v17 = vunpack.i.l.bf16 %v13601_v26 }
 0x4bf   : > { %8675 = vmatpush1.bf16.msra.mxu0 %v8674_v44  ;;  %8831 = vmatpush1.bf16.msra.mxu1 %v8830_v35  ;;  %v20161_v51 = vunpack.i.l.bf16 %v13623_v46  ;;  %v20162_v22 = vunpack.i.h.bf16 %v13272_v63  ;;  %v20163_v3 = vunpack.i.h.bf16 %v13389_v42  ;;  %v19506_v15 = vunpack.i.l.bf16 %v13653_v39  ;;  %v13692_v35 = vpop.permute.xlu0 %10160  ;;  %v13694_v5 = vpop.permute.xlu1 %10150 }
 0x4c0   : > { %v3216_v7 = vsel %vm3215_vm15, %v9727_v34, %v20159_v48  ;;  %v3337_v9 = vsel %vm3322_vm1, %v9802_v1, %v20160_v54  ;;  %v20164_v34 = vld [vmem:[#allocation33_spill] sm:$0xff]  ;;  %v20165_v1 = vld [vmem:[#allocation32_spill] sm:$0xff]  ;;  %v19505_v63 = vunpack.i.l.bf16 %v13692_v35  ;;  %v20167_v54 = vunpack.i.h.bf16 %v20155_v2 }
 0x4c1   : > { %v13679_v47 = vsel %vm3215_vm15, %v20162_v22, %v20161_v51  ;;  %v13686_v56 = vsel %vm3215_vm15, %v20163_v3, %v19509_v10  ;;  %v20166_v44 = vpack.c.bf16 %v20164_v34, %v20165_v1  ;;  %v8678_v48 = vpack.c.bf16 %v3229_v50, %v3216_v7 }
 0x4c2   : > { %v3324_v42 = vsel %vm3322_vm1, %v9767_v16, %v20167_v54  ;;  %v3323_v22 = vsel %vm3322_vm1, %v9732_v12, %v9767_v16  ;;  %v3119_v3 = vsel %vm3108_vm0, %v19512_v40, %v10138_v11  ;;  %v19507_v34 = vunpack.i.l.bf16 %v13694_v5  ;;  %v20185_v40 = vld [vmem:[#allocation41_spill] sm:$0xff] }
 0x4c3   : > { %8677 = vmatprep.subr.bf16.mxu0 %v20166_v44  ;;  %v8680_v1 = vpack.c.bf16 %v3337_v9, %v3324_v42  ;;  %v8682_v44 = vpack.c.bf16 %v3336_v33, %v3323_v22  ;;  %v3120_v2 = vsel %vm3108_vm0, %v10138_v11, %v19505_v63  ;;  %v3133_v50 = vsel %vm3108_vm0, %v10123_v32, %v13577_v37  ;;  %v13729_v9 = vpop.permute.xlu0 %10165  ;;  %v13731_v54 = vpop.permute.xlu1 %10155  ;;  %v20174_v22 = vld [vmem:[#allocation18_spill] sm:$0xff] }
 0x4c4   : > { %8679 = vmatpush1.bf16.msra.mxu0 %v8678_v48  ;;  %v3132_v16 = vsel %vm3108_vm0, %v19511_v17, %v10123_v32  ;;  %v20168_v12 = vunpack.i.h.bf16 %v13287_v45  ;;  %v20169_v33 = vunpack.i.h.bf16 %v13423_v6  ;;  %v8832_v48 = vpack.c.bf16 %v3133_v50, %v3120_v2  ;;  %v20172_v50 = vld [vmem:[#allocation37_spill] sm:$0xff] }
 0x4c5   : > { %8681 = vmatprep.subr.bf16.mxu0 %v8680_v1  ;;  %v19514_v32 = vunpack.i.h.bf16 %v13729_v9  ;;  %v10167_v45 = vunpack.i.l.bf16 %v13729_v9  ;;  %v8834_v42 = vpack.c.bf16 %v3132_v16, %v3119_v3  ;;  %v19510_v6 = vunpack.i.h.bf16 %v13657_v14  ;;  %v20170_v1 = vld [vmem:[#allocation61_spill] sm:$0xff] }
 0x4c6   : > { %v13720_v7 = vsel %vm3322_vm1, %v20168_v12, %v19506_v15  ;;  %v13727_v11 = vsel %vm3322_vm1, %v20169_v33, %v19507_v34  ;;  %v19508_v12 = vunpack.i.h.bf16 %v13623_v46  ;;  %v10158_v33 = vunpack.i.h.bf16 %v13731_v54  ;;  %8833 = vmatprep.subr.bf16.mxu1 %v8832_v48  ;;  %v20175_v15 = vld [vmem:[#allocation15_spill] sm:$0xff] }
 0x4c7   : > { %8835 = vmatpush1.bf16.msra.mxu1 %v8834_v42  ;;  %v20171_v2 = vunpack.i.l.bf16 %v20170_v1  ;;  %v20173_v63 = vunpack.i.h.bf16 %v20172_v50  ;;  %v20176_v34 = vpack.c.bf16 %v20174_v22, %v20175_v15  ;;  %v13756_v48 = vpop.permute.xlu1 %10175  ;;  %v20186_v58 = vunpack.i.h.bf16 %v20185_v40 }
 0x4c8   : > { %8683 = vmatpush1.bf16.msra.mxu0 %v8682_v44  ;;  %v3239_v3 = vsel %vm3215_vm15, %v19510_v6, %v10158_v33  ;;  %v3226_v16 = vsel %vm3215_vm15, %v19508_v12, %v10167_v45  ;;  %v13754_v44 = vpop.permute.xlu0 %3213  ;;  %v3227_v12 = vsel %vm3215_vm15, %v10167_v45, %v19514_v32  ;;  %v10177_v15 = vunpack.i.l.bf16 %v13756_v48  ;;  %v20180_v6 = vld [vmem:[#allocation19_spill] sm:$0xff] }
 0x4c9   : > { %v2695_v51 = vsel %vm1420_vm8, %v20173_v63, %v20171_v2  ;;  %8717 = vmatprep.subr.bf16.mxu0 %v20176_v34  ;;  %v3240_v42 = vsel %vm3215_vm15, %v10158_v33, %v13754_v44  ;;  %v20177_v63 = vld [vmem:[#allocation44_spill] sm:$0xff]  ;;  %v19515_v10 = vunpack.i.h.bf16 %v13756_v48  ;;  %v10148_v32 = vunpack.i.h.bf16 %v13653_v39 }
 0x4ca   : > { %v20178_v1 = vunpack.i.h.bf16 %v20177_v63  ;;  %v20179_v2 = vunpack.i.l.bf16 %v20177_v63  ;;  %v8836_v22 = vpack.c.bf16 %v3240_v42, %v3227_v12  ;;  %v20181_v33 = vld [vmem:[#allocation16_spill] sm:$0xff]  ;;  %v8838_v63 = vpack.c.bf16 %v3239_v3, %v3226_v16 }
 0x4cb   : > { %3454 = vmatmul.mubr.f32.vlgmr.msra.gmra.mrb[16].mxu0 %v13281_v30  ;;  %v20182_v17 = vpack.c.bf16 %v20180_v6, %v20181_v33  ;;  %v10153_v12 = vunpack.i.h.bf16 %v13694_v5  ;;  %v20188_v3 = vunpack.i.l.bf16 %v13064_v19  ;;  %v13793_v40 = vpop.permute.xlu1 %3320 }
 0x4cc   : > { %v2708_v50 = vsel %vm1420_vm8, %v20179_v2, %v20178_v1  ;;  %3459 = vmatprep.mubr.f32.mxu0 %v20038_v53  ;;  %v20183_v1 = vld [vmem:[#allocation60_spill] sm:$0xff]  ;;  %8837 = vmatprep.subr.bf16.mxu1 %v8836_v22 }
 0x4cd   : > { %v8720_v34 = vpack.c.bf16 %v2708_v50, %v2695_v51  ;;  %8719 = vmatpush1.bf16.msra.mxu0 %v20182_v17  ;;  %v20184_v2 = vunpack.i.l.bf16 %v20183_v1  ;;  %v13781_v51 = vpop.permute.xlu0 %10170  ;;  %8839 = vmatpush1.bf16.msra.mxu1 %v8838_v63  ;;  %v20187_v17 = vunpack.i.h.bf16 %v13064_v19  ;;  %v20189_v50 = vunpack.i.l.bf16 %v13228_v25  ;;  %v20192_v63 = vld [vmem:[#allocation47_spill] sm:$0xff]  ;;  %v20193_v1 = vld [vmem:[#allocation48_spill] sm:$0xff] }
 0x4ce   : > { %v10173_v6 = vunpack.i.h.bf16 %v13781_v51 }
 0x4cf   : > { %v2799_v45 = vsel %vm1530_vm9, %v20186_v58, %v20184_v2  ;;  %8721 = vmatprep.subr.bf16.mxu0 %v8720_v34  ;;  %v2812_v16 = vsel %vm1530_vm9, %v20188_v3, %v20187_v17  ;;  %v3333_v58 = vsel %vm3322_vm1, %v10148_v32, %v10177_v15  ;;  %3460 = vmatmul.mubr.f32.gmra.mrb[18].mxu0 %v13312_v4  ;;  %v20190_v34 = vld [vmem:[#allocation40_spill] sm:$0xff] }
 0x4d0   : > { %v8724_v42 = vpack.c.bf16 %v2812_v16, %v2799_v45  ;;  %v20191_v22 = vunpack.i.h.bf16 %v20190_v34  ;;  %v3346_v19 = vsel %vm3322_vm1, %v10153_v12, %v10173_v6  ;;  %v20194_v2 = vpack.c.bf16 %v20192_v63, %v20193_v1  ;;  %3607 = vmatprep.mubr.f32.mxu0 %v20038_v53  ;;  %v20197_v63 = vld [vmem:[#allocation50_spill] sm:$0xff]  ;;  %v20198_v1 = vld [vmem:[#allocation49_spill] sm:$0xff] }
 0x4d1   : > { %v3334_v17 = vsel %vm3322_vm1, %v10177_v15, %v19515_v10  ;;  %v3347_v45 = vsel %vm3322_vm1, %v10173_v6, %v13793_v40  ;;  %v8842_v3 = vpack.c.bf16 %v3346_v19, %v3333_v58  ;;  %v20195_v16 = vunpack.i.h.bf16 %v13073_v57  ;;  %v20201_v6 = vld [vmem:[#allocation43_spill] sm:$0xff] }
 0x4d2   : > { %v2903_v33 = vsel %vm1640_vm11, %v20191_v22, %v20189_v50  ;;  %8723 = vmatpush1.bf16.msra.mxu0 %v20194_v2  ;;  %v8840_v25 = vpack.c.bf16 %v3347_v45, %v3334_v17  ;;  %v20196_v50 = vunpack.i.l.bf16 %v13073_v57  ;;  %v20199_v2 = vpack.c.bf16 %v20197_v63, %v20198_v1  ;;  %v20205_v17 = vld [vmem:[#allocation53_spill] sm:$0xff]  ;;  %v20206_v45 = vld [vmem:[#allocation51_spill] sm:$0xff]  ;;  %v20214_v1 = vld [vmem:[#allocation56_spill] sm:$0xff] }
 0x4d3   : > { %8725 = vmatprep.subr.bf16.mxu0 %v8724_v42  ;;  %v20200_v15 = vunpack.i.l.bf16 %v13226_v28  ;;  %v20202_v10 = vunpack.i.h.bf16 %v20201_v6  ;;  %v20203_v58 = vunpack.i.h.bf16 %v13132_v41  ;;  %v20204_v57 = vunpack.i.l.bf16 %v13132_v41 }
 0x4d4   : > { %v2916_v34 = vsel %vm1640_vm11, %v20196_v50, %v20195_v16  ;;  %8841 = vmatprep.subr.bf16.mxu1 %v8840_v25  ;;  %v20207_v25 = vpack.c.bf16 %v20205_v17, %v20206_v45  ;;  %v20208_v28 = vunpack.i.l.bf16 %v13242_v49  ;;  %v20211_v41 = vunpack.i.l.bf16 %v13232_v59  ;;  %v20212_v50 = vld [vmem:[#allocation42_spill] sm:$0xff]  ;;  %v20222_v17 = vld [vmem:[#allocation52_spill] sm:$0xff] }
 0x4d5   : > { %v8728_v22 = vpack.c.bf16 %v2916_v34, %v2903_v33  ;;  %8843 = vmatpush1.bf16.msra.mxu1 %v8842_v3  ;;  %v3007_v42 = vsel %vm1750_vm13, %v20202_v10, %v20200_v15  ;;  %v3020_v19 = vsel %vm1750_vm13, %v20204_v57, %v20203_v58  ;;  %v20209_v3 = vld [vmem:[#allocation54_spill] sm:$0xff]  ;;  %v20213_v34 = vunpack.i.h.bf16 %v20212_v50 }
 0x4d6   : > { %8727 = vmatpush1.bf16.msra.mxu0 %v20199_v2  ;;  %v8732_v33 = vpack.c.bf16 %v3020_v19, %v3007_v42  ;;  %v20210_v10 = vunpack.i.h.bf16 %v20209_v3  ;;  %v20215_v2 = vld [vmem:[#allocation55_spill] sm:$0xff]  ;;  %v20217_v49 = vunpack.i.h.bf16 %v13180_v55  ;;  %v20218_v6 = vunpack.i.l.bf16 %v13180_v55  ;;  %v20229_v50 = vld [vmem:[#allocation58_spill] sm:$0xff] }
 0x4d7   : > { %8729 = vmatprep.subr.bf16.mxu0 %v8728_v22  ;;  %v3114_v22 = vsel %vm3108_vm0, %v20213_v34, %v20211_v41  ;;  %v20216_v15 = vpack.c.bf16 %v20214_v1, %v20215_v2  ;;  %v20219_v59 = vunpack.i.h.bf16 %v12983_v27  ;;  %v20220_v58 = vunpack.i.l.bf16 %v12983_v27  ;;  %v20228_v41 = vld [vmem:[#allocation59_spill] sm:$0xff]  ;;  %v20235_v2 = vld [vmem:[#allocation62_spill] sm:$0xff] }
 0x4d8   : > { %3839 = vmatmul.mubr.f32.vlgmr.msra.gmra.mrb[32].mxu1 %v13281_v30  ;;  %v3127_v16 = vsel %vm3108_vm0, %v20210_v10, %v20208_v28  ;;  %v3234_v42 = vsel %vm3215_vm15, %v20218_v6, %v20217_v49  ;;  %v20225_v55 = vunpack.i.l.bf16 %v13244_v24  ;;  %v20226_v3 = vunpack.i.h.bf16 %v12992_v36  ;;  %v20237_v6 = vld [vmem:[#allocation17_spill] sm:$0xff] }
 0x4d9   : > { %3844 = vmatprep.mubr.f32.mxu1 %v20038_v53  ;;  %v8736_v63 = vpack.c.bf16 %v3127_v16, %v3114_v22  ;;  %v3221_v57 = vsel %vm3215_vm15, %v20220_v58, %v20219_v59  ;;  %v20227_v10 = vunpack.i.l.bf16 %v12992_v36  ;;  %v20230_v34 = vpack.c.bf16 %v20228_v41, %v20229_v50  ;;  %v20231_v22 = vld [vmem:[#allocation68_spill] sm:$0xff]  ;;  %v20238_v36 = vld [vmem:[#allocation21_spill] sm:$0xff] }
 0x4da   : > { %8731 = vmatpush1.bf16.msra.mxu0 %v20207_v25  ;;  %v8740_v19 = vpack.c.bf16 %v3234_v42, %v3221_v57  ;;  %v20224_v25 = vunpack.i.h.bf16 %v13244_v24  ;;  %v20234_v24 = vunpack.i.l.bf16 %v13494_v21  ;;  %v20239_v42 = vpack.c.bf16 %v20237_v6, %v20238_v36  ;;  %v20251_v41 = vld [vmem:[#allocation69_spill] sm:$0xff]  ;;  %v20262_v36 = vld [vmem:[#allocation66_spill] sm:$0xff] }
 0x4db   : > { %8733 = vmatprep.subr.bf16.mxu0 %v8732_v33  ;;  %v20221_v33 = vld [vmem:[#allocation57_spill] sm:$0xff]  ;;  %v3328_v27 = vsel %vm3322_vm1, %v20227_v10, %v20226_v3  ;;  %v20240_v59 = vunpack.i.h.bf16 %v13252_v38  ;;  %v20241_v58 = vunpack.i.l.bf16 %v13252_v38  ;;  %v20248_v38 = vunpack.i.h.bf16 %v13352_v20 }
 0x4dc   : > { %3845 = vmatmul.mubr.f32.gmra.mrb[34].mxu1 %v13312_v4  ;;  %v20223_v45 = vpack.c.bf16 %v20221_v33, %v20222_v17  ;;  %v3341_v28 = vsel %vm3322_vm1, %v20225_v55, %v20224_v25  ;;  %v20242_v33 = vld [vmem:[#allocation20_spill] sm:$0xff]  ;;  %v20243_v17 = vld [vmem:[#allocation22_spill] sm:$0xff]  ;;  %v20249_v3 = vunpack.i.l.bf16 %v13352_v20  ;;  %v20256_v20 = vunpack.i.h.bf16 %v13294_v61 }
 0x4dd   : > { %5053 = vmatprep.mubr.f32.mxu1 %v20038_v53  ;;  %v8744_v16 = vpack.c.bf16 %v3341_v28, %v3328_v27  ;;  %v2712_v57 = vsel %vm1420_vm8, %v20241_v58, %v20240_v59  ;;  %v20244_v21 = vpack.c.bf16 %v20242_v33, %v20243_v17  ;;  %v20246_v25 = vld [vmem:[#allocation64_spill] sm:$0xff]  ;;  %v20264_v58 = vunpack.i.h.bf16 %v13415_v60  ;;  %v20267_v17 = vld [vmem:[#allocation77_spill] sm:$0xff] }
 0x4de   : > { %8735 = vmatpush1.bf16.msra.mxu0 %v20216_v15  ;;  %v20236_v15 = vunpack.i.h.bf16 %v20235_v2  ;;  %v20247_v55 = vunpack.i.h.bf16 %v20246_v25  ;;  %v2816_v10 = vsel %vm1530_vm9, %v20249_v3, %v20248_v38  ;;  %v20266_v33 = vld [vmem:[#allocation76_spill] sm:$0xff]  ;;  %v20270_v25 = vld [vmem:[#allocation65_spill] sm:$0xff] }
 0x4df   : > { %8737 = vmatprep.subr.bf16.mxu0 %v8736_v63  ;;  %v20232_v63 = vld [vmem:[#allocation67_spill] sm:$0xff]  ;;  %v20273_v38 = vld [vmem:[#allocation72_spill] sm:$0xff] }
 0x4e0   : > { %v20233_v1 = vpack.c.bf16 %v20231_v22, %v20232_v63  ;;  %v2699_v49 = vsel %vm1420_vm8, %v20236_v15, %v20234_v24  ;;  %v20258_v15 = vld [vmem:[#allocation73_spill] sm:$0xff]  ;;  %v20274_v3 = vunpack.i.h.bf16 %v20273_v38 }
 0x4e2   : > { %8739 = vmatpush1.bf16.msra.mxu0 %v20223_v45  ;;  %v20245_v45 = vunpack.i.l.bf16 %v13515_v8  ;;  %v20253_v8 = vunpack.i.l.bf16 %v13548_v29  ;;  %v20261_v29 = vunpack.i.l.bf16 %v13572_v62  ;;  %v20271_v62 = vunpack.i.h.bf16 %v20270_v25 }
 0x4e3   : > { %8741 = vmatprep.subr.bf16.mxu0 %v8740_v19  ;;  %v8784_v19 = vpack.c.bf16 %v2712_v57, %v2699_v49  ;;  %v20259_v49 = vld [vmem:[#allocation70_spill] sm:$0xff]  ;;  %v20265_v57 = vunpack.i.l.bf16 %v13415_v60 }
 0x4e4   : > { %v2803_v28 = vsel %vm1530_vm9, %v20247_v55, %v20245_v45  ;;  %v20260_v6 = vpack.c.bf16 %v20258_v15, %v20259_v49  ;;  %v20269_v45 = vunpack.i.l.bf16 %v13628_v0  ;;  %v20279_v0 = vunpack.i.l.bf16 %v13657_v14 }
 0x4e5   : > { %v8788_v27 = vpack.c.bf16 %v2816_v10, %v2803_v28  ;;  %v20272_v28 = vunpack.i.l.bf16 %v13601_v26  ;;  %v20281_v26 = vunpack.i.l.bf16 %v13623_v46  ;;  %v20286_v15 = vunpack.i.l.bf16 %v13653_v39 }
 0x4e6   : > { %8743 = vmatpush1.bf16.msra.mxu0 %v20230_v34  ;;  %v20254_v34 = vld [vmem:[#allocation63_spill] sm:$0xff]  ;;  %v3118_v55 = vsel %vm3108_vm0, %v20271_v62, %v20269_v45  ;;  %v10163_v39 = vunpack.i.h.bf16 %v13692_v35  ;;  %v14028_v45 = vpop.permute.xlu1 %3386 }
 0x4e7   : > { %8745 = vmatprep.subr.bf16.mxu0 %v8744_v16  ;;  %v20250_v16 = vld [vmem:[#allocation71_spill] sm:$0xff]  ;;  %v20255_v22 = vunpack.i.h.bf16 %v20254_v34  ;;  %v3131_v60 = vsel %vm3108_vm0, %v20274_v3, %v20272_v28  ;;  %v20280_v34 = vunpack.i.h.bf16 %v13623_v46  ;;  %v3332_v46 = vsel %vm3322_vm1, %v20286_v15, %v10148_v32 }
 0x4e8   : > { %v20252_v50 = vpack.c.bf16 %v20250_v16, %v20251_v41  ;;  %v8800_v10 = vpack.c.bf16 %v3131_v60, %v3118_v55  ;;  %v20276_v16 = vld [vmem:[#allocation78_spill] sm:$0xff] }
 0x4e9   : > { %v2907_v63 = vsel %vm1640_vm11, %v20255_v22, %v20253_v8  ;;  %v3225_v22 = vsel %vm3215_vm15, %v20281_v26, %v20280_v34 }
 0x4ea   : > { %8747 = vmatpush1.bf16.msra.mxu0 %v20233_v1  ;;  %v20257_v1 = vunpack.i.l.bf16 %v13294_v61  ;;  %v3024_v61 = vsel %vm1750_vm13, %v20265_v57, %v20264_v58 }
 0x4eb   : > { %8781 = vmatprep.subr.bf16.mxu0 %v20239_v42  ;;  %v20263_v42 = vunpack.i.h.bf16 %v20262_v36  ;;  %v20289_v36 = vld [vmem:[#allocation30_spill] sm:$0xff] }
 0x4ec   : > { %v2920_v24 = vsel %vm1640_vm11, %v20257_v1, %v20256_v20  ;;  %v20282_v20 = vld [vmem:[#allocation75_spill] sm:$0xff]  ;;  %v20283_v1 = vld [vmem:[#allocation74_spill] sm:$0xff] }
 0x4ed   : > { %3608 = vmatmul.mubr.f32.vlgmr.msra.gmra.mrb[20].mxu0 %v13281_v30  ;;  %v8792_v2 = vpack.c.bf16 %v2920_v24, %v2907_v63  ;;  %v3011_v59 = vsel %vm1750_vm13, %v20263_v42, %v20261_v29  ;;  %v20284_v24 = vpack.c.bf16 %v20282_v20, %v20283_v1  ;;  %v20288_v29 = vld [vmem:[#allocation34_spill] sm:$0xff] }
 0x4ee   : > { %8783 = vmatpush1.bf16.msra.mxu0 %v20244_v21  ;;  %3613 = vmatprep.mubr.f32.mxu0 %v20038_v53  ;;  %v20268_v21 = vpack.c.bf16 %v20266_v33, %v20267_v17  ;;  %v8844_v42 = vpack.c.bf16 %v20289_v36, %v20288_v29 }
 0x4ef   : > { %8785 = vmatprep.subr.bf16.mxu0 %v8784_v19  ;;  %v8796_v19 = vpack.c.bf16 %v3024_v61, %v3011_v59 }
 0x4f1   : > { %3614 = vmatmul.mubr.f32.gmra.mrb[22].mxu0 %v13312_v4 }
 0x4f2   : > { %8787 = vmatpush1.bf16.msra.mxu0 %v20252_v50  ;;  %3761 = vmatprep.mubr.f32.mxu0 %v20038_v53  ;;  %v20278_v50 = vunpack.i.h.bf16 %v13657_v14 }
 0x4f3   : > { %8789 = vmatprep.subr.bf16.mxu0 %v8788_v27  ;;  %v20275_v27 = vld [vmem:[#allocation79_spill] sm:$0xff] }
 0x4f4   : > { %v20277_v41 = vpack.c.bf16 %v20275_v27, %v20276_v16  ;;  %v3238_v8 = vsel %vm3215_vm15, %v20279_v0, %v20278_v50 }
 0x4f5   : > { %v8804_v63 = vpack.c.bf16 %v3238_v8, %v3225_v22 }
 0x4f6   : > { %8791 = vmatpush1.bf16.msra.mxu0 %v20260_v6  ;;  %v20287_v6 = vpack.c.bf16 %v13686_v56, %v13679_v47  ;;  %v20291_v47 = vunpack.i.l.bf16 %v13692_v35 }
 0x4f7   : > { %8793 = vmatprep.subr.bf16.mxu0 %v8792_v2  ;;  %v20285_v2 = vunpack.i.l.bf16 %v13694_v5  ;;  %v20290_v5 = vpack.c.bf16 %v13727_v11, %v13720_v7  ;;  %v3134_v7 = vsel %vm3108_vm0, %v13577_v37, %v10163_v39  ;;  %v10172_v11 = vunpack.i.l.bf16 %v13781_v51 }
 0x4f8   : > { %v3121_v56 = vsel %vm3108_vm0, %v20291_v47, %v10163_v39 }
 0x4f9   : > { %v3345_v14 = vsel %vm3322_vm1, %v20285_v2, %v10153_v12  ;;  %v3348_v12 = vsel %vm3322_vm1, %v13793_v40, %v10172_v11 }
 0x4fa   : > { %8795 = vmatpush1.bf16.msra.mxu0 %v20268_v21  ;;  %v8808_v49 = vpack.c.bf16 %v3345_v14, %v3332_v46 }
 0x4fb   : > { %8797 = vmatprep.subr.bf16.mxu0 %v8796_v19  ;;  %v14019_v19 = vpop.permute.xlu0 %3381 }
 0x4fe   : > { %8799 = vmatpush1.bf16.msra.mxu0 %v20277_v41 }
 0x4ff   : > { %8801 = vmatprep.subr.bf16.mxu0 %v8800_v10 }
 0x502   : > { %8803 = vmatpush1.bf16.msra.mxu0 %v20284_v24 }
 0x503   : > { %8805 = vmatprep.subr.bf16.mxu0 %v8804_v63 }
 0x506   : > { %8807 = vmatpush1.bf16.msra.mxu0 %v20287_v6 }
 0x507   : > { %8809 = vmatprep.subr.bf16.mxu0 %v8808_v49 }
 0x50a   : > { %8811 = vmatpush1.bf16.msra.mxu0 %v20290_v5 }
 0x50b   : > { %8845 = vmatprep.subr.bf16.mxu0 %v8844_v42 }
 0x50d   : > { %3762 = vmatmul.mubr.f32.vlgmr.msra.gmra.mrb[24].mxu0 %v13281_v30 }
 0x50e   : > { %8847 = vmatpush3.bf16.msra.mxu0 %v8844_v42  ;;  %3767 = vmatprep.mubr.f32.mxu0 %v20038_v53 }
 0x50f   : > { %8849 = vmatprep.subr.bf16.mxu0 %v13524_v23 }
 0x511   : > { %3768 = vmatmul.mubr.f32.gmra.mrb[26].mxu0 %v13312_v4 }
 0x512   : > { %8851 = vmatpush3.bf16.msra.mxu0 %v13524_v23  ;;  %8456 = vmatprep.mubr.f32.mxu0 %v13281_v30  ;;  %v14001_v30 = vunpack.i.l.bf16 %v13731_v54  ;;  %v8864_v23 = vpack.c.bf16 %v3134_v7, %v3121_v56  ;;  %v20294_v54 = vunpack.i.h.bf16 %v13756_v48 }
 0x513   : > { %8853 = vmatprep.subr.bf16.mxu0 %v13562_v18 }
 0x514   : > { %20292 = vst [vmem:[#allocation14_spill] sm:$0xff] %v14001_v30  ;;  %v3335_v32 = vsel %vm3322_vm1, %v20294_v54, %v10172_v11 }
 0x516   : > { %8855 = vmatpush3.bf16.msra.mxu0 %v13562_v18  ;;  %v3241_v18 = vsel %vm3215_vm15, %v13754_v44, %v14001_v30  ;;  %v8872_v44 = vpack.c.bf16 %v3348_v12, %v3335_v32 }
 0x517   : > { %8857 = vmatprep.subr.bf16.mxu0 %v13587_v43 }
 0x51a   : > { %8859 = vmatpush3.bf16.msra.mxu0 %v13587_v43  ;;  %v20293_v43 = vunpack.i.h.bf16 %v13729_v9 }
 0x51b   : > { %8861 = vmatprep.subr.bf16.mxu0 %v13637_v13 }
 0x51c   : > { %v3228_v37 = vsel %vm3215_vm15, %v20293_v43, %v14001_v30 }
 0x51d   : > { %v8868_v35 = vpack.c.bf16 %v3241_v18, %v3228_v37 }
 0x51e   : > { %8863 = vmatpush3.bf16.msra.mxu0 %v13637_v13 }
 0x51f   : > { %8865 = vmatprep.subr.bf16.mxu0 %v8864_v23 }
 0x522   : > { %8867 = vmatpush3.bf16.msra.mxu0 %v8864_v23 }
 0x523   : > { %8869 = vmatprep.subr.bf16.mxu0 %v8868_v35 }
 0x526   : > { %8871 = vmatpush3.bf16.msra.mxu0 %v8868_v35 }
 0x527   : > { %8873 = vmatprep.subr.bf16.mxu0 %v8872_v44 }
 0x52a   : > { %8875 = vmatpush3.bf16.msra.mxu0 %v8872_v44 }
 0x52d   : > { %8457 = vmatmul.mubr.f32.vlgmr.msra.gmra.mrb[28].mxu0 %v13312_v4 }
 0x52e   : > { %5136 = vmatprep.mubr.f32.mxu0 %v20038_v53 }
 0x55b   : > { %v3532_v13 = vpop.f32.mrb[24].mxu1 }
 0x55c   : > { %v3534_v9 = vpop.f32.mrb[25].mxu1  ;;  %v14045_v60 = vadd.f32 %v3532_v13, %v14019_v19 }
 0x55d   : > { %v14048_v10 = vadd.f32 %v3534_v9, %v14019_v19 }
 0x55e   : > { %v3928_v16 = vmax.f32 %v14045_v60, 0.0 }
 0x55f   : > { %v3538_v51 = vpop.f32.mrb[26].mxu1  ;;  %v3929_v41 = vmax.f32 %v14048_v10, 0.0 }
 0x560   : > { %v3540_v59 = vpop.f32.mrb[27].mxu1  ;;  %v14060_v50 = vadd.f32 %v3538_v51, %v14028_v45 }
 0x561   : > { %v14063_v0 = vadd.f32 %v3540_v59, %v14028_v45 }
 0x562   : > { %v3941_v26 = vmax.f32 %v14060_v50, 0.0  ;;  %v20304_v50 = vld [vmem:[#allocation6_spill] sm:$0xff] }
 0x563   : > { %v3942_v22 = vmax.f32 %v14063_v0, 0.0 }
 0x57f   : > { %v3686_v58 = vpop.f32.mrb[28].mxu1 }
 0x580   : > { %v3688_v48 = vpop.f32.mrb[29].mxu1  ;;  %v14101_v5 = vadd.f32 %v3686_v58, %v14019_v19 }
 0x581   : > { %v14104_v39 = vadd.f32 %v3688_v48, %v14019_v19 }
 0x582   : > { %v3932_v56 = vmax.f32 %v14101_v5, 0.0 }
 0x583   : > { %v19525_v7 = vmax.f32 %v14104_v39, 0.0 }
 0x584   : > { %v3692_v57 = vpop.f32.mrb[30].mxu1 }
 0x585   : > { %v3694_v61 = vpop.f32.mrb[31].mxu1  ;;  %v14116_v23 = vadd.f32 %v3692_v57, %v14028_v45 }
 0x586   : > { %v14119_v18 = vadd.f32 %v3694_v61, %v14028_v45 }
 0x587   : > { %v19528_v11 = vmax.f32 %v14116_v23, 0.0 }
 0x588   : > { %v19527_v43 = vmax.f32 %v14119_v18, 0.0 }
 0x59e   : > { %v3455_v40 = vpop.f32.mrb[16].mxu0 }
 0x59f   : > { %v14022_v33 = vadd.f32 %v3455_v40, %v14019_v19  ;;  %v3457_v17 = vpop.f32.mrb[17].mxu0 }
 0x5a0   : > { %v14025_v21 = vadd.f32 %v3457_v17, %v14019_v19 }
 0x5a1   : > { %v3926_v4 = vmax.f32 %v14022_v33, 0.0 }
 0x5a2   : > { %v3927_v25 = vmax.f32 %v14025_v21, 0.0  ;;  %v3461_v62 = vpop.f32.mrb[18].mxu0 }
 0x5a3   : > { %v14032_v55 = vadd.f32 %v3461_v62, %v14028_v45  ;;  %v3463_v28 = vpop.f32.mrb[19].mxu0  ;;  %3978 = vrot.lane.b32.xlu0 %v3926_v4, %s11362_s17 }
 0x5a4   : > { %v14038_v38 = vadd.f32 %v3463_v28, %v14028_v45  ;;  %3980 = vrot.lane.b32.xlu1 %v3927_v25, %s11362_s17 }
 0x5a5   : > { %v3939_v3 = vmax.f32 %v14032_v55, 0.0 }
 0x5a6   : > { %v3940_v27 = vmax.f32 %v14038_v38, 0.0 }
 0x5a8   : > { %4004 = vrot.lane.b32.xlu1 %v3939_v3, %s11362_s17  ;;  %4006 = vrot.lane.b32.xlu0 %v3940_v27, %s11362_s17 }
 0x5ab   : > { %v3840_v8 = vpop.f32.mrb[32].mxu1 }
 0x5ac   : > { %v3842_v34 = vpop.f32.mrb[33].mxu1  ;;  %3984 = vrot.lane.b32.xlu1 %v3929_v41, %s11362_s17  ;;  %3982 = vrot.lane.b32.xlu0 %v3928_v16, %s11362_s17  ;;  %v14157_v48 = vadd.f32 %v3840_v8, %v14019_v19 }
 0x5ad   : > { %v14160_v57 = vadd.f32 %v3842_v34, %v14019_v19 }
 0x5ae   : > { %v19523_v40 = vmax.f32 %v14157_v48, 0.0 }
 0x5af   : > { %v3846_v63 = vpop.f32.mrb[34].mxu1  ;;  %v19516_v17 = vmax.f32 %v14160_v57, 0.0 }
 0x5b0   : > { %v3848_v20 = vpop.f32.mrb[35].mxu1  ;;  %4008 = vrot.lane.b32.xlu1 %v3941_v26, %s11362_s17  ;;  %4010 = vrot.lane.b32.xlu0 %v3942_v22, %s11362_s17  ;;  %v14172_v62 = vadd.f32 %v3846_v63, %v14028_v45 }
 0x5b1   : > { %v14175_v28 = vadd.f32 %v3848_v20, %v14028_v45 }
 0x5b2   : > { %v19520_v8 = vmax.f32 %v14172_v62, 0.0 }
 0x5b3   : > { %v19519_v34 = vmax.f32 %v14175_v28, 0.0 }
 0x5c0   : > { %v3609_v1 = vpop.f32.mrb[20].mxu0 }
 0x5c1   : > { %v14080_v24 = vadd.f32 %v3609_v1, %v14019_v19  ;;  %v3611_v2 = vpop.f32.mrb[21].mxu0 }
 0x5c2   : > { %v14083_v14 = vadd.f32 %v3611_v2, %v14019_v19 }
 0x5c3   : > { %v3930_v15 = vmax.f32 %v14080_v24, 0.0 }
 0x5c4   : > { %v19530_v46 = vmax.f32 %v14083_v14, 0.0  ;;  %v3615_v49 = vpop.f32.mrb[22].mxu0 }
 0x5c5   : > { %v14088_v6 = vadd.f32 %v3615_v49, %v14028_v45  ;;  %v3617_v29 = vpop.f32.mrb[23].mxu0  ;;  %3986 = vrot.lane.b32.xlu0 %v3930_v15, %s11362_s17 }
 0x5c6   : > { %v14094_v36 = vadd.f32 %v3617_v29, %v14028_v45  ;;  %3988 = vrot.lane.b32.xlu1 %v19530_v46, %s11362_s17 }
 0x5c7   : > { %v3943_v42 = vmax.f32 %v14088_v6, 0.0 }
 0x5c8   : > { %v19529_v47 = vmax.f32 %v14094_v36, 0.0 }
 0x5ca   : > { %4012 = vrot.lane.b32.xlu1 %v3943_v42, %s11362_s17  ;;  %4014 = vrot.lane.b32.xlu0 %v19529_v47, %s11362_s17 }
 0x5ce   : > { %3992 = vrot.lane.b32.xlu1 %v19525_v7, %s11362_s17  ;;  %3990 = vrot.lane.b32.xlu0 %v3932_v56, %s11362_s17 }
 0x5d2   : > { %4016 = vrot.lane.b32.xlu1 %v19528_v11, %s11362_s17  ;;  %4018 = vrot.lane.b32.xlu0 %v19527_v43, %s11362_s17  ;;  %v20302_v11 = vld [vmem:[#allocation4_spill] sm:$0xff] }
 0x5e0   : > { %v3763_v37 = vpop.f32.mrb[24].mxu0 }
 0x5e1   : > { %v14136_v35 = vadd.f32 %v3763_v37, %v14019_v19  ;;  %v3765_v54 = vpop.f32.mrb[25].mxu0  ;;  %v14205_v37 = vpop.permute.xlu0 %4674 }
 0x5e2   : > { %v14139_v32 = vadd.f32 %v3765_v54, %v14019_v19  ;;  %20295 = vst [vmem:[#allocation12_spill] sm:$0xff] %v14205_v37 }
 0x5e3   : > { %v19524_v12 = vmax.f32 %v14136_v35, 0.0 }
 0x5e4   : > { %v19522_v44 = vmax.f32 %v14139_v32, 0.0  ;;  %v3769_v13 = vpop.f32.mrb[26].mxu0 }
 0x5e5   : > { %v14144_v9 = vadd.f32 %v3769_v13, %v14028_v45  ;;  %v3771_v51 = vpop.f32.mrb[27].mxu0  ;;  %3994 = vrot.lane.b32.xlu0 %v19524_v12, %s11362_s17  ;;  %v14209_v54 = vpop.permute.xlu0 %4888 }
 0x5e6   : > { %v14150_v59 = vadd.f32 %v3771_v51, %v14028_v45  ;;  %3996 = vrot.lane.b32.xlu1 %v19522_v44, %s11362_s17  ;;  %20297 = vst [vmem:[#allocation38_spill] sm:$0xff] %v14209_v54 }
 0x5e7   : > { %v19526_v58 = vmax.f32 %v14144_v9, 0.0 }
 0x5e8   : > { %v19521_v61 = vmax.f32 %v14150_v59, 0.0 }
 0x5e9   : > { %v14213_v13 = vpop.permute.xlu0 %4981 }
 0x5ea   : > { %4020 = vrot.lane.b32.xlu1 %v19526_v58, %s11362_s17  ;;  %4022 = vrot.lane.b32.xlu0 %v19521_v61, %s11362_s17  ;;  %20299 = vst [vmem:[#allocation28_spill] sm:$0xff] %v14213_v13 }
 0x5ee   : > { %4000 = vrot.lane.b32.xlu1 %v19516_v17, %s11362_s17  ;;  %3998 = vrot.lane.b32.xlu0 %v19523_v40, %s11362_s17  ;;  %v14220_v17 = vld [vmem:[%s19348_s13] sm:$0xff] }
 0x5f2   : > { %4024 = vrot.lane.b32.xlu1 %v19520_v8, %s11362_s17  ;;  %4026 = vrot.lane.b32.xlu0 %v19519_v34, %s11362_s17 }
 0x600   : > { %v8458_v63 = vpop.f32.mrb[28].mxu0 }
 0x601   : > { %v14192_v20 = vadd.f32 %v8458_v63, %v14028_v45  ;;  %v3917_v1 = vpop.f32.mrb[29].mxu0  ;;  %v14207_v45 = vpop.permute.xlu1 %4781 }
 0x602   : > { %v14195_v2 = vadd.f32 %v3917_v1, %v14019_v19  ;;  %20296 = vst [vmem:[#allocation39_spill] sm:$0xff] %v14207_v45 }
 0x603   : > { %v19518_v49 = vmax.f32 %v14192_v20, 0.0 }
 0x604   : > { %v19517_v29 = vmax.f32 %v14195_v2, 0.0 }
 0x605   : > { %4028 = vrot.lane.b32.xlu1 %v19518_v49, %s11362_s17  ;;  %v14211_v19 = vpop.permute.xlu1 %4976  ;;  %v20301_v49 = vld [vmem:[#allocation3_spill] sm:$0xff] }
 0x606   : > { %4002 = vrot.lane.b32.xlu0 %v19517_v29, %s11362_s17  ;;  %20298 = vst [vmem:[#allocation25_spill] sm:$0xff] %v14211_v19  ;;  %v4115_v34 = vrot.slane %v14220_v17, %v20301_v49  ;;  %s11376_s17 = smov 96  }
 0x609   : > { %v14215_v51 = vpop.permute.xlu1 %4986 }
 0x60a   : > { %20300 = vst [vmem:[#allocation36_spill] sm:$0xff] %v14215_v51 }
 0x615   : > { %v3979_v63 = vpop.permute.xlu0 %3978 }
 0x616   : > { %v3981_v1 = vpop.permute.xlu1 %3980 }
 0x617   : > { %v4030_v29 = vsel %vm1420_vm8, %v3979_v63, %v3981_v1  ;;  %v4119_v63 = vrot.slane %v14220_v17, %v20302_v11 }
 0x618   : > { %v4082_v8 = vmax.f32 %v3926_v4, %v4030_v29 }
 0x61a   : > { %v4005_v61 = vpop.permute.xlu1 %4004  ;;  %v4007_v44 = vpop.permute.xlu0 %4006  ;;  %v4177_v7 = vmul.f32 %v4115_v34, %v4082_v8 }
 0x61b   : > { %v4043_v40 = vsel %vm1420_vm8, %v4005_v61, %v4007_v44 }
 0x61c   : > { %v4095_v12 = vmax.f32 %v3939_v3, %v4043_v40  ;;  %v20303_v3 = vld [vmem:[#allocation5_spill] sm:$0xff] }
 0x61e   : > { %v14230_v58 = vmul.f32 %v4115_v34, %v4095_v12  ;;  %v3985_v43 = vpop.permute.xlu1 %3984  ;;  %v3983_v47 = vpop.permute.xlu0 %3982  ;;  %v4123_v12 = vrot.slane %v14220_v17, %v20303_v3 }
 0x61f   : > { %v4031_v46 = vsel %vm1420_vm8, %v3981_v1, %v3983_v47  ;;  %v4032_v61 = vsel %vm1420_vm8, %v3983_v47, %v3985_v43 }
 0x620   : > { %v4083_v33 = vmax.f32 %v3927_v25, %v4031_v46  ;;  %v10184_v4 = vpack.i.bf16 %v14230_v58, %v4177_v7  ;;  %v4084_v8 = vmax.f32 %v3928_v16, %v4032_v61  ;;  %v8878_v38 = vpack.c.bf16 %v14230_v58, %v4177_v7 }
 0x622   : > { %v4178_v29 = vmul.f32 %v4119_v63, %v4083_v33  ;;  %v4009_v55 = vpop.permute.xlu1 %4008  ;;  %10185 = vrot.lane.b32.xlu1 %v10184_v4, %s11375_s28  ;;  %10180 = vrot.lane.b32.xlu0 %v10184_v4, %s11374_s25  ;;  %v4011_v47 = vpop.permute.xlu0 %4010  ;;  %v4179_v34 = vmul.f32 %v4123_v12, %v4084_v8 }
 0x623   : > { %v4044_v40 = vsel %vm1420_vm8, %v4007_v44, %v4009_v55  ;;  %v4045_v33 = vsel %vm1420_vm8, %v4009_v55, %v4011_v47 }
 0x624   : > { %v4096_v21 = vmax.f32 %v3940_v27, %v4044_v40  ;;  %v10194_v25 = vpack.i.bf16 %v4178_v29, %v4177_v7  ;;  %v4097_v60 = vmax.f32 %v3941_v26, %v4045_v33  ;;  %v10214_v27 = vpack.i.bf16 %v4179_v34, %v4178_v29  ;;  %v20305_v33 = vld [vmem:[#allocation8_spill] sm:$0xff] }
 0x625   : > { %v4127_v26 = vrot.slane %v14220_v17, %v20304_v50  ;;  %v4131_v10 = vrot.slane %v14220_v17, %v20305_v33 }
 0x626   : > { %v14248_v46 = vmul.f32 %v4119_v63, %v4096_v21  ;;  %10195 = vrot.lane.b32.xlu1 %v10194_v25, %s11369_s2  ;;  %10190 = vrot.lane.b32.xlu0 %v10194_v25, %s11364_s19  ;;  %v14261_v16 = vmul.f32 %v4123_v12, %v4097_v60 }
 0x628   : > { %v8876_v1 = vpack.c.bf16 %v14248_v46, %v4178_v29  ;;  %v10224_v44 = vpack.i.bf16 %v14248_v46, %v14230_v58  ;;  %v10234_v7 = vpack.i.bf16 %v14261_v16, %v14248_v46 }
 0x62a   : > { %10205 = vrot.lane.b32.xlu1 %v10194_v25, %s11376_s17  ;;  %10200 = vrot.lane.b32.xlu0 %v10194_v25, %s11371_s26 }
 0x62b   : > { %8877 = vmatprep.subr.bf16.mxu1 %v8876_v1 }
 0x62c   : > { %8879 = vmatpush1.bf16.msra.mxu1 %v8878_v38 }
 0x62e   : > { %10210 = vrot.lane.b32.xlu1 %v10194_v25, %s11373_s24  ;;  %10215 = vrot.lane.b32.xlu0 %v10214_v27, %s11374_s25 }
 0x632   : > { %10220 = vrot.lane.b32.xlu1 %v10214_v27, %s11375_s28  ;;  %10225 = vrot.lane.b32.xlu0 %v10224_v44, %s11376_s17  ;;  %v20306_v44 = vld [vmem:[#allocation7_spill] sm:$0xff] }
 0x636   : > { %10235 = vrot.lane.b32.xlu0 %v10234_v7, %s11369_s2  ;;  %10230 = vrot.lane.b32.xlu1 %v10234_v7, %s11364_s19 }
 0x637   : > { %v3987_v63 = vpop.permute.xlu0 %3986 }
 0x638   : > { %v4033_v4 = vsel %vm1420_vm8, %v3985_v43, %v3987_v63  ;;  %v3989_v61 = vpop.permute.xlu1 %3988 }
 0x639   : > { %v4085_v29 = vmax.f32 %v3929_v41, %v4033_v4  ;;  %v4034_v8 = vsel %vm1420_vm8, %v3987_v63, %v3989_v61  ;;  %v4135_v63 = vrot.slane %v14220_v17, %v20306_v44  ;;  %v20307_v4 = vld [vmem:[#allocation9_spill] sm:$0xff] }
 0x63a   : > { %10245 = vrot.lane.b32.xlu0 %v10234_v7, %s11374_s25  ;;  %10240 = vrot.lane.b32.xlu1 %v10234_v7, %s11371_s26  ;;  %v4086_v41 = vmax.f32 %v3930_v15, %v4034_v8  ;;  %v4139_v24 = vrot.slane %v14220_v17, %v20307_v4 }
 0x63b   : > { %v4180_v55 = vmul.f32 %v4127_v26, %v4085_v29 }
 0x63c   : > { %v4013_v12 = vpop.permute.xlu1 %4012  ;;  %v4015_v40 = vpop.permute.xlu0 %4014 }
 0x63d   : > { %v4046_v21 = vsel %vm1420_vm8, %v4011_v47, %v4013_v12  ;;  %v10259_v43 = vpack.i.bf16 %v4180_v55, %v4179_v34  ;;  %v4047_v1 = vsel %vm1420_vm8, %v4013_v12, %v4015_v40 }
 0x63e   : > { %v4098_v25 = vmax.f32 %v3942_v22, %v4046_v21  ;;  %10250 = vrot.lane.b32.xlu1 %v10234_v7, %s11375_s28  ;;  %v4099_v47 = vmax.f32 %v3943_v42, %v4047_v1  ;;  %v8910_v42 = vpack.c.bf16 %v14261_v16, %v4179_v34  ;;  %v20310_v21 = vmax.f32 %v14083_v14, 0.0 }
 0x63f   : > { %10260 = vrot.lane.b32.xlu0 %v10259_v43, %s11369_s2  ;;  %v20311_v1 = vmax.f32 %v14094_v36, 0.0 }
 0x640   : > { %v4193_v38 = vmul.f32 %v4127_v26, %v4098_v25  ;;  %v3993_v60 = vpop.permute.xlu1 %3992  ;;  %v3991_v27 = vpop.permute.xlu0 %3990  ;;  %v14297_v26 = vmul.f32 %v4131_v10, %v4086_v41  ;;  %v14302_v29 = vmul.f32 %v4131_v10, %v4099_v47 }
 0x641   : > { %v4036_v0 = vsel %vm1420_vm8, %v3991_v27, %v3993_v60  ;;  %v4035_v15 = vsel %vm1420_vm8, %v3989_v61, %v3991_v27  ;;  %v20312_v27 = vmax.f32 %v14116_v23, 0.0 }
 0x642   : > { %v8908_v22 = vpack.c.bf16 %v4193_v38, %v4180_v55  ;;  %20308 = vst [vmem:[#allocation35_spill] sm:$0xff] %v14297_v26  ;;  %10255 = vrot.lane.b32.xlu1 %v10259_v43, %s11364_s19  ;;  %20309 = vst [vmem:[#allocation27_spill] sm:$0xff] %v14302_v29  ;;  %v4088_v12 = vmax.f32 %v3932_v56, %v4036_v0  ;;  %v4087_v25 = vmax.f32 %v20310_v21, %v4035_v15  ;;  %v20317_v21 = vld [vmem:[#allocation10_spill] sm:$0xff] }
 0x643   : > { %10270 = vrot.lane.b32.xlu0 %v10259_v43, %s11376_s17  ;;  %v10289_v36 = vpack.i.bf16 %v14297_v26, %v4180_v55  ;;  %v10279_v23 = vpack.i.bf16 %v14248_v46, %v14297_v26  ;;  %v10299_v47 = vpack.i.bf16 %v4193_v38, %v14261_v16  ;;  %v10304_v55 = vpack.i.bf16 %v14302_v29, %v4193_v38 }
 0x644   : > { %v4017_v7 = vpop.permute.xlu1 %4016  ;;  %v4019_v6 = vpop.permute.xlu0 %4018  ;;  %8909 = vmatprep.subr.bf16.mxu0 %v8908_v22  ;;  %v14320_v5 = vmul.f32 %v4139_v24, %v4088_v12  ;;  %v14324_v56 = vmul.f32 %v4135_v63, %v4087_v25  ;;  %v10319_v22 = vpack.i.bf16 %v14230_v58, %v14302_v29  ;;  %v4143_v25 = vrot.slane %v14220_v17, %v20317_v21 }
 0x645   : > { %v4048_v8 = vsel %vm1420_vm8, %v4015_v40, %v4017_v7  ;;  %v4049_v61 = vsel %vm1420_vm8, %v4017_v7, %v4019_v6  ;;  %8911 = vmatpush1.bf16.msra.mxu0 %v8910_v42  ;;  %v20315_v42 = vmax.f32 %v14119_v18, 0.0 }
 0x646   : > { %v4100_v41 = vmax.f32 %v20311_v1, %v4048_v8  ;;  %v4101_v4 = vmax.f32 %v20312_v27, %v4049_v61  ;;  %10265 = vrot.lane.b32.xlu1 %v10259_v43, %s11371_s26  ;;  %20314 = vst [vmem:[#allocation24_spill] sm:$0xff] %v14324_v56  ;;  %v10334_v61 = vpack.i.bf16 %v14324_v56, %v14297_v26  ;;  %v20318_v1 = vmax.f32 %v14104_v39, 0.0 }
 0x647   : > { %10275 = vrot.lane.b32.xlu0 %v10259_v43, %s11373_s24 }
 0x648   : > { %v14314_v34 = vmul.f32 %v4135_v63, %v4100_v41  ;;  %v14316_v10 = vmul.f32 %v4139_v24, %v4101_v4  ;;  %v4109_v63 = vld [vmem:[%s19348_s13 + $0x8] sm:$0x1f] }
 0x649   : > { %v4147_v27 = vrot.slane %v4109_v63, %v20301_v49 }
 0x64a   : > { %20313 = vst [vmem:[#allocation23_spill] sm:$0xff] %v14314_v34  ;;  %10280 = vrot.lane.b32.xlu1 %v10279_v23, %s11373_s24 }
 0x64b   : > { %10290 = vrot.lane.b32.xlu0 %v10289_v36, %s11375_s28 }
 0x64e   : > { %10285 = vrot.lane.b32.xlu1 %v10289_v36, %s11374_s25 }
 0x64f   : > { %10300 = vrot.lane.b32.xlu0 %v10299_v47, %s11373_s24 }
 0x652   : > { %10295 = vrot.lane.b32.xlu1 %v10299_v47, %s11376_s17 }
 0x653   : > { %10305 = vrot.lane.b32.xlu0 %v10304_v55, %s11364_s19 }
 0x656   : > { %10310 = vrot.lane.b32.xlu1 %v10304_v55, %s11369_s2 }
 0x657   : > { %v3995_v46 = vpop.permute.xlu0 %3994  ;;  %10315 = vrot.lane.b32.xlu0 %v10304_v55, %s11371_s26 }
 0x658   : > { %v3997_v0 = vpop.permute.xlu1 %3996  ;;  %v4037_v16 = vsel %vm1420_vm8, %v3993_v60, %v3995_v46  ;;  %v20316_v60 = vmax.f32 %v14144_v9, 0.0 }
 0x659   : > { %v4038_v38 = vsel %vm1420_vm8, %v3995_v46, %v3997_v0  ;;  %v4089_v41 = vmax.f32 %v20318_v1, %v4037_v16  ;;  %v4155_v16 = vrot.slane %v4109_v63, %v20303_v3  ;;  %v20325_v1 = vmax.f32 %v14172_v62, 0.0 }
 0x65a   : > { %10320 = vrot.lane.b32.xlu1 %v10319_v22, %s11373_s24  ;;  %v4151_v22 = vrot.slane %v4109_v63, %v20302_v11 }
 0x65b   : > { %10330 = vrot.lane.b32.xlu0 %v10304_v55, %s11375_s28  ;;  %v14374_v46 = vmul.f32 %v4143_v25, %v4089_v41 }
 0x65c   : > { %v4021_v4 = vpop.permute.xlu1 %4020  ;;  %v4023_v24 = vpop.permute.xlu0 %4022 }
 0x65d   : > { %v4050_v15 = vsel %vm1420_vm8, %v4019_v6, %v4021_v4  ;;  %v4051_v7 = vsel %vm1420_vm8, %v4021_v4, %v4023_v24  ;;  %v20319_v6 = vmax.f32 %v14136_v35, 0.0 }
 0x65e   : > { %v4102_v12 = vmax.f32 %v20315_v42, %v4050_v15  ;;  %v4103_v8 = vmax.f32 %v20316_v60, %v4051_v7  ;;  %10325 = vrot.lane.b32.xlu1 %v10304_v55, %s11374_s25  ;;  %v20322_v55 = vmax.f32 %v14157_v48, 0.0  ;;  %v20323_v60 = vmax.f32 %v14139_v32, 0.0 }
 0x65f   : > { %v4090_v36 = vmax.f32 %v20319_v6, %v4038_v38  ;;  %10335 = vrot.lane.b32.xlu0 %v10334_v61, %s11364_s19 }
 0x660   : > { %v4001_v23 = vpop.permute.xlu1 %4000  ;;  %v3999_v18 = vpop.permute.xlu0 %3998  ;;  %v14369_v9 = vmul.f32 %v4143_v25, %v4102_v12  ;;  %v14371_v47 = vmul.f32 %v4147_v27, %v4103_v8  ;;  %v20324_v8 = vmax.f32 %v14150_v59, 0.0  ;;  %v10374_v59 = vpack.i.bf16 %v14316_v10, %v14314_v34 }
 0x661   : > { %v4040_v17 = vsel %vm1420_vm8, %v3999_v18, %v4001_v23  ;;  %v14376_v39 = vmul.f32 %v4147_v27, %v4090_v36  ;;  %v4039_v35 = vsel %vm1420_vm8, %v3997_v0, %v3999_v18 }
 0x662   : > { %20320 = vst [vmem:[#allocation46_spill] sm:$0xff] %v14371_v47  ;;  %v4092_v38 = vmax.f32 %v20322_v55, %v4040_v17  ;;  %10340 = vrot.lane.b32.xlu1 %v10334_v61, %s11369_s2  ;;  %v4091_v48 = vmax.f32 %v20323_v60, %v4039_v35  ;;  %v4159_v17 = vrot.slane %v4109_v63, %v20304_v50 }
 0x663   : > { %20321 = vst [vmem:[#allocation45_spill] sm:$0xff] %v14376_v39  ;;  %10345 = vrot.lane.b32.xlu0 %v10334_v61, %s11371_s26  ;;  %v4163_v35 = vrot.slane %v4109_v63, %v20305_v33  ;;  %v20329_v63 = vmax.f32 %v14192_v20, 0.0 }
 0x664   : > { %v4025_v4 = vpop.permute.xlu1 %4024  ;;  %v4027_v15 = vpop.permute.xlu0 %4026  ;;  %v14405_v36 = vmul.f32 %v4155_v16, %v4092_v38  ;;  %v14407_v32 = vmul.f32 %v4151_v22, %v4091_v48 }
 0x665   : > { %v4052_v7 = vsel %vm1420_vm8, %v4023_v24, %v4025_v4  ;;  %v4053_v42 = vsel %vm1420_vm8, %v4025_v4, %v4027_v15  ;;  %v10354_v24 = vpack.i.bf16 %v14320_v5, %v14324_v56  ;;  %v20328_v4 = vmax.f32 %v14175_v28, 0.0 }
 0x666   : > { %v4104_v25 = vmax.f32 %v20324_v8, %v4052_v7  ;;  %v4105_v41 = vmax.f32 %v20325_v1, %v4053_v42  ;;  %10350 = vrot.lane.b32.xlu1 %v10334_v61, %s11376_s17  ;;  %20327 = vst [vmem:[#allocation31_spill] sm:$0xff] %v14407_v32  ;;  %v10369_v61 = vpack.i.bf16 %v14314_v34, %v14302_v29 }
 0x667   : > { %10355 = vrot.lane.b32.xlu0 %v10354_v24, %s11373_s24 }
 0x668   : > { %v14399_v27 = vmul.f32 %v4151_v22, %v4104_v25  ;;  %v14401_v6 = vmul.f32 %v4155_v16, %v4105_v41  ;;  %v20331_v25 = vmax.f32 %v14195_v2, 0.0  ;;  %v10409_v41 = vpack.i.bf16 %v14374_v46, %v14320_v5 }
 0x669   : > { %v10424_v2 = vpack.i.bf16 %v14376_v39, %v14374_v46 }
 0x66a   : > { %20326 = vst [vmem:[#allocation26_spill] sm:$0xff] %v14399_v27  ;;  %10375 = vrot.lane.b32.xlu1 %v10374_v59, %s11364_s19 }
 0x66b   : > { %10360 = vrot.lane.b32.xlu0 %v10354_v24, %s11374_s25 }
 0x66e   : > { %10385 = vrot.lane.b32.xlu1 %v10374_v59, %s11371_s26 }
 0x66f   : > { %10365 = vrot.lane.b32.xlu0 %v10354_v24, %s11375_s28 }
 0x672   : > { %10390 = vrot.lane.b32.xlu1 %v10374_v59, %s11373_s24 }
 0x673   : > { %10370 = vrot.lane.b32.xlu0 %v10369_v61, %s11376_s17  ;;  %v10449_v61 = vpack.i.bf16 %v14371_v47, %v14369_v9 }
 0x676   : > { %10395 = vrot.lane.b32.xlu1 %v10374_v59, %s11374_s25 }
 0x677   : > { %v4029_v22 = vpop.permute.xlu1 %4028  ;;  %10380 = vrot.lane.b32.xlu0 %v10374_v59, %s11369_s2 }
 0x678   : > { %v4054_v16 = vsel %vm1420_vm8, %v4027_v15, %v4029_v22  ;;  %v4055_v55 = vsel %vm1420_vm8, %v4029_v22, %v12245_v31  ;;  %v4003_v38 = vpop.permute.xlu0 %4002  ;;  %v20330_v15 = vmax.f32 %v14160_v57, 0.0 }
 0x679   : > { %v4106_v7 = vmax.f32 %v20328_v4, %v4054_v16  ;;  %v4041_v42 = vsel %vm1420_vm8, %v4001_v23, %v4003_v38  ;;  %v4042_v60 = vsel %vm1420_vm8, %v4003_v38, %v12245_v31  ;;  %v4107_v48 = vmax.f32 %v20329_v63, %v4055_v55 }
 0x67a   : > { %v4093_v8 = vmax.f32 %v20330_v15, %v4041_v42  ;;  %v4094_v1 = vmax.f32 %v20331_v25, %v4042_v60  ;;  %10400 = vrot.lane.b32.xlu1 %v10374_v59, %s11375_s28  ;;  %v10439_v59 = vpack.i.bf16 %v14369_v9, %v14316_v10  ;;  %v10514_v63 = vpack.i.bf16 %v14401_v6, %v14399_v27 }
 0x67b   : > { %10410 = vrot.lane.b32.xlu0 %v10409_v41, %s11369_s2  ;;  %v14445_v28 = vmul.f32 %v4159_v17, %v4106_v7  ;;  %v14449_v31 = vmul.f32 %v4163_v35, %v4107_v48  ;;  %v10494_v7 = vpack.i.bf16 %v14405_v36, %v14407_v32  ;;  %vm6892_vm8 = vcmask 64512  }
 0x67c   : > { %v14447_v23 = vmul.f32 %v4159_v17, %v4093_v8  ;;  %v14451_v20 = vmul.f32 %v4163_v35, %v4094_v1  ;;  %v10474_v35 = vpack.i.bf16 %v14407_v32, %v14376_v39  ;;  %v10509_v1 = vpack.i.bf16 %v14399_v27, %v14371_v47 }
 0x67d   : > { %20332 = vst [vmem:[#allocation29_spill] sm:$0xff] %v14449_v31  ;;  %v10544_v40 = vpack.i.bf16 %v14449_v31, %v14445_v28 }
 0x67e   : > { %20333 = vst [vmem:[#allocation33_spill] sm:$0xff] %v14451_v20  ;;  %10405 = vrot.lane.b32.xlu1 %v10409_v41, %s11364_s19  ;;  %v10619_v56 = vpack.i.bf16 %v14451_v20, %v14447_v23 }
 0x67f   : > { %10420 = vrot.lane.b32.xlu0 %v10409_v41, %s11376_s17 }
 0x682   : > { %10415 = vrot.lane.b32.xlu1 %v10409_v41, %s11371_s26 }
 0x683   : > { %10425 = vrot.lane.b32.xlu0 %v10424_v2, %s11373_s24 }
 0x686   : > { %10440 = vrot.lane.b32.xlu1 %v10439_v59, %s11376_s17 }
 0x687   : > { %10430 = vrot.lane.b32.xlu0 %v10424_v2, %s11374_s25 }
 0x68a   : > { %10450 = vrot.lane.b32.xlu1 %v10449_v61, %s11369_s2 }
 0x68b   : > { %10435 = vrot.lane.b32.xlu0 %v10424_v2, %s11375_s28 }
 0x68e   : > { %10460 = vrot.lane.b32.xlu1 %v10449_v61, %s11373_s24 }
 0x68f   : > { %10445 = vrot.lane.b32.xlu0 %v10449_v61, %s11364_s19 }
 0x692   : > { %10465 = vrot.lane.b32.xlu1 %v10449_v61, %s11374_s25 }
 0x693   : > { %10455 = vrot.lane.b32.xlu0 %v10449_v61, %s11371_s26 }
 0x694   : > { %v14475_v17 = vpop.permute.xlu1 %10185  ;;  %v14477_v22 = vpop.permute.xlu0 %10180 }
 0x695   : > { %20334 = vst [vmem:[#allocation32_spill] sm:$0xff] %v14475_v17  ;;  %20335 = vst [vmem:[#allocation61_spill] sm:$0xff] %v14477_v22 }
 0x696   : > { %10470 = vrot.lane.b32.xlu1 %v10449_v61, %s11375_s28 }
 0x697   : > { %10475 = vrot.lane.b32.xlu0 %v10474_v35, %s11364_s19 }
 0x698   : > { %v14483_v16 = vpop.permute.xlu1 %10195  ;;  %v14485_v55 = vpop.permute.xlu0 %10190 }
 0x69a   : > { %10480 = vrot.lane.b32.xlu1 %v10474_v35, %s11369_s2 }
 0x69b   : > { %10485 = vrot.lane.b32.xlu0 %v10474_v35, %s11371_s26 }
 0x69c   : > { %v14489_v38 = vpop.permute.xlu1 %10205  ;;  %v14491_v4 = vpop.permute.xlu0 %10200 }
 0x69d   : > { %v19547_v49 = vunpack.i.h.bf16 %v14491_v4  ;;  %v19562_v27 = vunpack.i.h.bf16 %v14489_v38 }
 0x69e   : > { %10490 = vrot.lane.b32.xlu1 %v10474_v35, %s11376_s17 }
 0x69f   : > { %10495 = vrot.lane.b32.xlu0 %v10494_v7, %s11373_s24 }
 0x6a0   : > { %v14497_v42 = vpop.permute.xlu1 %10210  ;;  %v14499_v60 = vpop.permute.xlu0 %10215 }
 0x6a1   : > { %20336 = vst [vmem:[#allocation37_spill] sm:$0xff] %v14497_v42  ;;  %v19532_v41 = vunpack.i.h.bf16 %v14499_v60  ;;  %v19531_v2 = vunpack.i.l.bf16 %v14499_v60  ;;  %v19557_v13 = vunpack.i.h.bf16 %v14497_v42 }
 0x6a2   : > { %10515 = vrot.lane.b32.xlu1 %v10514_v63, %s11364_s19 }
 0x6a3   : > { %10500 = vrot.lane.b32.xlu0 %v10494_v7, %s11374_s25  ;;  %v14538_v14 = vsel %vm4809_vm2, %v19531_v2, %v19532_v41  ;;  %v19537_v2 = vunpack.i.h.bf16 %v14483_v16 }
 0x6a4   : > { %v14505_v48 = vpop.permute.xlu1 %10220  ;;  %v14507_v15 = vpop.permute.xlu0 %10225  ;;  %20340 = vst [vmem:[#allocation19_spill] sm:$0xff] %v14538_v14 }
 0x6a5   : > { %20337 = vst [vmem:[#allocation18_spill] sm:$0xff] %v14507_v15  ;;  %v19536_v24 = vunpack.i.h.bf16 %v14505_v48  ;;  %v19535_v0 = vunpack.i.l.bf16 %v14505_v48  ;;  %v19564_v26 = vunpack.i.h.bf16 %v14507_v15 }
 0x6a6   : > { %10525 = vrot.lane.b32.xlu1 %v10514_v63, %s11371_s26 }
 0x6a7   : > { %10505 = vrot.lane.b32.xlu0 %v10494_v7, %s11375_s28  ;;  %v14567_v12 = vsel %vm1791_vm14, %v19535_v0, %v19536_v24 }
 0x6a8   : > { %v14511_v8 = vpop.permute.xlu1 %10230  ;;  %v14513_v25 = vpop.permute.xlu0 %10235  ;;  %20342 = vst [vmem:[#allocation60_spill] sm:$0xff] %v14567_v12 }
 0x6a9   : > { %20338 = vst [vmem:[#allocation15_spill] sm:$0xff] %v14513_v25  ;;  %v20351_v33 = vunpack.i.l.bf16 %v14511_v8  ;;  %v20363_v14 = vunpack.i.h.bf16 %v14511_v8 }
 0x6aa   : > { %10530 = vrot.lane.b32.xlu1 %v10514_v63, %s11373_s24 }
 0x6ab   : > { %10510 = vrot.lane.b32.xlu0 %v10509_v1, %s11376_s17 }
 0x6ac   : > { %v14521_v59 = vpop.permute.xlu1 %10240  ;;  %v14523_v61 = vpop.permute.xlu0 %10245 }
 0x6ad   : > { %20339 = vst [vmem:[#allocation44_spill] sm:$0xff] %v14521_v59  ;;  %v19534_v35 = vunpack.i.h.bf16 %v14523_v61  ;;  %v19533_v7 = vunpack.i.l.bf16 %v14523_v61  ;;  %v20373_v37 = vunpack.i.h.bf16 %v14521_v59 }
 0x6ae   : > { %10535 = vrot.lane.b32.xlu1 %v10514_v63, %s11374_s25 }
 0x6af   : > { %10520 = vrot.lane.b32.xlu0 %v10514_v63, %s11369_s2  ;;  %v14545_v43 = vsel %vm4809_vm2, %v19533_v7, %v19534_v35  ;;  %v20344_v7 = vunpack.i.h.bf16 %v14513_v25 }
 0x6b0   : > { %20341 = vst [vmem:[#allocation16_spill] sm:$0xff] %v14545_v43  ;;  %v14547_v62 = vpop.permute.xlu1 %10250 }
 0x6b1   : > { %v14549_v57 = vpop.permute.xlu0 %10260  ;;  %v20347_v21 = vunpack.i.h.bf16 %v14547_v62  ;;  %v20348_v0 = vunpack.i.l.bf16 %v14547_v62 }
 0x6b2   : > { %v19538_v1 = vunpack.i.l.bf16 %v14549_v57  ;;  %10540 = vrot.lane.b32.xlu1 %v10514_v63, %s11375_s28  ;;  %v20345_v63 = vunpack.i.l.bf16 %v14513_v25  ;;  %v10263_v22 = vunpack.i.h.bf16 %v14549_v57 }
 0x6b3   : > { %10545 = vrot.lane.b32.xlu0 %v10544_v40, %s11364_s19  ;;  %v14589_v24 = vsel %vm1791_vm14, %v20348_v0, %v20347_v21  ;;  %v10559_v21 = vpack.i.bf16 %v14445_v28, %v14401_v6 }
 0x6b4   : > { %v14575_v18 = vsel %vm1750_vm13, %v19537_v2, %v19538_v1  ;;  %v14582_v41 = vsel %vm1750_vm13, %v20345_v63, %v20344_v7  ;;  %20349 = vst [vmem:[#allocation47_spill] sm:$0xff] %v14589_v24  ;;  %v14591_v35 = vpop.permute.xlu1 %10255  ;;  %v19545_v7 = vunpack.i.h.bf16 %v14485_v55  ;;  %v20350_v1 = vunpack.i.h.bf16 %v14511_v8 }
 0x6b5   : > { %20343 = vst [vmem:[#allocation41_spill] sm:$0xff] %v14575_v18  ;;  %20346 = vst [vmem:[#allocation40_spill] sm:$0xff] %v14582_v41  ;;  %v14593_v44 = vpop.permute.xlu0 %10270  ;;  %v19546_v63 = vunpack.i.l.bf16 %v14591_v35  ;;  %v10258_v12 = vunpack.i.h.bf16 %v14591_v35 }
 0x6b6   : > { %10550 = vrot.lane.b32.xlu1 %v10544_v40, %s11369_s2  ;;  %v4295_v50 = vsel %vm1530_vm9, %v20351_v33, %v20350_v1  ;;  %v20353_v1 = vunpack.i.h.bf16 %v14521_v59  ;;  %v20394_v15 = vunpack.i.h.bf16 %v14593_v44 }
 0x6b7   : > { %10555 = vrot.lane.b32.xlu0 %v10544_v40, %s11371_s26  ;;  %v4282_v2 = vsel %vm1530_vm9, %v19545_v7, %v19546_v63 }
 0x6b8   : > { %v14615_v3 = vpop.permute.xlu1 %10265  ;;  %v8880_v0 = vpack.c.bf16 %v4295_v50, %v4282_v2  ;;  %v20354_v50 = vunpack.i.l.bf16 %v14521_v59 }
 0x6b9   : > { %v14617_v11 = vpop.permute.xlu0 %10275  ;;  %v19548_v51 = vunpack.i.l.bf16 %v14615_v3 }
 0x6ba   : > { %10560 = vrot.lane.b32.xlu1 %v10559_v21, %s11376_s17  ;;  %8881 = vmatprep.subr.bf16.mxu1 %v8880_v0  ;;  %v14638_v2 = vsel %vm3215_vm15, %v20354_v50, %v20353_v1  ;;  %v10584_v21 = vpack.i.bf16 %v14230_v58, %v14451_v20  ;;  %v10589_v50 = vpack.i.bf16 %v14447_v23, %v14405_v36 }
 0x6bb   : > { %4593 = vrot.lane.b32.xlu0 %v14449_v31, %s11376_s17  ;;  %v14631_v33 = vsel %vm3215_vm15, %v19547_v49, %v19548_v51  ;;  %20355 = vst [vmem:[#allocation50_spill] sm:$0xff] %v14638_v2  ;;  %v19560_v49 = vunpack.i.l.bf16 %v14617_v11 }
 0x6bc   : > { %20352 = vst [vmem:[#allocation48_spill] sm:$0xff] %v14631_v33  ;;  %v14640_v7 = vpop.permute.xlu1 %10280 }
 0x6bd   : > { %20356 = vst [vmem:[#allocation49_spill] sm:$0xff] %v14640_v7  ;;  %v14642_v63 = vpop.permute.xlu0 %10290  ;;  %v19558_v58 = vunpack.i.h.bf16 %v14640_v7  ;;  %v14668_v31 = vsel %vm4702_vm3, %v19557_v13, %v19560_v49 }
 0x6be   : > { %10565 = vrot.lane.b32.xlu1 %v10544_v40, %s11373_s24  ;;  %20357 = vst [vmem:[#allocation43_spill] sm:$0xff] %v14668_v31 }
 0x6bf   : > { %10585 = vrot.lane.b32.xlu0 %v10584_v21, %s11364_s19 }
 0x6c0   : > { %v14651_v51 = vpop.permute.xlu1 %10285 }
 0x6c1   : > { %v14653_v1 = vpop.permute.xlu0 %10300 }
 0x6c2   : > { %v19559_v19 = vunpack.i.l.bf16 %v14653_v1  ;;  %10570 = vrot.lane.b32.xlu1 %v10544_v40, %s11374_s25 }
 0x6c3   : > { %10590 = vrot.lane.b32.xlu0 %v10589_v50, %s11369_s2 }
 0x6c4   : > { %v14675_v39 = vsel %vm4702_vm3, %v19558_v58, %v19559_v19  ;;  %v14677_v47 = vpop.permute.xlu1 %10295  ;;  %v20359_v58 = vunpack.i.l.bf16 %v14593_v44 }
 0x6c5   : > { %20358 = vst [vmem:[#allocation53_spill] sm:$0xff] %v14675_v39  ;;  %v14679_v32 = vpop.permute.xlu0 %10305  ;;  %v19565_v13 = vunpack.i.l.bf16 %v14677_v47 }
 0x6c6   : > { %10575 = vrot.lane.b32.xlu1 %v10544_v40, %s11375_s28  ;;  %v14693_v19 = vsel %vm4595_vm5, %v19562_v27, %v20359_v58  ;;  %v20364_v31 = vunpack.i.h.bf16 %v14679_v32 }
 0x6c7   : > { %10605 = vrot.lane.b32.xlu0 %v10584_v21, %s11371_s26  ;;  %20360 = vst [vmem:[#allocation51_spill] sm:$0xff] %v14693_v19  ;;  %v14700_v0 = vsel %vm4595_vm5, %v19564_v26, %v19565_v13  ;;  %v10307_v26 = vunpack.i.l.bf16 %v14679_v32 }
 0x6c8   : > { %20361 = vst [vmem:[#allocation54_spill] sm:$0xff] %v14700_v0  ;;  %v14702_v49 = vpop.permute.xlu1 %10310  ;;  %v20365_v0 = vunpack.i.l.bf16 %v14591_v35 }
 0x6c9   : > { %v14704_v29 = vpop.permute.xlu0 %10315  ;;  %v4296_v43 = vsel %vm1530_vm9, %v20363_v14, %v10307_v26  ;;  %v10312_v13 = vunpack.i.l.bf16 %v14702_v49  ;;  %v4297_v39 = vsel %vm1530_vm9, %v10307_v26, %v20364_v31  ;;  %v10268_v31 = vunpack.i.h.bf16 %v14615_v3 }
 0x6ca   : > { %10580 = vrot.lane.b32.xlu1 %v10589_v50, %s11364_s19  ;;  %v4283_v54 = vsel %vm1530_vm9, %v20365_v0, %v10258_v12  ;;  %v10317_v2 = vunpack.i.l.bf16 %v14704_v29  ;;  %v20367_v0 = vunpack.i.h.bf16 %v14702_v49 }
 0x6cb   : > { %10610 = vrot.lane.b32.xlu0 %v10589_v50, %s11376_s17 }
 0x6cc   : > { %v14710_v58 = vpop.permute.xlu1 %10320  ;;  %v4401_v33 = vsel %vm1750_vm13, %v10312_v13, %v20367_v0 }
 0x6cd   : > { %20362 = vst [vmem:[#allocation42_spill] sm:$0xff] %v14710_v58  ;;  %v14712_v27 = vpop.permute.xlu0 %10330 }
 0x6ce   : > { %10595 = vrot.lane.b32.xlu1 %v10584_v21, %s11369_s2 }
 0x6cf   : > { %10620 = vrot.lane.b32.xlu0 %v10619_v56, %s11373_s24 }
 0x6d0   : > { %v14720_v40 = vpop.permute.xlu1 %10325 }
 0x6d1   : > { %v14722_v34 = vpop.permute.xlu0 %10335 }
 0x6d2   : > { %v19578_v24 = vunpack.i.l.bf16 %v14722_v34  ;;  %10600 = vrot.lane.b32.xlu1 %v10589_v50, %s11371_s26  ;;  %v10614_v50 = vpack.i.bf16 %v20038_v53, %v14451_v20  ;;  %v20374_v20 = vunpack.i.l.bf16 %v14617_v11 }
 0x6d3   : > { %10625 = vrot.lane.b32.xlu0 %v10619_v56, %s11374_s25 }
 0x6d4   : > { %v4284_v17 = vsel %vm1530_vm9, %v10258_v12, %v19578_v24  ;;  %v14740_v19 = vpop.permute.xlu1 %10340  ;;  %v10278_v24 = vunpack.i.h.bf16 %v14617_v11  ;;  %v20375_v11 = vunpack.i.l.bf16 %v14653_v1 }
 0x6d5   : > { %v14742_v14 = vpop.permute.xlu0 %10345  ;;  %v8912_v21 = vpack.c.bf16 %v4297_v39, %v4284_v17  ;;  %v19582_v45 = vunpack.i.l.bf16 %v14740_v19  ;;  %v8914_v39 = vpack.c.bf16 %v4296_v43, %v4283_v54  ;;  %v20366_v17 = vunpack.i.h.bf16 %v14513_v25 }
 0x6d6   : > { %v19584_v26 = vunpack.i.l.bf16 %v14742_v14  ;;  %10615 = vrot.lane.b32.xlu1 %v10614_v50, %s11376_s17 }
 0x6d7   : > { %10630 = vrot.lane.b32.xlu0 %v10619_v56, %s11375_s28  ;;  %v4400_v12 = vsel %vm1750_vm13, %v20366_v17, %v10312_v13  ;;  %8913 = vmatprep.subr.bf16.mxu0 %v8912_v21  ;;  %v4388_v35 = vsel %vm1750_vm13, %v10263_v22, %v19582_v45  ;;  %v20368_v21 = vunpack.i.l.bf16 %v14549_v57  ;;  %v20369_v45 = vunpack.i.h.bf16 %v14593_v44  ;;  %s11379_s28 = smov 8  }
 0x6d8   : > { %8915 = vmatpush1.bf16.msra.mxu0 %v8914_v39  ;;  %v14767_v56 = vpop.permute.xlu1 %10350  ;;  %v8916_v54 = vpack.c.bf16 %v4401_v33, %v4388_v35  ;;  %v4492_v43 = vsel %vm3215_vm15, %v10268_v31, %v19584_v26  ;;  %v20370_v13 = vunpack.i.l.bf16 %v14593_v44  ;;  %v10303_v39 = vunpack.i.h.bf16 %v14653_v1 }
 0x6d9   : > { %v14769_v50 = vpop.permute.xlu0 %10355  ;;  %v4387_v17 = vsel %vm1750_vm13, %v20368_v21, %v10263_v22  ;;  %v10322_v33 = vunpack.i.l.bf16 %v14710_v58  ;;  %v20371_v26 = vunpack.i.h.bf16 %v14704_v29  ;;  %v20372_v22 = vunpack.i.l.bf16 %v14615_v3 }
 0x6da   : > { %v14782_v0 = vsel %vm4595_vm5, %v20370_v13, %v20369_v45  ;;  %8917 = vmatprep.subr.bf16.mxu0 %v8916_v54  ;;  %v8918_v35 = vpack.c.bf16 %v4400_v12, %v4387_v17  ;;  %v4504_v45 = vsel %vm3215_vm15, %v20373_v37, %v10317_v2  ;;  %v19588_v13 = vunpack.i.h.bf16 %v14722_v34 }
 0x6db   : > { %v4505_v57 = vsel %vm3215_vm15, %v10317_v2, %v20371_v26  ;;  %v4491_v21 = vsel %vm3215_vm15, %v20372_v22, %v10268_v31  ;;  %v14800_v54 = vsel %vm4702_vm3, %v20374_v20, %v10278_v24  ;;  %v10282_v12 = vunpack.i.l.bf16 %v14640_v7 }
 0x6dc   : > { %v8920_v25 = vpack.c.bf16 %v4505_v57, %v4492_v43  ;;  %8919 = vmatpush1.bf16.msra.mxu0 %v8918_v35  ;;  %v14805_v31 = vpop.permute.xlu1 %10375  ;;  %v10288_v37 = vunpack.i.h.bf16 %v14651_v51  ;;  %v14814_v20 = vsel %vm4702_vm3, %v20375_v11, %v10303_v39  ;;  %v20376_v57 = vunpack.i.h.bf16 %v14677_v47 }
 0x6dd   : > { %v14807_v17 = vpop.permute.xlu0 %10360  ;;  %v20377_v35 = vunpack.i.l.bf16 %v14677_v47  ;;  %v10328_v3 = vunpack.i.h.bf16 %v14720_v40  ;;  %v8922_v26 = vpack.c.bf16 %v4504_v45, %v4491_v21  ;;  %v14826_v2 = vsel %vm4702_vm3, %v10303_v39, %v10322_v33 }
 0x6de   : > { %8921 = vmatprep.subr.bf16.mxu0 %v8920_v25  ;;  %v20378_v11 = vunpack.i.l.bf16 %v14722_v34  ;;  %v10352_v45 = vunpack.i.l.bf16 %v14767_v56  ;;  %v10357_v1 = vunpack.i.l.bf16 %v14769_v50  ;;  %v20384_v43 = vunpack.i.h.bf16 %v14742_v14 }
 0x6df   : > { %v14822_v22 = vsel %vm4595_vm5, %v20377_v35, %v20376_v57  ;;  %v20380_v57 = vunpack.i.l.bf16 %v14805_v31  ;;  %v20381_v35 = vunpack.i.h.bf16 %v14679_v32  ;;  %v4706_v32 = vsel %vm4702_vm3, %v10278_v24, %v10282_v12 }
 0x6e0   : > { %v14834_v25 = vsel %vm1530_vm9, %v20378_v11, %v19588_v13  ;;  %8923 = vmatpush1.bf16.msra.mxu0 %v8922_v26  ;;  %v14847_v7 = vpop.permute.xlu1 %10385  ;;  %v10333_v26 = vunpack.i.h.bf16 %v14712_v27  ;;  %v8926_v13 = vpack.c.bf16 %v14822_v22, %v14782_v0  ;;  %v20385_v24 = vunpack.i.l.bf16 %v14742_v14 }
 0x6e1   : > { %20379 = vst [vmem:[#allocation56_spill] sm:$0xff] %v14834_v25  ;;  %v14842_v21 = vsel %vm1530_vm9, %v20381_v35, %v20380_v57  ;;  %v14849_v11 = vpop.permute.xlu0 %10365  ;;  %v20383_v35 = vunpack.i.l.bf16 %v14651_v51  ;;  %v20387_v25 = vunpack.i.l.bf16 %v14847_v7  ;;  %v8928_v59 = vpack.c.bf16 %v14826_v2, %v4706_v32 }
 0x6e2   : > { %20382 = vst [vmem:[#allocation55_spill] sm:$0xff] %v14842_v21  ;;  %v14872_v57 = vsel %vm3215_vm15, %v20385_v24, %v20384_v43  ;;  %v20390_v58 = vunpack.i.l.bf16 %v14720_v40  ;;  %v10343_v22 = vunpack.i.h.bf16 %v14740_v19  ;;  %v20391_v30 = vunpack.i.h.bf16 %v14767_v56 }
 0x6e3   : > { %v14860_v39 = vsel %vm4809_vm2, %v20383_v35, %v10288_v37  ;;  %20386 = vst [vmem:[#allocation57_spill] sm:$0xff] %v14872_v57  ;;  %v20388_v35 = vunpack.i.h.bf16 %v14704_v29  ;;  %v14892_v24 = vsel %vm4702_vm3, %v10282_v12, %v10357_v1  ;;  %v10362_v12 = vunpack.i.l.bf16 %v14807_v17 }
 0x6e4   : > { %v4826_v0 = vsel %vm4809_vm2, %v20390_v58, %v10328_v3  ;;  %v14889_v43 = vsel %vm4595_vm5, %v10352_v45, %v20391_v30  ;;  %20393 = vst [vmem:[#allocation58_spill] sm:$0xff] %v14892_v24  ;;  %v14894_v29 = vpop.permute.xlu1 %10390  ;;  %v4599_v18 = vsel %vm4595_vm5, %v20394_v15, %v10352_v45  ;;  %v20395_v41 = vunpack.i.h.bf16 %v14769_v50 }
 0x6e5   : > { %v14879_v21 = vsel %vm3215_vm15, %v20388_v35, %v20387_v25  ;;  %20392 = vst [vmem:[#allocation59_spill] sm:$0xff] %v14889_v43  ;;  %v14896_v25 = vpop.permute.xlu0 %10370  ;;  %v10392_v58 = vunpack.i.l.bf16 %v14894_v29  ;;  %v20399_v30 = vunpack.i.h.bf16 %v14677_v47  ;;  %v20400_v44 = vunpack.i.h.bf16 %v14894_v29 }
 0x6e6   : > { %20389 = vst [vmem:[#allocation52_spill] sm:$0xff] %v14879_v21  ;;  %v19604_v35 = vunpack.i.h.bf16 %v14896_v25  ;;  %v10372_v42 = vunpack.i.l.bf16 %v14896_v25  ;;  %v14912_v2 = vsel %vm4702_vm3, %v10357_v1, %v20395_v41  ;;  %v20405_v47 = vunpack.i.h.bf16 %v14807_v17 }
 0x6e7   : > { %20396 = vst [vmem:[#allocation68_spill] sm:$0xff] %v14912_v2  ;;  %v14915_v32 = vsel %vm4702_vm3, %v10322_v33, %v10392_v58  ;;  %v14928_v15 = vsel %vm4702_vm3, %v10392_v58, %v20400_v44  ;;  %v20408_v24 = vunpack.i.h.bf16 %v14702_v49 }
 0x6e8   : > { %20397 = vst [vmem:[#allocation67_spill] sm:$0xff] %v14915_v32  ;;  %v14920_v57 = vsel %vm4595_vm5, %v10372_v42, %v19604_v35  ;;  %v4612_v21 = vsel %vm4595_vm5, %v20399_v30, %v10372_v42  ;;  %20401 = vst [vmem:[#allocation17_spill] sm:$0xff] %v14928_v15  ;;  %v14930_v45 = vpop.permute.xlu1 %10395  ;;  %v20402_v42 = vunpack.i.l.bf16 %v14740_v19  ;;  %v10367_v35 = vunpack.i.l.bf16 %v14849_v11 }
 0x6e9   : > { %20398 = vst [vmem:[#allocation62_spill] sm:$0xff] %v14920_v57  ;;  %v14932_v41 = vpop.permute.xlu0 %10380  ;;  %v8924_v33 = vpack.c.bf16 %v4612_v21, %v4599_v18  ;;  %v10397_v44 = vunpack.i.l.bf16 %v14930_v45  ;;  %v14949_v21 = vsel %vm4809_vm2, %v10288_v37, %v10362_v12  ;;  %v14956_v19 = vsel %vm4809_vm2, %v10362_v12, %v20405_v47 }
 0x6ea   : > { %v14943_v30 = vsel %vm1750_vm13, %v20402_v42, %v10343_v22  ;;  %v10382_v18 = vunpack.i.l.bf16 %v14932_v41  ;;  %20404 = vst [vmem:[#allocation20_spill] sm:$0xff] %v14949_v21  ;;  %20406 = vst [vmem:[#allocation22_spill] sm:$0xff] %v14956_v19  ;;  %v20410_v1 = vunpack.i.h.bf16 %v14930_v45  ;;  %v20415_v15 = vunpack.i.h.bf16 %v14642_v63 }
 0x6eb   : > { %20403 = vst [vmem:[#allocation21_spill] sm:$0xff] %v14943_v30  ;;  %8925 = vmatprep.subr.bf16.mxu0 %v8924_v33  ;;  %v14959_v42 = vsel %vm4809_vm2, %v10328_v3, %v10397_v44  ;;  %v20412_v3 = vunpack.i.l.bf16 %v14712_v27 }
 0x6ec   : > { %20407 = vst [vmem:[#allocation64_spill] sm:$0xff] %v14959_v42  ;;  %v14965_v37 = vsel %vm1750_vm13, %v20408_v24, %v10382_v18  ;;  %8927 = vmatpush1.bf16.msra.mxu0 %v8926_v13  ;;  %v14970_v33 = vsel %vm4809_vm2, %v10397_v44, %v20410_v1  ;;  %v14972_v32 = vpop.permute.xlu1 %10400  ;;  %v20413_v1 = vunpack.i.l.bf16 %v14720_v40  ;;  %v20414_v44 = vunpack.i.h.bf16 %v14523_v61 }
 0x6ed   : > { %20409 = vst [vmem:[#allocation71_spill] sm:$0xff] %v14965_v37  ;;  %20411 = vst [vmem:[#allocation69_spill] sm:$0xff] %v14970_v33  ;;  %v14974_v12 = vpop.permute.xlu0 %10410  ;;  %8929 = vmatprep.subr.bf16.mxu0 %v8928_v59  ;;  %v4932_v47 = vsel %vm1791_vm14, %v20412_v3, %v10333_v26  ;;  %v19610_v59 = vunpack.i.h.bf16 %v14972_v32  ;;  %v10402_v2 = vunpack.i.l.bf16 %v14972_v32  ;;  %v14997_v13 = vsel %vm1791_vm14, %v20415_v15, %v10367_v35 }
 0x6ee   : > { %v4825_v58 = vsel %vm4809_vm2, %v20414_v44, %v20413_v1  ;;  %v19611_v3 = vunpack.i.l.bf16 %v14974_v12  ;;  %20416 = vst [vmem:[#allocation63_spill] sm:$0xff] %v14997_v13  ;;  %v8932_v24 = vpack.c.bf16 %v4826_v0, %v14860_v39  ;;  %v20417_v40 = vunpack.i.h.bf16 %v14849_v11 }
 0x6ef   : > { %v15006_v1 = vsel %vm1791_vm14, %v10333_v26, %v10402_v2  ;;  %v20420_v44 = vpack.c.bf16 %v14814_v20, %v14800_v54  ;;  %v20422_v15 = vunpack.i.h.bf16 %v14932_v41  ;;  %v15024_v0 = vsel %vm1791_vm14, %v10402_v2, %v19610_v59 }
 0x6f0   : > { %v15003_v21 = vsel %vm1791_vm14, %v10367_v35, %v20417_v40  ;;  %20419 = vst [vmem:[#allocation70_spill] sm:$0xff] %v15006_v1  ;;  %v15014_v49 = vsel %vm1750_vm13, %v10343_v22, %v19611_v3  ;;  %20424 = vst [vmem:[#allocation77_spill] sm:$0xff] %v15024_v0  ;;  %v20425_v26 = vunpack.i.l.bf16 %v14651_v51  ;;  %v20426_v54 = vunpack.i.h.bf16 %v14499_v60  ;;  %v10406_v35 = vpop.permute.xlu1 %10405 }
 0x6f1   : > { %20418 = vst [vmem:[#allocation73_spill] sm:$0xff] %v15003_v21  ;;  %8931 = vmatpush1.bf16.msra.mxu0 %v20420_v44  ;;  %20421 = vst [vmem:[#allocation66_spill] sm:$0xff] %v15014_v49  ;;  %v15019_v39 = vsel %vm1750_vm13, %v10382_v18, %v20422_v15  ;;  %v15031_v40 = vpop.permute.xlu0 %10420  ;;  %v10407_v44 = vunpack.i.l.bf16 %v10406_v35  ;;  %v20427_v51 = vunpack.i.h.bf16 %v14642_v63  ;;  %v20428_v59 = vunpack.i.l.bf16 %v14642_v63 }
 0x6f2   : > { %20423 = vst [vmem:[#allocation76_spill] sm:$0xff] %v15019_v39  ;;  %v4812_v20 = vsel %vm4809_vm2, %v20426_v54, %v20425_v26  ;;  %8933 = vmatprep.subr.bf16.mxu0 %v8932_v24  ;;  %v20429_v54 = vunpack.i.l.bf16 %v14712_v27  ;;  %v20430_v24 = vunpack.i.h.bf16 %v14547_v62  ;;  %v19616_v18 = vunpack.i.h.bf16 %v14847_v7 }
 0x6f3   : > { %v8934_v15 = vpack.c.bf16 %v4825_v58, %v4812_v20  ;;  %v4919_v26 = vsel %vm1791_vm14, %v20428_v59, %v20427_v51  ;;  %v20431_v2 = vunpack.i.h.bf16 %v14722_v34  ;;  %v20433_v20 = vunpack.i.h.bf16 %v14805_v31 }
 0x6f4   : > { %v4931_v22 = vsel %vm1791_vm14, %v20430_v24, %v20429_v54  ;;  %v8936_v3 = vpack.c.bf16 %v4932_v47, %v4919_v26  ;;  %v20434_v13 = vunpack.i.l.bf16 %v14805_v31  ;;  %v20435_v27 = vunpack.i.l.bf16 %v14642_v63  ;;  %v15067_v26 = vpop.permute.xlu1 %10415  ;;  %v15077_v63 = vld [vmem:[%s19342_s7] sm:$0xff] }
 0x6f5   : > { %8935 = vmatpush1.bf16.msra.mxu0 %v8934_v15  ;;  %v15053_v58 = vsel %vm1530_vm9, %v20431_v2, %v10407_v44  ;;  %v20436_v51 = vunpack.i.h.bf16 %v14505_v48  ;;  %v15069_v15 = vpop.permute.xlu0 %10425  ;;  %v19615_v2 = vunpack.i.l.bf16 %v15067_v26  ;;  %v20448_v1 = vunpack.i.h.bf16 %v14805_v31 }
 0x6f6   : > { %20432 = vst [vmem:[#allocation65_spill] sm:$0xff] %v15053_v58  ;;  %v15060_v59 = vsel %vm1530_vm9, %v20434_v13, %v20433_v20  ;;  %8937 = vmatprep.subr.bf16.mxu0 %v8936_v3  ;;  %v20437_v13 = vunpack.i.h.bf16 %v14742_v14  ;;  %v20439_v3 = vunpack.i.l.bf16 %v14847_v7  ;;  %v10418_v57 = vunpack.i.h.bf16 %v15067_v26 }
 0x6f7   : > { %v4918_v47 = vsel %vm1791_vm14, %v20436_v51, %v20435_v27  ;;  %v20441_v51 = vpack.c.bf16 %v14369_v9, %v14374_v46  ;;  %v15112_v9 = vld [vmem:[%s19342_s7 + $0x8] sm:$0xff] }
 0x6f8   : > { %v8938_v54 = vpack.c.bf16 %v4931_v22, %v4918_v47  ;;  %v15084_v24 = vsel %vm3215_vm15, %v20437_v13, %v19615_v2  ;;  %v15091_v20 = vsel %vm3215_vm15, %v20439_v3, %v19616_v18  ;;  %v15093_v22 = vpop.permute.xlu1 %10440  ;;  %v19614_v47 = vunpack.i.l.bf16 %v15031_v40 }
 0x6f9   : > { %20438 = vst [vmem:[#allocation72_spill] sm:$0xff] %v15084_v24  ;;  %20440 = vst [vmem:[#allocation79_spill] sm:$0xff] %v15091_v20  ;;  %v15095_v27 = vpop.permute.xlu0 %10430  ;;  %v20442_v13 = vpack.c.bf16 %v14316_v10, %v14320_v5  ;;  %v20445_v10 = vunpack.i.h.bf16 %v14767_v56 }
 0x6fa   : > { %8939 = vmatpush1.bf16.msra.mxu0 %v8938_v54  ;;  %v19613_v54 = vunpack.i.l.bf16 %v15093_v22 }
 0x6fb   : > { %8973 = vmatprep.subr.bf16.mxu0 %v20441_v51  ;;  %v20443_v51 = vunpack.i.h.bf16 %v14896_v25  ;;  %v15130_v5 = vsel %vm4595_vm5, %v20445_v10, %v19614_v47  ;;  %v15139_v25 = vld [vmem:[%s19342_s7 + $0x10] sm:$0xff] }
 0x6fc   : > { %v15114_v46 = vpop.permute.xlu1 %10450  ;;  %20446 = vst [vmem:[#allocation75_spill] sm:$0xff] %v15130_v5 }
 0x6fd   : > { %5137 = vmatmul.mubr.f32.vlgmr.msra.gmra.mrb[30].mxu0 %v15077_v63  ;;  %v15116_v3 = vpop.permute.xlu0 %10435  ;;  %v15123_v14 = vsel %vm4595_vm5, %v20443_v51, %v19613_v54  ;;  %v10452_v42 = vunpack.i.l.bf16 %v15114_v46 }
 0x6fe   : > { %8975 = vmatpush1.bf16.msra.mxu0 %v20442_v13  ;;  %5142 = vmatprep.mubr.f32.mxu0 %v20038_v53  ;;  %20444 = vst [vmem:[#allocation78_spill] sm:$0xff] %v15123_v14  ;;  %v10408_v13 = vunpack.i.h.bf16 %v10406_v35 }
 0x700   : > { %v15141_v51 = vpop.permute.xlu1 %10460  ;;  %v4287_v19 = vsel %vm1530_vm9, %v10407_v44, %v10408_v13 }
 0x701   : > { %5143 = vmatmul.mubr.f32.gmra.mrb[32].mxu0 %v15112_v9  ;;  %v10446_v34 = vpop.permute.xlu0 %10445 }
 0x702   : > { %5148 = vmatprep.mubr.f32.mxu0 %v20038_v53  ;;  %v10447_v54 = vunpack.i.l.bf16 %v10446_v34  ;;  %v10448_v47 = vunpack.i.h.bf16 %v10446_v34  ;;  %v10413_v34 = vunpack.i.h.bf16 %v14974_v12 }
 0x704   : > { %v15145_v56 = vpop.permute.xlu1 %10465  ;;  %v4300_v21 = vsel %vm1530_vm9, %v20448_v1, %v10447_v54  ;;  %v4301_v35 = vsel %vm1530_vm9, %v10447_v54, %v10448_v47  ;;  %v20450_v54 = vunpack.i.h.bf16 %v14932_v41 }
 0x705   : > { %5149 = vmatmul.mubr.f32.gmra.mrb[34].mxu0 %v15139_v25  ;;  %v15147_v10 = vpop.permute.xlu0 %10455  ;;  %v8978_v14 = vpack.c.bf16 %v4300_v21, %v4287_v19 }
 0x706   : > { %5302 = vmatprep.mubr.f32.mxu0 %v20038_v53  ;;  %v10458_v24 = vunpack.i.h.bf16 %v15147_v10  ;;  %v10457_v44 = vunpack.i.l.bf16 %v15147_v10  ;;  %v4404_v20 = vsel %vm1750_vm13, %v20450_v54, %v10452_v42  ;;  %v20452_v10 = vunpack.i.l.bf16 %v14974_v12 }
 0x707   : > { %v20455_v12 = vunpack.i.l.bf16 %v15067_v26 }
 0x708   : > { %v15149_v2 = vpop.permute.xlu1 %10470  ;;  %v4509_v54 = vsel %vm3215_vm15, %v10457_v44, %v10458_v24 }
 0x709   : > { %v15151_v18 = vpop.permute.xlu0 %10475 }
 0x70a   : > { %20447 = vst [vmem:[#allocation74_spill] sm:$0xff] %v15151_v18  ;;  %v10477_v0 = vunpack.i.l.bf16 %v15151_v18 }
 0x70c   : > { %v4288_v43 = vsel %vm1530_vm9, %v10408_v13, %v10477_v0  ;;  %v15164_v5 = vpop.permute.xlu1 %10480 }
 0x70d   : > { %v15166_v31 = vpop.permute.xlu0 %10485  ;;  %v8976_v1 = vpack.c.bf16 %v4301_v35, %v4288_v43  ;;  %v19631_v33 = vunpack.i.l.bf16 %v15164_v5  ;;  %v20451_v43 = vunpack.i.h.bf16 %v15114_v46  ;;  %v4391_v35 = vsel %vm1750_vm13, %v20452_v10, %v10413_v34 }
 0x70e   : > { %20449 = vst [vmem:[#allocation34_spill] sm:$0xff] %v15166_v31  ;;  %v10487_v13 = vunpack.i.l.bf16 %v15166_v31 }
 0x70f   : > { %8977 = vmatprep.subr.bf16.mxu0 %v8976_v1  ;;  %v4392_v30 = vsel %vm1750_vm13, %v10413_v34, %v19631_v33  ;;  %v4405_v21 = vsel %vm1750_vm13, %v10452_v42, %v20451_v43  ;;  %v20454_v33 = vunpack.i.h.bf16 %v14847_v7  ;;  %v19635_v43 = vunpack.i.h.bf16 %v15151_v18 }
 0x710   : > { %8979 = vmatpush1.bf16.msra.mxu0 %v8978_v14  ;;  %v4496_v19 = vsel %vm3215_vm15, %v10418_v57, %v10487_v13  ;;  %v15185_v37 = vpop.permute.xlu1 %10490  ;;  %v8980_v1 = vpack.c.bf16 %v4405_v21, %v4392_v30  ;;  %v8982_v14 = vpack.c.bf16 %v4404_v20, %v4391_v35  ;;  %v4495_v34 = vsel %vm3215_vm15, %v20455_v12, %v10418_v57 }
 0x711   : > { %20453 = vst [vmem:[#allocation30_spill] sm:$0xff] %v15185_v37  ;;  %v15187_v41 = vpop.permute.xlu0 %10495  ;;  %v4508_v49 = vsel %vm3215_vm15, %v20454_v33, %v10457_v44  ;;  %v8984_v42 = vpack.c.bf16 %v4509_v54, %v4496_v19  ;;  %v10423_v30 = vunpack.i.h.bf16 %v15031_v40  ;;  %v10428_v33 = vunpack.i.h.bf16 %v15069_v15 }
 0x712   : > { %8981 = vmatprep.subr.bf16.mxu0 %v8980_v1  ;;  %v8986_v20 = vpack.c.bf16 %v4508_v49, %v4495_v34  ;;  %v10427_v44 = vunpack.i.l.bf16 %v15069_v15  ;;  %v15208_v26 = vsel %vm1530_vm9, %v10477_v0, %v19635_v43  ;;  %v19637_v57 = vunpack.i.h.bf16 %v15166_v31 }
 0x713   : > { %20456 = vst [vmem:[#allocation80_spill] sm:$0xff] %v15208_v26  ;;  %v10443_v19 = vunpack.i.h.bf16 %v15093_v22  ;;  %v10463_v49 = vunpack.i.h.bf16 %v15141_v51  ;;  %v10462_v35 = vunpack.i.l.bf16 %v15141_v51  ;;  %v10492_v12 = vunpack.i.l.bf16 %v15185_v37 }
 0x714   : > { %8983 = vmatpush1.bf16.msra.mxu0 %v8982_v14  ;;  %v15197_v10 = vpop.permute.xlu1 %10515  ;;  %v20458_v14 = vunpack.i.l.bf16 %v15031_v40  ;;  %v4710_v51 = vsel %vm4702_vm3, %v10427_v44, %v10428_v33  ;;  %v15238_v40 = vsel %vm3215_vm15, %v10487_v13, %v19637_v57  ;;  %v20461_v0 = vunpack.i.l.bf16 %v15093_v22 }
 0x715   : > { %v15199_v39 = vpop.permute.xlu0 %10500  ;;  %8985 = vmatprep.subr.bf16.mxu0 %v8984_v42  ;;  %v19634_v7 = vunpack.i.l.bf16 %v15197_v10  ;;  %20459 = vst [vmem:[#allocation82_spill] sm:$0xff] %v15238_v40  ;;  %v10468_v34 = vunpack.i.h.bf16 %v15145_v56  ;;  %v10467_v57 = vunpack.i.l.bf16 %v15145_v56  ;;  %v20463_v31 = vunpack.i.h.bf16 %v15185_v37 }
 0x716   : > { %v4602_v54 = vsel %vm4595_vm5, %v20458_v14, %v10423_v30  ;;  %v4615_v43 = vsel %vm4595_vm5, %v20461_v0, %v10443_v19  ;;  %v20465_v18 = vunpack.i.l.bf16 %v15187_v41  ;;  %v4603_v56 = vsel %vm4595_vm5, %v10423_v30, %v10492_v12 }
 0x717   : > { %v15214_v21 = vsel %vm1530_vm9, %v10448_v47, %v19634_v7  ;;  %v10432_v7 = vunpack.i.l.bf16 %v15095_v27  ;;  %v8990_v30 = vpack.c.bf16 %v4615_v43, %v4602_v54  ;;  %v20471_v43 = vunpack.i.h.bf16 %v15164_v5 }
 0x718   : > { %20457 = vst [vmem:[#allocation81_spill] sm:$0xff] %v15214_v21  ;;  %8987 = vmatpush1.bf16.msra.mxu0 %v8986_v20  ;;  %v15219_v15 = vpop.permute.xlu1 %10525  ;;  %v10433_v20 = vunpack.i.h.bf16 %v15095_v27  ;;  %v4723_v27 = vsel %vm4702_vm3, %v10462_v35, %v10463_v49  ;;  %v15264_v21 = vsel %vm4595_vm5, %v10492_v12, %v20463_v31  ;;  %v15269_v58 = vsel %vm4702_vm3, %v10428_v33, %v20465_v18 }
 0x719   : > { %v15221_v1 = vpop.permute.xlu0 %10505  ;;  %v19638_v47 = vunpack.i.l.bf16 %v15219_v15  ;;  %20464 = vst [vmem:[#allocation85_spill] sm:$0xff] %v15264_v21  ;;  %20466 = vst [vmem:[#allocation86_spill] sm:$0xff] %v15269_v58  ;;  %v20472_v54 = vunpack.i.l.bf16 %v15164_v5 }
 0x71b   : > { %v15243_v14 = vsel %vm3215_vm15, %v10458_v24, %v19638_v47 }
 0x71c   : > { %20460 = vst [vmem:[#allocation83_spill] sm:$0xff] %v15243_v14  ;;  %v15249_v42 = vpop.permute.xlu1 %10530 }
 0x71d   : > { %v15251_v26 = vpop.permute.xlu0 %10510  ;;  %v19645_v24 = vunpack.i.l.bf16 %v15249_v42 }
 0x71e   : > { %20462 = vst [vmem:[#allocation84_spill] sm:$0xff] %v15251_v26  ;;  %v10512_v22 = vunpack.i.l.bf16 %v15251_v26  ;;  %v20468_v0 = vunpack.i.h.bf16 %v15251_v26  ;;  %v10473_v26 = vunpack.i.h.bf16 %v15149_v2 }
 0x71f   : > { %v15276_v47 = vsel %vm4702_vm3, %v10463_v49, %v19645_v24  ;;  %v20470_v24 = vunpack.i.h.bf16 %v14894_v29  ;;  %v4830_v29 = vsel %vm4809_vm2, %v10467_v57, %v10468_v34 }
 0x720   : > { %20467 = vst [vmem:[#allocation87_spill] sm:$0xff] %v15276_v47  ;;  %v15281_v40 = vsel %vm4595_vm5, %v10512_v22, %v20468_v0  ;;  %v4616_v31 = vsel %vm4595_vm5, %v10443_v19, %v10512_v22  ;;  %v15284_v14 = vpop.permute.xlu1 %10535  ;;  %v8992_v22 = vpack.c.bf16 %v4723_v27, %v4710_v51  ;;  %v19648_v51 = vunpack.i.l.bf16 %v15221_v1 }
 0x721   : > { %20469 = vst [vmem:[#allocation88_spill] sm:$0xff] %v15281_v40  ;;  %v15286_v18 = vpop.permute.xlu0 %10520  ;;  %v8988_v33 = vpack.c.bf16 %v4616_v31, %v4603_v56  ;;  %v4722_v13 = vsel %vm4702_vm3, %v20470_v24, %v10462_v35  ;;  %v19647_v0 = vunpack.i.l.bf16 %v15284_v14  ;;  %v10472_v56 = vunpack.i.l.bf16 %v15149_v2 }
 0x722   : > { %v19650_v19 = vunpack.i.l.bf16 %v15286_v18  ;;  %v15304_v31 = vsel %vm1750_vm13, %v20472_v54, %v20471_v43  ;;  %v20474_v35 = vunpack.i.l.bf16 %v15199_v39  ;;  %v20477_v27 = vunpack.i.h.bf16 %v15114_v46 }
 0x723   : > { %20473 = vst [vmem:[#allocation89_spill] sm:$0xff] %v15304_v31  ;;  %8989 = vmatprep.subr.bf16.mxu0 %v8988_v33  ;;  %v15316_v2 = vsel %vm4809_vm2, %v10468_v34, %v19647_v0  ;;  %v20478_v43 = vunpack.i.h.bf16 %v14769_v50  ;;  %v4817_v34 = vsel %vm4809_vm2, %v10432_v7, %v10433_v20  ;;  %v20498_v0 = vld [vmem:[#allocation37_spill] sm:$0xff] }
 0x724   : > { %v15310_v24 = vsel %vm4809_vm2, %v10433_v20, %v20474_v35  ;;  %20476 = vst [vmem:[#allocation91_spill] sm:$0xff] %v15316_v2  ;;  %v15323_v33 = vsel %vm1750_vm13, %v20477_v27, %v19650_v19  ;;  %8991 = vmatpush1.bf16.msra.mxu0 %v8990_v30  ;;  %v15328_v35 = vpop.permute.xlu1 %10540  ;;  %v10438_v27 = vunpack.i.h.bf16 %v15116_v3  ;;  %v10437_v30 = vunpack.i.l.bf16 %v15116_v3 }
 0x725   : > { %20475 = vst [vmem:[#allocation90_spill] sm:$0xff] %v15310_v24  ;;  %v4709_v54 = vsel %vm4702_vm3, %v20478_v43, %v10427_v44  ;;  %v15330_v49 = vpop.permute.xlu0 %10545  ;;  %8993 = vmatprep.subr.bf16.mxu0 %v8992_v22  ;;  %v19649_v50 = vunpack.i.l.bf16 %v15328_v35  ;;  %v20479_v43 = vunpack.i.h.bf16 %v14930_v45  ;;  %v8996_v22 = vpack.c.bf16 %v4830_v29, %v4817_v34 }
 0x726   : > { %v8994_v44 = vpack.c.bf16 %v4722_v13, %v4709_v54  ;;  %v15346_v20 = vsel %vm1791_vm14, %v10438_v27, %v19648_v51  ;;  %v4936_v3 = vsel %vm1791_vm14, %v10472_v56, %v10473_v26  ;;  %v20482_v13 = vunpack.i.h.bf16 %v14807_v17 }
 0x727   : > { %v4829_v12 = vsel %vm4809_vm2, %v20479_v43, %v10467_v57  ;;  %20480 = vst [vmem:[#allocation92_spill] sm:$0xff] %v15346_v20  ;;  %v15351_v46 = vsel %vm1791_vm14, %v10473_v26, %v19649_v50  ;;  %v4923_v43 = vsel %vm1791_vm14, %v10437_v30, %v10438_v27  ;;  %v20483_v51 = vunpack.i.h.bf16 %v14972_v32 }
 0x728   : > { %20481 = vst [vmem:[#allocation93_spill] sm:$0xff] %v15351_v46  ;;  %8995 = vmatpush1.bf16.msra.mxu0 %v8994_v44  ;;  %v4816_v45 = vsel %vm4809_vm2, %v20482_v13, %v10432_v7  ;;  %v15357_v54 = vpop.permute.xlu1 %10550  ;;  %v9000_v26 = vpack.c.bf16 %v4936_v3, %v4923_v43  ;;  %v20484_v17 = vunpack.i.h.bf16 %v14849_v11  ;;  %v10548_v27 = vunpack.i.h.bf16 %v15330_v49 }
 0x729   : > { %v15359_v57 = vpop.permute.xlu0 %10555  ;;  %8997 = vmatprep.subr.bf16.mxu0 %v8996_v22  ;;  %v8998_v34 = vpack.c.bf16 %v4829_v12, %v4816_v45  ;;  %v4935_v44 = vsel %vm1791_vm14, %v20483_v51, %v10472_v56  ;;  %v10192_v12 = vunpack.i.l.bf16 %v14485_v55  ;;  %v20485_v51 = vpack.c.bf16 %v14445_v28, %v14447_v23 }
 0x72a   : > { %v4922_v7 = vsel %vm1791_vm14, %v20484_v17, %v10437_v30  ;;  %v20486_v3 = vunpack.i.h.bf16 %v14485_v55  ;;  %v20488_v43 = vunpack.i.l.bf16 %v14511_v8  ;;  %v20490_v23 = vpack.c.bf16 %v14401_v6, %v14405_v36 }
 0x72b   : > { %v9002_v22 = vpack.c.bf16 %v4935_v44, %v4922_v7  ;;  %v10197_v7 = vunpack.i.l.bf16 %v14483_v16  ;;  %v10202_v6 = vunpack.i.l.bf16 %v14491_v4  ;;  %v10558_v36 = vunpack.i.h.bf16 %v15359_v57 }
 0x72c   : > { %8999 = vmatpush1.bf16.msra.mxu0 %v8998_v34  ;;  %v15370_v13 = vpop.permute.xlu1 %10560  ;;  %v4281_v45 = vsel %vm1530_vm9, %v10192_v12, %v20486_v3  ;;  %v15387_v34 = vsel %vm1530_vm9, %v10548_v27, %v12261_v52  ;;  %v20491_v12 = vld [vmem:[#allocation40_spill] sm:$0xff]  ;;  %v20496_v8 = vunpack.i.h.bf16 %v14489_v38 }
 0x72d   : > { %v15372_v50 = vpop.permute.xlu0 %4593  ;;  %9001 = vmatprep.subr.bf16.mxu0 %v9000_v26  ;;  %20487 = vst [vmem:[#allocation94_spill] sm:$0xff] %v15387_v34  ;;  %v19665_v34 = vunpack.i.h.bf16 %v15286_v18 }
 0x730   : > { %9003 = vmatpush1.bf16.msra.mxu0 %v9002_v22  ;;  %v15376_v32 = vpop.permute.xlu1 %10565  ;;  %v10207_v22 = vunpack.i.l.bf16 %v14489_v38 }
 0x731   : > { %v10586_v56 = vpop.permute.xlu0 %10585  ;;  %9037 = vmatprep.subr.bf16.mxu0 %v20485_v51 }
 0x732   : > { %v10588_v11 = vunpack.i.h.bf16 %v10586_v56  ;;  %v10587_v30 = vunpack.i.l.bf16 %v10586_v56  ;;  %v20492_v56 = vld [vmem:[#allocation41_spill] sm:$0xff]  ;;  %v15427_v29 = vsel %vm4595_vm5, %v10207_v22, %v20496_v8  ;;  %v10552_v22 = vunpack.i.l.bf16 %v15357_v54 }
 0x733   : > { %5303 = vmatmul.mubr.f32.vlgmr.msra.gmra.mrb[36].mxu0 %v15077_v63  ;;  %v20493_v51 = vpack.c.bf16 %v20491_v12, %v20492_v56  ;;  %v10547_v12 = vunpack.i.l.bf16 %v15330_v49  ;;  %v20497_v56 = vunpack.i.h.bf16 %v14491_v4 }
 0x734   : > { %v4294_v44 = vsel %vm1530_vm9, %v10588_v11, %v20488_v43  ;;  %v15394_v28 = vsel %vm1530_vm9, %v10587_v30, %v12261_v52  ;;  %9039 = vmatpush1.bf16.msra.mxu0 %v20490_v23  ;;  %v15399_v26 = vpop.permute.xlu1 %10570  ;;  %5308 = vmatprep.mubr.f32.mxu0 %v20038_v53  ;;  %v20494_v11 = vld [vmem:[#allocation18_spill] sm:$0xff]  ;;  %v20495_v23 = vunpack.i.h.bf16 %v14483_v16  ;;  %v10557_v52 = vunpack.i.l.bf16 %v15359_v57 }
 0x735   : > { %20489 = vst [vmem:[#allocation95_spill] sm:$0xff] %v15394_v28  ;;  %v15401_v55 = vpop.permute.xlu0 %10590  ;;  %v8882_v17 = vpack.c.bf16 %v4294_v44, %v4281_v45  ;;  %v10227_v3 = vunpack.i.l.bf16 %v20494_v11  ;;  %v20499_v44 = vld [vmem:[#allocation14_spill] sm:$0xff]  ;;  %v20503_v49 = vunpack.i.h.bf16 %v20494_v11  ;;  %v4305_v28 = vsel %vm1530_vm9, %v10547_v12, %v10548_v27  ;;  %v20505_v27 = vld [vmem:[#allocation13_spill] sm:$0xff] }
 0x736   : > { %v15439_v16 = vsel %vm3215_vm15, %v10558_v36, %v20499_v44  ;;  %v10593_v19 = vunpack.i.h.bf16 %v15401_v55 }
 0x737   : > { %8883 = vmatpush1.bf16.msra.mxu1 %v8882_v17  ;;  %5309 = vmatmul.mubr.f32.gmra.mrb[38].mxu0 %v15112_v9  ;;  %v4385_v17 = vsel %vm1750_vm13, %v10197_v7, %v20495_v23  ;;  %20500 = vst [vmem:[#allocation40_spill] sm:$0xff] %v15439_v16  ;;  %v15451_v4 = vsel %vm4595_vm5, %v10227_v3, %v20503_v49  ;;  %v20504_v7 = vld [vmem:[#allocation42_spill] sm:$0xff] }
 0x738   : > { %8885 = vmatprep.subr.bf16.mxu1 %v20493_v51  ;;  %5314 = vmatprep.mubr.f32.mxu0 %v20038_v53  ;;  %v15416_v45 = vpop.permute.xlu1 %10575  ;;  %v15434_v51 = vsel %vm3215_vm15, %v10202_v6, %v20497_v56  ;;  %v19658_v6 = vunpack.i.h.bf16 %v15197_v10 }
 0x739   : > { %v15418_v43 = vpop.permute.xlu0 %10605 }
 0x73a   : > { %v20501_v38 = vunpack.i.l.bf16 %v15418_v43  ;;  %v4304_v49 = vsel %vm1530_vm9, %v19658_v6, %v10547_v12  ;;  %v20508_v6 = vld [vmem:[#allocation15_spill] sm:$0xff] }
 0x73b   : > { %5315 = vmatmul.mubr.f32.gmra.mrb[40].mxu0 %v15139_v25  ;;  %v20509_v58 = vunpack.i.l.bf16 %v20508_v6 }
 0x73c   : > { %v15445_v8 = vsel %vm3215_vm15, %v20501_v38, %v20499_v44  ;;  %5468 = vmatprep.mubr.f32.mxu0 %v20038_v53  ;;  %v15455_v23 = vpop.permute.xlu1 %10580  ;;  %v10553_v44 = vunpack.i.h.bf16 %v15357_v54  ;;  %v10608_v38 = vunpack.i.h.bf16 %v15418_v43 }
 0x73d   : > { %20502 = vst [vmem:[#allocation41_spill] sm:$0xff] %v15445_v8  ;;  %v15457_v56 = vpop.permute.xlu0 %10610  ;;  %v10583_v11 = vunpack.i.h.bf16 %v15455_v23  ;;  %v19663_v3 = vunpack.i.l.bf16 %v15455_v23 }
 0x73e   : > { %v15483_v12 = vsel %vm1750_vm13, %v10553_v44, %v20505_v27 }
 0x73f   : > { %v4291_v8 = vsel %vm1530_vm9, %v19663_v3, %v10583_v11  ;;  %v4292_v16 = vsel %vm1530_vm9, %v10583_v11, %v10587_v30  ;;  %v4408_v30 = vsel %vm1750_vm13, %v19665_v34, %v10552_v22  ;;  %v20506_v11 = vunpack.i.h.bf16 %v15219_v15 }
 0x740   : > { %v10596_v20 = vpop.permute.xlu1 %10595  ;;  %v9040_v57 = vpack.c.bf16 %v4305_v28, %v4292_v16  ;;  %v9042_v46 = vpack.c.bf16 %v4304_v49, %v4291_v8  ;;  %v4409_v28 = vsel %vm1750_vm13, %v10552_v22, %v10553_v44  ;;  %v4513_v16 = vsel %vm3215_vm15, %v10557_v52, %v10558_v36  ;;  %v20510_v44 = vld [vmem:[#allocation12_spill] sm:$0xff] }
 0x741   : > { %v15479_v54 = vpop.permute.xlu0 %10620  ;;  %v10598_v24 = vunpack.i.h.bf16 %v10596_v20  ;;  %v10597_v2 = vunpack.i.l.bf16 %v10596_v20  ;;  %v4512_v3 = vsel %vm3215_vm15, %v20506_v11, %v10557_v52  ;;  %v20507_v8 = vunpack.i.l.bf16 %v15401_v55 }
 0x742   : > { %9041 = vmatprep.subr.bf16.mxu0 %v9040_v57  ;;  %v10623_v47 = vunpack.i.h.bf16 %v15479_v54  ;;  %v10563_v57 = vunpack.i.h.bf16 %v15370_v13  ;;  %v20511_v52 = vunpack.i.h.bf16 %v15376_v32 }
 0x743   : > { %v4395_v49 = vsel %vm1750_vm13, %v20507_v8, %v10593_v19  ;;  %v15499_v20 = vsel %vm1750_vm13, %v10597_v2, %v20505_v27  ;;  %v4398_v34 = vsel %vm1750_vm13, %v10598_v24, %v20509_v58  ;;  %9043 = vmatpush1.bf16.msra.mxu0 %v9042_v46  ;;  %v4396_v6 = vsel %vm1750_vm13, %v10593_v19, %v10597_v2  ;;  %v20512_v24 = vld [vmem:[#allocation44_spill] sm:$0xff] }
 0x744   : > { %v15510_v36 = vsel %vm4702_vm3, %v20511_v52, %v20510_v44  ;;  %v15512_v22 = vpop.permute.xlu1 %10600  ;;  %v8886_v8 = vpack.c.bf16 %v4398_v34, %v4385_v17  ;;  %v20513_v27 = vunpack.i.l.bf16 %v20512_v24  ;;  %v9044_v37 = vpack.c.bf16 %v4409_v28, %v4396_v6 }
 0x745   : > { %v15514_v11 = vpop.permute.xlu0 %10625  ;;  %v10603_v21 = vunpack.i.h.bf16 %v15512_v22  ;;  %v19672_v40 = vunpack.i.l.bf16 %v15512_v22  ;;  %v9046_v31 = vpack.c.bf16 %v4408_v30, %v4395_v49  ;;  %v15529_v2 = vsel %vm4702_vm3, %v10623_v47, %v20510_v44  ;;  %v20529_v44 = vld [vmem:[#allocation61_spill] sm:$0xff] }
 0x746   : > { %v4502_v46 = vsel %vm3215_vm15, %v10608_v38, %v20513_v27  ;;  %v10628_v52 = vunpack.i.h.bf16 %v15514_v11  ;;  %8887 = vmatpush1.bf16.msra.mxu1 %v8886_v8  ;;  %v20514_v38 = vld [vmem:[#allocation50_spill] sm:$0xff]  ;;  %v20515_v27 = vld [vmem:[#allocation48_spill] sm:$0xff]  ;;  %v20517_v28 = vunpack.i.l.bf16 %v15418_v43  ;;  %v10613_v49 = vunpack.i.h.bf16 %v15457_v56  ;;  %9045 = vmatprep.subr.bf16.mxu0 %v9044_v37 }
 0x747   : > { %v4499_v17 = vsel %vm3215_vm15, %v19672_v40, %v10603_v21  ;;  %v20516_v24 = vpack.c.bf16 %v20514_v38, %v20515_v27  ;;  %v19675_v8 = vunpack.i.l.bf16 %v15457_v56  ;;  %v8890_v19 = vpack.c.bf16 %v4502_v46, %v15434_v51  ;;  %9047 = vmatpush1.bf16.msra.mxu0 %v9046_v31  ;;  %v20519_v31 = vld [vmem:[#allocation49_spill] sm:$0xff]  ;;  %v20534_v27 = vld [vmem:[#allocation43_spill] sm:$0xff] }
 0x748   : > { %v4500_v30 = vsel %vm3215_vm15, %v10603_v21, %v20517_v28  ;;  %v15542_v6 = vpop.permute.xlu1 %10615  ;;  %v10622_v58 = vunpack.i.l.bf16 %v15479_v54  ;;  %v9050_v21 = vpack.c.bf16 %v4512_v3, %v4499_v17  ;;  %v8894_v51 = vpack.c.bf16 %v15451_v4, %v15427_v29  ;;  %v20525_v29 = vld [vmem:[#allocation51_spill] sm:$0xff] }
 0x749   : > { %8889 = vmatprep.subr.bf16.mxu1 %v20516_v24  ;;  %v15544_v34 = vpop.permute.xlu0 %10630  ;;  %v9048_v40 = vpack.c.bf16 %v4513_v16, %v4500_v30  ;;  %v19676_v38 = vunpack.i.l.bf16 %v15542_v6  ;;  %v20518_v24 = vld [vmem:[#allocation39_spill] sm:$0xff]  ;;  %v20520_v16 = vunpack.i.h.bf16 %v20519_v31  ;;  %v20521_v46 = vunpack.i.h.bf16 %v20504_v7  ;;  %v20522_v30 = vld [vmem:[#allocation38_spill] sm:$0xff] }
 0x74a   : > { %v10633_v43 = vunpack.i.h.bf16 %v15544_v34  ;;  %v15553_v37 = vsel %vm4809_vm2, %v10628_v52, %v20518_v24  ;;  %8891 = vmatpush1.bf16.msra.mxu1 %v8890_v19  ;;  %v4620_v17 = vsel %vm4595_vm5, %v10563_v57, %v15372_v50  ;;  %v10567_v28 = vunpack.i.l.bf16 %v15376_v32  ;;  %v20524_v19 = vld [vmem:[#allocation54_spill] sm:$0xff] }
 0x74b   : > { %9049 = vmatprep.subr.bf16.mxu0 %v9048_v40  ;;  %v4716_v3 = vsel %vm4702_vm3, %v20521_v46, %v20520_v16  ;;  %v20526_v4 = vpack.c.bf16 %v20524_v19, %v20525_v29  ;;  %v20527_v31 = vunpack.i.h.bf16 %v15399_v26  ;;  %v20528_v16 = vunpack.i.h.bf16 %v15416_v45 }
 0x74c   : > { %v15569_v40 = vsel %vm1791_vm14, %v10633_v43, %v20522_v30  ;;  %v4606_v54 = vsel %vm4595_vm5, %v19675_v8, %v10613_v49  ;;  %v4607_v19 = vsel %vm4595_vm5, %v10613_v49, %v19676_v38  ;;  %v10627_v29 = vunpack.i.l.bf16 %v15514_v11  ;;  %9051 = vmatpush1.bf16.msra.mxu0 %v9050_v21 }
 0x74d   : > { %20523 = vst [vmem:[#allocation18_spill] sm:$0xff] %v15569_v40  ;;  %8893 = vmatprep.subr.bf16.mxu1 %v20526_v4  ;;  %v15578_v7 = vsel %vm4809_vm2, %v20527_v31, %v20518_v24  ;;  %v15584_v46 = vsel %vm1791_vm14, %v20528_v16, %v20522_v30  ;;  %v9052_v4 = vpack.c.bf16 %v4620_v17, %v4607_v19  ;;  %v10183_v30 = vunpack.i.h.bf16 %v20529_v44  ;;  %v20533_v19 = vld [vmem:[#allocation53_spill] sm:$0xff] }
 0x74e   : > { %v4714_v31 = vsel %vm4702_vm3, %v10622_v58, %v10623_v47  ;;  %v20530_v24 = vunpack.i.l.bf16 %v15370_v13  ;;  %8895 = vmatpush1.bf16.msra.mxu1 %v8894_v51  ;;  %v20531_v11 = vunpack.i.h.bf16 %v20498_v0  ;;  %v20532_v21 = vunpack.i.l.bf16 %v20498_v0 }
 0x74f   : > { %v10572_v17 = vunpack.i.l.bf16 %v15399_v26  ;;  %9053 = vmatprep.subr.bf16.mxu0 %v9052_v4  ;;  %v20535_v38 = vpack.c.bf16 %v20533_v19, %v20534_v27  ;;  %v10533_v51 = vunpack.i.h.bf16 %v15249_v42  ;;  %v20537_v49 = vunpack.i.h.bf16 %v15187_v41 }
 0x750   : > { %v4619_v8 = vsel %vm4595_vm5, %v20530_v24, %v10563_v57  ;;  %v4703_v47 = vsel %vm4702_vm3, %v20532_v21, %v20531_v11  ;;  %v20536_v57 = vunpack.i.h.bf16 %v15376_v32  ;;  %v10182_v21 = vunpack.i.l.bf16 %v20529_v44 }
 0x751   : > { %8897 = vmatprep.subr.bf16.mxu1 %v20535_v38  ;;  %v9054_v16 = vpack.c.bf16 %v4619_v8, %v4606_v54  ;;  %v4713_v0 = vsel %vm4702_vm3, %v20537_v49, %v10622_v58  ;;  %v8898_v11 = vpack.c.bf16 %v4716_v3, %v4703_v47  ;;  %v20538_v4 = vunpack.i.l.bf16 %v14523_v61  ;;  %v20539_v38 = vld [vmem:[#allocation32_spill] sm:$0xff] }
 0x752   : > { %v4727_v24 = vsel %vm4702_vm3, %v10567_v28, %v20536_v57  ;;  %v10632_v8 = vunpack.i.l.bf16 %v15544_v34  ;;  %v4821_v32 = vsel %vm4809_vm2, %v10627_v29, %v10628_v52  ;;  %v10188_v54 = vunpack.i.h.bf16 %v20539_v38  ;;  %v20541_v34 = vld [vmem:[#allocation16_spill] sm:$0xff] }
 0x753   : > { %v9056_v40 = vpack.c.bf16 %v4727_v24, %v4714_v31  ;;  %v4823_v27 = vsel %vm4809_vm2, %v10183_v30, %v20538_v4  ;;  %9055 = vmatpush1.bf16.msra.mxu0 %v9054_v16  ;;  %v10503_v19 = vunpack.i.h.bf16 %v15199_v39  ;;  %v4726_v58 = vsel %vm4702_vm3, %v10533_v51, %v10567_v28  ;;  %8899 = vmatpush1.bf16.msra.mxu1 %v8898_v11  ;;  %v20542_v31 = vld [vmem:[#allocation19_spill] sm:$0xff] }
 0x754   : > { %v20540_v44 = vunpack.i.l.bf16 %v14499_v60  ;;  %v10577_v3 = vunpack.i.l.bf16 %v15416_v45  ;;  %v20543_v30 = vpack.c.bf16 %v20541_v34, %v20542_v31  ;;  %v9058_v52 = vpack.c.bf16 %v4726_v58, %v4713_v0  ;;  %v20551_v34 = vld [vmem:[#allocation23_spill] sm:$0xff]  ;;  %v20552_v31 = vld [vmem:[#allocation24_spill] sm:$0xff] }
 0x755   : > { %9057 = vmatprep.subr.bf16.mxu0 %v9056_v40  ;;  %v20544_v16 = vunpack.i.h.bf16 %v15399_v26  ;;  %v10538_v47 = vunpack.i.h.bf16 %v15284_v14  ;;  %v4820_v28 = vsel %vm4809_vm2, %v10503_v19, %v10627_v29  ;;  %v10187_v57 = vunpack.i.l.bf16 %v20539_v38 }
 0x756   : > { %v4810_v61 = vsel %vm4809_vm2, %v10182_v21, %v20540_v44  ;;  %8901 = vmatprep.subr.bf16.mxu1 %v20543_v30  ;;  %v20545_v24 = vunpack.i.l.bf16 %v14547_v62  ;;  %v4927_v0 = vsel %vm1791_vm14, %v10632_v8, %v10633_v43  ;;  %v10508_v26 = vunpack.i.h.bf16 %v15221_v1 }
 0x757   : > { %v4834_v49 = vsel %vm4809_vm2, %v10572_v17, %v20544_v16  ;;  %v8902_v40 = vpack.c.bf16 %v4823_v27, %v4810_v61  ;;  %9059 = vmatpush1.bf16.msra.mxu0 %v9058_v52  ;;  %v4833_v21 = vsel %vm4809_vm2, %v10538_v47, %v10572_v17  ;;  %v20546_v29 = vunpack.i.l.bf16 %v14505_v48  ;;  %v20547_v27 = vld [vmem:[#allocation47_spill] sm:$0xff] }
 0x758   : > { %v9060_v60 = vpack.c.bf16 %v4834_v49, %v4821_v32  ;;  %v4929_v11 = vsel %vm1791_vm14, %v10188_v54, %v20545_v24  ;;  %v20548_v32 = vld [vmem:[#allocation60_spill] sm:$0xff]  ;;  %v9062_v38 = vpack.c.bf16 %v4833_v21, %v4820_v28  ;;  %v20550_v54 = vunpack.i.h.bf16 %v15416_v45  ;;  %v20554_v52 = vld [vmem:[#allocation27_spill] sm:$0xff]  ;;  %v20557_v49 = vld [vmem:[#allocation65_spill] sm:$0xff] }
 0x759   : > { %8903 = vmatpush1.bf16.msra.mxu1 %v8902_v40  ;;  %v4916_v4 = vsel %vm1791_vm14, %v10187_v57, %v20546_v29  ;;  %v20549_v62 = vpack.c.bf16 %v20547_v27, %v20548_v32  ;;  %v10543_v58 = vunpack.i.h.bf16 %v15328_v35  ;;  %v4926_v17 = vsel %vm1791_vm14, %v10508_v26, %v10632_v8  ;;  %v20555_v16 = vld [vmem:[#allocation35_spill] sm:$0xff]  ;;  %v20562_v57 = vld [vmem:[#allocation76_spill] sm:$0xff]  ;;  %v20563_v24 = vld [vmem:[#allocation66_spill] sm:$0xff] }
 0x75a   : > { %9061 = vmatprep.subr.bf16.mxu0 %v9060_v60  ;;  %v4940_v43 = vsel %vm1791_vm14, %v10577_v3, %v20550_v54  ;;  %v8906_v61 = vpack.c.bf16 %v4929_v11, %v4916_v4  ;;  %v20553_v45 = vpack.c.bf16 %v20551_v34, %v20552_v31  ;;  %v20556_v8 = vpack.c.bf16 %v20554_v52, %v20555_v16  ;;  %v20560_v60 = vld [vmem:[#allocation56_spill] sm:$0xff]  ;;  %v20568_v29 = vld [vmem:[#allocation79_spill] sm:$0xff]  ;;  %v20574_v54 = vld [vmem:[#allocation78_spill] sm:$0xff] }
 0x75b   : > { %8905 = vmatprep.subr.bf16.mxu1 %v20549_v62  ;;  %v9064_v44 = vpack.c.bf16 %v4940_v43, %v4927_v0  ;;  %9063 = vmatpush1.bf16.msra.mxu0 %v9062_v38  ;;  %v4939_v48 = vsel %vm1791_vm14, %v10543_v58, %v10577_v3  ;;  %v20558_v28 = vpack.c.bf16 %v15060_v59, %v20557_v49  ;;  %v20559_v3 = vld [vmem:[#allocation55_spill] sm:$0xff]  ;;  %v20566_v0 = vld [vmem:[#allocation21_spill] sm:$0xff]  ;;  %v20569_v4 = vld [vmem:[#allocation72_spill] sm:$0xff] }
 0x75c   : > { %v9066_v30 = vpack.c.bf16 %v4939_v48, %v4926_v17  ;;  %v20561_v40 = vpack.c.bf16 %v20559_v3, %v20560_v60  ;;  %v20564_v11 = vpack.c.bf16 %v20562_v57, %v20563_v24  ;;  %v20565_v59 = vld [vmem:[#allocation71_spill] sm:$0xff]  ;;  %v20570_v27 = vpack.c.bf16 %v20568_v29, %v20569_v4  ;;  %v20571_v32 = vld [vmem:[#allocation52_spill] sm:$0xff]  ;;  %v20572_v62 = vld [vmem:[#allocation57_spill] sm:$0xff] }
 0x75d   : > { %9065 = vmatprep.subr.bf16.mxu0 %v9064_v44  ;;  %8907 = vmatpush1.bf16.msra.mxu1 %v8906_v61  ;;  %v20567_v21 = vpack.c.bf16 %v20565_v59, %v20566_v0  ;;  %v20573_v38 = vpack.c.bf16 %v20571_v32, %v20572_v62  ;;  %v20575_v43 = vld [vmem:[#allocation75_spill] sm:$0xff]  ;;  %v20577_v44 = vld [vmem:[#allocation62_spill] sm:$0xff]  ;;  %v20580_v34 = vld [vmem:[#allocation17_spill] sm:$0xff]  ;;  %v20598_v29 = vunpack.i.l.bf16 %v15455_v23 }
 0x75e   : > { %8941 = vmatprep.subr.bf16.mxu1 %v20553_v45  ;;  %v20576_v17 = vpack.c.bf16 %v20574_v54, %v20575_v43  ;;  %v20578_v61 = vld [vmem:[#allocation59_spill] sm:$0xff]  ;;  %v20581_v31 = vld [vmem:[#allocation68_spill] sm:$0xff]  ;;  %v20584_v52 = vld [vmem:[#allocation58_spill] sm:$0xff]  ;;  %v20604_v43 = vunpack.i.h.bf16 %v15197_v10 }
 0x75f   : > { %9067 = vmatpush1.bf16.msra.mxu0 %v9066_v30  ;;  %v20579_v48 = vpack.c.bf16 %v20577_v44, %v20578_v61  ;;  %v20582_v45 = vpack.c.bf16 %v20580_v34, %v20581_v31  ;;  %v20583_v30 = vld [vmem:[#allocation67_spill] sm:$0xff]  ;;  %v20587_v49 = vld [vmem:[#allocation22_spill] sm:$0xff]  ;;  %v20589_v3 = vld [vmem:[#allocation64_spill] sm:$0xff]  ;;  %v20609_v31 = vunpack.i.l.bf16 %v15401_v55 }
 0x760   : > { %5054 = vmatmul.mubr.f32.vlgmr.msra.gmra.mrb[36].mxu1 %v15077_v63  ;;  %v20585_v16 = vpack.c.bf16 %v20583_v30, %v20584_v52  ;;  %v20590_v60 = vld [vmem:[#allocation20_spill] sm:$0xff]  ;;  %v20592_v57 = vld [vmem:[#allocation77_spill] sm:$0xff]  ;;  %v20595_v59 = vld [vmem:[#allocation70_spill] sm:$0xff]  ;;  %v20612_v52 = vunpack.i.l.bf16 %v15286_v18 }
 0x761   : > { %8943 = vmatpush1.bf16.msra.mxu1 %v20556_v8  ;;  %5059 = vmatprep.mubr.f32.mxu1 %v20038_v53  ;;  %v20586_v8 = vld [vmem:[#allocation69_spill] sm:$0xff]  ;;  %v20596_v0 = vld [vmem:[#allocation63_spill] sm:$0xff]  ;;  %v20599_v4 = vld [vmem:[#allocation74_spill] sm:$0xff] }
 0x762   : > { %8945 = vmatprep.subr.bf16.mxu1 %v20558_v28  ;;  %5469 = vmatmul.mubr.f32.vlgmr.msra.gmra.mrb[42].mxu0 %v15077_v63  ;;  %v20588_v28 = vpack.c.bf16 %v20586_v8, %v20587_v49  ;;  %v20593_v24 = vld [vmem:[#allocation73_spill] sm:$0xff]  ;;  %v20601_v62 = vld [vmem:[#allocation26_spill] sm:$0xff] }
 0x763   : > { %5474 = vmatprep.mubr.f32.mxu0 %v20038_v53  ;;  %v20607_v34 = vld [vmem:[#allocation45_spill] sm:$0xff]  ;;  %v20617_v55 = vld [vmem:[#allocation34_spill] sm:$0xff] }
 0x764   : > { %5060 = vmatmul.mubr.f32.gmra.mrb[38].mxu1 %v15112_v9  ;;  %v20613_v49 = vld [vmem:[#allocation81_spill] sm:$0xff] }
 0x765   : > { %8947 = vmatpush1.bf16.msra.mxu1 %v20561_v40  ;;  %5065 = vmatprep.mubr.f32.mxu1 %v20038_v53  ;;  %v20591_v40 = vpack.c.bf16 %v20589_v3, %v20590_v60  ;;  %v20618_v60 = vunpack.i.h.bf16 %v20617_v55  ;;  %v20649_v55 = vld [vmem:[#allocation92_spill] sm:$0xff] }
 0x766   : > { %8949 = vmatprep.subr.bf16.mxu1 %v20564_v11  ;;  %5475 = vmatmul.mubr.f32.gmra.mrb[44].mxu0 %v15112_v9  ;;  %v20594_v11 = vpack.c.bf16 %v20592_v57, %v20593_v24  ;;  %v20620_v57 = vunpack.i.l.bf16 %v15219_v15 }
 0x767   : > { %5480 = vmatprep.mubr.f32.mxu0 %v20038_v53 }
 0x768   : > { %5066 = vmatmul.mubr.f32.gmra.mrb[40].mxu1 %v15139_v25 }
 0x769   : > { %8951 = vmatpush1.bf16.msra.mxu1 %v20567_v21  ;;  %5219 = vmatprep.mubr.f32.mxu1 %v20038_v53  ;;  %v20597_v21 = vpack.c.bf16 %v20595_v59, %v20596_v0  ;;  %v20621_v59 = vld [vmem:[#allocation89_spill] sm:$0xff] }
 0x76a   : > { %8953 = vmatprep.subr.bf16.mxu1 %v20570_v27  ;;  %5481 = vmatmul.mubr.f32.gmra.mrb[46].mxu0 %v15139_v25  ;;  %v20600_v27 = vunpack.i.h.bf16 %v20599_v4  ;;  %v20622_v0 = vpack.c.bf16 %v15323_v33, %v20621_v59  ;;  %v20659_v59 = vunpack.i.l.bf16 %v15542_v6 }
 0x76c   : > { %v4290_v32 = vsel %vm1530_vm9, %v20600_v27, %v20598_v29  ;;  %v20627_v27 = vld [vmem:[#allocation84_spill] sm:$0xff] }
 0x76d   : > { %8955 = vmatpush1.bf16.msra.mxu1 %v20573_v38  ;;  %v20602_v38 = vld [vmem:[#allocation31_spill] sm:$0xff] }
 0x76e   : > { %8957 = vmatprep.subr.bf16.mxu1 %v20576_v17  ;;  %v20603_v54 = vpack.c.bf16 %v20601_v62, %v20602_v38  ;;  %v20605_v17 = vunpack.i.l.bf16 %v15197_v10  ;;  %v20611_v10 = vunpack.i.h.bf16 %v15286_v18  ;;  %v20619_v18 = vunpack.i.h.bf16 %v15219_v15 }
 0x76f   : > { %v20626_v15 = vunpack.i.l.bf16 %v15370_v13  ;;  %v20634_v13 = vunpack.i.l.bf16 %v15187_v41 }
 0x770   : > { %v4303_v44 = vsel %vm1530_vm9, %v20605_v17, %v20604_v43  ;;  %v4511_v24 = vsel %vm3215_vm15, %v20620_v57, %v20619_v18  ;;  %v20630_v43 = vld [vmem:[#allocation82_spill] sm:$0xff] }
 0x771   : > { %8959 = vmatpush1.bf16.msra.mxu1 %v20579_v48  ;;  %v9008_v61 = vpack.c.bf16 %v4303_v44, %v4290_v32  ;;  %v20606_v48 = vld [vmem:[#allocation46_spill] sm:$0xff]  ;;  %v20628_v32 = vunpack.i.h.bf16 %v20627_v27  ;;  %v20633_v44 = vunpack.i.h.bf16 %v15187_v41 }
 0x772   : > { %8961 = vmatprep.subr.bf16.mxu1 %v20582_v45  ;;  %v20608_v23 = vpack.c.bf16 %v20606_v48, %v20607_v34  ;;  %v20610_v45 = vunpack.i.h.bf16 %v15164_v5  ;;  %v20616_v5 = vunpack.i.l.bf16 %v15512_v22  ;;  %v20623_v22 = vunpack.i.l.bf16 %v15457_v56  ;;  %v20635_v34 = vld [vmem:[#allocation88_spill] sm:$0xff] }
 0x773   : > { %v4618_v62 = vsel %vm4595_vm5, %v20628_v32, %v20626_v15  ;;  %v20632_v56 = vunpack.i.l.bf16 %v15249_v42 }
 0x774   : > { %v4394_v30 = vsel %vm1750_vm13, %v20610_v45, %v20609_v31  ;;  %v20638_v45 = vunpack.i.l.bf16 %v15284_v14 }
 0x775   : > { %8963 = vmatpush1.bf16.msra.mxu1 %v20585_v16  ;;  %v4407_v16 = vsel %vm1750_vm13, %v20612_v52, %v20611_v10  ;;  %v4725_v17 = vsel %vm4702_vm3, %v20632_v56, %v10533_v51  ;;  %v20639_v51 = vunpack.i.l.bf16 %v15199_v39  ;;  %v20640_v10 = vld [vmem:[#allocation87_spill] sm:$0xff]  ;;  %v20641_v52 = vld [vmem:[#allocation86_spill] sm:$0xff] }
 0x776   : > { %8965 = vmatprep.subr.bf16.mxu1 %v20588_v28  ;;  %v9012_v8 = vpack.c.bf16 %v4407_v16, %v4394_v30  ;;  %v20614_v28 = vld [vmem:[#allocation80_spill] sm:$0xff]  ;;  %v4832_v42 = vsel %vm4809_vm2, %v20638_v45, %v10538_v47  ;;  %v20642_v16 = vpack.c.bf16 %v20640_v10, %v20641_v52  ;;  %v20644_v47 = vunpack.i.l.bf16 %v15221_v1  ;;  %v20655_v1 = vld [vmem:[#allocation94_spill] sm:$0xff] }
 0x777   : > { %v20615_v3 = vpack.c.bf16 %v20613_v49, %v20614_v28  ;;  %v4819_v41 = vsel %vm4809_vm2, %v20639_v51, %v10503_v19  ;;  %v20645_v19 = vld [vmem:[#allocation91_spill] sm:$0xff]  ;;  %v20646_v28 = vld [vmem:[#allocation90_spill] sm:$0xff] }
 0x778   : > { %v9028_v30 = vpack.c.bf16 %v4832_v42, %v4819_v41  ;;  %v4925_v39 = vsel %vm1791_vm14, %v20644_v47, %v10508_v26  ;;  %v20656_v26 = vld [vmem:[#allocation95_spill] sm:$0xff]  ;;  %v20669_v47 = vld [vmem:[#allocation36_spill] sm:$0xff] }
 0x779   : > { %8967 = vmatpush1.bf16.msra.mxu1 %v20591_v40  ;;  %v4498_v40 = vsel %vm3215_vm15, %v20618_v60, %v20616_v5  ;;  %v20648_v5 = vld [vmem:[#allocation93_spill] sm:$0xff]  ;;  %v20657_v57 = vpack.c.bf16 %v20655_v1, %v20656_v26 }
 0x77a   : > { %8969 = vmatprep.subr.bf16.mxu1 %v20594_v11  ;;  %v9016_v11 = vpack.c.bf16 %v4511_v24, %v4498_v40  ;;  %v20650_v60 = vpack.c.bf16 %v20648_v5, %v20649_v55  ;;  %v20653_v40 = vld [vmem:[#allocation33_spill] sm:$0xff]  ;;  %v10618_v24 = vunpack.i.h.bf16 %v15542_v6  ;;  %v20664_v6 = vpack.c.bf16 %v15578_v7, %v15553_v37 }
 0x77d   : > { %8971 = vmatpush1.bf16.msra.mxu1 %v20597_v21  ;;  %v20624_v21 = vld [vmem:[#allocation30_spill] sm:$0xff] }
 0x77e   : > { %9005 = vmatprep.subr.bf16.mxu1 %v20603_v54  ;;  %v20625_v29 = vunpack.i.h.bf16 %v20624_v21  ;;  %v20629_v54 = vld [vmem:[#allocation83_spill] sm:$0xff]  ;;  %v20660_v21 = vld [vmem:[#allocation40_spill] sm:$0xff] }
 0x77f   : > { %v20631_v33 = vpack.c.bf16 %v20629_v54, %v20630_v43  ;;  %v20667_v43 = vld [vmem:[#allocation25_spill] sm:$0xff] }
 0x780   : > { %5220 = vmatmul.mubr.f32.vlgmr.msra.gmra.mrb[42].mxu1 %v15077_v63  ;;  %v4605_v4 = vsel %vm4595_vm5, %v20625_v29, %v20623_v22  ;;  %v4621_v22 = vsel %vm4595_vm5, %v15372_v50, %v10618_v24  ;;  %v20661_v29 = vld [vmem:[#allocation41_spill] sm:$0xff]  ;;  %v20665_v50 = vld [vmem:[#allocation18_spill] sm:$0xff] }
 0x781   : > { %9007 = vmatpush1.bf16.msra.mxu1 %v20608_v23  ;;  %5225 = vmatprep.mubr.f32.mxu1 %v20038_v53  ;;  %v9020_v38 = vpack.c.bf16 %v4618_v62, %v4605_v4  ;;  %v20636_v23 = vld [vmem:[#allocation85_spill] sm:$0xff]  ;;  %v20662_v4 = vpack.c.bf16 %v20660_v21, %v20661_v29  ;;  %v20666_v15 = vpack.c.bf16 %v15584_v46, %v20665_v50 }
 0x782   : > { %9009 = vmatprep.subr.bf16.mxu1 %v9008_v61  ;;  %v4712_v61 = vsel %vm4702_vm3, %v20634_v13, %v20633_v44  ;;  %v20637_v31 = vpack.c.bf16 %v20635_v34, %v20636_v23 }
 0x783   : > { %v9024_v48 = vpack.c.bf16 %v4725_v17, %v4712_v61 }
 0x784   : > { %5226 = vmatmul.mubr.f32.gmra.mrb[44].mxu1 %v15112_v9 }
 0x785   : > { %9011 = vmatpush1.bf16.msra.mxu1 %v20615_v3  ;;  %5231 = vmatprep.mubr.f32.mxu1 %v20038_v53  ;;  %v20647_v3 = vpack.c.bf16 %v20645_v19, %v20646_v28 }
 0x786   : > { %9013 = vmatprep.subr.bf16.mxu1 %v9012_v8  ;;  %v20643_v8 = vunpack.i.l.bf16 %v15328_v35  ;;  %v20651_v35 = vmov 0.0|0.0  }
 0x788   : > { %5232 = vmatmul.mubr.f32.gmra.mrb[46].mxu1 %v15139_v25  ;;  %v4938_v14 = vsel %vm1791_vm14, %v20643_v8, %v10543_v58  ;;  %v20652_v58 = vld [vmem:[#allocation29_spill] sm:$0xff] }
 0x789   : > { %9015 = vmatpush1.bf16.msra.mxu1 %v20622_v0  ;;  %5385 = vmatprep.mubr.f32.mxu1 %v20038_v53  ;;  %v9032_v49 = vpack.c.bf16 %v4938_v14, %v4925_v39  ;;  %v20654_v18 = vpack.c.bf16 %v20652_v58, %v20653_v40  ;;  %v4608_v0 = vsel %vm4595_vm5, %v20659_v59, %v10618_v24 }
 0x78a   : > { %9017 = vmatprep.subr.bf16.mxu1 %v9016_v11  ;;  %v20658_v11 = vpack.c.bf16 %v15483_v12, %v15499_v20  ;;  %v9081_v12 = vpack.c.bf16 %v4621_v22, %v4608_v0  ;;  %v20663_v20 = vpack.c.bf16 %v15510_v36, %v15529_v2 }
 0x78d   : > { %9019 = vmatpush1.bf16.msra.mxu1 %v20631_v33 }
 0x78e   : > { %9021 = vmatprep.subr.bf16.mxu1 %v9020_v38 }
 0x791   : > { %9023 = vmatpush1.bf16.msra.mxu1 %v20637_v31  ;;  %v20668_v31 = vld [vmem:[#allocation28_spill] sm:$0xff] }
 0x792   : > { %9025 = vmatprep.subr.bf16.mxu1 %v9024_v48 }
 0x795   : > { %9027 = vmatpush1.bf16.msra.mxu1 %v20642_v16 }
 0x796   : > { %9029 = vmatprep.subr.bf16.mxu1 %v9028_v30 }
 0x799   : > { %9031 = vmatpush1.bf16.msra.mxu1 %v20647_v3 }
 0x79a   : > { %9033 = vmatprep.subr.bf16.mxu1 %v9032_v49 }
 0x79d   : > { %9035 = vmatpush1.bf16.msra.mxu1 %v20650_v60 }
 0x79e   : > { %9068 = vmatprep.subr.bf16.mxu1 %v20651_v35 }
 0x7a0   : > { %5386 = vmatmul.mubr.f32.vlgmr.msra.gmra.mrb[48].mxu1 %v15077_v63 }
 0x7a1   : > { %9070 = vmatpush3.bf16.msra.mxu1 %v20654_v18  ;;  %5391 = vmatprep.mubr.f32.mxu1 %v20038_v53 }
 0x7a2   : > { %9071 = vmatprep.subr.bf16.mxu1 %v20651_v35 }
 0x7a4   : > { %5392 = vmatmul.mubr.f32.gmra.mrb[50].mxu1 %v15112_v9 }
 0x7a5   : > { %9073 = vmatpush3.bf16.msra.mxu1 %v20657_v57  ;;  %5397 = vmatprep.mubr.f32.mxu1 %v20038_v53 }
 0x7a6   : > { %9074 = vmatprep.subr.bf16.mxu1 %v20651_v35 }
 0x7a8   : > { %5398 = vmatmul.mubr.f32.gmra.mrb[52].mxu1 %v15139_v25 }
 0x7a9   : > { %9076 = vmatpush3.bf16.msra.mxu1 %v20658_v11  ;;  %8491 = vmatprep.mubr.msk.f32.mxu1 %vm11360_vm4, %v20038_v53 }
 0x7aa   : > { %9077 = vmatprep.subr.bf16.mxu1 %v20651_v35 }
 0x7ad   : > { %9079 = vmatpush3.bf16.msra.mxu1 %v20662_v4 }
 0x7ae   : > { %9080 = vmatprep.subr.bf16.mxu1 %v20651_v35 }
 0x7b1   : > { %9082 = vmatpush3.bf16.msra.mxu1 %v9081_v12 }
 0x7b2   : > { %9083 = vmatprep.subr.bf16.mxu1 %v20651_v35 }
 0x7b5   : > { %9085 = vmatpush3.bf16.msra.mxu1 %v20663_v20 }
 0x7b6   : > { %9086 = vmatprep.subr.bf16.mxu1 %v20651_v35 }
 0x7b9   : > { %9088 = vmatpush3.bf16.msra.mxu1 %v20664_v6 }
 0x7ba   : > { %9089 = vmatprep.subr.bf16.mxu1 %v20651_v35  ;;  %v16203_v35 = vld [vmem:[%s19349_s14] sm:$0xff] }
 0x7bd   : > { %9091 = vmatpush3.bf16.msra.mxu1 %v20666_v15 }
 0x7c0   : > { %8492 = vmatmul.mubr.f32.vlgmr.msra.gmra.mrb[54].mxu1 %v15077_v63 }
 0x7c1   : > { %8494 = vmatprep.mubr.msk.f32.mxu1 %vm11360_vm4, %v20038_v53 }
 0x7c4   : > { %8495 = vmatmul.mubr.f32.gmra.mrb[56].mxu1 %v15112_v9 }
 0x7c5   : > { %8497 = vmatprep.mubr.msk.f32.mxu1 %vm11360_vm4, %v20038_v53  ;;  %v20678_v53 = vld [vmem:[#allocation3_spill] sm:$0xff]  ;;  %vm6733_vm4 = vcmask 261120  }
 0x7c8   : > { %8498 = vmatmul.mubr.f32.gmra.mrb[58].mxu1 %v15139_v25 }
 0x7d0   : > { %v5138_v36 = vpop.f32.mrb[30].mxu0 }
 0x7d1   : > { %v5140_v2 = vpop.f32.mrb[31].mxu0  ;;  %v5139_v28 = vadd.f32 %v5138_v36, %v20667_v43 }
 0x7d2   : > { %v5141_v55 = vadd.f32 %v5140_v2, %v20667_v43 }
 0x7d3   : > { %v15949_v5 = vmax.f32 %v5139_v28, 0.0 }
 0x7d4   : > { %v5144_v37 = vpop.f32.mrb[32].mxu0  ;;  %v15956_v60 = vmax.f32 %v5141_v55, 0.0 }
 0x7d5   : > { %v5146_v7 = vpop.f32.mrb[33].mxu0  ;;  %v5145_v58 = vadd.f32 %v5144_v37, %v20668_v31 }
 0x7d6   : > { %v5147_v26 = vadd.f32 %v5146_v7, %v20668_v31 }
 0x7d7   : > { %v15963_v1 = vmax.f32 %v5145_v58, 0.0 }
 0x7d8   : > { %v5150_v27 = vpop.f32.mrb[34].mxu0  ;;  %v15970_v11 = vmax.f32 %v5147_v26, 0.0 }
 0x7d9   : > { %v15880_v32 = vpop.f32.mrb[35].mxu0  ;;  %v5151_v59 = vadd.f32 %v5150_v27, %v20669_v47 }
 0x7da   : > { %v5153_v29 = vadd.f32 %v15880_v32, %v20669_v47 }
 0x7db   : > { %v15977_v21 = vmax.f32 %v5151_v59, 0.0 }
 0x7dc   : > { %v15985_v4 = vmax.f32 %v5153_v29, 0.0 }
 0x806   : > { %v15882_v46 = vpop.f32.mrb[36].mxu0 }
 0x807   : > { %v15884_v63 = vpop.f32.mrb[37].mxu0 }
 0x80a   : > { %v15886_v62 = vpop.f32.mrb[38].mxu0 }
 0x80b   : > { %v15888_v38 = vpop.f32.mrb[39].mxu0 }
 0x80e   : > { %v15890_v9 = vpop.f32.mrb[40].mxu0 }
 0x80f   : > { %v15892_v54 = vpop.f32.mrb[41].mxu0 }
 0x833   : > { %v5055_v25 = vpop.f32.mrb[36].mxu1 }
 0x834   : > { %v5056_v33 = vadd.f32 %v5055_v25, %v20667_v43  ;;  %v5057_v56 = vpop.f32.mrb[37].mxu1 }
 0x835   : > { %v5058_v44 = vadd.f32 %v5057_v56, %v20667_v43  ;;  %v15898_v13 = vpop.f32.mrb[42].mxu0 }
 0x836   : > { %v15895_v17 = vmax.f32 %v5056_v33, 0.0  ;;  %v15900_v61 = vpop.f32.mrb[43].mxu0 }
 0x837   : > { %v5061_v48 = vpop.f32.mrb[38].mxu1  ;;  %v15906_v23 = vmax.f32 %v5058_v44, 0.0 }
 0x838   : > { %v5063_v34 = vpop.f32.mrb[39].mxu1  ;;  %5840 = vrot.lane.b32.xlu1 %v15895_v17, %s11369_s2  ;;  %5645 = vrot.lane.b32.xlu0 %v15895_v17, %s11364_s19  ;;  %v5062_v45 = vadd.f32 %v5061_v48, %v20668_v31  ;;  %v5305_v48 = vadd.f32 %v15882_v46, %v20667_v43 }
 0x839   : > { %v15909_v42 = vpop.f32.mrb[44].mxu0  ;;  %v5064_v52 = vadd.f32 %v5063_v34, %v20668_v31 }
 0x83a   : > { %v15911_v51 = vpop.f32.mrb[45].mxu0  ;;  %v15917_v10 = vmax.f32 %v5062_v45, 0.0 }
 0x83b   : > { %v5067_v41 = vpop.f32.mrb[40].mxu1  ;;  %v15928_v14 = vmax.f32 %v5064_v52, 0.0  ;;  %v5307_v52 = vadd.f32 %v15884_v63, %v20667_v43  ;;  %v5313_v63 = vadd.f32 %v15888_v38, %v20668_v31  ;;  %v5319_v38 = vadd.f32 %v15892_v54, %v20669_v47 }
 0x83c   : > { %v5069_v30 = vpop.f32.mrb[41].mxu1  ;;  %5647 = vrot.lane.b32.xlu1 %v15906_v23, %s11364_s19  ;;  %5842 = vrot.lane.b32.xlu0 %v15906_v23, %s11369_s2  ;;  %v5068_v39 = vadd.f32 %v5067_v41, %v20669_v47 }
 0x83d   : > { %v15920_v16 = vpop.f32.mrb[46].mxu0  ;;  %v5070_v19 = vadd.f32 %v5069_v30, %v20669_v47  ;;  %v16035_v30 = vmax.f32 %v5305_v48, 0.0  ;;  %v16043_v46 = vmax.f32 %v5307_v52, 0.0  ;;  %v16059_v28 = vmax.f32 %v5313_v63, 0.0 }
 0x83e   : > { %v15922_v8 = vpop.f32.mrb[47].mxu0  ;;  %v15935_v49 = vmax.f32 %v5068_v39, 0.0  ;;  %v5311_v39 = vadd.f32 %v15886_v62, %v20668_v31  ;;  %v5317_v62 = vadd.f32 %v15890_v9, %v20669_v47  ;;  %v16075_v58 = vmax.f32 %v5319_v38, 0.0 }
 0x83f   : > { %v15943_v3 = vmax.f32 %v5070_v19, 0.0  ;;  %v5479_v38 = vadd.f32 %v15911_v51, %v20668_v31 }
 0x840   : > { %5671 = vrot.lane.b32.xlu1 %v15917_v10, %s11364_s19  ;;  %5866 = vrot.lane.b32.xlu0 %v15917_v10, %s11369_s2  ;;  %v16051_v19 = vmax.f32 %v5311_v39, 0.0  ;;  %v16067_v55 = vmax.f32 %v5317_v62, 0.0  ;;  %20672 = vst [vmem:[#allocation15_spill] sm:$0xff] %v16075_v58  ;;  %v5477_v39 = vadd.f32 %v15909_v42, %v20668_v31 }
 0x841   : > { %v16155_v42 = vmax.f32 %v5479_v38, 0.0 }
 0x842   : > { %20671 = vst [vmem:[#allocation42_spill] sm:$0xff] %v16067_v55 }
 0x844   : > { %5868 = vrot.lane.b32.xlu1 %v15928_v14, %s11369_s2  ;;  %5673 = vrot.lane.b32.xlu0 %v15928_v14, %s11364_s19 }
 0x848   : > { %5892 = vrot.lane.b32.xlu1 %v15935_v49, %s11369_s2  ;;  %5697 = vrot.lane.b32.xlu0 %v15935_v49, %s11364_s19 }
 0x84c   : > { %5699 = vrot.lane.b32.xlu1 %v15943_v3, %s11364_s19  ;;  %5894 = vrot.lane.b32.xlu0 %v15943_v3, %s11369_s2 }
 0x850   : > { %5844 = vrot.lane.b32.xlu1 %v15949_v5, %s11369_s2  ;;  %5649 = vrot.lane.b32.xlu0 %v15949_v5, %s11364_s19 }
 0x853   : > { %v5221_v40 = vpop.f32.mrb[42].mxu1 }
 0x854   : > { %v5223_v18 = vpop.f32.mrb[43].mxu1  ;;  %5651 = vrot.lane.b32.xlu1 %v15956_v60, %s11364_s19  ;;  %5846 = vrot.lane.b32.xlu0 %v15956_v60, %s11369_s2  ;;  %v5222_v12 = vadd.f32 %v5221_v40, %v20667_v43 }
 0x855   : > { %v5224_v6 = vadd.f32 %v5223_v18, %v20667_v43 }
 0x856   : > { %v15992_v20 = vmax.f32 %v5222_v12, 0.0 }
 0x857   : > { %v5227_v57 = vpop.f32.mrb[44].mxu1  ;;  %v15999_v50 = vmax.f32 %v5224_v6, 0.0 }
 0x858   : > { %v5229_v24 = vpop.f32.mrb[45].mxu1  ;;  %5675 = vrot.lane.b32.xlu1 %v15963_v1, %s11364_s19  ;;  %5870 = vrot.lane.b32.xlu0 %v15963_v1, %s11369_s2  ;;  %v5228_v15 = vadd.f32 %v5227_v57, %v20668_v31 }
 0x859   : > { %v5230_v2 = vadd.f32 %v5229_v24, %v20668_v31 }
 0x85a   : > { %v16006_v36 = vmax.f32 %v5228_v15, 0.0 }
 0x85b   : > { %v5233_v0 = vpop.f32.mrb[46].mxu1  ;;  %v16013_v37 = vmax.f32 %v5230_v2, 0.0 }
 0x85c   : > { %v5235_v22 = vpop.f32.mrb[47].mxu1  ;;  %5872 = vrot.lane.b32.xlu1 %v15970_v11, %s11369_s2  ;;  %5677 = vrot.lane.b32.xlu0 %v15970_v11, %s11364_s19  ;;  %v5234_v7 = vadd.f32 %v5233_v0, %v20669_v47 }
 0x85d   : > { %v5236_v33 = vadd.f32 %v5235_v22, %v20669_v47 }
 0x85e   : > { %v16020_v25 = vmax.f32 %v5234_v7, 0.0 }
 0x85f   : > { %v16029_v34 = vmax.f32 %v5236_v33, 0.0 }
 0x860   : > { %5896 = vrot.lane.b32.xlu1 %v15977_v21, %s11369_s2  ;;  %5701 = vrot.lane.b32.xlu0 %v15977_v21, %s11364_s19 }
 0x861   : > { %20670 = vst [vmem:[#allocation37_spill] sm:$0xff] %v16029_v34 }
 0x864   : > { %5703 = vrot.lane.b32.xlu1 %v15985_v4, %s11364_s19  ;;  %5898 = vrot.lane.b32.xlu0 %v15985_v4, %s11369_s2 }
 0x868   : > { %5848 = vrot.lane.b32.xlu1 %v15992_v20, %s11369_s2  ;;  %5653 = vrot.lane.b32.xlu0 %v15992_v20, %s11364_s19 }
 0x86c   : > { %5655 = vrot.lane.b32.xlu1 %v15999_v50, %s11364_s19  ;;  %5850 = vrot.lane.b32.xlu0 %v15999_v50, %s11369_s2 }
 0x870   : > { %5679 = vrot.lane.b32.xlu1 %v16006_v36, %s11364_s19  ;;  %5874 = vrot.lane.b32.xlu0 %v16006_v36, %s11369_s2 }
 0x873   : > { %v5387_v27 = vpop.f32.mrb[48].mxu1 }
 0x874   : > { %v5389_v32 = vpop.f32.mrb[49].mxu1  ;;  %5876 = vrot.lane.b32.xlu1 %v16013_v37, %s11369_s2  ;;  %5681 = vrot.lane.b32.xlu0 %v16013_v37, %s11364_s19  ;;  %v5388_v9 = vadd.f32 %v5387_v27, %v20667_v43 }
 0x875   : > { %v5390_v26 = vadd.f32 %v5389_v32, %v20667_v43  ;;  %v5471_v32 = vadd.f32 %v15898_v13, %v20667_v43 }
 0x876   : > { %v16084_v54 = vmax.f32 %v5388_v9, 0.0 }
 0x877   : > { %v5393_v56 = vpop.f32.mrb[50].mxu1  ;;  %v16093_v59 = vmax.f32 %v5390_v26, 0.0  ;;  %v16131_v48 = vmax.f32 %v5471_v32, 0.0  ;;  %v5483_v26 = vadd.f32 %v15920_v16, %v20669_v47 }
 0x878   : > { %v5395_v44 = vpop.f32.mrb[51].mxu1  ;;  %5900 = vrot.lane.b32.xlu1 %v16020_v25, %s11369_s2  ;;  %5705 = vrot.lane.b32.xlu0 %v16020_v25, %s11364_s19  ;;  %v5394_v0 = vadd.f32 %v5393_v56, %v20668_v31 }
 0x879   : > { %v5396_v6 = vadd.f32 %v5395_v44, %v20668_v31  ;;  %v16167_v51 = vmax.f32 %v5483_v26, 0.0 }
 0x87a   : > { %v16102_v12 = vmax.f32 %v5394_v0, 0.0 }
 0x87b   : > { %v5399_v45 = vpop.f32.mrb[52].mxu1  ;;  %v16109_v15 = vmax.f32 %v5396_v6, 0.0  ;;  %20675 = vst [vmem:[#allocation48_spill] sm:$0xff] %v16167_v51 }
 0x87c   : > { %v5401_v41 = vpop.f32.mrb[53].mxu1  ;;  %5707 = vrot.lane.b32.xlu1 %v16029_v34, %s11364_s19  ;;  %5902 = vrot.lane.b32.xlu0 %v16029_v34, %s11369_s2  ;;  %v5400_v2 = vadd.f32 %v5399_v45, %v20669_v47  ;;  %v5473_v45 = vadd.f32 %v15900_v61, %v20667_v43  ;;  %v16147_v61 = vmax.f32 %v5477_v39, 0.0 }
 0x87d   : > { %v5402_v27 = vadd.f32 %v5401_v41, %v20669_v47 }
 0x87e   : > { %v16116_v7 = vmax.f32 %v5400_v2, 0.0  ;;  %v16139_v13 = vmax.f32 %v5473_v45, 0.0 }
 0x87f   : > { %v16125_v33 = vmax.f32 %v5402_v27, 0.0 }
 0x880   : > { %5852 = vrot.lane.b32.xlu1 %v16035_v30, %s11369_s2  ;;  %5657 = vrot.lane.b32.xlu0 %v16035_v30, %s11364_s19  ;;  %20673 = vst [vmem:[#allocation44_spill] sm:$0xff] %v16116_v7 }
 0x881   : > { %20674 = vst [vmem:[#allocation50_spill] sm:$0xff] %v16125_v33 }
 0x884   : > { %5659 = vrot.lane.b32.xlu1 %v16043_v46, %s11364_s19  ;;  %5854 = vrot.lane.b32.xlu0 %v16043_v46, %s11369_s2 }
 0x888   : > { %5683 = vrot.lane.b32.xlu1 %v16051_v19, %s11364_s19  ;;  %5878 = vrot.lane.b32.xlu0 %v16051_v19, %s11369_s2 }
 0x88c   : > { %5880 = vrot.lane.b32.xlu1 %v16059_v28, %s11369_s2  ;;  %5685 = vrot.lane.b32.xlu0 %v16059_v28, %s11364_s19 }
 0x890   : > { %5904 = vrot.lane.b32.xlu1 %v16067_v55, %s11369_s2  ;;  %5709 = vrot.lane.b32.xlu0 %v16067_v55, %s11364_s19 }
 0x893   : > { %v16078_v40 = vpop.f32.mrb[54].mxu1 }
 0x894   : > { %5711 = vrot.lane.b32.xlu1 %v16075_v58, %s11364_s19  ;;  %5906 = vrot.lane.b32.xlu0 %v16075_v58, %s11369_s2  ;;  %v8493_v18 = vpop.f32.mrb[55].mxu1  ;;  %v5554_v27 = vadd.f32 %v16078_v40, %v20667_v43 }
 0x896   : > { %v16190_v26 = vmax.f32 %v5554_v27, 0.0 }
 0x897   : > { %v16087_v57 = vpop.f32.mrb[56].mxu1 }
 0x898   : > { %5856 = vrot.lane.b32.xlu1 %v16084_v54, %s11369_s2  ;;  %5661 = vrot.lane.b32.xlu0 %v16084_v54, %s11364_s19  ;;  %v8496_v24 = vpop.f32.mrb[57].mxu1 }
 0x89b   : > { %v16096_v22 = vpop.f32.mrb[58].mxu1 }
 0x89c   : > { %5663 = vrot.lane.b32.xlu1 %v16093_v59, %s11364_s19  ;;  %5858 = vrot.lane.b32.xlu0 %v16093_v59, %s11369_s2  ;;  %v8499_v29 = vpop.f32.mrb[59].mxu1 }
 0x89d   : > { %v5485_v29 = vadd.f32 %v15922_v8, %v20669_v47 }
 0x89f   : > { %v16179_v16 = vmax.f32 %v5485_v29, 0.0  ;;  %v5559_v29 = vadd.f32 %v16087_v57, %v20668_v31 }
 0x8a0   : > { %5687 = vrot.lane.b32.xlu1 %v16102_v12, %s11364_s19  ;;  %5882 = vrot.lane.b32.xlu0 %v16102_v12, %s11369_s2 }
 0x8a1   : > { %20676 = vst [vmem:[#allocation49_spill] sm:$0xff] %v16179_v16 }
 0x8a4   : > { %5884 = vrot.lane.b32.xlu1 %v16109_v15, %s11369_s2  ;;  %5689 = vrot.lane.b32.xlu0 %v16109_v15, %s11364_s19 }
 0x8a8   : > { %5908 = vrot.lane.b32.xlu1 %v16116_v7, %s11369_s2  ;;  %5713 = vrot.lane.b32.xlu0 %v16116_v7, %s11364_s19 }
 0x8aa   : > { %v5841_v56 = vpop.permute.xlu1 %5840  ;;  %v5646_v44 = vpop.permute.xlu0 %5645 }
 0x8ac   : > { %5715 = vrot.lane.b32.xlu1 %v16125_v33, %s11364_s19  ;;  %5910 = vrot.lane.b32.xlu0 %v16125_v33, %s11369_s2 }
 0x8ae   : > { %v5648_v41 = vpop.permute.xlu1 %5647  ;;  %v5843_v52 = vpop.permute.xlu0 %5842 }
 0x8af   : > { %v5723_v8 = vsel %vm1530_vm9, %v5646_v44, %v5648_v41  ;;  %v5918_v57 = vsel %vm1750_vm13, %v5841_v56, %v5843_v52 }
 0x8b0   : > { %5860 = vrot.lane.b32.xlu1 %v16131_v48, %s11369_s2  ;;  %5665 = vrot.lane.b32.xlu0 %v16131_v48, %s11364_s19  ;;  %v5801_v44 = vmax.f32 %v15895_v17, %v5723_v8  ;;  %v5564_v17 = vadd.f32 %v16096_v22, %v20669_v47 }
 0x8b2   : > { %v5672_v63 = vpop.permute.xlu1 %5671  ;;  %v5867_v62 = vpop.permute.xlu0 %5866  ;;  %v16230_v56 = vmax.f32 %v5564_v17, 0.0  ;;  %v20682_v17 = vld [vmem:[#allocation5_spill] sm:$0xff] }
 0x8b4   : > { %5667 = vrot.lane.b32.xlu1 %v16139_v13, %s11364_s19  ;;  %5862 = vrot.lane.b32.xlu0 %v16139_v13, %s11369_s2  ;;  %20680 = vst [vmem:[#allocation54_spill] sm:$0xff] %v16230_v56 }
 0x8b6   : > { %v5869_v9 = vpop.permute.xlu1 %5868  ;;  %v5674_v18 = vpop.permute.xlu0 %5673 }
 0x8b7   : > { %v5736_v39 = vsel %vm1530_vm9, %v5672_v63, %v5674_v18  ;;  %v5931_v31 = vsel %vm1750_vm13, %v5867_v62, %v5869_v9  ;;  %v20679_v62 = vld [vmem:[#allocation4_spill] sm:$0xff] }
 0x8b8   : > { %5691 = vrot.lane.b32.xlu1 %v16147_v61, %s11364_s19  ;;  %5886 = vrot.lane.b32.xlu0 %v16147_v61, %s11369_s2  ;;  %v5814_v43 = vmax.f32 %v15917_v10, %v5736_v39  ;;  %v16211_v10 = vmax.f32 %v5559_v29, 0.0  ;;  %v6046_v29 = vrot.slane %v16203_v35, %v20679_v62 }
 0x8ba   : > { %v16159_v24 = vpop.permute.xlu1 %5892  ;;  %v16161_v0 = vpop.permute.xlu0 %5697  ;;  %20677 = vst [vmem:[#allocation38_spill] sm:$0xff] %v16211_v10  ;;  %v6009_v27 = vmax.f32 %v5814_v43, %v5931_v31 }
 0x8bc   : > { %5888 = vrot.lane.b32.xlu1 %v16155_v42, %s11369_s2  ;;  %5693 = vrot.lane.b32.xlu0 %v16155_v42, %s11364_s19 }
 0x8be   : > { %v16171_v6 = vpop.permute.xlu1 %5699  ;;  %v16173_v2 = vpop.permute.xlu0 %5894 }
 0x8c0   : > { %5912 = vrot.lane.b32.xlu1 %v16167_v51, %s11369_s2  ;;  %5717 = vrot.lane.b32.xlu0 %v16167_v51, %s11364_s19 }
 0x8c2   : > { %v5845_v32 = vpop.permute.xlu1 %5844  ;;  %v5650_v45 = vpop.permute.xlu0 %5649 }
 0x8c3   : > { %v5724_v38 = vsel %vm1530_vm9, %v5648_v41, %v5650_v45 }
 0x8c4   : > { %5719 = vrot.lane.b32.xlu1 %v16179_v16, %s11364_s19  ;;  %5914 = vrot.lane.b32.xlu0 %v16179_v16, %s11369_s2  ;;  %v5802_v41 = vmax.f32 %v15906_v23, %v5724_v38  ;;  %v16218_v23 = vrot.slane %v16203_v35, %v20678_v53  ;;  %v5996_v38 = vmax.f32 %v5801_v44, %v5918_v57 }
 0x8c5   : > { %v5919_v16 = vsel %vm1750_vm13, %v5843_v52, %v5845_v32  ;;  %v16254_v57 = vrot.slane %v16203_v35, %v20682_v17 }
 0x8c6   : > { %v16195_v40 = vpop.permute.xlu1 %5651  ;;  %v16197_v63 = vpop.permute.xlu0 %5846  ;;  %v5997_v7 = vmax.f32 %v5802_v41, %v5919_v16  ;;  %v16233_v52 = vmul.f32 %v16218_v23, %v6009_v27  ;;  %v16238_v16 = vmul.f32 %v16218_v23, %v5996_v38 }
 0x8c8   : > { %5864 = vrot.lane.b32.xlu1 %v16190_v26, %s11369_s2  ;;  %5669 = vrot.lane.b32.xlu0 %v16190_v26, %s11364_s19  ;;  %20681 = vst [vmem:[#allocation51_spill] sm:$0xff] %v16233_v52  ;;  %v16243_v41 = vmul.f32 %v6046_v29, %v5997_v7 }
 0x8ca   : > { %v5676_v39 = vpop.permute.xlu1 %5675  ;;  %v5871_v8 = vpop.permute.xlu0 %5870 }
 0x8cb   : > { %v5737_v51 = vsel %vm1530_vm9, %v5674_v18, %v5676_v39  ;;  %v5932_v22 = vsel %vm1750_vm13, %v5869_v9, %v5871_v8 }
 0x8cc   : > { %v5815_v47 = vmax.f32 %v15928_v14, %v5737_v51  ;;  %5695 = vrot.lane.b32.xlu1 %v16211_v10, %s11364_s19  ;;  %5890 = vrot.lane.b32.xlu0 %v16211_v10, %s11369_s2  ;;  %v5725_v14 = vsel %vm1530_vm9, %v5650_v45, %v16195_v40 }
 0x8cd   : > { %v5803_v7 = vmax.f32 %v15949_v5, %v5725_v14  ;;  %v5920_v5 = vsel %vm1750_vm13, %v5845_v32, %v16197_v63 }
 0x8ce   : > { %v6010_v18 = vmax.f32 %v5815_v47, %v5932_v22  ;;  %v16235_v43 = vpop.permute.xlu1 %5872  ;;  %v5678_v44 = vpop.permute.xlu0 %5677 }
 0x8cf   : > { %v5738_v51 = vsel %vm1530_vm9, %v5676_v39, %v5678_v44  ;;  %v5933_v45 = vsel %vm1750_vm13, %v5871_v8, %v16235_v43  ;;  %v5998_v8 = vmax.f32 %v5803_v7, %v5920_v5 }
 0x8d0   : > { %v16245_v9 = vmul.f32 %v6046_v29, %v6010_v18  ;;  %v5816_v31 = vmax.f32 %v15963_v1, %v5738_v51  ;;  %5916 = vrot.lane.b32.xlu1 %v16230_v56, %s11369_s2  ;;  %5721 = vrot.lane.b32.xlu0 %v16230_v56, %s11364_s19  ;;  %v10634_v1 = vpack.i.bf16 %v16233_v52, %v16238_v16  ;;  %s11377_s19 = smov 32  }
 0x8d1   : > { %v9094_v18 = vpack.c.bf16 %v16233_v52, %v16238_v16  ;;  %v16285_v32 = vmul.f32 %v16254_v57, %v5998_v8 }
 0x8d2   : > { %v6011_v27 = vmax.f32 %v5816_v31, %v5933_v45  ;;  %v5897_v39 = vpop.permute.xlu1 %5896  ;;  %v5702_v38 = vpop.permute.xlu0 %5701  ;;  %v9092_v47 = vpack.c.bf16 %v16245_v9, %v16243_v41 }
 0x8d3   : > { %v5750_v22 = vsel %vm1530_vm9, %v16171_v6, %v5702_v38  ;;  %v10649_v8 = vpack.i.bf16 %v16285_v32, %v16243_v41 }
 0x8d4   : > { %v16268_v51 = vmul.f32 %v16254_v57, %v6011_v27  ;;  %10635 = vrot.lane.b32.xlu0 %v10634_v1, %s11374_s25  ;;  %9093 = vmatprep.subr.bf16.mxu0 %v9092_v47  ;;  %v5828_v14 = vmax.f32 %v15943_v3, %v5750_v22  ;;  %v5945_v27 = vsel %vm1750_vm13, %v16173_v2, %v5897_v39 }
 0x8d5   : > { %9095 = vmatpush1.bf16.msra.mxu0 %v9094_v18  ;;  %v10644_v22 = vpack.i.bf16 %v16243_v41, %v16238_v16 }
 0x8d6   : > { %v16274_v31 = vpop.permute.xlu1 %5703  ;;  %v16276_v45 = vpop.permute.xlu0 %5898  ;;  %v10689_v56 = vpack.i.bf16 %v16268_v51, %v16245_v9  ;;  %v6023_v7 = vmax.f32 %v5828_v14, %v5945_v27 }
 0x8d7   : > { %v5751_v14 = vsel %vm1530_vm9, %v5702_v38, %v16274_v31 }
 0x8d8   : > { %10640 = vrot.lane.b32.xlu0 %v10634_v1, %s11377_s19  ;;  %10690 = vrot.lane.b32.xlu1 %v10689_v56, %s11371_s26  ;;  %v16293_v1 = vmul.f32 %v6046_v29, %v6023_v7  ;;  %v5829_v7 = vmax.f32 %v15977_v21, %v5751_v14  ;;  %v20684_v14 = vld [vmem:[#allocation8_spill] sm:$0xff] }
 0x8da   : > { %v5849_v3 = vpop.permute.xlu1 %5848  ;;  %v5654_v47 = vpop.permute.xlu0 %5653 }
 0x8db   : > { %v5726_v18 = vsel %vm1530_vm9, %v16195_v40, %v5654_v47  ;;  %v5749_v40 = vsel %vm1530_vm9, %v16161_v0, %v16171_v6  ;;  %v20683_v0 = vld [vmem:[#allocation6_spill] sm:$0xff] }
 0x8dc   : > { %10645 = vrot.lane.b32.xlu0 %v10644_v22, %s11371_s26  ;;  %10695 = vrot.lane.b32.xlu1 %v10689_v56, %s11374_s25  ;;  %v5804_v27 = vmax.f32 %v15956_v60, %v5726_v18  ;;  %v5921_v22 = vsel %vm1750_vm13, %v16197_v63, %v5849_v3  ;;  %v10709_v60 = vpack.i.bf16 %v16293_v1, %v16268_v51 }
 0x8dd   : > { %v5827_v18 = vmax.f32 %v15935_v49, %v5749_v40  ;;  %v16319_v6 = vrot.slane %v16203_v35, %v20683_v0  ;;  %v5944_v49 = vsel %vm1750_vm13, %v16159_v24, %v16173_v2  ;;  %v5946_v63 = vsel %vm1750_vm13, %v5897_v39, %v16276_v45 }
 0x8de   : > { %v16295_v5 = vpop.permute.xlu1 %5655  ;;  %v16297_v10 = vpop.permute.xlu0 %5850 }
 0x8df   : > { %v5727_v29 = vsel %vm1530_vm9, %v5654_v47, %v16295_v5  ;;  %v5922_v24 = vsel %vm1750_vm13, %v5849_v3, %v16297_v10 }
 0x8e0   : > { %10650 = vrot.lane.b32.xlu0 %v10649_v8, %s11374_s25  ;;  %10700 = vrot.lane.b32.xlu1 %v10689_v56, %s11377_s19  ;;  %v5999_v56 = vmax.f32 %v5804_v27, %v5921_v22  ;;  %v5805_v47 = vmax.f32 %v15992_v20, %v5727_v29  ;;  %v16333_v27 = vrot.slane %v16203_v35, %v20684_v14 }
 0x8e1   : > { %v6022_v29 = vmax.f32 %v5827_v18, %v5944_v49 }
 0x8e2   : > { %v5680_v33 = vpop.permute.xlu1 %5679  ;;  %v5875_v38 = vpop.permute.xlu0 %5874  ;;  %v16338_v22 = vmul.f32 %v16319_v6, %v5999_v56  ;;  %v6000_v39 = vmax.f32 %v5805_v47, %v5922_v24 }
 0x8e3   : > { %v5739_v58 = vsel %vm1530_vm9, %v5678_v44, %v5680_v33  ;;  %v5934_v20 = vsel %vm1750_vm13, %v16235_v43, %v5875_v38 }
 0x8e4   : > { %v5817_v21 = vmax.f32 %v15970_v11, %v5739_v58  ;;  %10655 = vrot.lane.b32.xlu0 %v10649_v8, %s11378_s23  ;;  %10710 = vrot.lane.b32.xlu1 %v10709_v60, %s11378_s23  ;;  %v6024_v11 = vmax.f32 %v5829_v7, %v5946_v63  ;;  %v16363_v47 = vmul.f32 %v16333_v27, %v6000_v39 }
 0x8e6   : > { %v6012_v58 = vmax.f32 %v5817_v21, %v5934_v20  ;;  %v5877_v44 = vpop.permute.xlu1 %5876  ;;  %v5682_v40 = vpop.permute.xlu0 %5681  ;;  %v16351_v7 = vmul.f32 %v16254_v57, %v6024_v11  ;;  %20685 = vst [vmem:[#allocation61_spill] sm:$0xff] %v16363_v47 }
 0x8e7   : > { %v5740_v2 = vsel %vm1530_vm9, %v5680_v33, %v5682_v40  ;;  %v5935_v43 = vsel %vm1750_vm13, %v5875_v38, %v5877_v44  ;;  %v10669_v38 = vpack.i.bf16 %v16245_v9, %v16238_v16 }
 0x8e8   : > { %v16344_v55 = vmul.f32 %v16319_v6, %v6012_v58  ;;  %v5818_v34 = vmax.f32 %v16006_v36, %v5740_v2  ;;  %10660 = vrot.lane.b32.xlu0 %v10649_v8, %s11377_s19  ;;  %10715 = vrot.lane.b32.xlu1 %v10709_v60, %s11379_s28  ;;  %v16360_v36 = vmul.f32 %v16218_v23, %v6022_v29 }
 0x8e9   : > { %v10724_v20 = vpack.i.bf16 %v16351_v7, %v16293_v1  ;;  %v10679_v58 = vpack.i.bf16 %v16245_v9, %v16243_v41 }
 0x8ea   : > { %v6013_v18 = vmax.f32 %v5818_v34, %v5935_v43  ;;  %v16353_v3 = vpop.permute.xlu1 %5900  ;;  %v16355_v33 = vpop.permute.xlu0 %5705  ;;  %v9144_v56 = vpack.c.bf16 %v16344_v55, %v16338_v22  ;;  %v9146_v34 = vpack.c.bf16 %v16268_v51, %v16285_v32  ;;  %v10719_v21 = vpack.i.bf16 %v16360_v36, %v16351_v7 }
 0x8ec   : > { %v16366_v60 = vmul.f32 %v16333_v27, %v6013_v18  ;;  %10665 = vrot.lane.b32.xlu0 %v10649_v8, %s11379_s28  ;;  %7311 = vrot.lane.b32.xlu1 %v16293_v1, %s11380_s0 }
 0x8ed   : > { %9145 = vmatprep.subr.bf16.mxu1 %v9144_v56 }
 0x8ee   : > { %20686 = vst [vmem:[#allocation53_spill] sm:$0xff] %v16366_v60  ;;  %9147 = vmatpush1.bf16.msra.mxu1 %v9146_v34  ;;  %v16373_v57 = vpop.permute.xlu1 %5707  ;;  %v16375_v23 = vpop.permute.xlu0 %5902 }
 0x8f0   : > { %10670 = vrot.lane.b32.xlu0 %v10669_v38, %s11378_s23  ;;  %10720 = vrot.lane.b32.xlu1 %v10719_v21, %s11371_s26 }
 0x8f2   : > { %v5853_v49 = vpop.permute.xlu1 %5852  ;;  %v5658_v63 = vpop.permute.xlu0 %5657 }
 0x8f3   : > { %v5728_v29 = vsel %vm1530_vm9, %v16295_v5, %v5658_v63 }
 0x8f4   : > { %10675 = vrot.lane.b32.xlu0 %v10669_v38, %s11379_s28  ;;  %10725 = vrot.lane.b32.xlu1 %v10724_v20, %s11374_s25  ;;  %v5806_v43 = vmax.f32 %v15999_v50, %v5728_v29  ;;  %v5923_v38 = vsel %vm1750_vm13, %v16297_v10, %v5853_v49  ;;  %v10704_v50 = vpack.i.bf16 %v16268_v51, %v16243_v41  ;;  %v20688_v41 = vld [vmem:[#allocation9_spill] sm:$0xff] }
 0x8f6   : > { %v5660_v16 = vpop.permute.xlu1 %5659  ;;  %v16389_v11 = vpop.permute.xlu0 %5854  ;;  %v6001_v29 = vmax.f32 %v5806_v43, %v5923_v38 }
 0x8f7   : > { %v5729_v24 = vsel %vm1530_vm9, %v5658_v63, %v5660_v16 }
 0x8f8   : > { %10680 = vrot.lane.b32.xlu0 %v10679_v58, %s11369_s2  ;;  %10735 = vrot.lane.b32.xlu1 %v10724_v20, %s11377_s19  ;;  %v5807_v5 = vmax.f32 %v16035_v30, %v5729_v24  ;;  %v16424_v24 = vrot.slane %v16203_v35, %v20688_v41 }
 0x8fa   : > { %v5684_v2 = vpop.permute.xlu1 %5683  ;;  %v5879_v39 = vpop.permute.xlu0 %5878 }
 0x8fb   : > { %v5741_v18 = vsel %vm1530_vm9, %v5682_v40, %v5684_v2  ;;  %v5936_v34 = vsel %vm1750_vm13, %v5877_v44, %v5879_v39  ;;  %v20687_v40 = vld [vmem:[#allocation7_spill] sm:$0xff]  ;;  %v5924_v44 = vsel %vm1750_vm13, %v5853_v49, %v16389_v11 }
 0x8fc   : > { %v5819_v56 = vmax.f32 %v16013_v37, %v5741_v18  ;;  %10685 = vrot.lane.b32.xlu0 %v10679_v58, %s11380_s0  ;;  %7313 = vrot.lane.b32.xlu1 %v16351_v7, %s11380_s0  ;;  %v10744_v37 = vpack.i.bf16 %v16338_v22, %v16285_v32  ;;  %v16414_v58 = vrot.slane %v16203_v35, %v20687_v40 }
 0x8fd   : > { %v6002_v32 = vmax.f32 %v5807_v5, %v5924_v44 }
 0x8fe   : > { %v6014_v21 = vmax.f32 %v5819_v56, %v5936_v34  ;;  %v5881_v63 = vpop.permute.xlu1 %5880  ;;  %v5686_v20 = vpop.permute.xlu0 %5685  ;;  %v10749_v34 = vpack.i.bf16 %v16338_v22, %v16360_v36  ;;  %v16439_v38 = vmul.f32 %v16414_v58, %v6001_v29  ;;  %v5752_v22 = vsel %vm1530_vm9, %v16274_v31, %v16355_v33 }
 0x8ff   : > { %v5742_v30 = vsel %vm1530_vm9, %v5684_v2, %v5686_v20  ;;  %v5937_v43 = vsel %vm1750_vm13, %v5879_v39, %v5881_v63  ;;  %v16447_v39 = vmul.f32 %v16424_v24, %v6002_v32  ;;  %v5830_v31 = vmax.f32 %v15985_v4, %v5752_v22 }
 0x900   : > { %v5820_v10 = vmax.f32 %v16051_v19, %v5742_v30  ;;  %10705 = vrot.lane.b32.xlu0 %v10704_v50, %s11373_s24  ;;  %10745 = vrot.lane.b32.xlu1 %v10744_v37, %s11371_s26  ;;  %v16427_v18 = vmul.f32 %v16414_v58, %v6014_v21  ;;  %v10729_v19 = vpack.i.bf16 %v16233_v52, %v16351_v7 }
 0x901   : > { %20690 = vst [vmem:[#allocation32_spill] sm:$0xff] %v16439_v38  ;;  %20692 = vst [vmem:[#allocation19_spill] sm:$0xff] %v16447_v39  ;;  %v10784_v21 = vpack.i.bf16 %v16363_v47, %v16293_v1 }
 0x902   : > { %20689 = vst [vmem:[#allocation43_spill] sm:$0xff] %v16427_v18  ;;  %v6015_v2 = vmax.f32 %v5820_v10, %v5937_v43  ;;  %v16430_v56 = vpop.permute.xlu1 %5904  ;;  %v16432_v49 = vpop.permute.xlu0 %5709 }
 0x904   : > { %v16442_v5 = vmul.f32 %v16424_v24, %v6015_v2  ;;  %10730 = vrot.lane.b32.xlu0 %v10729_v19, %s11378_s23  ;;  %10750 = vrot.lane.b32.xlu1 %v10749_v34, %s11374_s25 }
 0x906   : > { %20691 = vst [vmem:[#allocation16_spill] sm:$0xff] %v16442_v5  ;;  %v16451_v50 = vpop.permute.xlu1 %5711  ;;  %v16453_v30 = vpop.permute.xlu0 %5906 }
 0x908   : > { %10740 = vrot.lane.b32.xlu0 %v10729_v19, %s11379_s28  ;;  %10755 = vrot.lane.b32.xlu1 %v10749_v34, %s11378_s23 }
 0x90a   : > { %v5857_v29 = vpop.permute.xlu1 %5856  ;;  %v5662_v44 = vpop.permute.xlu0 %5661 }
 0x90b   : > { %v5730_v43 = vsel %vm1530_vm9, %v5660_v16, %v5662_v44 }
 0x90c   : > { %10770 = vrot.lane.b32.xlu0 %v10744_v37, %s11369_s2  ;;  %10760 = vrot.lane.b32.xlu1 %v10749_v34, %s11377_s19  ;;  %v5808_v41 = vmax.f32 %v16043_v46, %v5730_v43  ;;  %v5925_v46 = vsel %vm1750_vm13, %v16389_v11, %v5857_v29 }
 0x90e   : > { %v5664_v10 = vpop.permute.xlu1 %5663  ;;  %v16461_v32 = vpop.permute.xlu0 %5858 }
 0x90f   : > { %v5731_v2 = vsel %vm1530_vm9, %v5662_v44, %v5664_v10 }
 0x910   : > { %10775 = vrot.lane.b32.xlu0 %v10744_v37, %s11373_s24  ;;  %10765 = vrot.lane.b32.xlu1 %v10749_v34, %s11379_s28  ;;  %v5809_v16 = vmax.f32 %v16084_v54, %v5731_v2  ;;  %v16481_v34 = vld [vmem:[%s19349_s14 + $0x8] sm:$0x1f]  ;;  %v6003_v2 = vmax.f32 %v5808_v41, %v5925_v46 }
 0x911   : > { %v16500_v11 = vrot.slane %v16481_v34, %v20678_v53 }
 0x912   : > { %v5688_v19 = vpop.permute.xlu1 %5687  ;;  %v5883_v8 = vpop.permute.xlu0 %5882 }
 0x913   : > { %v5743_v40 = vsel %vm1530_vm9, %v5686_v20, %v5688_v19  ;;  %v5938_v44 = vsel %vm1750_vm13, %v5881_v63, %v5883_v8  ;;  %v5926_v63 = vsel %vm1750_vm13, %v5857_v29, %v16461_v32 }
 0x914   : > { %v5821_v52 = vmax.f32 %v16059_v28, %v5743_v40  ;;  %10780 = vrot.lane.b32.xlu0 %v10744_v37, %s11380_s0  ;;  %10785 = vrot.lane.b32.xlu1 %v10784_v21, %s11369_s2  ;;  %v10809_v37 = vpack.i.bf16 %v16344_v55, %v16363_v47  ;;  %v20693_v40 = vld [vmem:[#allocation10_spill] sm:$0xff] }
 0x915   : > { %v16493_v43 = vrot.slane %v16203_v35, %v20693_v40  ;;  %v5947_v35 = vsel %vm1750_vm13, %v16276_v45, %v16353_v3 }
 0x916   : > { %v6016_v20 = vmax.f32 %v5821_v52, %v5938_v44  ;;  %v16487_v54 = vpop.permute.xlu1 %5884  ;;  %v5690_v28 = vpop.permute.xlu0 %5689  ;;  %v6004_v52 = vmax.f32 %v5809_v16, %v5926_v63  ;;  %v10799_v63 = vpack.i.bf16 %v16351_v7, %v16344_v55 }
 0x917   : > { %v5744_v4 = vsel %vm1530_vm9, %v5688_v19, %v5690_v28  ;;  %v5939_v29 = vsel %vm1750_vm13, %v5883_v8, %v16487_v54  ;;  %v6025_v19 = vmax.f32 %v5830_v31, %v5947_v35  ;;  %v5753_v35 = vsel %vm1530_vm9, %v16355_v33, %v16373_v57 }
 0x918   : > { %v5822_v22 = vmax.f32 %v16102_v12, %v5744_v4  ;;  %10790 = vrot.lane.b32.xlu1 %v10784_v21, %s11373_s24  ;;  %10810 = vrot.lane.b32.xlu0 %v10809_v37, %s11374_s25  ;;  %v16509_v41 = vmul.f32 %v16493_v43, %v6016_v20  ;;  %v10794_v12 = vpack.i.bf16 %v16344_v55, %v16268_v51 }
 0x919   : > { %v16520_v21 = vmul.f32 %v16493_v43, %v6003_v2  ;;  %v16523_v45 = vmul.f32 %v16500_v11, %v6004_v52  ;;  %v16533_v31 = vmul.f32 %v16319_v6, %v6025_v19  ;;  %v10819_v4 = vpack.i.bf16 %v16366_v60, %v16344_v55 }
 0x91a   : > { %20694 = vst [vmem:[#allocation47_spill] sm:$0xff] %v16509_v41  ;;  %v6017_v44 = vmax.f32 %v5822_v22, %v5939_v29  ;;  %v16513_v46 = vpop.permute.xlu1 %5908  ;;  %v16515_v16 = vpop.permute.xlu0 %5713 }
 0x91b   : > { %20695 = vst [vmem:[#allocation60_spill] sm:$0xff] %v16520_v21  ;;  %20696 = vst [vmem:[#allocation23_spill] sm:$0xff] %v16523_v45  ;;  %v10829_v22 = vpack.i.bf16 %v16245_v9, %v16533_v31  ;;  %v5831_v9 = vmax.f32 %v16020_v25, %v5753_v35 }
 0x91c   : > { %v16526_v20 = vmul.f32 %v16500_v11, %v6017_v44  ;;  %10815 = vrot.lane.b32.xlu0 %v10809_v37, %s11377_s19  ;;  %10795 = vrot.lane.b32.xlu1 %v10794_v12, %s11369_s2 }
 0x91e   : > { %20697 = vst [vmem:[#allocation24_spill] sm:$0xff] %v16526_v20  ;;  %v16535_v51 = vpop.permute.xlu1 %5715  ;;  %v16537_v2 = vpop.permute.xlu0 %5910 }
 0x920   : > { %10800 = vrot.lane.b32.xlu1 %v10799_v63, %s11373_s24  ;;  %10820 = vrot.lane.b32.xlu0 %v10819_v4, %s11371_s26  ;;  %v16560_v63 = vrot.slane %v16481_v34, %v20679_v62  ;;  %v20705_v62 = vld [vmem:[#allocation13_spill] sm:$0xff] }
 0x922   : > { %v5861_v52 = vpop.permute.xlu1 %5860  ;;  %v5666_v6 = vpop.permute.xlu0 %5665 }
 0x923   : > { %v5732_v29 = vsel %vm1530_vm9, %v5664_v10, %v5666_v6  ;;  %v5927_v44 = vsel %vm1750_vm13, %v16461_v32, %v5861_v52  ;;  %v10824_v10 = vpack.i.bf16 %v16533_v31, %v16351_v7 }
 0x924   : > { %v5810_v19 = vmax.f32 %v16093_v59, %v5732_v29  ;;  %10805 = vrot.lane.b32.xlu1 %v10794_v12, %s11380_s0  ;;  %10830 = vrot.lane.b32.xlu0 %v10829_v22, %s11373_s24  ;;  %v5948_v59 = vsel %vm1750_vm13, %v16353_v3, %v16375_v23  ;;  %v10834_v29 = vpack.i.bf16 %v16533_v31, %v16366_v60 }
 0x925   : > { %v6026_v12 = vmax.f32 %v5831_v9, %v5948_v59 }
 0x926   : > { %v6005_v4 = vmax.f32 %v5810_v19, %v5927_v44  ;;  %v5668_v37 = vpop.permute.xlu1 %5667  ;;  %v5863_v33 = vpop.permute.xlu0 %5862  ;;  %v10854_v19 = vpack.i.bf16 %v16439_v38, %v16366_v60 }
 0x927   : > { %v5733_v25 = vsel %vm1530_vm9, %v5666_v6, %v5668_v37 }
 0x928   : > { %7315 = vrot.lane.b32.xlu0 %v16533_v31, %s11380_s0  ;;  %10825 = vrot.lane.b32.xlu1 %v10824_v10, %s11369_s2  ;;  %v16572_v32 = vmul.f32 %v16560_v63, %v6005_v4  ;;  %v5811_v10 = vmax.f32 %v16131_v48, %v5733_v25  ;;  %v16591_v4 = vmul.f32 %v16333_v27, %v6026_v12 }
 0x929   : > { %v5928_v48 = vsel %vm1750_vm13, %v5861_v52, %v5863_v33 }
 0x92a   : > { %20698 = vst [vmem:[#allocation27_spill] sm:$0xff] %v16572_v32  ;;  %v5692_v22 = vpop.permute.xlu1 %5691  ;;  %v5887_v35 = vpop.permute.xlu0 %5886  ;;  %v16588_v9 = vpack.i.bf16 %v16572_v32, %v16523_v45  ;;  %20699 = vst [vmem:[#allocation35_spill] sm:$0xff] %v16591_v4 }
 0x92b   : > { %v5745_v44 = vsel %vm1530_vm9, %v5690_v28, %v5692_v22  ;;  %v5940_v6 = vsel %vm1750_vm13, %v16487_v54, %v5887_v35  ;;  %v16599_v54 = vrot.slane %v16481_v34, %v20682_v17 }
 0x92c   : > { %v5823_v3 = vmax.f32 %v16109_v15, %v5745_v44  ;;  %10835 = vrot.lane.b32.xlu0 %v10834_v29, %s11378_s23  ;;  %10855 = vrot.lane.b32.xlu1 %v10854_v19, %s11374_s25  ;;  %v10859_v15 = vpack.i.bf16 %v16439_v38, %v16363_v47  ;;  %v6006_v44 = vmax.f32 %v5811_v10, %v5928_v48 }
 0x92e   : > { %v6018_v59 = vmax.f32 %v5823_v3, %v5940_v6  ;;  %v5889_v28 = vpop.permute.xlu1 %5888  ;;  %v5694_v8 = vpop.permute.xlu0 %5693  ;;  %v10844_v6 = vpack.i.bf16 %v16591_v4, %v16533_v31  ;;  %v16615_v10 = vmul.f32 %v16599_v54, %v6006_v44 }
 0x92f   : > { %v5746_v25 = vsel %vm1530_vm9, %v5692_v22, %v5694_v8  ;;  %v5941_v12 = vsel %vm1750_vm13, %v5887_v35, %v5889_v28 }
 0x930   : > { %v5824_v40 = vmax.f32 %v16147_v61, %v5746_v25  ;;  %10840 = vrot.lane.b32.xlu0 %v10834_v29, %s11379_s28  ;;  %10860 = vrot.lane.b32.xlu1 %v10859_v15, %s11378_s23  ;;  %v16605_v27 = vmul.f32 %v16560_v63, %v6018_v59  ;;  %20701 = vst [vmem:[#allocation55_spill] sm:$0xff] %v16615_v10 }
 0x932   : > { %20700 = vst [vmem:[#allocation65_spill] sm:$0xff] %v16605_v27  ;;  %v6019_v3 = vmax.f32 %v5824_v40, %v5941_v12  ;;  %v16608_v52 = vpop.permute.xlu1 %5912  ;;  %v16610_v22 = vpop.permute.xlu0 %5717  ;;  %v20703_v12 = vld [vmem:[#allocation11_spill] sm:$0xff] }
 0x934   : > { %v16618_v61 = vmul.f32 %v16599_v54, %v6019_v3  ;;  %10845 = vrot.lane.b32.xlu0 %v10844_v6, %s11371_s26  ;;  %10865 = vrot.lane.b32.xlu1 %v10854_v19, %s11377_s19  ;;  %v10884_v19 = vpack.i.bf16 %v16344_v55, %v16447_v39  ;;  %v10874_v55 = vpack.i.bf16 %v16366_v60, %v16439_v38 }
 0x936   : > { %20702 = vst [vmem:[#allocation56_spill] sm:$0xff] %v16618_v61  ;;  %v16624_v35 = vpop.permute.xlu1 %5719  ;;  %v16626_v29 = vpop.permute.xlu0 %5914 }
 0x938   : > { %7317 = vrot.lane.b32.xlu0 %v16591_v4, %s11380_s0  ;;  %10870 = vrot.lane.b32.xlu1 %v10859_v15, %s11379_s28 }
 0x93a   : > { %v5865_v48 = vpop.permute.xlu1 %5864  ;;  %v5670_v25 = vpop.permute.xlu0 %5669 }
 0x93b   : > { %v5734_v44 = vsel %vm1530_vm9, %v5668_v37, %v5670_v25  ;;  %v5735_v3 = vsel %vm1530_vm9, %v5670_v25, %v20703_v12  ;;  %v5929_v25 = vsel %vm1750_vm13, %v5863_v33, %v5865_v48  ;;  %v5930_v53 = vsel %vm1750_vm13, %v5865_v48, %v20705_v62 }
 0x93c   : > { %10850 = vrot.lane.b32.xlu0 %v10859_v15, %s11371_s26  ;;  %10885 = vrot.lane.b32.xlu1 %v10884_v19, %s11378_s23  ;;  %v5812_v6 = vmax.f32 %v16139_v13, %v5734_v44  ;;  %v5813_v40 = vmax.f32 %v16190_v26, %v5735_v3  ;;  %v16655_v13 = vrot.slane %v16481_v34, %v20683_v0 }
 0x93d   : > { %v16660_v26 = vrot.slane %v16481_v34, %v20684_v14  ;;  %v5754_v33 = vsel %vm1530_vm9, %v16373_v57, %v16432_v49  ;;  %v10894_v48 = vpack.i.bf16 %v16447_v39, %v16439_v38  ;;  %v20722_v38 = vld [vmem:[#allocation42_spill] sm:$0xff] }
 0x93e   : > { %v16642_v59 = vpop.permute.xlu1 %5695  ;;  %v16644_v17 = vpop.permute.xlu0 %5890  ;;  %20706 = vst [vmem:[#allocation66_spill] sm:$0xff] %v16655_v13  ;;  %v6007_v44 = vmax.f32 %v5812_v6, %v5929_v25  ;;  %v6008_v3 = vmax.f32 %v5813_v40, %v5930_v53  ;;  %v20710_v40 = vld [vmem:[#allocation37_spill] sm:$0xff] }
 0x93f   : > { %20704 = vst [vmem:[#allocation76_spill] sm:$0xff] %v16644_v17  ;;  %v5747_v37 = vsel %vm1530_vm9, %v5694_v8, %v16642_v59  ;;  %20707 = vst [vmem:[#allocation71_spill] sm:$0xff] %v16660_v26 }
 0x940   : > { %10875 = vrot.lane.b32.xlu0 %v10874_v55, %s11369_s2  ;;  %v5825_v47 = vmax.f32 %v16155_v42, %v5747_v37  ;;  %10890 = vrot.lane.b32.xlu1 %v10884_v19, %s11379_s28  ;;  %v5942_v55 = vsel %vm1750_vm13, %v5889_v28, %v16644_v17  ;;  %v16675_v53 = vmul.f32 %v16655_v13, %v6007_v44 }
 0x941   : > { %v16678_v42 = vmul.f32 %v16660_v26, %v6008_v3  ;;  %v5832_v19 = vmax.f32 %v20710_v40, %v5754_v33  ;;  %v10899_v28 = vpack.i.bf16 %v16427_v18, %v16447_v39  ;;  %v10924_v40 = vpack.i.bf16 %v16591_v4, %v16427_v18 }
 0x942   : > { %v16664_v8 = vpop.permute.xlu0 %5721  ;;  %20708 = vst [vmem:[#allocation21_spill] sm:$0xff] %v16675_v53  ;;  %v6020_v34 = vmax.f32 %v5825_v47, %v5942_v55  ;;  %v16682_v57 = vpop.permute.xlu1 %5916  ;;  %v5949_v47 = vsel %vm1750_vm13, %v16375_v23, %v16430_v56  ;;  %v5755_v23 = vsel %vm1530_vm9, %v16432_v49, %v16451_v50 }
 0x943   : > { %20709 = vst [vmem:[#allocation79_spill] sm:$0xff] %v16678_v42  ;;  %v16700_v25 = vpack.i.bf16 %v16678_v42, %v16675_v53  ;;  %v6027_v44 = vmax.f32 %v5832_v19, %v5949_v47  ;;  %v10919_v19 = vpack.i.bf16 %v16447_v39, %v16427_v18 }
 0x944   : > { %10880 = vrot.lane.b32.xlu0 %v10859_v15, %s11380_s0  ;;  %10895 = vrot.lane.b32.xlu1 %v10894_v48, %s11373_s24  ;;  %v10904_v15 = vpack.i.bf16 %v16427_v18, %v16591_v4  ;;  %v16695_v37 = vmul.f32 %v16655_v13, %v6020_v34 }
 0x945   : > { %20713 = vst [vmem:[#allocation57_spill] sm:$0xff] %v16700_v25  ;;  %v16711_v48 = vmul.f32 %v16414_v58, %v6027_v44 }
 0x946   : > { %v16684_v6 = vpop.permute.xlu0 %10635  ;;  %20712 = vst [vmem:[#allocation52_spill] sm:$0xff] %v16695_v37 }
 0x947   : > { %20711 = vst [vmem:[#allocation72_spill] sm:$0xff] %v16684_v6  ;;  %20715 = vst [vmem:[#allocation75_spill] sm:$0xff] %v16711_v48  ;;  %v10949_v44 = vpack.i.bf16 %v16711_v48, %v16591_v4 }
 0x948   : > { %10900 = vrot.lane.b32.xlu0 %v10899_v28, %s11374_s25  ;;  %10905 = vrot.lane.b32.xlu1 %v10904_v15, %s11378_s23 }
 0x94a   : > { %v16702_v3 = vpop.permute.xlu1 %10690  ;;  %v16704_v33 = vpop.permute.xlu0 %10640 }
 0x94b   : > { %20714 = vst [vmem:[#allocation78_spill] sm:$0xff] %v16704_v33  ;;  %v5833_v33 = vmax.f32 %v20722_v38, %v5755_v23 }
 0x94c   : > { %10910 = vrot.lane.b32.xlu0 %v10899_v28, %s11377_s19  ;;  %10915 = vrot.lane.b32.xlu1 %v10904_v15, %s11379_s28  ;;  %v10929_v15 = vpack.i.bf16 %v16427_v18, %v16366_v60 }
 0x94e   : > { %v16713_v55 = vpop.permute.xlu1 %10695  ;;  %v16715_v34 = vpop.permute.xlu0 %10645 }
 0x94f   : > { %20716 = vst [vmem:[#allocation62_spill] sm:$0xff] %v16713_v55  ;;  %v19703_v28 = vunpack.i.h.bf16 %v16713_v55  ;;  %v20720_v49 = vunpack.i.l.bf16 %v16713_v55 }
 0x950   : > { %10925 = vrot.lane.b32.xlu0 %v10924_v40, %s11373_s24  ;;  %10920 = vrot.lane.b32.xlu1 %v10919_v19, %s11369_s2 }
 0x951   : > { %v16752_v0 = vsel %vm4809_vm2, %v20720_v49, %v19703_v28  ;;  %v5950_v49 = vsel %vm1750_vm13, %v16430_v56, %v16453_v30 }
 0x952   : > { %v16725_v58 = vpop.permute.xlu1 %10700  ;;  %v16727_v47 = vpop.permute.xlu0 %10650  ;;  %20721 = vst [vmem:[#allocation67_spill] sm:$0xff] %v16752_v0  ;;  %v6028_v28 = vmax.f32 %v5833_v33, %v5950_v49  ;;  %v10939_v0 = vpack.i.bf16 %v16533_v31, %v16442_v5 }
 0x953   : > { %20717 = vst [vmem:[#allocation59_spill] sm:$0xff] %v16725_v58  ;;  %20718 = vst [vmem:[#allocation17_spill] sm:$0xff] %v16727_v47  ;;  %v19702_v14 = vunpack.i.h.bf16 %v16727_v47  ;;  %v19701_v40 = vunpack.i.l.bf16 %v16727_v47  ;;  %v19713_v38 = vunpack.i.h.bf16 %v16725_v58  ;;  %v19712_v23 = vunpack.i.l.bf16 %v16725_v58 }
 0x954   : > { %10950 = vrot.lane.b32.xlu0 %v10949_v44, %s11374_s25  ;;  %10930 = vrot.lane.b32.xlu1 %v10929_v15, %s11380_s0  ;;  %v10954_v15 = vpack.i.bf16 %v16711_v48, %v16442_v5  ;;  %v16797_v33 = vmul.f32 %v16424_v24, %v6028_v28  ;;  %v10969_v24 = vpack.i.bf16 %v16442_v5, %v16711_v48 }
 0x955   : > { %v16745_v19 = vsel %vm4809_vm2, %v19701_v40, %v19702_v14  ;;  %v10934_v14 = vpack.i.bf16 %v16442_v5, %v16427_v18  ;;  %v16794_v56 = vsel %vm6733_vm4, %v19712_v23, %v19713_v38 }
 0x956   : > { %20719 = vst [vmem:[#allocation68_spill] sm:$0xff] %v16745_v19  ;;  %v16755_v6 = vpop.permute.xlu1 %10710  ;;  %v16757_v25 = vpop.permute.xlu0 %10655  ;;  %20727 = vst [vmem:[#allocation20_spill] sm:$0xff] %v16794_v56  ;;  %v10979_v23 = vpack.i.bf16 %v16797_v33, %v16711_v48  ;;  %v10989_v38 = vpack.i.bf16 %v16520_v21, %v16797_v33  ;;  %v10647_v56 = vunpack.i.l.bf16 %v16715_v34 }
 0x957   : > { %20723 = vst [vmem:[#allocation58_spill] sm:$0xff] %v16757_v25  ;;  %20728 = vst [vmem:[#allocation77_spill] sm:$0xff] %v16797_v33 }
 0x958   : > { %10955 = vrot.lane.b32.xlu0 %v10954_v15, %s11378_s23  ;;  %10935 = vrot.lane.b32.xlu1 %v10934_v14, %s11371_s26 }
 0x95a   : > { %v16772_v26 = vpop.permute.xlu1 %10715  ;;  %v16774_v40 = vpop.permute.xlu0 %10660 }
 0x95b   : > { %20724 = vst [vmem:[#allocation69_spill] sm:$0xff] %v16772_v26  ;;  %20725 = vst [vmem:[#allocation22_spill] sm:$0xff] %v16774_v40  ;;  %v19711_v18 = vunpack.i.h.bf16 %v16774_v40  ;;  %v19710_v19 = vunpack.i.l.bf16 %v16774_v40 }
 0x95c   : > { %10960 = vrot.lane.b32.xlu0 %v10949_v44, %s11377_s19  ;;  %10940 = vrot.lane.b32.xlu1 %v10939_v0, %s11374_s25 }
 0x95d   : > { %v16787_v14 = vsel %vm6733_vm4, %v19710_v19, %v19711_v18 }
 0x95e   : > { %20726 = vst [vmem:[#allocation64_spill] sm:$0xff] %v16787_v14  ;;  %v16799_v44 = vpop.permute.xlu1 %7311  ;;  %v16801_v49 = vpop.permute.xlu0 %10665  ;;  %v10984_v14 = vpack.i.bf16 %v16520_v21, %v16447_v39 }
 0x95f   : > { %20729 = vst [vmem:[#allocation73_spill] sm:$0xff] %v16799_v44  ;;  %20730 = vst [vmem:[#allocation70_spill] sm:$0xff] %v16801_v49 }
 0x960   : > { %10965 = vrot.lane.b32.xlu0 %v10954_v15, %s11379_s28  ;;  %10945 = vrot.lane.b32.xlu1 %v10939_v0, %s11377_s19 }
 0x962   : > { %v16807_v19 = vpop.permute.xlu1 %10720  ;;  %v16809_v18 = vpop.permute.xlu0 %10670 }
 0x963   : > { %20731 = vst [vmem:[#allocation63_spill] sm:$0xff] %v16809_v18 }
 0x964   : > { %10980 = vrot.lane.b32.xlu0 %v10979_v23, %s11369_s2  ;;  %10970 = vrot.lane.b32.xlu1 %v10969_v24, %s11373_s24 }
 0x966   : > { %v16817_v28 = vpop.permute.xlu1 %10725  ;;  %v16819_v17 = vpop.permute.xlu0 %10675 }
 0x967   : > { %20732 = vst [vmem:[#allocation74_spill] sm:$0xff] %v16817_v28  ;;  %20733 = vst [vmem:[#allocation26_spill] sm:$0xff] %v16819_v17 }
 0x968   : > { %7321 = vrot.lane.b32.xlu0 %v16797_v33, %s11380_s0  ;;  %7319 = vrot.lane.b32.xlu1 %v16711_v48, %s11380_s0  ;;  %v10648_v48 = vunpack.i.h.bf16 %v16715_v34 }
 0x96a   : > { %v16825_v0 = vpop.permute.xlu1 %10735  ;;  %v16827_v15 = vpop.permute.xlu0 %10680 }
 0x96b   : > { %20734 = vst [vmem:[#allocation31_spill] sm:$0xff] %v16825_v0  ;;  %20735 = vst [vmem:[#allocation46_spill] sm:$0xff] %v16827_v15  ;;  %v19776_v0 = vunpack.i.l.bf16 %v16807_v19 }
 0x96c   : > { %10990 = vrot.lane.b32.xlu0 %v10989_v38, %s11374_s25  ;;  %10975 = vrot.lane.b32.xlu1 %v10979_v23, %s11371_s26  ;;  %v11009_v23 = vpack.i.bf16 %v16442_v5, %v16520_v21 }
 0x96e   : > { %v16833_v24 = vpop.permute.xlu1 %7313  ;;  %v16835_v44 = vpop.permute.xlu0 %10685 }
 0x96f   : > { %20736 = vst [vmem:[#allocation45_spill] sm:$0xff] %v16833_v24  ;;  %20737 = vst [vmem:[#allocation81_spill] sm:$0xff] %v16835_v44  ;;  %v6260_v44 = vsel %vm3215_vm15, %v10647_v56, %v10648_v48  ;;  %v5756_v56 = vsel %vm1530_vm9, %v16451_v50, %v16515_v16 }
 0x970   : > { %11000 = vrot.lane.b32.xlu0 %v10989_v38, %s11377_s19  ;;  %10985 = vrot.lane.b32.xlu1 %v10984_v14, %s11371_s26  ;;  %v9098_v62 = vpack.c.bf16 %v6260_v44, %v16360_v36  ;;  %v11014_v36 = vpack.i.bf16 %v16366_v60, %v16520_v21 }
 0x972   : > { %v16843_v15 = vpop.permute.xlu1 %10745  ;;  %v16845_v17 = vpop.permute.xlu0 %10705 }
 0x973   : > { %20738 = vst [vmem:[#allocation80_spill] sm:$0xff] %v16845_v17  ;;  %v19724_v24 = vunpack.i.l.bf16 %v16843_v15  ;;  %v20771_v49 = vunpack.i.l.bf16 %v16843_v15 }
 0x974   : > { %11010 = vrot.lane.b32.xlu0 %v11009_v23, %s11369_s2  ;;  %10995 = vrot.lane.b32.xlu1 %v10989_v38, %s11378_s23 }
 0x975   : > { %v6261_v34 = vsel %vm3215_vm15, %v10648_v48, %v19724_v24  ;;  %v11024_v24 = vpack.i.bf16 %v16293_v1, %v16509_v41 }
 0x976   : > { %v16856_v18 = vpop.permute.xlu1 %10750  ;;  %v16858_v39 = vpop.permute.xlu0 %10730  ;;  %v9096_v17 = vpack.c.bf16 %v6261_v34, %v16293_v1  ;;  %v20742_v34 = vld [vmem:[#allocation15_spill] sm:$0xff]  ;;  %v11034_v1 = vpack.i.bf16 %v16797_v33, %v16509_v41 }
 0x977   : > { %20739 = vst [vmem:[#allocation34_spill] sm:$0xff] %v16856_v18  ;;  %v5834_v26 = vmax.f32 %v20742_v34, %v5756_v56 }
 0x978   : > { %11020 = vrot.lane.b32.xlu0 %v10984_v14, %s11380_s0  ;;  %9097 = vmatprep.subr.bf16.mxu0 %v9096_v17  ;;  %v11029_v14 = vpack.i.bf16 %v16591_v4, %v16509_v41 }
 0x979   : > { %11005 = vrot.lane.b32.xlu1 %v10989_v38, %s11379_s28  ;;  %9099 = vmatpush1.bf16.msra.mxu0 %v9098_v62  ;;  %v5951_v62 = vsel %vm1750_vm13, %v16453_v30, %v16513_v46  ;;  %v11044_v30 = vpack.i.bf16 %v16509_v41, %v16523_v45 }
 0x97a   : > { %v16867_v23 = vpop.permute.xlu1 %10755  ;;  %v16869_v48 = vpop.permute.xlu0 %10740  ;;  %v6029_v38 = vmax.f32 %v5834_v26, %v5951_v62  ;;  %v11039_v26 = vpack.i.bf16 %v16509_v41, %v16442_v5  ;;  %v7410_v62 = vld [vmem:[%s19344_s9 + $0x8] sm:$0xff] }
 0x97b   : > { %20740 = vst [vmem:[#allocation89_spill] sm:$0xff] %v16867_v23  ;;  %20741 = vst [vmem:[#allocation30_spill] sm:$0xff] %v16869_v48  ;;  %8325 = vmatprep.mubr.msk.f32.mxu1 %vm4702_vm3, %v7410_v62  ;;  %8322 = vmatprep.mubr.msk.f32.mxu0 %vm4702_vm3, %v7410_v62 }
 0x97c   : > { %11025 = vrot.lane.b32.xlu0 %v11024_v24, %s11371_s26  ;;  %v16898_v56 = vmul.f32 %v16493_v43, %v6029_v38 }
 0x97d   : > { %11015 = vrot.lane.b32.xlu1 %v11014_v36, %s11373_s24 }
 0x97e   : > { %v16881_v17 = vpop.permute.xlu1 %10760  ;;  %v16883_v50 = vpop.permute.xlu0 %10770  ;;  %20747 = vst [vmem:[#allocation85_spill] sm:$0xff] %v16898_v56 }
 0x97f   : > { %20743 = vst [vmem:[#allocation84_spill] sm:$0xff] %v16881_v17  ;;  %20744 = vst [vmem:[#allocation83_spill] sm:$0xff] %v16883_v50 }
 0x980   : > { %11035 = vrot.lane.b32.xlu0 %v11034_v1, %s11373_s24  ;;  %v11059_v1 = vpack.i.bf16 %v16523_v45, %v16898_v56 }
 0x981   : > { %11030 = vrot.lane.b32.xlu1 %v11029_v14, %s11369_s2  ;;  %v19737_v14 = vunpack.i.h.bf16 %v16883_v50 }
 0x982   : > { %v16891_v44 = vpop.permute.xlu1 %10765  ;;  %v16893_v24 = vpop.permute.xlu0 %10775 }
 0x983   : > { %20745 = vst [vmem:[#allocation82_spill] sm:$0xff] %v16891_v44  ;;  %20746 = vst [vmem:[#allocation88_spill] sm:$0xff] %v16893_v24 }
 0x984   : > { %11045 = vrot.lane.b32.xlu0 %v11044_v30, %s11374_s25 }
 0x985   : > { %11040 = vrot.lane.b32.xlu1 %v11039_v26, %s11380_s0  ;;  %v19736_v26 = vunpack.i.l.bf16 %v16883_v50 }
 0x986   : > { %v16904_v34 = vpop.permute.xlu1 %10785  ;;  %v16906_v36 = vpop.permute.xlu0 %10780 }
 0x987   : > { %20748 = vst [vmem:[#allocation87_spill] sm:$0xff] %v16904_v34  ;;  %20749 = vst [vmem:[#allocation86_spill] sm:$0xff] %v16906_v36  ;;  %v16943_v33 = vsel %vm1750_vm13, %v19736_v26, %v19737_v14  ;;  %v19748_v50 = vunpack.i.h.bf16 %v16906_v36  ;;  %v19747_v26 = vunpack.i.l.bf16 %v16906_v36 }
 0x988   : > { %11050 = vrot.lane.b32.xlu0 %v11044_v30, %s11377_s19  ;;  %v11064_v30 = vpack.i.bf16 %v16898_v56, %v16526_v20  ;;  %20752 = vst [vmem:[#allocation93_spill] sm:$0xff] %v16943_v33 }
 0x989   : > { %11060 = vrot.lane.b32.xlu1 %v11059_v1, %s11373_s24  ;;  %v16979_v33 = vsel %vm7335_vm6, %v19747_v26, %v19748_v50  ;;  %v20762_v50 = vld [vmem:[#allocation44_spill] sm:$0xff]  ;;  %v11104_v26 = vpack.i.bf16 %v16509_v41, %v16615_v10 }
 0x98a   : > { %v16917_v43 = vpop.permute.xlu1 %10790  ;;  %v16919_v38 = vpop.permute.xlu0 %10810  ;;  %20757 = vst [vmem:[#allocation95_spill] sm:$0xff] %v16979_v33  ;;  %v20768_v41 = vld [vmem:[#allocation48_spill] sm:$0xff] }
 0x98b   : > { %20750 = vst [vmem:[#allocation91_spill] sm:$0xff] %v16917_v43  ;;  %v10812_v44 = vunpack.i.l.bf16 %v16919_v38 }
 0x98c   : > { %11055 = vrot.lane.b32.xlu0 %v11059_v1, %s11369_s2  ;;  %v11084_v1 = vpack.i.bf16 %v16572_v32, %v16526_v20 }
 0x98d   : > { %7323 = vrot.lane.b32.xlu1 %v16898_v56, %s11380_s0 }
 0x98e   : > { %v16926_v45 = vpop.permute.xlu1 %10795  ;;  %v16928_v62 = vpop.permute.xlu0 %10815 }
 0x98f   : > { %20751 = vst [vmem:[#allocation90_spill] sm:$0xff] %v16926_v45  ;;  %v19739_v60 = vunpack.i.h.bf16 %v16926_v45  ;;  %v19738_v4 = vunpack.i.l.bf16 %v16926_v45 }
 0x990   : > { %11065 = vrot.lane.b32.xlu0 %v11064_v30, %s11371_s26 }
 0x991   : > { %11085 = vrot.lane.b32.xlu1 %v11084_v1, %s11374_s25  ;;  %v16950_v5 = vsel %vm1750_vm13, %v19738_v4, %v19739_v60  ;;  %v5758_v60 = vsel %vm1530_vm9, %v16535_v51, %v16610_v22 }
 0x992   : > { %20753 = vst [vmem:[#allocation92_spill] sm:$0xff] %v16950_v5  ;;  %v16952_v21 = vpop.permute.xlu1 %10800  ;;  %v16954_v24 = vpop.permute.xlu0 %10820 }
 0x993   : > { %20754 = vst [vmem:[#allocation29_spill] sm:$0xff] %v16952_v21 }
 0x994   : > { %11070 = vrot.lane.b32.xlu0 %v11064_v30, %s11378_s23 }
 0x995   : > { %11090 = vrot.lane.b32.xlu1 %v16588_v9, %s11378_s23 }
 0x996   : > { %v16963_v14 = vpop.permute.xlu1 %10805  ;;  %v16965_v4 = vpop.permute.xlu0 %10830 }
 0x997   : > { %20755 = vst [vmem:[#allocation33_spill] sm:$0xff] %v16963_v14  ;;  %20756 = vst [vmem:[#allocation94_spill] sm:$0xff] %v16965_v4  ;;  %v19752_v21 = vunpack.i.h.bf16 %v16963_v14  ;;  %v19751_v43 = vunpack.i.l.bf16 %v16963_v14  ;;  %v20759_v4 = vld [vmem:[#allocation50_spill] sm:$0xff] }
 0x998   : > { %11075 = vrot.lane.b32.xlu0 %v11064_v30, %s11379_s28  ;;  %v5757_v30 = vsel %vm1530_vm9, %v16515_v16, %v16535_v51 }
 0x999   : > { %11095 = vrot.lane.b32.xlu1 %v11084_v1, %s11377_s19  ;;  %v16986_v5 = vsel %vm7335_vm6, %v19751_v43, %v19752_v21  ;;  %v5836_v1 = vmax.f32 %v20759_v4, %v5758_v60  ;;  %v5835_v36 = vmax.f32 %v20762_v50, %v5757_v30  ;;  %v5953_v43 = vsel %vm1750_vm13, %v16537_v2, %v16608_v52 }
 0x99a   : > { %20758 = vst [vmem:[#allocation40_spill] sm:$0xff] %v16986_v5  ;;  %v16992_v45 = vpop.permute.xlu1 %10825  ;;  %v16994_v34 = vpop.permute.xlu0 %7315  ;;  %v11119_v4 = vpack.i.bf16 %v16605_v27, %v16615_v10  ;;  %v5952_v50 = vsel %vm1750_vm13, %v16513_v46, %v16537_v2 }
 0x99b   : > { %20760 = vst [vmem:[#allocation41_spill] sm:$0xff] %v16992_v45  ;;  %20761 = vst [vmem:[#allocation18_spill] sm:$0xff] %v16994_v34  ;;  %v6031_v60 = vmax.f32 %v5836_v1, %v5953_v43  ;;  %v6030_v30 = vmax.f32 %v5835_v36, %v5952_v50  ;;  %v10748_v50 = vunpack.i.h.bf16 %v16843_v15 }
 0x99c   : > { %11080 = vrot.lane.b32.xlu0 %v16588_v9, %s11371_s26 }
 0x99d   : > { %11100 = vrot.lane.b32.xlu1 %v16588_v9, %s11379_s28  ;;  %v17020_v43 = vmul.f32 %v16560_v63, %v6031_v60  ;;  %v17028_v33 = vmul.f32 %v16500_v11, %v6030_v30  ;;  %v11134_v30 = vpack.i.bf16 %v16898_v56, %v16618_v61  ;;  %v6262_v40 = vsel %vm3215_vm15, %v20771_v49, %v10748_v50 }
 0x99e   : > { %v17006_v16 = vpop.permute.xlu1 %10855  ;;  %v17008_v51 = vpop.permute.xlu0 %10835 }
 0x99f   : > { %20763 = vst [vmem:[#allocation25_spill] sm:$0xff] %v17020_v43  ;;  %20765 = vst [vmem:[#allocation36_spill] sm:$0xff] %v17028_v33  ;;  %v17037_v36 = vpack.i.bf16 %v17020_v43, %v16618_v61  ;;  %v17041_v63 = vpack.i.bf16 %v16605_v27, %v17028_v33  ;;  %v11149_v60 = vpack.i.bf16 %v17020_v43, %v17028_v33 }
 0x9a0   : > { %11120 = vrot.lane.b32.xlu0 %v11119_v4, %s11374_s25 }
 0x9a1   : > { %11105 = vrot.lane.b32.xlu1 %v11104_v26, %s11378_s23 }
 0x9a2   : > { %v17022_v1 = vpop.permute.xlu1 %10860  ;;  %v17024_v21 = vpop.permute.xlu0 %10840 }
 0x9a3   : > { %20764 = vst [vmem:[#allocation28_spill] sm:$0xff] %v17022_v1 }
 0x9a4   : > { %11130 = vrot.lane.b32.xlu0 %v11119_v4, %s11377_s19  ;;  %v5759_v4 = vsel %vm1530_vm9, %v16610_v22, %v16624_v35  ;;  %v10822_v22 = vunpack.i.l.bf16 %v16954_v24 }
 0x9a5   : > { %11110 = vrot.lane.b32.xlu1 %v11104_v26, %s11379_s28  ;;  %v5837_v34 = vmax.f32 %v20768_v41, %v5759_v4  ;;  %v5954_v41 = vsel %vm1750_vm13, %v16608_v52, %v16626_v29  ;;  %v10857_v4 = vunpack.i.l.bf16 %v17006_v16  ;;  %v10813_v52 = vunpack.i.h.bf16 %v16919_v38 }
 0x9a6   : > { %v17031_v46 = vpop.permute.xlu1 %10865  ;;  %v17033_v2 = vpop.permute.xlu0 %10845 }
 0x9a7   : > { %v10847_v5 = vunpack.i.l.bf16 %v17033_v2  ;;  %v20772_v56 = vunpack.i.h.bf16 %v17033_v2  ;;  %v6032_v49 = vmax.f32 %v5837_v34, %v5954_v41 }
 0x9a8   : > { %11145 = vrot.lane.b32.xlu0 %v17037_v36, %s11371_s26 }
 0x9a9   : > { %11115 = vrot.lane.b32.xlu1 %v17041_v63, %s11371_s26  ;;  %v6289_v15 = vsel %vm3215_vm15, %v10847_v5, %v20772_v56  ;;  %v19777_v56 = vunpack.i.h.bf16 %v16702_v3  ;;  %v6288_v34 = vsel %vm3215_vm15, %v19776_v0, %v10847_v5 }
 0x9aa   : > { %v17047_v11 = vpop.permute.xlu1 %10870  ;;  %v17049_v26 = vpop.permute.xlu0 %7317 }
 0x9ab   : > { %20766 = vst [vmem:[#allocation11_spill] sm:$0xff] %v17047_v11  ;;  %20767 = vst [vmem:[#allocation37_spill] sm:$0xff] %v17049_v26  ;;  %v6275_v38 = vsel %vm3215_vm15, %v19777_v56, %v10822_v22  ;;  %v20785_v56 = vld [vmem:[#allocation49_spill] sm:$0xff] }
 0x9ac   : > { %11150 = vrot.lane.b32.xlu0 %v11149_v60, %s11374_s25 }
 0x9ad   : > { %11125 = vrot.lane.b32.xlu1 %v17041_v63, %s11378_s23 }
 0x9ae   : > { %v17063_v26 = vpop.permute.xlu1 %10885  ;;  %v17065_v14 = vpop.permute.xlu0 %10850 }
 0x9af   : > { %20769 = vst [vmem:[#allocation42_spill] sm:$0xff] %v17063_v26  ;;  %20770 = vst [vmem:[#allocation15_spill] sm:$0xff] %v17065_v14  ;;  %v19775_v48 = vunpack.i.l.bf16 %v17065_v14  ;;  %v9150_v14 = vpack.c.bf16 %v6262_v40, %v16351_v7  ;;  %v6432_v7 = vsel %vm4809_vm2, %v10813_v52, %v10857_v4  ;;  %v17109_v40 = vmul.f32 %v16599_v54, %v6032_v49 }
 0x9b0   : > { %11155 = vrot.lane.b32.xlu0 %v17037_v36, %s11378_s23 }
 0x9b1   : > { %11135 = vrot.lane.b32.xlu1 %v11134_v30, %s11374_s25  ;;  %v6263_v45 = vsel %vm3215_vm15, %v10748_v50, %v19775_v48  ;;  %v20774_v50 = vunpack.i.h.bf16 %v16954_v24  ;;  %20775 = vst [vmem:[#allocation44_spill] sm:$0xff] %v17109_v40 }
 0x9b2   : > { %v17089_v13 = vpop.permute.xlu0 %10875  ;;  %v9148_v37 = vpack.c.bf16 %v6263_v45, %v16533_v31  ;;  %v17094_v58 = vpop.permute.xlu1 %10890  ;;  %v10753_v31 = vunpack.i.h.bf16 %v16856_v18  ;;  %v20789_v18 = vunpack.i.h.bf16 %v17022_v1 }
 0x9b3   : > { %20773 = vst [vmem:[#allocation50_spill] sm:$0xff] %v17094_v58  ;;  %v6276_v48 = vsel %vm3215_vm15, %v10822_v22, %v20774_v50  ;;  %v20778_v22 = vunpack.i.h.bf16 %v16727_v47  ;;  %v10838_v47 = vunpack.i.h.bf16 %v17008_v51 }
 0x9b4   : > { %11160 = vrot.lane.b32.xlu0 %v11149_v60, %s11377_s19  ;;  %9149 = vmatprep.subr.bf16.mxu1 %v9148_v37  ;;  %v9152_v45 = vpack.c.bf16 %v6289_v15, %v6276_v48  ;;  %v9154_v37 = vpack.c.bf16 %v6288_v34, %v6275_v38  ;;  %v6419_v48 = vsel %vm4809_vm2, %v10753_v31, %v10812_v44  ;;  %v20777_v60 = vunpack.i.h.bf16 %v16713_v55 }
 0x9b5   : > { %11140 = vrot.lane.b32.xlu1 %v11134_v30, %s11377_s19  ;;  %9151 = vmatpush1.bf16.msra.mxu1 %v9150_v14  ;;  %v9156_v54 = vpack.c.bf16 %v6432_v7, %v6419_v48  ;;  %v19783_v30 = vunpack.i.h.bf16 %v17006_v16  ;;  %v6418_v15 = vsel %vm4809_vm2, %v20778_v22, %v10753_v31  ;;  %v19779_v7 = vunpack.i.h.bf16 %v17031_v46 }
 0x9b6   : > { %v17114_v41 = vpop.permute.xlu0 %10880  ;;  %9153 = vmatprep.subr.bf16.mxu1 %v9152_v45  ;;  %v17116_v5 = vpop.permute.xlu1 %10895  ;;  %v6431_v14 = vsel %vm4809_vm2, %v20777_v60, %v10813_v52  ;;  %v19778_v48 = vunpack.i.l.bf16 %v16928_v62  ;;  %v10888_v55 = vunpack.i.h.bf16 %v17063_v26 }
 0x9b7   : > { %20776 = vst [vmem:[#allocation48_spill] sm:$0xff] %v17116_v5  ;;  %v9158_v34 = vpack.c.bf16 %v6431_v14, %v6418_v15  ;;  %v17140_v45 = vsel %vm4809_vm2, %v10812_v44, %v19783_v30  ;;  %v19781_v44 = vunpack.i.l.bf16 %v17031_v46  ;;  %v5955_v30 = vsel %vm1750_vm13, %v16626_v29, %v16682_v57 }
 0x9b8   : > { %6410 = vrot.lane.b32.xlu0 %v17109_v40, %s11374_s25  ;;  %20780 = vst [vmem:[#allocation97_spill] sm:$0xff] %v17140_v45  ;;  %v17173_v22 = vsel %vm6733_vm4, %v19778_v48, %v19779_v7  ;;  %v17231_v7 = vsel %vm1530_vm9, %v16664_v8, %v20703_v12 }
 0x9b9   : > { %6254 = vrot.lane.b32.xlu1 %v17109_v40, %s11371_s26  ;;  %9155 = vmatpush1.bf16.msra.mxu1 %v9154_v37  ;;  %20783 = vst [vmem:[#allocation100_spill] sm:$0xff] %v17173_v22  ;;  %v17193_v37 = vsel %vm1530_vm9, %v16642_v59, %v20703_v12  ;;  %v11184_v59 = vpack.i.bf16 %v16615_v10, %v16605_v27 }
 0x9ba   : > { %v17130_v49 = vpop.permute.xlu0 %10900  ;;  %9157 = vmatprep.subr.bf16.mxu1 %v9156_v54  ;;  %v17132_v50 = vpop.permute.xlu1 %10905  ;;  %v5760_v54 = vsel %vm1530_vm9, %v16624_v35, %v16664_v8  ;;  %v11179_v35 = vpack.i.bf16 %v16526_v20, %v16572_v32  ;;  %vm8215_vm9 = vcmask 7168  }
 0x9bb   : > { %20779 = vst [vmem:[#allocation96_spill] sm:$0xff] %v17132_v50  ;;  %v19782_v52 = vunpack.i.h.bf16 %v17130_v49  ;;  %v5838_v48 = vmax.f32 %v20785_v56, %v5760_v54  ;;  %v20786_v56 = vld [vmem:[#allocation38_spill] sm:$0xff]  ;;  %v10758_v54 = vunpack.i.h.bf16 %v16867_v23 }
 0x9bc   : > { %6727 = vrot.lane.b32.xlu0 %v17109_v40, %s11377_s19 }
 0x9bd   : > { %v17146_v31 = vsel %vm4809_vm2, %v10857_v4, %v19782_v52  ;;  %6568 = vrot.lane.b32.xlu1 %v17109_v40, %s11378_s23  ;;  %9159 = vmatpush1.bf16.msra.mxu1 %v9158_v34  ;;  %v17161_v4 = vpack.i.bf16 %v16675_v53, %v16615_v10  ;;  %v11199_v34 = vpack.i.bf16 %v17028_v33, %v16605_v27 }
 0x9be   : > { %20781 = vst [vmem:[#allocation98_spill] sm:$0xff] %v17146_v31  ;;  %v17150_v38 = vpop.permute.xlu0 %10910  ;;  %v17156_v60 = vpop.permute.xlu1 %10915  ;;  %v11189_v52 = vpack.i.bf16 %v17109_v40, %v17020_v43  ;;  %v17233_v31 = vmax.f32 %v5838_v48, %v5955_v30 }
 0x9bf   : > { %20782 = vst [vmem:[#allocation99_spill] sm:$0xff] %v17156_v60  ;;  %v19780_v14 = vunpack.i.h.bf16 %v17150_v38 }
 0x9c0   : > { %11175 = vrot.lane.b32.xlu0 %v17037_v36, %s11379_s28 }
 0x9c1   : > { %v17180_v15 = vsel %vm6733_vm4, %v19781_v44, %v19780_v14  ;;  %11165 = vrot.lane.b32.xlu1 %v17161_v4, %s11371_s26  ;;  %v10862_v44 = vunpack.i.l.bf16 %v17022_v1 }
 0x9c2   : > { %20784 = vst [vmem:[#allocation101_spill] sm:$0xff] %v17180_v15  ;;  %v17184_v36 = vpop.permute.xlu0 %10925  ;;  %v17195_v0 = vpop.permute.xlu1 %10920  ;;  %v20788_v15 = vld [vmem:[#allocation51_spill] sm:$0xff] }
 0x9c3   : > { %v11219_v45 = vpack.i.bf16 %v20788_v15, %v16678_v42  ;;  %v17244_v15 = vsel %vm6574_vm7, %v10862_v44, %v20789_v18  ;;  %v20794_v18 = vunpack.i.h.bf16 %v16757_v25 }
 0x9c4   : > { %11180 = vrot.lane.b32.xlu0 %v11179_v35, %s11369_s2  ;;  %20790 = vst [vmem:[#allocation38_spill] sm:$0xff] %v17244_v15 }
 0x9c5   : > { %11170 = vrot.lane.b32.xlu1 %v17041_v63, %s11379_s28  ;;  %v10837_v63 = vunpack.i.l.bf16 %v17008_v51 }
 0x9c6   : > { %v17211_v35 = vpop.permute.xlu0 %10950  ;;  %v17222_v14 = vpop.permute.xlu1 %10930 }
 0x9c7   : > { %20787 = vst [vmem:[#allocation49_spill] sm:$0xff] %v17211_v35  ;;  %v10952_v22 = vunpack.i.l.bf16 %v17211_v35  ;;  %v20791_v8 = vunpack.i.h.bf16 %v17211_v35  ;;  %v6577_v35 = vsel %vm6574_vm7, %v20794_v18, %v10758_v54  ;;  %v6578_v18 = vsel %vm6574_vm7, %v10758_v54, %v10862_v44 }
 0x9c8   : > { %11190 = vrot.lane.b32.xlu0 %v11189_v52, %s11369_s2 }
 0x9c9   : > { %v17250_v30 = vsel %vm4809_vm2, %v10952_v22, %v20791_v8  ;;  %6886 = vrot.lane.b32.xlu1 %v17109_v40, %s11379_s28  ;;  %v10907_v8 = vunpack.i.l.bf16 %v17132_v50 }
 0x9ca   : > { %20792 = vst [vmem:[#allocation51_spill] sm:$0xff] %v17250_v30  ;;  %v17257_v29 = vpop.permute.xlu0 %10955  ;;  %v17264_v1 = vpop.permute.xlu1 %10935  ;;  %v20795_v30 = vunpack.i.h.bf16 %v17132_v50  ;;  %v20801_v50 = vunpack.i.l.bf16 %v17047_v11 }
 0x9cb   : > { %20793 = vst [vmem:[#allocation102_spill] sm:$0xff] %v17257_v29  ;;  %v20797_v52 = vunpack.i.h.bf16 %v17257_v29  ;;  %v20803_v29 = vunpack.i.l.bf16 %v16755_v6 }
 0x9cc   : > { %11200 = vrot.lane.b32.xlu0 %v11199_v34, %s11373_s24  ;;  %v17279_v23 = vsel %vm6574_vm7, %v10837_v63, %v20795_v30  ;;  %v10818_v34 = vunpack.i.h.bf16 %v16928_v62  ;;  %v20800_v30 = vunpack.i.h.bf16 %v17047_v11 }
 0x9cd   : > { %20796 = vst [vmem:[#allocation103_spill] sm:$0xff] %v17279_v23  ;;  %v17284_v48 = vsel %vm6574_vm7, %v10907_v8, %v20797_v52  ;;  %11185 = vrot.lane.b32.xlu1 %v11184_v59, %s11369_s2  ;;  %v6590_v26 = vsel %vm6574_vm7, %v20803_v29, %v10888_v55  ;;  %v6604_v23 = vsel %vm6574_vm7, %v10838_v47, %v10907_v8  ;;  %v20815_v8 = vunpack.i.h.bf16 %v17156_v60 }
 0x9ce   : > { %20798 = vst [vmem:[#allocation104_spill] sm:$0xff] %v17284_v48  ;;  %v17290_v15 = vpop.permute.xlu0 %10960  ;;  %v17299_v52 = vsel %vm6892_vm8, %v20801_v50, %v20800_v30  ;;  %v17301_v25 = vpop.permute.xlu1 %10940  ;;  %v20804_v50 = vunpack.i.l.bf16 %v17130_v49  ;;  %v20805_v30 = vunpack.i.h.bf16 %v17006_v16  ;;  %v20810_v16 = vunpack.i.h.bf16 %v16817_v28 }
 0x9cf   : > { %20799 = vst [vmem:[#allocation105_spill] sm:$0xff] %v17290_v15  ;;  %20802 = vst [vmem:[#allocation106_spill] sm:$0xff] %v17299_v52  ;;  %v10962_v51 = vunpack.i.l.bf16 %v17290_v15  ;;  %v10943_v12 = vunpack.i.h.bf16 %v17301_v25  ;;  %v20807_v29 = vunpack.i.h.bf16 %v17290_v15  ;;  %v20812_v44 = vunpack.i.l.bf16 %v17301_v25 }
 0x9d0   : > { %11210 = vrot.lane.b32.xlu0 %v16588_v9, %s11380_s0  ;;  %v17318_v59 = vsel %vm4809_vm2, %v20805_v30, %v20804_v50  ;;  %v20809_v9 = vpack.i.bf16 %v16615_v10, %v16572_v32 }
 0x9d1   : > { %20806 = vst [vmem:[#allocation107_spill] sm:$0xff] %v17318_v59  ;;  %v17325_v48 = vsel %vm6733_vm4, %v10962_v51, %v20807_v29  ;;  %v6444_v50 = vsel %vm4809_vm2, %v20810_v16, %v10943_v12  ;;  %v6445_v54 = vsel %vm4809_vm2, %v10943_v12, %v10952_v22  ;;  %v20813_v29 = vunpack.i.h.bf16 %v17130_v49 }
 0x9d2   : > { %20808 = vst [vmem:[#allocation108_spill] sm:$0xff] %v17325_v48  ;;  %11195 = vrot.lane.b32.xlu1 %v20809_v9, %s11373_s24  ;;  %v17335_v30 = vpop.permute.xlu0 %10965  ;;  %v17348_v32 = vpop.permute.xlu1 %10945  ;;  %v9160_v10 = vpack.c.bf16 %v6578_v18, %v6445_v54  ;;  %v9162_v28 = vpack.c.bf16 %v6577_v35, %v6444_v50  ;;  %v19813_v22 = vunpack.i.h.bf16 %v17116_v5  ;;  %v20816_v48 = vunpack.i.l.bf16 %v17024_v21 }
 0x9d3   : > { %20811 = vst [vmem:[#allocation109_spill] sm:$0xff] %v17335_v30  ;;  %v17343_v15 = vsel %vm4809_vm2, %v20813_v29, %v20812_v44  ;;  %v19811_v16 = vunpack.i.h.bf16 %v17335_v30  ;;  %v19812_v12 = vunpack.i.l.bf16 %v17348_v32  ;;  %v6591_v44 = vsel %vm6574_vm7, %v10888_v55, %v10837_v63 }
 0x9d4   : > { %20814 = vst [vmem:[#allocation110_spill] sm:$0xff] %v17343_v15  ;;  %11220 = vrot.lane.b32.xlu0 %v11219_v45, %s11371_s26  ;;  %v17363_v18 = vsel %vm6892_vm8, %v20816_v48, %v20815_v8  ;;  %v20818_v35 = vunpack.i.l.bf16 %v17156_v60  ;;  %v20820_v55 = vpack.i.bf16 %v16618_v61, %v17020_v43  ;;  %9161 = vmatprep.subr.bf16.mxu1 %v9160_v10  ;;  %v10948_v54 = vunpack.i.h.bf16 %v17348_v32 }
 0x9d5   : > { %20817 = vst [vmem:[#allocation111_spill] sm:$0xff] %v17363_v18  ;;  %v9164_v63 = vpack.c.bf16 %v6604_v23, %v6591_v44  ;;  %9163 = vmatpush1.bf16.msra.mxu1 %v9162_v28  ;;  %v20822_v48 = vunpack.i.l.bf16 %v17031_v46  ;;  %v20825_v23 = vunpack.i.l.bf16 %v16858_v39  ;;  %v20827_v29 = vunpack.i.l.bf16 %v17150_v38 }
 0x9d6   : > { %v17370_v45 = vsel %vm6892_vm8, %v20818_v35, %v19811_v16  ;;  %11205 = vrot.lane.b32.xlu1 %v20820_v55, %s11373_s24  ;;  %v17377_v50 = vpop.permute.xlu0 %10980  ;;  %v20823_v35 = vunpack.i.h.bf16 %v17150_v38  ;;  %v17394_v44 = vpop.permute.xlu1 %10970  ;;  %v20828_v9 = vunpack.i.h.bf16 %v17031_v46  ;;  %v20830_v10 = vpack.i.bf16 %v16618_v61, %v16675_v53  ;;  %v20833_v55 = vld [vmem:[#allocation59_spill] sm:$0xff] }
 0x9d7   : > { %20819 = vst [vmem:[#allocation112_spill] sm:$0xff] %v17370_v45  ;;  %20821 = vst [vmem:[#allocation113_spill] sm:$0xff] %v17377_v50  ;;  %v6750_v8 = vsel %vm6733_vm4, %v10818_v34, %v20822_v48  ;;  %v6603_v28 = vsel %vm6574_vm7, %v20825_v23, %v10838_v47  ;;  %9165 = vmatprep.subr.bf16.mxu1 %v9164_v63  ;;  %v20831_v23 = vunpack.i.l.bf16 %v16928_v62  ;;  %v20834_v46 = vunpack.i.h.bf16 %v20833_v55 }
 0x9d8   : > { %v17387_v16 = vsel %vm6733_vm4, %v20823_v35, %v19812_v12  ;;  %20826 = vst [vmem:[#allocation115_spill] sm:$0xff] %v17394_v44  ;;  %v17403_v35 = vsel %vm6733_vm4, %v20828_v9, %v20827_v29  ;;  %11225 = vrot.lane.b32.xlu0 %v20830_v10, %s11369_s2  ;;  %v9166_v47 = vpack.c.bf16 %v6603_v28, %v6590_v26  ;;  %v20832_v12 = vunpack.i.h.bf16 %v16881_v17 }
 0x9d9   : > { %20824 = vst [vmem:[#allocation114_spill] sm:$0xff] %v17387_v16  ;;  %20829 = vst [vmem:[#allocation116_spill] sm:$0xff] %v17403_v35  ;;  %v6749_v9 = vsel %vm6733_vm4, %v20834_v46, %v10818_v34  ;;  %v20835_v29 = vunpack.i.l.bf16 %v17116_v5  ;;  %v20837_v62 = vunpack.i.h.bf16 %v17377_v50  ;;  %v20838_v26 = vunpack.i.l.bf16 %v17377_v50 }
 0x9da   : > { %v6737_v48 = vsel %vm6733_vm4, %v20832_v12, %v20831_v23  ;;  %v20840_v28 = vpack.i.bf16 %v16605_v27, %v16526_v20  ;;  %v20841_v23 = vld [vmem:[#allocation82_spill] sm:$0xff]  ;;  %9167 = vmatpush1.bf16.msra.mxu1 %v9166_v47  ;;  %v17438_v63 = vpop.permute.xlu0 %7321  ;;  %v20846_v27 = vld [vmem:[#allocation31_spill] sm:$0xff]  ;;  %v17455_v52 = vpop.permute.xlu1 %7319  ;;  %v20854_v16 = vpack.i.bf16 %v16526_v20, %v16675_v53  ;;  %v20862_v53 = vunpack.i.h.bf16 %v16954_v24 }
 0x9db   : > { %v17424_v10 = vsel %vm4702_vm3, %v20835_v29, %v19813_v22  ;;  %v17431_v12 = vsel %vm1750_vm13, %v20838_v26, %v20837_v62  ;;  %v9168_v34 = vpack.c.bf16 %v6750_v8, %v6737_v48  ;;  %v10768_v46 = vunpack.i.h.bf16 %v20841_v23  ;;  %20842 = vst [vmem:[#allocation118_spill] sm:$0xff] %v17438_v63  ;;  %v20843_v22 = vld [vmem:[#allocation52_spill] sm:$0xff]  ;;  %v20844_v26 = vld [vmem:[#allocation66_spill] sm:$0xff]  ;;  %20850 = vst [vmem:[#allocation31_spill] sm:$0xff] %v17455_v52 }
 0x9dc   : > { %20836 = vst [vmem:[#allocation59_spill] sm:$0xff] %v17424_v10  ;;  %20839 = vst [vmem:[#allocation117_spill] sm:$0xff] %v17431_v12  ;;  %11215 = vrot.lane.b32.xlu1 %v20840_v28, %s11380_s0  ;;  %v6763_v29 = vsel %vm6733_vm4, %v10948_v54, %v10962_v51  ;;  %v11239_v18 = vpack.i.bf16 %v17028_v33, %v20843_v22  ;;  %v17447_v45 = vmul.f32 %v20844_v26, %v17233_v31  ;;  %v20848_v48 = vld [vmem:[#allocation22_spill] sm:$0xff] }
 0x9dd   : > { %v20847_v8 = vunpack.i.h.bf16 %v16881_v17  ;;  %v20849_v47 = vunpack.i.h.bf16 %v20848_v48  ;;  %9169 = vmatprep.subr.bf16.mxu1 %v9168_v34  ;;  %v11244_v51 = vpack.i.bf16 %v17109_v40, %v20843_v22  ;;  %v10843_v62 = vunpack.i.h.bf16 %v17024_v21  ;;  %11235 = vrot.lane.b32.xlu0 %v17161_v4, %s11380_s0  ;;  %v20852_v10 = vld [vmem:[#allocation70_spill] sm:$0xff]  ;;  %v20855_v4 = vld [vmem:[#allocation69_spill] sm:$0xff] }
 0x9de   : > { %20845 = vst [vmem:[#allocation66_spill] sm:$0xff] %v17447_v45  ;;  %v10893_v12 = vunpack.i.h.bf16 %v17094_v58  ;;  %v20851_v26 = vunpack.i.l.bf16 %v17047_v11  ;;  %v20853_v34 = vunpack.i.h.bf16 %v20846_v27  ;;  %v20856_v11 = vunpack.i.l.bf16 %v17156_v60  ;;  %v20860_v60 = vld [vmem:[#allocation87_spill] sm:$0xff] }
 0x9df   : > { %v6736_v63 = vsel %vm6733_vm4, %v20849_v47, %v20847_v8  ;;  %v10922_v47 = vunpack.i.l.bf16 %v17195_v0  ;;  %v17478_v8 = vpop.permute.xlu0 %10990  ;;  %v20858_v23 = vunpack.i.h.bf16 %v20852_v10 }
 0x9e0   : > { %v9170_v31 = vpack.c.bf16 %v6749_v9, %v6736_v63  ;;  %v6896_v28 = vsel %vm6892_vm8, %v10768_v46, %v20851_v26  ;;  %v6762_v35 = vsel %vm6733_vm4, %v20853_v34, %v10948_v54  ;;  %11230 = vrot.lane.b32.xlu1 %v20854_v16, %s11373_s24  ;;  %v10937_v26 = vunpack.i.l.bf16 %v17264_v1  ;;  %v20857_v54 = vld [vmem:[#allocation30_spill] sm:$0xff]  ;;  %v17489_v9 = vpop.permute.xlu1 %10975 }
 0x9e1   : > { %v9172_v59 = vpack.c.bf16 %v6896_v28, %v6763_v29  ;;  %v6922_v15 = vsel %vm6892_vm8, %v10843_v62, %v20856_v11  ;;  %v6895_v16 = vsel %vm6892_vm8, %v20858_v23, %v10768_v46  ;;  %v10878_v29 = vunpack.i.h.bf16 %v17089_v13  ;;  %11245 = vrot.lane.b32.xlu0 %v11244_v51, %s11373_s24 }
 0x9e2   : > { %9171 = vmatpush1.bf16.msra.mxu1 %v9170_v31  ;;  %v10877_v28 = vunpack.i.l.bf16 %v17089_v13  ;;  %v10977_v63 = vunpack.i.l.bf16 %v17489_v9  ;;  %v9174_v11 = vpack.c.bf16 %v6895_v16, %v6762_v35  ;;  %v20859_v34 = vunpack.i.l.bf16 %v17024_v21 }
 0x9e3   : > { %9173 = vmatprep.subr.bf16.mxu1 %v9172_v59  ;;  %v10788_v23 = vunpack.i.h.bf16 %v20860_v60  ;;  %v20861_v46 = vunpack.i.l.bf16 %v20855_v4  ;;  %v7058_v31 = vsel %vm1750_vm13, %v10878_v29, %v10922_v47  ;;  %v17506_v51 = vsel %vm3215_vm15, %v20862_v53, %v10937_v26 }
 0x9e4   : > { %v6909_v20 = vsel %vm6892_vm8, %v10893_v12, %v20859_v34  ;;  %11240 = vrot.lane.b32.xlu1 %v11239_v18, %s11369_s2  ;;  %20863 = vst [vmem:[#allocation22_spill] sm:$0xff] %v17506_v51  ;;  %v20864_v21 = vunpack.i.h.bf16 %v17033_v2  ;;  %v17513_v34 = vpop.permute.xlu0 %11000  ;;  %v20871_v53 = vunpack.i.l.bf16 %v20857_v54  ;;  %v17530_v16 = vpop.permute.xlu1 %10985  ;;  %v10972_v60 = vunpack.i.l.bf16 %v17394_v44 }
 0x9e5   : > { %v6908_v13 = vsel %vm6892_vm8, %v20861_v46, %v10893_v12  ;;  %v9176_v59 = vpack.c.bf16 %v6922_v15, %v6909_v20  ;;  %20866 = vst [vmem:[#allocation69_spill] sm:$0xff] %v17513_v34  ;;  %v20867_v12 = vunpack.i.h.bf16 %v17264_v1  ;;  %v20869_v20 = vunpack.i.h.bf16 %v17489_v9  ;;  %20872 = vst [vmem:[#allocation121_spill] sm:$0xff] %v17530_v16  ;;  %v20873_v46 = vld [vmem:[#allocation54_spill] sm:$0xff]  ;;  %7039 = vrot.lane.b32.xlu0 %v17447_v45, %s11369_s2 }
 0x9e6   : > { %v17511_v35 = vsel %vm3215_vm15, %v20864_v21, %v10977_v63  ;;  %9175 = vmatpush1.bf16.msra.mxu1 %v9174_v11  ;;  %v6921_v2 = vsel %vm6892_vm8, %v20871_v53, %v10843_v62  ;;  %v11249_v11 = vpack.i.bf16 %v20843_v22, %v16618_v61  ;;  %v7046_v62 = vsel %vm1750_vm13, %v10788_v23, %v10877_v28 }
 0x9e7   : > { %20865 = vst [vmem:[#allocation70_spill] sm:$0xff] %v17511_v35  ;;  %v17518_v18 = vsel %vm3215_vm15, %v10937_v26, %v20867_v12  ;;  %v17523_v24 = vsel %vm3215_vm15, %v10977_v63, %v20869_v20  ;;  %9177 = vmatprep.subr.bf16.mxu1 %v9176_v59  ;;  %v5839_v63 = vmax.f32 %v20873_v46, %v17231_v7  ;;  %v20874_v12 = vld [vmem:[#allocation13_spill] sm:$0xff]  ;;  %v20875_v20 = vld [vmem:[#allocation76_spill] sm:$0xff]  ;;  %v20876_v59 = vld [vmem:[#allocation90_spill] sm:$0xff]  ;;  %v19834_v35 = vunpack.i.h.bf16 %v17195_v0 }
 0x9e8   : > { %20868 = vst [vmem:[#allocation119_spill] sm:$0xff] %v17518_v18  ;;  %20870 = vst [vmem:[#allocation120_spill] sm:$0xff] %v17523_v24  ;;  %v9178_v21 = vpack.c.bf16 %v6921_v2, %v6908_v13  ;;  %v5943_v53 = vsel %vm1750_vm13, %v20875_v20, %v20874_v12  ;;  %v20877_v15 = vunpack.i.h.bf16 %v20876_v59  ;;  %11250 = vrot.lane.b32.xlu1 %v11249_v11, %s11380_s0  ;;  %v17552_v13 = vpop.permute.xlu0 %11010  ;;  %v20879_v20 = vld [vmem:[#allocation83_spill] sm:$0xff]  ;;  %v20904_v59 = vunpack.i.l.bf16 %v17377_v50 }
 0x9e9   : > { %v9180_v26 = vpack.c.bf16 %v7058_v31, %v7046_v62  ;;  %v20878_v7 = vmax.f32 %v20786_v56, %v17193_v37  ;;  %v5956_v2 = vsel %vm1750_vm13, %v16682_v57, %v20874_v12  ;;  %v20880_v18 = vunpack.i.h.bf16 %v20879_v20  ;;  %7325 = vrot.lane.b32.xlu0 %v17028_v33, %s11380_s0 }
 0x9ea   : > { %v7057_v51 = vsel %vm1750_vm13, %v20877_v15, %v10878_v29  ;;  %9179 = vmatpush1.bf16.msra.mxu1 %v9178_v21  ;;  %v17560_v15 = vpop.permute.xlu1 %10995  ;;  %v11013_v11 = vunpack.i.h.bf16 %v17552_v13  ;;  %v6034_v31 = vmax.f32 %v5839_v63, %v5956_v2  ;;  %v17568_v56 = vsel %vm1750_vm13, %v10877_v28, %v19834_v35  ;;  %v20890_v2 = vld [vmem:[#allocation88_spill] sm:$0xff] }
 0x9eb   : > { %v6021_v46 = vmax.f32 %v20878_v7, %v5943_v53  ;;  %v7045_v29 = vsel %vm1750_vm13, %v20880_v18, %v10788_v23  ;;  %9181 = vmatprep.subr.bf16.mxu1 %v9180_v26  ;;  %20881 = vst [vmem:[#allocation54_spill] sm:$0xff] %v17568_v56  ;;  %v20883_v23 = vld [vmem:[#allocation71_spill] sm:$0xff]  ;;  %v19842_v62 = vunpack.i.l.bf16 %v16702_v3  ;;  %v20898_v26 = vunpack.i.l.bf16 %v17116_v5 }
 0x9ec   : > { %v9182_v37 = vpack.c.bf16 %v7057_v51, %v7045_v29  ;;  %v17571_v57 = vsel %vm1750_vm13, %v10922_v47, %v11013_v11  ;;  %7184 = vrot.lane.b32.xlu1 %v17447_v45, %s11373_s24  ;;  %v17580_v63 = vpop.permute.xlu0 %11020  ;;  %v19832_v51 = vunpack.i.h.bf16 %v17114_v41  ;;  %v17587_v47 = vmul.f32 %v20883_v23, %v6034_v31  ;;  %v20888_v53 = vld [vmem:[#allocation91_spill] sm:$0xff] }
 0x9ed   : > { %20882 = vst [vmem:[#allocation76_spill] sm:$0xff] %v17571_v57  ;;  %v17576_v18 = vmul.f32 %v20883_v23, %v6021_v46  ;;  %20885 = vst [vmem:[#allocation122_spill] sm:$0xff] %v17580_v63  ;;  %v19833_v28 = vunpack.i.l.bf16 %v17580_v63  ;;  %v10793_v7 = vunpack.i.h.bf16 %v20888_v53  ;;  %7329 = vrot.lane.b32.xlu0 %v17109_v40, %s11380_s0  ;;  %v19839_v29 = vunpack.i.h.bf16 %v20890_v2 }
 0x9ee   : > { %9183 = vmatpush1.bf16.msra.mxu1 %v9182_v37  ;;  %v17583_v21 = vpop.permute.xlu1 %11005  ;;  %20887 = vst [vmem:[#allocation124_spill] sm:$0xff] %v17587_v47  ;;  %v17624_v33 = vpack.i.bf16 %v17587_v47, %v17447_v45  ;;  %v10928_v40 = vunpack.i.h.bf16 %v17184_v36 }
 0x9ef   : > { %20884 = vst [vmem:[#allocation71_spill] sm:$0xff] %v17576_v18  ;;  %20886 = vst [vmem:[#allocation123_spill] sm:$0xff] %v17583_v21  ;;  %v17598_v46 = vsel %vm7335_vm6, %v19832_v51, %v19833_v28  ;;  %v17607_v37 = vpack.i.bf16 %v17576_v18, %v20843_v22  ;;  %v7190_v51 = vsel %vm4702_vm3, %v19839_v29, %v10793_v7  ;;  %v20892_v28 = vunpack.i.h.bf16 %v16702_v3 }
 0x9f0   : > { %20889 = vst [vmem:[#allocation125_spill] sm:$0xff] %v17598_v46  ;;  %7327 = vrot.lane.b32.xlu1 %v17020_v43, %s11380_s0  ;;  %v17603_v31 = vpop.permute.xlu0 %11025  ;;  %v20893_v43 = vld [vmem:[#allocation29_spill] sm:$0xff]  ;;  %v20894_v29 = vunpack.i.l.bf16 %v16807_v19  ;;  %v7191_v53 = vsel %vm4702_vm3, %v10793_v7, %v20898_v26  ;;  %v10927_v22 = vunpack.i.l.bf16 %v17184_v36  ;;  %v20900_v36 = vunpack.i.h.bf16 %v17394_v44 }
 0x9f1   : > { %11255 = vrot.lane.b32.xlu0 %v17607_v37, %s11371_s26  ;;  %v6274_v35 = vsel %vm3215_vm15, %v19842_v62, %v20892_v28  ;;  %v20895_v12 = vunpack.i.h.bf16 %v17603_v31  ;;  %v20896_v28 = vld [vmem:[#allocation41_spill] sm:$0xff]  ;;  %v10932_v62 = vunpack.i.l.bf16 %v17222_v14 }
 0x9f2   : > { %v17609_v23 = vpop.permute.xlu1 %11015  ;;  %v20899_v26 = vld [vmem:[#allocation57_spill] sm:$0xff]  ;;  %v17658_v7 = vsel %vm4702_vm3, %v10927_v22, %v20900_v36  ;;  %v20909_v36 = vunpack.i.h.bf16 %v17195_v0 }
 0x9f3   : > { %20891 = vst [vmem:[#allocation126_spill] sm:$0xff] %v17609_v23  ;;  %v11018_v57 = vunpack.i.h.bf16 %v17609_v23  ;;  %v6287_v24 = vsel %vm3215_vm15, %v20895_v12, %v20894_v29  ;;  %v10933_v29 = vunpack.i.h.bf16 %v17222_v14  ;;  %20901 = vst [vmem:[#allocation57_spill] sm:$0xff] %v17658_v7 }
 0x9f4   : > { %11265 = vrot.lane.b32.xlu1 %v17607_v37, %s11374_s25  ;;  %v17638_v61 = vpop.permute.xlu0 %11035  ;;  %v9100_v56 = vpack.c.bf16 %v6287_v24, %v6274_v35  ;;  %v20903_v24 = vunpack.i.h.bf16 %v20896_v28 }
 0x9f5   : > { %20897 = vst [vmem:[#allocation127_spill] sm:$0xff] %v17638_v61  ;;  %v19849_v12 = vunpack.i.h.bf16 %v17638_v61  ;;  %11260 = vrot.lane.b32.xlu0 %v20899_v26, %s11374_s25  ;;  %v7203_v14 = vsel %vm4702_vm3, %v11018_v57, %v10927_v22  ;;  %v10882_v22 = vunpack.i.l.bf16 %v17114_v41  ;;  %v20908_v61 = vunpack.i.l.bf16 %v17552_v13 }
 0x9f6   : > { %v17646_v20 = vpop.permute.xlu1 %11030  ;;  %9101 = vmatprep.subr.bf16.mxu0 %v9100_v56 }
 0x9f7   : > { %v11033_v35 = vunpack.i.h.bf16 %v17646_v20  ;;  %v17664_v5 = vsel %vm4702_vm3, %v10972_v60, %v19849_v12  ;;  %v20905_v12 = vunpack.i.l.bf16 %v17646_v20  ;;  %v17692_v7 = vsel %vm1750_vm13, %v20909_v36, %v20908_v61 }
 0x9f8   : > { %20902 = vst [vmem:[#allocation128_spill] sm:$0xff] %v17664_v5  ;;  %7331 = vrot.lane.b32.xlu1 %v17447_v45, %s11380_s0  ;;  %v17674_v44 = vpop.permute.xlu0 %11045  ;;  %20910 = vst [vmem:[#allocation131_spill] sm:$0xff] %v17692_v7  ;;  %v17823_v7 = vld [vmem:[%s19344_s9 + $0x10] sm:$0xff] }
 0x9f9   : > { %v7069_v56 = vsel %vm1750_vm13, %v20903_v24, %v11033_v35  ;;  %v7070_v2 = vsel %vm1750_vm13, %v11033_v35, %v20904_v59  ;;  %v17682_v54 = vsel %vm1750_vm13, %v11013_v11, %v20905_v12  ;;  %11280 = vrot.lane.b32.xlu0 %v17607_v37, %s11378_s23  ;;  %v7215_v11 = vsel %vm4702_vm3, %v10928_v40, %v10972_v60 }
 0x9fa   : > { %20906 = vst [vmem:[#allocation129_spill] sm:$0xff] %v17682_v54  ;;  %v9186_v45 = vpack.c.bf16 %v7190_v51, %v7069_v56  ;;  %v17685_v28 = vpop.permute.xlu1 %11040  ;;  %v9184_v24 = vpack.c.bf16 %v7191_v53, %v7070_v2  ;;  %v20911_v53 = vld [vmem:[#allocation94_spill] sm:$0xff]  ;;  %v20912_v12 = vunpack.i.l.bf16 %v20893_v43  ;;  %v9188_v61 = vpack.c.bf16 %v7215_v11, %v7203_v14 }
 0x9fb   : > { %20907 = vst [vmem:[#allocation130_spill] sm:$0xff] %v17685_v28  ;;  %v11042_v35 = vunpack.i.l.bf16 %v17685_v28  ;;  %v7351_v60 = vsel %vm7335_vm6, %v10932_v62, %v10933_v29  ;;  %v20914_v51 = vunpack.i.h.bf16 %v17580_v63  ;;  %v20915_v2 = vunpack.i.l.bf16 %v17580_v63 }
 0x9fc   : > { %v7202_v0 = vsel %vm4702_vm3, %v20912_v12, %v11018_v57  ;;  %11270 = vrot.lane.b32.xlu1 %v17624_v33, %s11371_s26  ;;  %9185 = vmatprep.subr.bf16.mxu1 %v9184_v24  ;;  %v17710_v36 = vpop.permute.xlu0 %11050  ;;  %v20917_v57 = vunpack.i.h.bf16 %v17685_v28  ;;  %v20919_v14 = vunpack.i.l.bf16 %v20911_v53 }
 0x9fd   : > { %v17708_v56 = vsel %vm7335_vm6, %v10933_v29, %v11042_v35  ;;  %9187 = vmatpush1.bf16.msra.mxu1 %v9186_v45  ;;  %v17718_v59 = vsel %vm7335_vm6, %v20915_v2, %v20914_v51  ;;  %v19858_v51 = vunpack.i.l.bf16 %v17609_v23  ;;  %11285 = vrot.lane.b32.xlu0 %v17624_v33, %s11374_s25 }
 0x9fe   : > { %20913 = vst [vmem:[#allocation132_spill] sm:$0xff] %v17708_v56  ;;  %20916 = vst [vmem:[#allocation133_spill] sm:$0xff] %v17718_v59  ;;  %v17723_v24 = vsel %vm7335_vm6, %v11042_v35, %v20917_v57  ;;  %v7214_v45 = vsel %vm4702_vm3, %v20919_v14, %v10928_v40  ;;  %v17730_v29 = vpop.permute.xlu1 %11060  ;;  %9189 = vmatprep.subr.bf16.mxu1 %v9188_v61  ;;  %v20921_v35 = vunpack.i.h.bf16 %v17114_v41  ;;  %v20922_v57 = vld [vmem:[#allocation33_spill] sm:$0xff]  ;;  %v20925_v41 = vld [vmem:[#allocation86_spill] sm:$0xff] }
 0x9ff   : > { %20918 = vst [vmem:[#allocation134_spill] sm:$0xff] %v17723_v24  ;;  %20920 = vst [vmem:[#allocation135_spill] sm:$0xff] %v17730_v29  ;;  %v9190_v2 = vpack.c.bf16 %v7214_v45, %v7202_v0  ;;  %v19859_v5 = vunpack.i.h.bf16 %v17730_v29  ;;  %v20923_v14 = vunpack.i.h.bf16 %v20922_v57  ;;  %v20936_v56 = vld [vmem:[#allocation60_spill] sm:$0xff]  ;;  %v20958_v29 = vunpack.i.h.bf16 %v17560_v15 }
 0xa00   : > { %v7339_v40 = vsel %vm7335_vm6, %v10882_v22, %v20921_v35  ;;  %11275 = vrot.lane.b32.xlu1 %v20899_v26, %s11378_s23  ;;  %v17753_v45 = vpop.permute.xlu0 %11055  ;;  %v20926_v35 = vunpack.i.h.bf16 %v20925_v41  ;;  %v20946_v41 = vunpack.i.l.bf16 %v17530_v16 }
 0xa01   : > { %v7350_v11 = vsel %vm7335_vm6, %v20923_v14, %v10932_v62  ;;  %v9192_v61 = vpack.c.bf16 %v7351_v60, %v7339_v40  ;;  %v17751_v0 = vsel %vm4702_vm3, %v19858_v51, %v19859_v5  ;;  %9191 = vmatpush1.bf16.msra.mxu1 %v9190_v2  ;;  %v19860_v62 = vunpack.i.h.bf16 %v17753_v45 }
 0xa02   : > { %20924 = vst [vmem:[#allocation136_spill] sm:$0xff] %v17751_v0  ;;  %v7338_v12 = vsel %vm7335_vm6, %v20926_v35, %v10882_v22  ;;  %v17758_v46 = vpop.permute.xlu1 %7323  ;;  %v20928_v60 = vmov 0.0   ;;  %v20929_v14 = vunpack.i.l.bf16 %v17552_v13  ;;  %v20930_v35 = vld [vmem:[#allocation37_spill] sm:$0xff]  ;;  %v20957_v0 = vunpack.i.l.bf16 %v17130_v49 }
 0xa03   : > { %20927 = vst [vmem:[#allocation137_spill] sm:$0xff] %v17758_v46  ;;  %9193 = vmatprep.subr.bf16.mxu1 %v9192_v61  ;;  %6520 = vrot.lane.b32.xlu0 %v20928_v60, %s11378_s23  ;;  %v9194_v40 = vpack.c.bf16 %v7350_v11, %v7338_v12  ;;  %v7363_v61 = vsel %vm7335_vm6, %v20930_v35, %v17455_v52  ;;  %v19866_v11 = vunpack.i.l.bf16 %v17674_v44  ;;  %v17786_v12 = vld [vmem:[%s19344_s9] sm:$0xff]  ;;  %v20960_v49 = vunpack.i.h.bf16 %v17264_v1 }
 0xa04   : > { %v17768_v2 = vsel %vm1750_vm13, %v20929_v14, %v19860_v62  ;;  %11290 = vrot.lane.b32.xlu1 %v20899_v26, %s11377_s19  ;;  %v17772_v22 = vpop.permute.xlu0 %11065  ;;  %20931 = vst [vmem:[#allocation37_spill] sm:$0xff] %v17786_v12  ;;  %v17805_v62 = vld [vmem:[%s19344_s9 + $0x18] sm:$0xff] }
 0xa05   : > { %9195 = vmatpush1.bf16.msra.mxu1 %v9194_v40  ;;  %v20932_v40 = vld [vmem:[#allocation18_spill] sm:$0xff]  ;;  %20934 = vst [vmem:[#allocation139_spill] sm:$0xff] %v17805_v62 }
 0xa06   : > { %v17777_v51 = vpop.permute.xlu1 %11085  ;;  %7577 = vmatprep.subr.mxu1 %v7363_v61  ;;  %v7362_v14 = vsel %vm7335_vm6, %v20932_v40, %v20930_v35  ;;  %v20935_v35 = vld [vmem:[#allocation47_spill] sm:$0xff]  ;;  %v20953_v46 = vld [vmem:[#allocation42_spill] sm:$0xff] }
 0xa07   : > { %v19865_v13 = vunpack.i.h.bf16 %v17777_v51  ;;  %11295 = vrot.lane.b32.xlu0 %v17607_v37, %s11377_s19  ;;  %v20937_v59 = vpack.c.bf16 %v20935_v35, %v20936_v56  ;;  %20941 = vst [vmem:[#allocation47_spill] sm:$0xff] %v17823_v7 }
 0xa08   : > { %11305 = vrot.lane.b32.xlu1 %v17624_v33, %s11378_s23  ;;  %v17800_v5 = vpop.permute.xlu0 %11070 }
 0xa09   : > { %v17798_v61 = vsel %vm4809_vm2, %v19866_v11, %v19865_v13  ;;  %7578 = vmatpush1.msra.mxu1 %v7362_v14  ;;  %v20938_v14 = vld [vmem:[#allocation16_spill] sm:$0xff]  ;;  %v20939_v11 = vld [vmem:[#allocation19_spill] sm:$0xff] }
 0xa0a   : > { %20933 = vst [vmem:[#allocation138_spill] sm:$0xff] %v17798_v61  ;;  %v17807_v52 = vpop.permute.xlu1 %11090  ;;  %7590 = vmatmul.mubr.f32.vlgmr.msra.gmra.mrb[60].mxu1 %v17786_v12  ;;  %9249 = vmatprep.subr.bf16.mxu1 %v20937_v59  ;;  %v20940_v23 = vpack.c.bf16 %v20938_v14, %v20939_v11  ;;  %v17832_v59 = vld [vmem:[%s19344_s9 + $0x28] sm:$0xff]  ;;  %v10988_v11 = vunpack.i.h.bf16 %v17530_v16  ;;  %v19876_v14 = vunpack.i.l.bf16 %v17710_v36  ;;  %v20951_v12 = vld [vmem:[#allocation77_spill] sm:$0xff]  ;;  %v20954_v61 = vld [vmem:[#allocation102_spill] sm:$0xff] }
 0xa0b   : > { %v19870_v24 = vunpack.i.h.bf16 %v17807_v52  ;;  %v19871_v13 = vunpack.i.l.bf16 %v17807_v52  ;;  %11300 = vrot.lane.b32.xlu0 %v20899_v26, %s11379_s28  ;;  %8326 = vmatprep.mubr.msk.f32.mxu1 %vm4702_vm3, %v17805_v62  ;;  %20942 = vst [vmem:[#allocation60_spill] sm:$0xff] %v17832_v59 }
 0xa0c   : > { %9251 = vmatpush1.bf16.msra.mxu1 %v20940_v23  ;;  %6679 = vrot.lane.b32.xlu1 %v20928_v60, %s11377_s19  ;;  %v17841_v26 = vpop.permute.xlu0 %11075 }
 0xa0d   : > { %v17839_v23 = vsel %vm6574_vm7, %v19871_v13, %v19870_v24  ;;  %v17857_v24 = vld [vmem:[%s19344_s9 + $0x20] sm:$0xff] }
 0xa0e   : > { %20943 = vst [vmem:[#allocation16_spill] sm:$0xff] %v17839_v23  ;;  %v17843_v56 = vpop.permute.xlu1 %11095  ;;  %7596 = vmatmul.mubr.f32.gmra.mrb[62].mxu1 %v17823_v7  ;;  %20944 = vst [vmem:[#allocation19_spill] sm:$0xff] %v17857_v24  ;;  %v20982_v23 = vunpack.i.l.bf16 %v17478_v8 }
 0xa0f   : > { %v19875_v54 = vunpack.i.h.bf16 %v17843_v56  ;;  %11310 = vrot.lane.b32.xlu0 %v17607_v37, %s11379_s28  ;;  %8327 = vmatprep.mubr.msk.f32.mxu1 %vm4702_vm3, %v17832_v59  ;;  %v6266_v59 = vsel %vm3215_vm15, %v20946_v41, %v10988_v11  ;;  %v20955_v63 = vunpack.i.l.bf16 %v17843_v56 }
 0xa10   : > { %11315 = vrot.lane.b32.xlu1 %v17624_v33, %s11377_s19  ;;  %v17868_v35 = vpop.permute.xlu0 %11080  ;;  %v9254_v43 = vpack.c.bf16 %v6266_v59, %v20951_v12  ;;  %v11334_v12 = vpack.i.bf16 %v20928_v60, %v16678_v42 }
 0xa11   : > { %v17866_v13 = vsel %vm6733_vm4, %v19876_v14, %v19875_v54  ;;  %v19883_v50 = vunpack.i.h.bf16 %v17868_v35  ;;  %v11082_v40 = vunpack.i.l.bf16 %v17868_v35  ;;  %v17885_v54 = vld [vmem:[%s19344_s9 + $0x8] sm:$0xff] }
 0xa12   : > { %20945 = vst [vmem:[#allocation140_spill] sm:$0xff] %v17866_v13  ;;  %v17870_v37 = vpop.permute.xlu1 %11100  ;;  %7602 = vmatmul.mubr.f32.gmra.mrb[64].mxu1 %v17857_v24  ;;  %20947 = vst [vmem:[#allocation141_spill] sm:$0xff] %v17885_v54 }
 0xa13   : > { %v19885_v57 = vunpack.i.h.bf16 %v17870_v37  ;;  %v19884_v7 = vunpack.i.l.bf16 %v17870_v37  ;;  %6838 = vrot.lane.b32.xlu0 %v20928_v60, %s11379_s28  ;;  %8331 = vmatprep.mubr.msk.f32.mxu1 %vm4702_vm3, %v17885_v54  ;;  %v17892_v14 = vsel %vm3215_vm15, %v11082_v40, %v19883_v50  ;;  %v6267_v41 = vsel %vm3215_vm15, %v10988_v11, %v11082_v40  ;;  %v20950_v54 = vld [vmem:[#allocation85_spill] sm:$0xff] }
 0xa14   : > { %20948 = vst [vmem:[#allocation142_spill] sm:$0xff] %v17892_v14  ;;  %11320 = vrot.lane.b32.xlu1 %v17624_v33, %s11379_s28  ;;  %v17904_v24 = vpop.permute.xlu0 %11120  ;;  %v9252_v62 = vpack.c.bf16 %v6267_v41, %v20950_v54  ;;  %v11087_v50 = vunpack.i.l.bf16 %v17777_v51  ;;  %v11324_v40 = vpack.i.bf16 %v17576_v18, %v16678_v42  ;;  %v10993_v54 = vunpack.i.h.bf16 %v17478_v8  ;;  %s573_s28 = scalar_lea.vmem %s19353_s18, %s21371_s30 }
 0xa15   : > { %v17902_v16 = vsel %vm6892_vm8, %v19884_v7, %v19885_v57  ;;  %v19886_v33 = vunpack.i.h.bf16 %v17904_v24  ;;  %v11027_v7 = vunpack.i.l.bf16 %v17603_v31 }
 0xa16   : > { %20949 = vst [vmem:[#allocation143_spill] sm:$0xff] %v17902_v16  ;;  %v17909_v14 = vpop.permute.xlu1 %11105  ;;  %9253 = vmatprep.subr.bf16.mxu1 %v9252_v62  ;;  %v11067_v62 = vunpack.i.l.bf16 %v17772_v22  ;;  %v17954_v60 = vsel %vm4809_vm2, %v20957_v0, %v10993_v54 }
 0xa17   : > { %7041 = vrot.lane.b32.xlu0 %v17587_v47, %s11369_s2  ;;  %v17919_v11 = vsel %vm4809_vm2, %v11087_v50, %v19886_v33  ;;  %9255 = vmatpush1.bf16.msra.mxu1 %v9254_v43  ;;  %v11048_v43 = vunpack.i.h.bf16 %v17674_v44  ;;  %v6279_v0 = vsel %vm3215_vm15, %v20960_v49, %v11027_v7  ;;  %v20963_v49 = vunpack.i.h.bf16 %v17489_v9 }
 0xa18   : > { %20952 = vst [vmem:[#allocation85_spill] sm:$0xff] %v17919_v11  ;;  %11325 = vrot.lane.b32.xlu1 %v11324_v40, %s11369_s2  ;;  %v17925_v59 = vpop.permute.xlu0 %11130  ;;  %v11068_v11 = vunpack.i.h.bf16 %v17772_v22  ;;  %v20961_v22 = vunpack.i.l.bf16 %v17301_v25  ;;  %v7415_v25 = vld [vmem:[%s19345_s10] sm:$0xff] }
 0xa19   : > { %v19897_v33 = vunpack.i.h.bf16 %v17925_v59  ;;  %v6436_v41 = vsel %vm4809_vm2, %v11048_v43, %v11087_v50 }
 0xa1a   : > { %v17930_v57 = vpop.permute.xlu1 %11110  ;;  %v6435_v13 = vsel %vm4809_vm2, %v20961_v22, %v11048_v43  ;;  %v6280_v22 = vsel %vm3215_vm15, %v11027_v7, %v11067_v62 }
 0xa1b   : > { %7186 = vrot.lane.b32.xlu0 %v17587_v47, %s11373_s24  ;;  %v17947_v53 = vsel %vm6733_vm4, %v20955_v63, %v19897_v33  ;;  %v20959_v63 = vunpack.i.l.bf16 %v20953_v46  ;;  %v6292_v33 = vsel %vm3215_vm15, %v20963_v49, %v11068_v11 }
 0xa1c   : > { %20956 = vst [vmem:[#allocation77_spill] sm:$0xff] %v17947_v53  ;;  %11330 = vrot.lane.b32.xlu1 %v11324_v40, %s11373_s24  ;;  %v17959_v42 = vpop.permute.xlu0 %11145 }
 0xa1d   : > { %v17966_v40 = vsel %vm6574_vm7, %v20959_v63, %v20958_v29  ;;  %v20962_v29 = vunpack.i.l.bf16 %v17674_v44  ;;  %v11073_v44 = vunpack.i.h.bf16 %v17800_v5  ;;  %v20965_v9 = vunpack.i.h.bf16 %v17959_v42 }
 0xa1e   : > { %v17972_v28 = vpop.permute.xlu1 %11115 }
 0xa1f   : > { %v19901_v53 = vunpack.i.h.bf16 %v17972_v28  ;;  %v11117_v46 = vunpack.i.l.bf16 %v17972_v28  ;;  %7309 = vrot.lane.b32.xlu0 %v17576_v18, %s11380_s0  ;;  %v6423_v1 = vsel %vm4809_vm2, %v10993_v54, %v20962_v29  ;;  %v11072_v18 = vunpack.i.l.bf16 %v17800_v5  ;;  %v7417_v5 = vld [vmem:[%s19345_s10 + $0x10] sm:$0xff] }
 0xa20   : > { %11335 = vrot.lane.b32.xlu1 %v11334_v12, %s11380_s0  ;;  %v18006_v12 = vpop.permute.xlu0 %11150 }
 0xa21   : > { %v17999_v54 = vsel %vm3215_vm15, %v11067_v62, %v19901_v53  ;;  %v18004_v29 = vsel %vm3215_vm15, %v11117_v46, %v20965_v9  ;;  %v6293_v49 = vsel %vm3215_vm15, %v11068_v11, %v11117_v46  ;;  %v19904_v43 = vunpack.i.h.bf16 %v18006_v12 }
 0xa22   : > { %20964 = vst [vmem:[#allocation144_spill] sm:$0xff] %v17999_v54  ;;  %20966 = vst [vmem:[#allocation145_spill] sm:$0xff] %v18004_v29  ;;  %v18011_v50 = vpop.permute.xlu1 %11125  ;;  %v11152_v63 = vunpack.i.l.bf16 %v18006_v12  ;;  %v9256_v62 = vpack.c.bf16 %v6293_v49, %v6280_v22  ;;  %v9258_v53 = vpack.c.bf16 %v6292_v33, %v6279_v0  ;;  %v11108_v46 = vunpack.i.h.bf16 %v17909_v14 }
 0xa23   : > { %v19905_v17 = vunpack.i.h.bf16 %v18011_v50  ;;  %7420 = vperm.xlu0 %9477, %v7415_v25   ;;  %v11127_v11 = vunpack.i.l.bf16 %v18011_v50  ;;  %v9260_v33 = vpack.c.bf16 %v6436_v41, %v6423_v1  ;;  %v9262_v0 = vpack.c.bf16 %v6435_v13, %v17954_v60  ;;  %v7416_v60 = vld [vmem:[%s19345_s10 + $0x8] sm:$0xff] }
 0xa24   : > { %v18023_v7 = vsel %vm4809_vm2, %v11152_v63, %v19904_v43  ;;  %7333 = vrot.lane.b32.xlu1 %v17587_v47, %s11380_s0  ;;  %9257 = vmatprep.subr.bf16.mxu1 %v9256_v62  ;;  %v20968_v25 = vunpack.i.h.bf16 %v17710_v36  ;;  %v20969_v22 = vunpack.i.l.bf16 %v17348_v32  ;;  %v18045_v1 = vpop.permute.xlu0 %11155  ;;  %v20971_v32 = vunpack.i.l.bf16 %v17560_v15 }
 0xa25   : > { %20967 = vst [vmem:[#allocation146_spill] sm:$0xff] %v18023_v7  ;;  %v18041_v43 = vsel %vm6574_vm7, %v11072_v18, %v19905_v17  ;;  %9259 = vmatpush1.bf16.msra.mxu1 %v9258_v53  ;;  %v20973_v41 = vunpack.i.h.bf16 %v17560_v15  ;;  %v20974_v17 = vunpack.i.l.bf16 %v17710_v36  ;;  %v20975_v9 = vunpack.i.h.bf16 %v17513_v34 }
 0xa26   : > { %v18036_v49 = vsel %vm6733_vm4, %v20969_v22, %v20968_v25  ;;  %20970 = vst [vmem:[#allocation147_spill] sm:$0xff] %v18041_v43  ;;  %v6607_v13 = vsel %vm6574_vm7, %v20971_v32, %v11073_v44  ;;  %v18053_v62 = vpop.permute.xlu1 %11135  ;;  %9261 = vmatprep.subr.bf16.mxu1 %v9260_v33  ;;  %v20972_v22 = vunpack.i.l.bf16 %v17807_v52  ;;  %v20976_v33 = vunpack.i.l.bf16 %v17904_v24 }
 0xa27   : > { %v6741_v47 = vsel %vm6733_vm4, %v20975_v9, %v20974_v17  ;;  %v11138_v32 = vunpack.i.h.bf16 %v18053_v62  ;;  %7430 = vperm.xlu0 %9477, %v7417_v5   ;;  %v20977_v25 = vunpack.i.h.bf16 %v17777_v51  ;;  %v20980_v9 = vunpack.i.h.bf16 %v18045_v1 }
 0xa28   : > { %v6582_v53 = vsel %vm6574_vm7, %v20973_v41, %v20972_v22  ;;  %v20979_v41 = vunpack.i.l.bf16 %v20954_v61  ;;  %7425 = vperm.xlu1 %9723, %v7416_v60   ;;  %v6608_v5 = vsel %vm6574_vm7, %v11073_v44, %v11127_v11  ;;  %v20983_v17 = vunpack.i.l.bf16 %v18053_v62 }
 0xa29   : > { %v18074_v54 = vsel %vm4809_vm2, %v20977_v25, %v20976_v33  ;;  %v18083_v7 = vsel %vm6574_vm7, %v11127_v11, %v20980_v9  ;;  %v6448_v51 = vsel %vm4809_vm2, %v20982_v23, %v11138_v32  ;;  %9263 = vmatpush1.bf16.msra.mxu1 %v9262_v0  ;;  %v11161_v33 = vpop.permute.xlu0 %11160  ;;  %v20984_v29 = vunpack.i.h.bf16 %v17904_v24 }
 0xa2a   : > { %20978 = vst [vmem:[#allocation148_spill] sm:$0xff] %v18074_v54  ;;  %v6594_v22 = vsel %vm6574_vm7, %v20979_v41, %v11108_v46  ;;  %20981 = vst [vmem:[#allocation149_spill] sm:$0xff] %v18083_v7  ;;  %v6449_v41 = vsel %vm4809_vm2, %v11138_v32, %v11152_v63  ;;  %v9266_v44 = vpack.c.bf16 %v17966_v40, %v6448_v51  ;;  %v18100_v11 = vpop.permute.xlu1 %11140  ;;  %v11163_v60 = vunpack.i.h.bf16 %v11161_v33 }
 0xa2b   : > { %v18097_v9 = vsel %vm4809_vm2, %v20984_v29, %v20983_v17  ;;  %v11162_v23 = vunpack.i.l.bf16 %v11161_v33  ;;  %v9264_v61 = vpack.c.bf16 %v6582_v53, %v6449_v41  ;;  %v19914_v25 = vunpack.i.l.bf16 %v17959_v42 }
 0xa2c   : > { %20985 = vst [vmem:[#allocation150_spill] sm:$0xff] %v18097_v9  ;;  %v19913_v0 = vunpack.i.l.bf16 %v18100_v11  ;;  %v6595_v63 = vsel %vm6574_vm7, %v11108_v46, %v11072_v18  ;;  %v20987_v40 = vunpack.i.l.bf16 %v17909_v14  ;;  %v20988_v29 = vunpack.i.h.bf16 %v17807_v52 }
 0xa2d   : > { %v18108_v43 = vsel %vm6733_vm4, %v11162_v23, %v11163_v60  ;;  %9265 = vmatprep.subr.bf16.mxu1 %v9264_v61  ;;  %v9268_v53 = vpack.c.bf16 %v6608_v5, %v6595_v63  ;;  %v20990_v51 = vunpack.i.l.bf16 %v17843_v56  ;;  %v20991_v33 = vunpack.i.h.bf16 %v17710_v36  ;;  %v18125_v61 = vpop.permute.xlu0 %6410 }
 0xa2e   : > { %20986 = vst [vmem:[#allocation151_spill] sm:$0xff] %v18108_v43  ;;  %v18115_v17 = vsel %vm6574_vm7, %v20988_v29, %v20987_v40  ;;  %v11143_v46 = vunpack.i.h.bf16 %v18100_v11  ;;  %9267 = vmatpush1.bf16.msra.mxu1 %v9266_v44  ;;  %v20992_v52 = vunpack.i.l.bf16 %v17925_v59  ;;  %v20993_v40 = vunpack.i.h.bf16 %v17843_v56  ;;  %v18142_v44 = vpop.permute.xlu1 %6254 }
 0xa2f   : > { %20989 = vst [vmem:[#allocation152_spill] sm:$0xff] %v18115_v17  ;;  %v6754_v18 = vsel %vm6733_vm4, %v20991_v33, %v20990_v51  ;;  %v20995_v36 = vunpack.i.h.bf16 %v17925_v59  ;;  %v9270_v29 = vpack.c.bf16 %v6607_v13, %v6594_v22  ;;  %v19915_v51 = vunpack.i.l.bf16 %v17930_v57  ;;  %9269 = vmatprep.subr.bf16.mxu1 %v9268_v53 }
 0xa30   : > { %v18132_v5 = vsel %vm6733_vm4, %v20993_v40, %v20992_v52  ;;  %v20997_v33 = vunpack.i.h.bf16 %v18006_v12  ;;  %v20999_v13 = vunpack.i.h.bf16 %v17972_v28  ;;  %v9272_v41 = vpack.c.bf16 %v6754_v18, %v6741_v47 }
 0xa31   : > { %20994 = vst [vmem:[#allocation153_spill] sm:$0xff] %v18132_v5  ;;  %v18139_v63 = vsel %vm6733_vm4, %v20995_v36, %v19913_v0  ;;  %v21001_v36 = vunpack.i.h.bf16 %v17959_v42  ;;  %v21003_v52 = vunpack.i.h.bf16 %v17513_v34  ;;  %v21004_v28 = vunpack.i.l.bf16 %v17150_v38  ;;  %v18176_v0 = vpop.permute.xlu0 %6727 }
 0xa32   : > { %20996 = vst [vmem:[#allocation154_spill] sm:$0xff] %v18139_v63  ;;  %v18148_v56 = vsel %vm4809_vm2, %v20997_v33, %v18125_v61  ;;  %v18158_v22 = vsel %vm3215_vm15, %v20999_v13, %v19914_v25  ;;  %v11008_v32 = vunpack.i.h.bf16 %v17583_v21  ;;  %9271 = vmatpush1.bf16.msra.mxu1 %v9270_v29  ;;  %v19917_v25 = vunpack.i.l.bf16 %v17513_v34  ;;  %v18181_v40 = vpop.permute.xlu1 %6568 }
 0xa33   : > { %20998 = vst [vmem:[#allocation155_spill] sm:$0xff] %v18148_v56  ;;  %21000 = vst [vmem:[#allocation156_spill] sm:$0xff] %v18158_v22  ;;  %v18164_v12 = vsel %vm3215_vm15, %v21001_v36, %v18142_v44  ;;  %v6740_v13 = vsel %vm6733_vm4, %v21004_v28, %v21003_v52  ;;  %v6767_v36 = vsel %vm6733_vm4, %v11143_v46, %v11162_v23  ;;  %v21005_v47 = vunpack.i.h.bf16 %v17870_v37 }
 0xa34   : > { %21002 = vst [vmem:[#allocation157_spill] sm:$0xff] %v18164_v12  ;;  %v9274_v53 = vpack.c.bf16 %v18036_v49, %v6740_v13  ;;  %v18192_v18 = vsel %vm6733_vm4, %v11163_v60, %v18176_v0  ;;  %9273 = vmatprep.subr.bf16.mxu1 %v9272_v41  ;;  %v21008_v23 = vunpack.i.l.bf16 %v18045_v1  ;;  %v21009_v29 = vunpack.i.h.bf16 %v18011_v50 }
 0xa35   : > { %v18188_v38 = vsel %vm6892_vm8, %v21005_v47, %v19915_v51  ;;  %21007 = vst [vmem:[#allocation159_spill] sm:$0xff] %v18192_v18  ;;  %v21011_v52 = vunpack.i.h.bf16 %v18045_v1  ;;  %v21013_v60 = vunpack.i.l.bf16 %v17870_v37  ;;  %v19916_v47 = vunpack.i.l.bf16 %v17094_v58 }
 0xa36   : > { %21006 = vst [vmem:[#allocation158_spill] sm:$0xff] %v18188_v38  ;;  %v18199_v49 = vsel %vm6574_vm7, %v21009_v29, %v21008_v23  ;;  %v6766_v50 = vsel %vm6733_vm4, %v19917_v25, %v11143_v46  ;;  %9275 = vmatpush1.bf16.msra.mxu1 %v9274_v53  ;;  %v18223_v37 = vpop.permute.xlu1 %11165  ;;  %v11113_v51 = vunpack.i.h.bf16 %v17930_v57  ;;  %v21014_v53 = vunpack.i.h.bf16 %v17868_v35 }
 0xa37   : > { %21010 = vst [vmem:[#allocation160_spill] sm:$0xff] %v18199_v49  ;;  %v18205_v28 = vsel %vm6574_vm7, %v21011_v52, %v18181_v40  ;;  %v6900_v41 = vsel %vm6892_vm8, %v11008_v32, %v21013_v60  ;;  %v18218_v52 = vpop.permute.xlu0 %11175  ;;  %v6899_v13 = vsel %vm6892_vm8, %v19916_v47, %v11008_v32  ;;  %v19918_v33 = vunpack.i.l.bf16 %v18223_v37 }
 0xa38   : > { %21012 = vst [vmem:[#allocation161_spill] sm:$0xff] %v18205_v28  ;;  %v9276_v29 = vpack.c.bf16 %v6900_v41, %v6767_v36  ;;  %v9278_v60 = vpack.c.bf16 %v6899_v13, %v6766_v50  ;;  %v19921_v41 = vunpack.i.l.bf16 %v17335_v30  ;;  %v11078_v32 = vunpack.i.h.bf16 %v17841_v26  ;;  %v21033_v28 = vld [vmem:[#allocation62_spill] sm:$0xff] }
 0xa39   : > { %v18232_v36 = vsel %vm3215_vm15, %v21014_v53, %v19918_v33  ;;  %v11077_v13 = vunpack.i.l.bf16 %v17841_v26  ;;  %v11178_v50 = vunpack.i.h.bf16 %v18218_v52  ;;  %v21018_v18 = vunpack.i.l.bf16 %v17583_v21 }
 0xa3a   : > { %9277 = vmatprep.subr.bf16.mxu1 %v9276_v29  ;;  %21015 = vst [vmem:[#allocation162_spill] sm:$0xff] %v18232_v36  ;;  %v11171_v23 = vpop.permute.xlu1 %11170  ;;  %v6912_v35 = vsel %vm6892_vm8, %v19921_v41, %v11113_v51  ;;  %v21019_v5 = vunpack.i.l.bf16 %v18218_v52  ;;  %v21026_v41 = vld [vmem:[#allocation78_spill] sm:$0xff]  ;;  %v21032_v49 = vunpack.i.h.bf16 %v17753_v45  ;;  %v21034_v56 = vunpack.i.l.bf16 %v21033_v28 }
 0xa3b   : > { %9279 = vmatpush1.bf16.msra.mxu1 %v9278_v60  ;;  %v11181_v46 = vpop.permute.xlu0 %11180  ;;  %v11173_v29 = vunpack.i.h.bf16 %v11171_v23  ;;  %v11172_v47 = vunpack.i.l.bf16 %v11171_v23  ;;  %v6913_v26 = vsel %vm6892_vm8, %v11113_v51, %v11077_v13  ;;  %v6925_v38 = vsel %vm6892_vm8, %v21018_v18, %v11078_v32 }
 0xa3c   : > { %v9282_v23 = vpack.c.bf16 %v6925_v38, %v6912_v35  ;;  %v11183_v16 = vunpack.i.h.bf16 %v11181_v46  ;;  %v21052_v21 = vunpack.i.l.bf16 %v20846_v27 }
 0xa3d   : > { %v18244_v25 = vsel %vm6892_vm8, %v11077_v13, %v11173_v29  ;;  %v18247_v33 = vsel %vm6892_vm8, %v11172_v47, %v11178_v50  ;;  %v6926_v53 = vsel %vm6892_vm8, %v11078_v32, %v11172_v47  ;;  %v18265_v63 = vsel %vm6892_vm8, %v11173_v29, %v21019_v5  ;;  %v21025_v29 = vld [vmem:[#allocation72_spill] sm:$0xff] }
 0xa3e   : > { %21016 = vst [vmem:[#allocation163_spill] sm:$0xff] %v18244_v25  ;;  %21017 = vst [vmem:[#allocation164_spill] sm:$0xff] %v18247_v33  ;;  %v18254_v60 = vpop.permute.xlu1 %6886  ;;  %v9280_v13 = vpack.c.bf16 %v6926_v53, %v6913_v26  ;;  %v11182_v32 = vunpack.i.l.bf16 %v11181_v46  ;;  %v10638_v38 = vunpack.i.h.bf16 %v21025_v29  ;;  %v10643_v33 = vunpack.i.h.bf16 %v21026_v41 }
 0xa3f   : > { %v18249_v43 = vpop.permute.xlu0 %11190  ;;  %21020 = vst [vmem:[#allocation165_spill] sm:$0xff] %v18265_v63  ;;  %v18269_v51 = vsel %vm6892_vm8, %v11178_v50, %v18254_v60  ;;  %v10637_v50 = vunpack.i.l.bf16 %v21025_v29  ;;  %v21027_v63 = vld [vmem:[#allocation17_spill] sm:$0xff] }
 0xa40   : > { %21021 = vst [vmem:[#allocation166_spill] sm:$0xff] %v18269_v51  ;;  %v21022_v47 = vunpack.i.h.bf16 %v18249_v43  ;;  %v21023_v25 = vunpack.i.l.bf16 %v18249_v43  ;;  %9281 = vmatprep.subr.bf16.mxu1 %v9280_v13  ;;  %v21029_v13 = vld [vmem:[#allocation58_spill] sm:$0xff]  ;;  %v21030_v51 = vunpack.i.l.bf16 %v17646_v20  ;;  %v18313_v20 = vsel %vm4809_vm2, %v10638_v38, %v21034_v56 }
 0xa41   : > { %9283 = vmatpush1.bf16.msra.mxu1 %v9282_v23  ;;  %v10713_v56 = vunpack.i.h.bf16 %v16755_v6  ;;  %v10667_v38 = vunpack.i.l.bf16 %v20852_v10 }
 0xa42   : > { %v18278_v18 = vsel %vm1750_vm13, %v21023_v25, %v21022_v47  ;;  %v18283_v53 = vpop.permute.xlu1 %11185  ;;  %v21028_v25 = vunpack.i.l.bf16 %v21027_v63  ;;  %v10657_v47 = vunpack.i.l.bf16 %v21029_v13  ;;  %v7061_v23 = vsel %vm1750_vm13, %v21030_v51, %v11183_v16 }
 0xa43   : > { %21024 = vst [vmem:[#allocation167_spill] sm:$0xff] %v18278_v18  ;;  %v18280_v5 = vpop.permute.xlu0 %11200  ;;  %v19934_v35 = vunpack.i.h.bf16 %v18283_v53  ;;  %v11187_v26 = vunpack.i.l.bf16 %v18283_v53  ;;  %v7050_v63 = vsel %vm1750_vm13, %v21032_v49, %v11182_v32  ;;  %v21035_v51 = vunpack.i.l.bf16 %v20833_v55 }
 0xa44   : > { %v18292_v46 = vsel %vm4809_vm2, %v10637_v50, %v21028_v25  ;;  %v10642_v25 = vunpack.i.l.bf16 %v21026_v41  ;;  %v9286_v9 = vpack.c.bf16 %v7061_v23, %v17768_v2  ;;  %v21036_v55 = vunpack.i.l.bf16 %v20848_v48 }
 0xa45   : > { %v18301_v29 = vsel %vm1750_vm13, %v11182_v32, %v19934_v35  ;;  %v7062_v50 = vsel %vm1750_vm13, %v11183_v16, %v11187_v26  ;;  %v18318_v35 = vsel %vm6733_vm4, %v10643_v33, %v21035_v51  ;;  %v9106_v28 = vpack.c.bf16 %v18313_v20, %v18292_v46 }
 0xa46   : > { %21031 = vst [vmem:[#allocation72_spill] sm:$0xff] %v18301_v29  ;;  %v18320_v17 = vpop.permute.xlu1 %11195  ;;  %v9284_v54 = vpack.c.bf16 %v7062_v50, %v7050_v63  ;;  %v18332_v33 = vsel %vm6733_vm4, %v10642_v25, %v21036_v55  ;;  %v21037_v32 = vunpack.i.h.bf16 %v21029_v13  ;;  %v10723_v23 = vunpack.i.h.bf16 %v16807_v19  ;;  %v21038_v63 = vld [vmem:[#allocation63_spill] sm:$0xff]  ;;  %v21041_v13 = vld [vmem:[#allocation74_spill] sm:$0xff] }
 0xa47   : > { %v18303_v7 = vpop.permute.xlu0 %11210  ;;  %v19939_v49 = vunpack.i.h.bf16 %v18320_v17  ;;  %v19938_v16 = vunpack.i.l.bf16 %v18320_v17  ;;  %v10673_v46 = vunpack.i.h.bf16 %v21038_v63  ;;  %v10727_v25 = vunpack.i.l.bf16 %v21041_v13  ;;  %v21046_v55 = vld [vmem:[#allocation26_spill] sm:$0xff] }
 0xa48   : > { %9285 = vmatprep.subr.bf16.mxu1 %v9284_v54  ;;  %v6576_v2 = vsel %vm6574_vm7, %v10657_v47, %v21037_v32  ;;  %v10672_v54 = vunpack.i.l.bf16 %v21038_v63  ;;  %v21042_v32 = vld [vmem:[#allocation34_spill] sm:$0xff]  ;;  %v21044_v63 = vunpack.i.h.bf16 %v17603_v31  ;;  %v21045_v20 = vunpack.i.l.bf16 %v16702_v3 }
 0xa49   : > { %v18345_v48 = vsel %vm4702_vm3, %v19938_v16, %v19939_v49  ;;  %9287 = vmatpush1.bf16.msra.mxu1 %v9286_v9  ;;  %v10752_v41 = vunpack.i.l.bf16 %v21042_v32  ;;  %v19946_v16 = vunpack.i.l.bf16 %v18280_v5  ;;  %v21043_v49 = vld [vmem:[#allocation89_spill] sm:$0xff]  ;;  %v10677_v36 = vunpack.i.l.bf16 %v21046_v55 }
 0xa4a   : > { %21039 = vst [vmem:[#allocation78_spill] sm:$0xff] %v18345_v48  ;;  %v18353_v19 = vpop.permute.xlu1 %11205  ;;  %v10757_v22 = vunpack.i.l.bf16 %v21043_v49  ;;  %v6286_v12 = vsel %vm3215_vm15, %v10723_v23, %v21044_v63  ;;  %v21048_v23 = vunpack.i.h.bf16 %v20852_v10  ;;  %v21049_v30 = vunpack.i.h.bf16 %v21041_v13 }
 0xa4b   : > { %v18347_v50 = vpop.permute.xlu0 %11220  ;;  %v19947_v9 = vunpack.i.h.bf16 %v18353_v19  ;;  %v21050_v10 = vunpack.i.l.bf16 %v16755_v6  ;;  %v21057_v6 = vunpack.i.l.bf16 %v16858_v39 }
 0xa4c   : > { %21040 = vst [vmem:[#allocation17_spill] sm:$0xff] %v18347_v50  ;;  %v11223_v51 = vunpack.i.h.bf16 %v18347_v50  ;;  %v18382_v3 = vsel %vm6892_vm8, %v10667_v38, %v21048_v23  ;;  %v6601_v13 = vsel %vm6574_vm7, %v10757_v22, %v10713_v56 }
 0xa4d   : > { %v18375_v32 = vsel %vm4702_vm3, %v19946_v16, %v19947_v9  ;;  %v6443_v16 = vsel %vm4809_vm2, %v10727_v25, %v21049_v30  ;;  %v6589_v23 = vsel %vm6574_vm7, %v10673_v46, %v21050_v10  ;;  %v21051_v9 = vunpack.i.h.bf16 %v20846_v27 }
 0xa4e   : > { %v6273_v18 = vsel %vm3215_vm15, %v11223_v51, %v21045_v20  ;;  %21047 = vst [vmem:[#allocation58_spill] sm:$0xff] %v18375_v32  ;;  %v10733_v20 = vunpack.i.h.bf16 %v16858_v39  ;;  %v18385_v51 = vpop.permute.xlu1 %11215  ;;  %v9108_v39 = vpack.c.bf16 %v6576_v2, %v6443_v16  ;;  %v21062_v16 = vld [vmem:[#allocation127_spill] sm:$0xff] }
 0xa4f   : > { %v9102_v49 = vpack.c.bf16 %v6286_v12, %v6273_v18  ;;  %v18377_v31 = vpop.permute.xlu0 %11225  ;;  %v6575_v12 = vsel %vm6574_vm7, %v10672_v54, %v10657_v47  ;;  %v6442_v18 = vsel %vm4809_vm2, %v10752_v41, %v10727_v25  ;;  %v18402_v58 = vsel %vm6733_vm4, %v21052_v21, %v21051_v9  ;;  %v21054_v47 = vld [vmem:[#allocation67_spill] sm:$0xff]  ;;  %v21055_v54 = vld [vmem:[#allocation68_spill] sm:$0xff] }
 0xa50   : > { %v11228_v63 = vunpack.i.h.bf16 %v18377_v31  ;;  %v19950_v48 = vunpack.i.l.bf16 %v18377_v31  ;;  %v21056_v41 = vpack.c.bf16 %v21054_v47, %v21055_v54  ;;  %v6602_v25 = vsel %vm6574_vm7, %v10713_v56, %v21057_v6  ;;  %v21061_v9 = vld [vmem:[#allocation84_spill] sm:$0xff] }
 0xa51   : > { %9103 = vmatpush1.bf16.msra.mxu0 %v9102_v49  ;;  %v21058_v49 = vunpack.i.h.bf16 %v18283_v53  ;;  %v6588_v56 = vsel %vm6574_vm7, %v10733_v20, %v10673_v46  ;;  %v19951_v47 = vunpack.i.h.bf16 %v18303_v7  ;;  %v9112_v6 = vpack.c.bf16 %v6602_v25, %v6589_v23 }
 0xa52   : > { %v18406_v30 = vsel %vm1750_vm13, %v11187_v26, %v11228_v63  ;;  %9105 = vmatprep.subr.bf16.mxu0 %v21056_v41  ;;  %v18423_v26 = vsel %vm6892_vm8, %v10677_v36, %v10667_v38  ;;  %v18431_v54 = vpop.permute.xlu1 %11230  ;;  %v9110_v38 = vpack.c.bf16 %v6575_v12, %v6442_v18  ;;  %v11203_v41 = vunpack.i.h.bf16 %v18280_v5 }
 0xa53   : > { %21053 = vst [vmem:[#allocation62_spill] sm:$0xff] %v18406_v30  ;;  %v18419_v21 = vsel %vm1750_vm13, %v21058_v49, %v19950_v48  ;;  %v18427_v10 = vpop.permute.xlu0 %11235  ;;  %21060 = vst [vmem:[#allocation74_spill] sm:$0xff] %v18431_v54  ;;  %v19953_v36 = vunpack.i.l.bf16 %v18431_v54  ;;  %v9114_v49 = vpack.c.bf16 %v6601_v13, %v6588_v56  ;;  %v10762_v48 = vunpack.i.l.bf16 %v21061_v9 }
 0xa54   : > { %21059 = vst [vmem:[#allocation63_spill] sm:$0xff] %v18419_v21  ;;  %v11237_v53 = vunpack.i.l.bf16 %v18427_v10  ;;  %v11233_v46 = vunpack.i.h.bf16 %v18431_v54  ;;  %v21065_v18 = vunpack.i.h.bf16 %v18320_v17  ;;  %v11207_v13 = vunpack.i.l.bf16 %v18353_v19 }
 0xa55   : > { %9107 = vmatpush1.bf16.msra.mxu0 %v9106_v28  ;;  %v21066_v56 = vunpack.i.l.bf16 %v18320_v17  ;;  %v21067_v28 = vld [vmem:[#allocation135_spill] sm:$0xff]  ;;  %v11218_v22 = vunpack.i.h.bf16 %v18385_v51  ;;  %v11217_v29 = vunpack.i.l.bf16 %v18385_v51  ;;  %v21070_v17 = vunpack.i.h.bf16 %v18353_v19 }
 0xa56   : > { %v18443_v20 = vsel %vm7335_vm6, %v19951_v47, %v11237_v53  ;;  %9109 = vmatprep.subr.bf16.mxu0 %v9108_v39  ;;  %v18455_v23 = vsel %vm4702_vm3, %v21065_v18, %v19953_v36  ;;  %v18458_v25 = vpop.permute.xlu1 %11240  ;;  %v21068_v47 = vunpack.i.h.bf16 %v21067_v28  ;;  %v21072_v51 = vunpack.i.l.bf16 %v18280_v5  ;;  %v21076_v5 = vld [vmem:[#allocation136_spill] sm:$0xff] }
 0xa57   : > { %21063 = vst [vmem:[#allocation34_spill] sm:$0xff] %v18443_v20  ;;  %v18448_v12 = vpop.permute.xlu0 %11245  ;;  %v11243_v18 = vunpack.i.h.bf16 %v18458_v25  ;;  %v21073_v36 = vunpack.i.l.bf16 %v17753_v45 }
 0xa58   : > { %21064 = vst [vmem:[#allocation89_spill] sm:$0xff] %v18448_v12  ;;  %v11248_v9 = vunpack.i.h.bf16 %v18448_v12  ;;  %v19957_v39 = vunpack.i.l.bf16 %v18448_v12  ;;  %v7195_v2 = vsel %vm4702_vm3, %v21068_v47, %v21066_v56  ;;  %v7207_v56 = vsel %vm4702_vm3, %v11233_v46, %v21072_v51 }
 0xa59   : > { %9111 = vmatpush1.bf16.msra.mxu0 %v9110_v38  ;;  %v7073_v38 = vsel %vm1750_vm13, %v21073_v36, %v11243_v18  ;;  %v21077_v36 = vunpack.i.h.bf16 %v18249_v43 }
 0xa5a   : > { %v18473_v34 = vsel %vm4702_vm3, %v11207_v13, %v11248_v9  ;;  %9113 = vmatprep.subr.bf16.mxu0 %v9112_v6  ;;  %v18480_v47 = vsel %vm4702_vm3, %v21070_v17, %v19957_v39  ;;  %v21074_v6 = vunpack.i.l.bf16 %v18249_v43  ;;  %v21075_v17 = vunpack.i.l.bf16 %v18458_v25  ;;  %v18501_v12 = vpop.permute.xlu1 %11250 }
 0xa5b   : > { %21069 = vst [vmem:[#allocation26_spill] sm:$0xff] %v18473_v34  ;;  %21071 = vst [vmem:[#allocation67_spill] sm:$0xff] %v18480_v47  ;;  %v18490_v54 = vpop.permute.xlu0 %7039  ;;  %v9290_v51 = vpack.c.bf16 %v21076_v5, %v7073_v38  ;;  %v7219_v38 = vsel %vm4702_vm3, %v11203_v41, %v11207_v13  ;;  %v19962_v5 = vunpack.i.l.bf16 %v21067_v28  ;;  %v21081_v34 = vld [vmem:[#allocation64_spill] sm:$0xff]  ;;  %v21134_v47 = vld [vmem:[#allocation55_spill] sm:$0xff] }
 0xa5c   : > { %v7074_v19 = vsel %vm1750_vm13, %v11243_v18, %v21074_v6  ;;  %v18498_v39 = vsel %vm1750_vm13, %v11228_v63, %v21075_v17  ;;  %v18507_v30 = vsel %vm1750_vm13, %v21077_v36, %v18490_v54  ;;  %v11252_v6 = vunpack.i.l.bf16 %v18501_v12  ;;  %v21080_v36 = vld [vmem:[#allocation20_spill] sm:$0xff] }
 0xa5d   : > { %v9288_v32 = vpack.c.bf16 %v7195_v2, %v7074_v19  ;;  %9115 = vmatpush1.bf16.msra.mxu0 %v9114_v49  ;;  %v21078_v17 = vunpack.i.l.bf16 %v20846_v27  ;;  %v21079_v2 = vunpack.i.l.bf16 %v21062_v16  ;;  %v21082_v18 = vpack.c.bf16 %v21080_v36, %v21081_v34  ;;  %v21088_v34 = vld [vmem:[#allocation82_spill] sm:$0xff] }
 0xa5e   : > { %v9292_v21 = vpack.c.bf16 %v7219_v38, %v7207_v56  ;;  %v18527_v49 = vsel %vm7335_vm6, %v11218_v22, %v11252_v6  ;;  %v7355_v27 = vsel %vm7335_vm6, %v11217_v29, %v11218_v22  ;;  %v7218_v56 = vsel %vm4702_vm3, %v19962_v5, %v11203_v41  ;;  %v18546_v22 = vpop.permute.xlu1 %7184 }
 0xa5f   : > { %v6760_v43 = vsel %vm6733_vm4, %v10762_v48, %v21078_v17  ;;  %v7206_v19 = vsel %vm4702_vm3, %v21079_v2, %v11233_v46  ;;  %9289 = vmatprep.subr.bf16.mxu1 %v9288_v32  ;;  %9117 = vmatprep.subr.bf16.mxu0 %v21082_v18  ;;  %21083 = vst [vmem:[#allocation68_spill] sm:$0xff] %v18527_v49  ;;  %v7326_v13 = vpop.permute.xlu0 %7325  ;;  %v21084_v48 = vunpack.i.h.bf16 %v18427_v10  ;;  %v21086_v46 = vunpack.i.h.bf16 %v18501_v12  ;;  %v21116_v49 = vld [vmem:[#allocation94_spill] sm:$0xff] }
 0xa60   : > { %9291 = vmatpush1.bf16.msra.mxu1 %v9290_v51  ;;  %v10767_v18 = vunpack.i.l.bf16 %v21088_v34  ;;  %v9294_v38 = vpack.c.bf16 %v7218_v56, %v7206_v19  ;;  %v21089_v2 = vpack.c.bf16 %v18318_v35, %v18332_v33  ;;  %v21090_v41 = vunpack.i.h.bf16 %v18303_v7  ;;  %v21102_v35 = vld [vmem:[#allocation122_spill] sm:$0xff] }
 0xa61   : > { %v18533_v17 = vsel %vm7335_vm6, %v11237_v53, %v21084_v48  ;;  %v18538_v32 = vsel %vm7335_vm6, %v11252_v6, %v21086_v46  ;;  %9293 = vmatprep.subr.bf16.mxu1 %v9292_v21  ;;  %v18552_v6 = vsel %vm4702_vm3, %v11248_v9, %v18546_v22  ;;  %v21091_v36 = vunpack.i.l.bf16 %v18303_v7  ;;  %v21092_v46 = vld [vmem:[#allocation30_spill] sm:$0xff] }
 0xa62   : > { %21085 = vst [vmem:[#allocation84_spill] sm:$0xff] %v18533_v17  ;;  %21087 = vst [vmem:[#allocation127_spill] sm:$0xff] %v18538_v32  ;;  %9119 = vmatpush1.bf16.msra.mxu0 %v21089_v2  ;;  %v21093_v21 = vunpack.i.l.bf16 %v21092_v46  ;;  %v21094_v34 = vunpack.i.h.bf16 %v20855_v4  ;;  %v10743_v56 = vunpack.i.h.bf16 %v21092_v46  ;;  %v21095_v9 = vld [vmem:[#allocation130_spill] sm:$0xff]  ;;  %v21097_v33 = vpack.c.bf16 %v18382_v3, %v18402_v58 }
 0xa63   : > { %v7343_v48 = vsel %vm7335_vm6, %v21091_v36, %v21090_v41  ;;  %v21096_v51 = vunpack.i.h.bf16 %v21095_v9  ;;  %v7330_v41 = vpop.permute.xlu0 %7329  ;;  %v9122_v36 = vpack.c.bf16 %v18423_v26, %v6760_v43  ;;  %v21099_v46 = vunpack.i.h.bf16 %v21046_v55  ;;  %v21104_v26 = vld [vmem:[#allocation41_spill] sm:$0xff]  ;;  %v21111_v55 = vld [vmem:[#allocation83_spill] sm:$0xff] }
 0xa64   : > { %v6920_v19 = vsel %vm6892_vm8, %v21094_v34, %v21093_v21  ;;  %9121 = vmatprep.subr.bf16.mxu0 %v21097_v33  ;;  %v9296_v2 = vpack.c.bf16 %v7355_v27, %v7343_v48  ;;  %9295 = vmatpush1.bf16.msra.mxu1 %v9294_v38  ;;  %v21098_v21 = vunpack.i.l.bf16 %v20855_v4  ;;  %v21101_v9 = vunpack.i.l.bf16 %v18303_v7  ;;  %v7328_v27 = vpop.permute.xlu1 %7327 }
 0xa65   : > { %v7354_v53 = vsel %vm7335_vm6, %v21096_v51, %v11217_v29  ;;  %v21100_v29 = vunpack.i.h.bf16 %v20855_v4  ;;  %v21103_v58 = vunpack.i.h.bf16 %v21102_v35  ;;  %v10827_v43 = vunpack.i.l.bf16 %v21104_v26  ;;  %v21106_v4 = vld [vmem:[#allocation46_spill] sm:$0xff] }
 0xa66   : > { %v6907_v34 = vsel %vm6892_vm8, %v21099_v46, %v21098_v21  ;;  %9297 = vmatprep.subr.bf16.mxu1 %v9296_v2  ;;  %v18593_v21 = vsel %vm7335_vm6, %v7328_v27, %v7330_v41  ;;  %9123 = vmatpush1.bf16.msra.mxu0 %v9122_v36  ;;  %v10682_v7 = vunpack.i.l.bf16 %v21106_v4  ;;  %v21107_v35 = vmov %v21099_v46 }
 0xa67   : > { %v6919_v51 = vsel %vm6892_vm8, %v10767_v18, %v21100_v29  ;;  %v7342_v3 = vsel %vm7335_vm6, %v21103_v58, %v21101_v9  ;;  %v9124_v38 = vpack.c.bf16 %v6920_v19, %v6907_v34  ;;  %21105 = vst [vmem:[#allocation135_spill] sm:$0xff] %v18593_v21  ;;  %v10683_v18 = vunpack.i.h.bf16 %v21106_v4  ;;  %v21108_v29 = vld [vmem:[#allocation88_spill] sm:$0xff]  ;;  %v21109_v19 = vld [vmem:[#allocation81_spill] sm:$0xff] }
 0xa68   : > { %v9298_v33 = vpack.c.bf16 %v7354_v53, %v7342_v3  ;;  %v6906_v46 = vsel %vm6892_vm8, %v10743_v56, %v21107_v35  ;;  %v10777_v2 = vunpack.i.l.bf16 %v21108_v29  ;;  %v10688_v34 = vunpack.i.h.bf16 %v21109_v19  ;;  %v18603_v53 = vpop.permute.xlu0 %11255  ;;  %v21110_v3 = vld [vmem:[#allocation80_spill] sm:$0xff]  ;;  %v21113_v35 = vld [vmem:[#allocation90_spill] sm:$0xff]  ;;  %v18614_v21 = vpop.permute.xlu1 %11265 }
 0xa69   : > { %9125 = vmatprep.subr.bf16.mxu0 %v9124_v38  ;;  %v11168_v9 = vunpack.i.h.bf16 %v18223_v37  ;;  %v7367_v36 = vsel %vm7335_vm6, %v7326_v13, %v7328_v27  ;;  %v9126_v58 = vpack.c.bf16 %v6919_v51, %v6906_v46  ;;  %v10708_v63 = vunpack.i.h.bf16 %v21110_v3 }
 0xa6a   : > { %9299 = vmatpush1.bf16.msra.mxu1 %v9298_v33  ;;  %v10707_v4 = vunpack.i.l.bf16 %v21110_v3  ;;  %v21112_v5 = vunpack.i.l.bf16 %v21111_v55  ;;  %v21114_v38 = vunpack.i.l.bf16 %v21113_v35  ;;  %v21115_v33 = vld [vmem:[#allocation87_spill] sm:$0xff]  ;;  %v10833_v27 = vunpack.i.h.bf16 %v21116_v49  ;;  %v21119_v55 = vld [vmem:[#allocation137_spill] sm:$0xff]  ;;  %v21120_v35 = vld [vmem:[#allocation92_spill] sm:$0xff] }
 0xa6b   : > { %7743 = vmatprep.subr.mxu1 %v7367_v36  ;;  %v10787_v20 = vunpack.i.l.bf16 %v21115_v33  ;;  %9127 = vmatpush1.bf16.msra.mxu0 %v9126_v58  ;;  %v21117_v51 = vunpack.i.l.bf16 %v18347_v50  ;;  %v21118_v3 = vunpack.i.h.bf16 %v21104_v26  ;;  %v21123_v58 = vunpack.i.h.bf16 %v21108_v29 }
 0xa6c   : > { %v7043_v56 = vsel %vm1750_vm13, %v10682_v7, %v21112_v5  ;;  %v7055_v48 = vsel %vm1750_vm13, %v10683_v18, %v21114_v38  ;;  %v7188_v7 = vsel %vm4702_vm3, %v10707_v4, %v10777_v2  ;;  %v7366_v18 = vsel %vm7335_vm6, %v21119_v55, %v7326_v13  ;;  %v21121_v38 = vld [vmem:[#allocation93_spill] sm:$0xff] }
 0xa6d   : > { %v6271_v46 = vsel %vm3215_vm15, %v11168_v9, %v21117_v51  ;;  %v7068_v5 = vsel %vm1750_vm13, %v10827_v43, %v21118_v3  ;;  %v21122_v33 = vpack.c.bf16 %v21120_v35, %v21121_v38  ;;  %v7189_v50 = vsel %vm4702_vm3, %v10777_v2, %v21123_v58  ;;  %v21124_v51 = vld [vmem:[#allocation29_spill] sm:$0xff]  ;;  %v18636_v3 = vpop.permute.xlu0 %11260  ;;  %v18644_v38 = vpop.permute.xlu1 %7331  ;;  %v21132_v58 = vld [vmem:[#allocation91_spill] sm:$0xff] }
 0xa6e   : > { %v10803_v17 = vunpack.i.h.bf16 %v21124_v51  ;;  %v7067_v26 = vsel %vm1750_vm13, %v10787_v20, %v10827_v43  ;;  %7744 = vmatpush1.msra.mxu1 %v7366_v18  ;;  %v9130_v4 = vpack.c.bf16 %v7055_v48, %v7043_v56  ;;  %v21125_v13 = vunpack.i.l.bf16 %v21124_v51  ;;  %v21127_v2 = vld [vmem:[#allocation37_spill] sm:$0xff]  ;;  %v21131_v18 = vld [vmem:[#allocation66_spill] sm:$0xff] }
 0xa6f   : > { %9129 = vmatprep.subr.bf16.mxu0 %v21122_v33  ;;  %v21126_v32 = vunpack.i.l.bf16 %v18223_v37  ;;  %v11263_v29 = vunpack.i.h.bf16 %v18636_v3  ;;  %7756 = vmatmul.mubr.f32.vlgmr.msra.gmra.mrb[66].mxu1 %v21127_v2  ;;  %v21128_v33 = vld [vmem:[#allocation52_spill] sm:$0xff]  ;;  %v21129_v20 = vld [vmem:[#allocation21_spill] sm:$0xff]  ;;  %v9356_v48 = vpack.c.bf16 %v6271_v46, %v21131_v18  ;;  %v9132_v56 = vpack.c.bf16 %v7189_v50, %v7068_v5 }
 0xa70   : > { %v7201_v36 = vsel %vm4702_vm3, %v10708_v63, %v21125_v13  ;;  %v21130_v43 = vpack.c.bf16 %v21128_v33, %v21129_v20  ;;  %v10792_v51 = vunpack.i.l.bf16 %v21132_v58  ;;  %v7200_v13 = vsel %vm4702_vm3, %v10833_v27, %v10708_v63  ;;  %v21133_v37 = vld [vmem:[#allocation56_spill] sm:$0xff]  ;;  %9131 = vmatpush1.bf16.msra.mxu0 %v9130_v4  ;;  %v21137_v20 = vld [vmem:[#allocation39_spill] sm:$0xff] }
 0xa71   : > { %v6270_v35 = vsel %vm3215_vm15, %v21126_v32, %v11168_v9  ;;  %v21135_v32 = vpack.c.bf16 %v21133_v37, %v21134_v47  ;;  %v21136_v9 = vunpack.i.l.bf16 %v21116_v49  ;;  %v18662_v33 = vsel %vm7335_vm6, %v7330_v41, %v18644_v38  ;;  %9133 = vmatprep.subr.bf16.mxu0 %v9132_v56  ;;  %v21139_v49 = vld [vmem:[#allocation44_spill] sm:$0xff]  ;;  %v18682_v18 = vpop.permute.xlu0 %11280 }
 0xa72   : > { %9353 = vmatprep.subr.bf16.mxu1 %v21130_v43  ;;  %v21138_v50 = vunpack.i.h.bf16 %v18614_v21  ;;  %v11258_v63 = vunpack.i.h.bf16 %v18603_v53  ;;  %v11257_v47 = vunpack.i.l.bf16 %v18603_v53  ;;  %v18674_v27 = vsel %vm4809_vm2, %v11263_v29, %v21137_v20  ;;  %v21140_v43 = vld [vmem:[#allocation139_spill] sm:$0xff] }
 0xa73   : > { %9355 = vmatpush1.bf16.msra.mxu1 %v21135_v32  ;;  %v7213_v2 = vsel %vm4702_vm3, %v10803_v17, %v21136_v9  ;;  %v9358_v5 = vpack.c.bf16 %v6270_v35, %v21139_v49  ;;  %v11262_v4 = vunpack.i.l.bf16 %v18636_v3  ;;  %8332 = vmatprep.mubr.msk.f32.mxu1 %vm4702_vm3, %v21140_v43  ;;  %v9134_v58 = vpack.c.bf16 %v7188_v7, %v7067_v26  ;;  %v11271_v32 = vpop.permute.xlu1 %11270  ;;  %v21142_v35 = vld [vmem:[#allocation33_spill] sm:$0xff]  ;;  %v21144_v7 = vld [vmem:[#allocation14_spill] sm:$0xff] }
 0xa74   : > { %v18668_v46 = vsel %vm4809_vm2, %v21138_v50, %v21137_v20  ;;  %9357 = vmatprep.subr.bf16.mxu1 %v9356_v48  ;;  %v10687_v53 = vunpack.i.l.bf16 %v21109_v19  ;;  %v7212_v37 = vsel %vm4702_vm3, %v10792_v51, %v10803_v17  ;;  %v21141_v48 = vld [vmem:[#allocation47_spill] sm:$0xff]  ;;  %v9136_v56 = vpack.c.bf16 %v7213_v2, %v7201_v36  ;;  %v21146_v36 = vld [vmem:[#allocation60_spill] sm:$0xff] }
 0xa75   : > { %7762 = vmatmul.mubr.f32.gmra.mrb[68].mxu1 %v21141_v48  ;;  %v21143_v9 = vunpack.i.l.bf16 %v21142_v35  ;;  %v11273_v49 = vunpack.i.h.bf16 %v11271_v32  ;;  %v11272_v3 = vunpack.i.l.bf16 %v11271_v32  ;;  %9135 = vmatpush1.bf16.msra.mxu0 %v9134_v58  ;;  %v9138_v43 = vpack.c.bf16 %v7212_v37, %v7200_v13  ;;  %v11286_v2 = vpop.permute.xlu0 %11285  ;;  %v21153_v37 = vld [vmem:[#allocation95_spill] sm:$0xff] }
 0xa76   : > { %v11267_v41 = vunpack.i.l.bf16 %v18614_v21  ;;  %v18693_v19 = vsel %vm3215_vm15, %v11258_v63, %v21144_v7  ;;  %v21145_v17 = vunpack.i.l.bf16 %v17959_v42  ;;  %9137 = vmatprep.subr.bf16.mxu0 %v9136_v56  ;;  %8333 = vmatprep.mubr.msk.f32.mxu1 %vm4702_vm3, %v21146_v36  ;;  %v6427_v42 = vsel %vm4809_vm2, %v11262_v4, %v11263_v29 }
 0xa77   : > { %v7348_v50 = vsel %vm7335_vm6, %v10688_v34, %v21143_v9  ;;  %9359 = vmatpush1.bf16.msra.mxu1 %v9358_v5  ;;  %v6284_v34 = vsel %vm3215_vm15, %v11257_v47, %v11258_v63  ;;  %v18703_v51 = vsel %vm3215_vm15, %v11273_v49, %v21144_v7  ;;  %v6296_v13 = vsel %vm3215_vm15, %v18142_v44, %v11272_v3  ;;  %v11276_v32 = vpop.permute.xlu1 %11275  ;;  %v21147_v63 = vld [vmem:[#allocation19_spill] sm:$0xff]  ;;  %v21149_v44 = vld [vmem:[#allocation86_spill] sm:$0xff] }
 0xa78   : > { %v6283_v26 = vsel %vm3215_vm15, %v21145_v17, %v11257_v47  ;;  %v6297_v5 = vsel %vm3215_vm15, %v11272_v3, %v11273_v49  ;;  %v11288_v48 = vunpack.i.h.bf16 %v11286_v2  ;;  %v11287_v56 = vunpack.i.l.bf16 %v11286_v2  ;;  %v21148_v17 = vld [vmem:[#allocation141_spill] sm:$0xff]  ;;  %v21151_v3 = vld [vmem:[#allocation15_spill] sm:$0xff] }
 0xa79   : > { %v9362_v58 = vpack.c.bf16 %v6296_v13, %v6283_v26  ;;  %7768 = vmatmul.mubr.f32.gmra.mrb[70].mxu1 %v21147_v63  ;;  %v11278_v47 = vunpack.i.h.bf16 %v11276_v32  ;;  %v11277_v35 = vunpack.i.l.bf16 %v11276_v32  ;;  %9139 = vmatpush1.bf16.msra.mxu0 %v9138_v43  ;;  %v9360_v9 = vpack.c.bf16 %v6297_v5, %v6284_v34  ;;  %v21152_v13 = vld [vmem:[#allocation40_spill] sm:$0xff]  ;;  %v6521_v32 = vpop.permute.xlu0 %6520 }
 0xa7a   : > { %8337 = vmatprep.mubr.msk.f32.mxu1 %vm4702_vm3, %v21148_v17  ;;  %v21150_v49 = vunpack.i.l.bf16 %v21149_v44  ;;  %v10853_v26 = vunpack.i.h.bf16 %v21151_v3  ;;  %v11283_v36 = vunpack.i.h.bf16 %v18682_v18  ;;  %v21154_v2 = vpack.c.bf16 %v21152_v13, %v21153_v37 }
 0xa7b   : > { %v21155_v63 = vunpack.i.h.bf16 %v18614_v21  ;;  %v21156_v34 = vunpack.i.l.bf16 %v17904_v24  ;;  %9361 = vmatprep.subr.bf16.mxu1 %v9360_v9  ;;  %v18735_v37 = vsel %vm6574_vm7, %v11278_v47, %v6521_v32  ;;  %v6453_v24 = vsel %vm4809_vm2, %v11287_v56, %v11288_v48 }
 0xa7c   : > { %v7336_v29 = vsel %vm7335_vm6, %v10687_v53, %v21150_v49  ;;  %9141 = vmatprep.subr.bf16.mxu0 %v21154_v2  ;;  %v18730_v53 = vsel %vm4809_vm2, %v11288_v48, %v21137_v20  ;;  %9363 = vmatpush1.bf16.msra.mxu1 %v9362_v58  ;;  %v18732_v49 = vpop.permute.xlu1 %11290  ;;  %v18738_v21 = vsel %vm6574_vm7, %v11283_v36, %v6521_v32  ;;  %v21157_v9 = vunpack.i.l.bf16 %v18053_v62  ;;  %v21159_v58 = vld [vmem:[#allocation45_spill] sm:$0xff] }
 0xa7d   : > { %v6440_v43 = vsel %vm4809_vm2, %v11267_v41, %v21155_v63  ;;  %v6426_v5 = vsel %vm4809_vm2, %v21156_v34, %v11262_v4  ;;  %v9142_v44 = vpack.c.bf16 %v7348_v50, %v7336_v29  ;;  %v6586_v4 = vsel %vm6574_vm7, %v11277_v35, %v11278_v47 }
 0xa7e   : > { %v9364_v17 = vpack.c.bf16 %v6440_v43, %v6427_v42  ;;  %v6439_v20 = vsel %vm4809_vm2, %v21157_v9, %v11267_v41  ;;  %v9417_v50 = vpack.c.bf16 %v18735_v37, %v18730_v53  ;;  %v21158_v42 = vld [vmem:[#allocation18_spill] sm:$0xff]  ;;  %v21160_v13 = vunpack.i.l.bf16 %v21151_v3  ;;  %v11296_v43 = vpop.permute.xlu0 %11295 }
 0xa7f   : > { %9143 = vmatpush1.bf16.msra.mxu0 %v9142_v44  ;;  %v7361_v29 = vsel %vm7335_vm6, %v21159_v58, %v21158_v42  ;;  %v9366_v48 = vpack.c.bf16 %v6439_v20, %v6426_v5  ;;  %v11282_v47 = vunpack.i.l.bf16 %v18682_v18  ;;  %v21161_v62 = vunpack.i.l.bf16 %v17909_v14  ;;  %v21164_v18 = vld [vmem:[#allocation73_spill] sm:$0xff] }
 0xa80   : > { %9365 = vmatprep.subr.bf16.mxu1 %v9364_v17  ;;  %v6264_v2 = vsel %vm3215_vm15, %v21160_v13, %v10853_v26  ;;  %7494 = vmatprep.subr.mxu0 %v7361_v29  ;;  %v6452_v63 = vsel %vm4809_vm2, %v18125_v61, %v11287_v56  ;;  %v9368_v34 = vpack.c.bf16 %v6586_v4, %v6453_v24  ;;  %v21162_v17 = vld [vmem:[#allocation121_spill] sm:$0xff]  ;;  %v11306_v3 = vpop.permute.xlu1 %11305  ;;  %v11298_v42 = vunpack.i.h.bf16 %v11296_v43  ;;  %v21167_v13 = vld [vmem:[#allocation43_spill] sm:$0xff] }
 0xa81   : > { %v6585_v41 = vsel %vm6574_vm7, %v21161_v62, %v11277_v35  ;;  %v21163_v44 = vunpack.i.l.bf16 %v21162_v17  ;;  %9367 = vmatpush1.bf16.msra.mxu1 %v9366_v48  ;;  %v11297_v5 = vunpack.i.l.bf16 %v11296_v43  ;;  %v7360_v20 = vsel %vm7335_vm6, %v21164_v18, %v21159_v58  ;;  %v21165_v35 = vld [vmem:[#allocation35_spill] sm:$0xff]  ;;  %v21168_v58 = vld [vmem:[#allocation32_spill] sm:$0xff]  ;;  %v21171_v17 = vld [vmem:[#allocation53_spill] sm:$0xff] }
 0xa82   : > { %v11308_v14 = vunpack.i.h.bf16 %v11306_v3  ;;  %v11307_v29 = vunpack.i.l.bf16 %v11306_v3  ;;  %9369 = vmatprep.subr.bf16.mxu1 %v9368_v34  ;;  %v9202_v61 = vpack.c.bf16 %v6264_v2, %v21165_v35  ;;  %v21166_v56 = vunpack.i.l.bf16 %v18045_v1  ;;  %v21170_v62 = vld [vmem:[#allocation75_spill] sm:$0xff]  ;;  %v11301_v34 = vpop.permute.xlu0 %11300  ;;  %v18792_v18 = vld [vmem:[%s19344_s9 + $0x18] sm:$0xff] }
 0xa83   : > { %v6265_v9 = vsel %vm3215_vm15, %v10853_v26, %v21163_v44  ;;  %7495 = vmatpush1.msra.mxu0 %v7360_v20  ;;  %v9370_v4 = vpack.c.bf16 %v6585_v41, %v6452_v63  ;;  %v18772_v26 = vld [vmem:[%s19344_s9] sm:$0xff]  ;;  %v21169_v48 = vpack.c.bf16 %v21167_v13, %v21168_v58  ;;  %v11293_v2 = vunpack.i.h.bf16 %v18732_v49  ;;  %v21172_v44 = vld [vmem:[#allocation61_spill] sm:$0xff] }
 0xa84   : > { %v6598_v24 = vsel %vm6574_vm7, %v21166_v56, %v11282_v47  ;;  %7507 = vmatmul.mubr.f32.vlgmr.msra.gmra.mrb[48].mxu0 %v18772_v26  ;;  %v9200_v43 = vpack.c.bf16 %v6265_v9, %v21170_v62  ;;  %v11292_v1 = vunpack.i.l.bf16 %v18732_v49  ;;  %v6611_v41 = vsel %vm6574_vm7, %v18181_v40, %v11307_v29  ;;  %v6680_v40 = vpop.permute.xlu1 %6679  ;;  %v21194_v49 = vld [vmem:[#allocation97_spill] sm:$0xff] }
 0xa85   : > { %9197 = vmatprep.subr.bf16.mxu0 %v21169_v48  ;;  %v18784_v63 = vsel %vm6574_vm7, %v11308_v14, %v6521_v32  ;;  %v21173_v3 = vpack.c.bf16 %v21171_v17, %v21172_v44  ;;  %8323 = vmatprep.mubr.msk.f32.mxu0 %vm4702_vm3, %v18792_v18  ;;  %v6599_v32 = vsel %vm6574_vm7, %v11282_v47, %v11283_v36  ;;  %v11303_v48 = vunpack.i.h.bf16 %v11301_v34  ;;  %v18812_v36 = vld [vmem:[%s19344_s9 + $0x10] sm:$0xff]  ;;  %v21176_v17 = vld [vmem:[#allocation119_spill] sm:$0xff] }
 0xa86   : > { %9371 = vmatpush1.bf16.msra.mxu1 %v9370_v4  ;;  %v6758_v9 = vsel %vm6733_vm4, %v11297_v5, %v11298_v42  ;;  %v9374_v20 = vpack.c.bf16 %v6611_v41, %v6598_v24  ;;  %v18801_v35 = vsel %vm6733_vm4, %v11293_v2, %v6680_v40  ;;  %v18804_v56 = vsel %vm6733_vm4, %v11298_v42, %v6680_v40  ;;  %v11311_v24 = vpop.permute.xlu0 %11310 }
 0xa87   : > { %9199 = vmatpush1.bf16.msra.mxu0 %v21173_v3  ;;  %v6612_v13 = vsel %vm6574_vm7, %v11307_v29, %v11308_v14  ;;  %v11302_v4 = vunpack.i.l.bf16 %v11301_v34  ;;  %v21174_v47 = vunpack.i.l.bf16 %v18100_v11  ;;  %v6745_v14 = vsel %vm6733_vm4, %v11292_v1, %v11293_v2  ;;  %v18822_v29 = vld [vmem:[%s19344_s9 + $0x28] sm:$0xff] }
 0xa88   : > { %9201 = vmatprep.subr.bf16.mxu0 %v9200_v43  ;;  %v9372_v62 = vpack.c.bf16 %v6612_v13, %v6599_v32  ;;  %7513 = vmatmul.mubr.f32.gmra.mrb[50].mxu0 %v18812_v36  ;;  %v11316_v43 = vpop.permute.xlu1 %11315  ;;  %v9376_v41 = vpack.c.bf16 %v6758_v9, %v6745_v14  ;;  %v21175_v34 = vld [vmem:[#allocation120_spill] sm:$0xff]  ;;  %v21182_v32 = vunpack.i.l.bf16 %v17925_v59  ;;  %v21184_v9 = vld [vmem:[#allocation49_spill] sm:$0xff]  ;;  %v18848_v59 = vld [vmem:[%s19344_s9 + $0x20] sm:$0xff] }
 0xa89   : > { %v6757_v42 = vsel %vm6733_vm4, %v21174_v47, %v11297_v5  ;;  %8324 = vmatprep.mubr.msk.f32.mxu0 %vm4702_vm3, %v18822_v29  ;;  %v21177_v11 = vpack.c.bf16 %v21175_v34, %v21176_v17  ;;  %v21178_v5 = vld [vmem:[#allocation42_spill] sm:$0xff]  ;;  %v11318_v47 = vunpack.i.h.bf16 %v11316_v43  ;;  %v11317_v58 = vunpack.i.l.bf16 %v11316_v43 }
 0xa8a   : > { %9373 = vmatprep.subr.bf16.mxu1 %v9372_v62  ;;  %v21179_v44 = vunpack.i.l.bf16 %v21178_v5  ;;  %v6744_v13 = vsel %vm6733_vm4, %v21182_v32, %v11292_v1  ;;  %v21183_v62 = vunpack.i.l.bf16 %v17478_v8  ;;  %v21185_v14 = vunpack.i.h.bf16 %v21184_v9  ;;  %v21188_v43 = vld [vmem:[#allocation22_spill] sm:$0xff] }
 0xa8b   : > { %9203 = vmatpush1.bf16.msra.mxu0 %v9202_v61  ;;  %v21180_v61 = vld [vmem:[#allocation28_spill] sm:$0xff]  ;;  %9375 = vmatpush1.bf16.msra.mxu1 %v9374_v20  ;;  %v9378_v17 = vpack.c.bf16 %v6757_v42, %v6744_v13  ;;  %v6904_v8 = vsel %vm6892_vm8, %v11302_v4, %v11303_v48  ;;  %v6770_v1 = vsel %vm6733_vm4, %v18176_v0, %v11317_v58  ;;  %v21187_v42 = vld [vmem:[#allocation70_spill] sm:$0xff] }
 0xa8c   : > { %9205 = vmatprep.subr.bf16.mxu0 %v21177_v11  ;;  %v21181_v3 = vunpack.i.h.bf16 %v21180_v61  ;;  %v6447_v34 = vsel %vm4809_vm2, %v21185_v14, %v21183_v62  ;;  %v21186_v11 = vunpack.i.l.bf16 %v17930_v57  ;;  %v11313_v61 = vunpack.i.h.bf16 %v11311_v24  ;;  %9377 = vmatprep.subr.bf16.mxu1 %v9376_v41  ;;  %v6839_v57 = vpop.permute.xlu0 %6838  ;;  %v11321_v0 = vpop.permute.xlu1 %11320  ;;  %v21190_v13 = vld [vmem:[#allocation110_spill] sm:$0xff]  ;;  %v21191_v62 = vld [vmem:[#allocation107_spill] sm:$0xff] }
 0xa8d   : > { %7519 = vmatmul.mubr.f32.gmra.mrb[52].mxu0 %v18848_v59  ;;  %v18855_v20 = vsel %vm6733_vm4, %v11318_v47, %v6680_v40  ;;  %v6771_v41 = vsel %vm6733_vm4, %v11317_v58, %v11318_v47  ;;  %v18869_v40 = vsel %vm6892_vm8, %v11303_v48, %v6839_v57  ;;  %v21192_v9 = vpack.c.bf16 %v21190_v13, %v21191_v62 }
 0xa8e   : > { %v6580_v2 = vsel %vm6574_vm7, %v21181_v3, %v21179_v44  ;;  %v6903_v5 = vsel %vm6892_vm8, %v21186_v11, %v11302_v4  ;;  %v21189_v44 = vpack.c.bf16 %v21187_v42, %v21188_v43  ;;  %v18864_v3 = vld [vmem:[%s19344_s9 + $0x8] sm:$0xff]  ;;  %v11312_v4 = vunpack.i.l.bf16 %v11311_v24 }
 0xa8f   : > { %8328 = vmatprep.mubr.msk.f32.mxu0 %vm4702_vm3, %v18864_v3  ;;  %v18872_v32 = vsel %vm6892_vm8, %v11313_v61, %v6839_v57  ;;  %v9380_v58 = vpack.c.bf16 %v6904_v8, %v6771_v41  ;;  %v9382_v47 = vpack.c.bf16 %v6903_v5, %v6770_v1  ;;  %9379 = vmatpush1.bf16.msra.mxu1 %v9378_v17  ;;  %v11323_v14 = vunpack.i.h.bf16 %v11321_v0  ;;  %v21197_v8 = vld [vmem:[#allocation102_spill] sm:$0xff] }
 0xa90   : > { %9207 = vmatpush1.bf16.msra.mxu0 %v21189_v44  ;;  %v11322_v11 = vunpack.i.l.bf16 %v11321_v0  ;;  %v9426_v42 = vpack.c.bf16 %v18869_v40, %v18855_v20  ;;  %v9212_v24 = vpack.c.bf16 %v6580_v2, %v6447_v34  ;;  %v21193_v44 = vld [vmem:[#allocation98_spill] sm:$0xff]  ;;  %v21196_v17 = vunpack.i.l.bf16 %v17560_v15  ;;  %v7042_v0 = vpop.permute.xlu0 %7041 }
 0xa91   : > { %9209 = vmatprep.subr.bf16.mxu0 %v21192_v9  ;;  %9381 = vmatprep.subr.bf16.mxu1 %v9380_v58  ;;  %v18882_v43 = vsel %vm6892_vm8, %v11323_v14, %v6839_v57  ;;  %v21195_v13 = vpack.c.bf16 %v21193_v44, %v21194_v49  ;;  %v21198_v1 = vunpack.i.h.bf16 %v21197_v8  ;;  %v21199_v2 = vunpack.i.l.bf16 %v18218_v52  ;;  %v11326_v57 = vpop.permute.xlu1 %11325  ;;  %v21201_v9 = vld [vmem:[#allocation96_spill] sm:$0xff] }
 0xa92   : > { %v6929_v48 = vsel %vm6892_vm8, %v18254_v60, %v11322_v11  ;;  %v6930_v5 = vsel %vm6892_vm8, %v11322_v11, %v11323_v14  ;;  %v9429_v60 = vpack.c.bf16 %v18882_v43, %v18872_v32  ;;  %v6917_v49 = vsel %vm6892_vm8, %v11312_v4, %v11313_v61  ;;  %v21362_v32 = vld [vmem:[#allocation3_spill] sm:$0xff] }
 0xa93   : > { %v6606_v41 = vsel %vm6574_vm7, %v21198_v1, %v21196_v17  ;;  %v6916_v34 = vsel %vm6892_vm8, %v21199_v2, %v11312_v4  ;;  %v21200_v62 = vunpack.i.l.bf16 %v21197_v8  ;;  %v21202_v15 = vunpack.i.h.bf16 %v21201_v9  ;;  %9383 = vmatpush1.bf16.msra.mxu1 %v9382_v47  ;;  %v21205_v4 = vld [vmem:[#allocation38_spill] sm:$0xff]  ;;  %v21206_v8 = vld [vmem:[#allocation51_spill] sm:$0xff] }
 0xa94   : > { %9211 = vmatpush1.bf16.msra.mxu0 %v21195_v13  ;;  %v9386_v14 = vpack.c.bf16 %v6929_v48, %v6916_v34  ;;  %v11328_v11 = vunpack.i.h.bf16 %v11326_v57  ;;  %v11327_v52 = vunpack.i.l.bf16 %v11326_v57  ;;  %v9384_v44 = vpack.c.bf16 %v6930_v5, %v6917_v49  ;;  %v7187_v57 = vpop.permute.xlu0 %7186  ;;  %v21209_v49 = vld [vmem:[#allocation74_spill] sm:$0xff] }
 0xa95   : > { %9213 = vmatprep.subr.bf16.mxu0 %v9212_v24  ;;  %v6593_v58 = vsel %vm6574_vm7, %v21202_v15, %v21200_v62  ;;  %v21203_v17 = vunpack.i.l.bf16 %v18458_v25  ;;  %v21204_v24 = vunpack.i.l.bf16 %v18377_v31  ;;  %v21207_v2 = vpack.c.bf16 %v21205_v4, %v21206_v8  ;;  %v21208_v62 = vld [vmem:[#allocation13_spill] sm:$0xff]  ;;  %v11331_v48 = vpop.permute.xlu1 %11330 }
 0xa96   : > { %v9216_v13 = vpack.c.bf16 %v6606_v41, %v6593_v58  ;;  %9385 = vmatprep.subr.bf16.mxu1 %v9384_v44  ;;  %v7054_v47 = vsel %vm1750_vm13, %v11327_v52, %v21208_v62  ;;  %v7066_v5 = vsel %vm1750_vm13, %v11328_v11, %v21208_v62  ;;  %v11333_v41 = vunpack.i.h.bf16 %v11331_v48  ;;  %v21211_v58 = vld [vmem:[#allocation104_spill] sm:$0xff]  ;;  %v21212_v44 = vld [vmem:[#allocation103_spill] sm:$0xff] }
 0xa97   : > { %v7065_v1 = vsel %vm1750_vm13, %v21203_v17, %v11328_v11  ;;  %v7053_v61 = vsel %vm1750_vm13, %v21204_v24, %v11327_v52  ;;  %9387 = vmatpush1.bf16.msra.mxu1 %v9386_v14  ;;  %v11332_v34 = vunpack.i.l.bf16 %v11331_v48  ;;  %v9388_v31 = vpack.c.bf16 %v7066_v5, %v7054_v47  ;;  %v21214_v52 = vld [vmem:[#allocation69_spill] sm:$0xff]  ;;  %v21219_v47 = vld [vmem:[#allocation114_spill] sm:$0xff]  ;;  %v21220_v48 = vld [vmem:[#allocation116_spill] sm:$0xff] }
 0xa98   : > { %9215 = vmatpush1.bf16.msra.mxu0 %v21207_v2  ;;  %v9390_v25 = vpack.c.bf16 %v7065_v1, %v7053_v61  ;;  %v21210_v9 = vunpack.i.l.bf16 %v21209_v49  ;;  %v21213_v17 = vpack.c.bf16 %v21211_v58, %v21212_v44  ;;  %v21216_v24 = vld [vmem:[#allocation105_spill] sm:$0xff]  ;;  %v7077_v14 = vsel %vm1750_vm13, %v18490_v54, %v7042_v0  ;;  %v21218_v61 = vld [vmem:[#allocation12_spill] sm:$0xff] }
 0xa99   : > { %9217 = vmatprep.subr.bf16.mxu0 %v9216_v13  ;;  %9389 = vmatprep.subr.bf16.mxu1 %v9388_v31  ;;  %v21215_v13 = vunpack.i.l.bf16 %v21214_v52  ;;  %v21217_v4 = vunpack.i.h.bf16 %v21216_v24  ;;  %v7078_v1 = vsel %vm1750_vm13, %v7042_v0, %v21208_v62  ;;  %v7211_v8 = vsel %vm4702_vm3, %v11333_v41, %v21218_v61  ;;  %v11336_v2 = vpop.permute.xlu1 %11335  ;;  %v21222_v31 = vld [vmem:[#allocation50_spill] sm:$0xff] }
 0xa9a   : > { %v7198_v15 = vsel %vm4702_vm3, %v21210_v9, %v11332_v34  ;;  %v21221_v5 = vpack.c.bf16 %v21219_v47, %v21220_v48  ;;  %v21223_v49 = vunpack.i.l.bf16 %v21222_v31  ;;  %v21224_v9 = vld [vmem:[#allocation11_spill] sm:$0xff]  ;;  %v18942_v54 = vunpack.i.h.bf16 %v11336_v2  ;;  %v21226_v47 = vld [vmem:[#allocation101_spill] sm:$0xff]  ;;  %v21227_v48 = vld [vmem:[#allocation100_spill] sm:$0xff] }
 0xa9b   : > { %v6765_v11 = vsel %vm6733_vm4, %v21217_v4, %v21215_v13  ;;  %v21225_v58 = vunpack.i.h.bf16 %v21224_v9  ;;  %9391 = vmatpush1.bf16.msra.mxu1 %v9390_v25  ;;  %v11337_v52 = vunpack.i.l.bf16 %v11336_v2  ;;  %v7199_v0 = vsel %vm4702_vm3, %v11332_v34, %v21218_v61  ;;  %v21229_v31 = vld [vmem:[#allocation123_spill] sm:$0xff] }
 0xa9c   : > { %9219 = vmatpush1.bf16.msra.mxu0 %v21213_v17  ;;  %v9394_v17 = vpack.c.bf16 %v7198_v15, %v7077_v14  ;;  %v9392_v13 = vpack.c.bf16 %v7199_v0, %v7078_v1  ;;  %v7223_v4 = vsel %vm4702_vm3, %v7187_v57, %v21218_v61  ;;  %v21230_v9 = vunpack.i.l.bf16 %v21229_v31  ;;  %v21233_v14 = vld [vmem:[#allocation89_spill] sm:$0xff]  ;;  %v7310_v1 = vpop.permute.xlu0 %7309 }
 0xa9d   : > { %9221 = vmatprep.subr.bf16.mxu0 %v21221_v5  ;;  %v6898_v44 = vsel %vm6892_vm8, %v21225_v58, %v21223_v49  ;;  %v21228_v5 = vpack.c.bf16 %v21226_v47, %v21227_v48  ;;  %v21231_v49 = vld [vmem:[#allocation109_spill] sm:$0xff]  ;;  %v21234_v2 = vunpack.i.l.bf16 %v21233_v14  ;;  %v9396_v34 = vpack.c.bf16 %v7223_v4, %v7211_v8  ;;  %v21236_v47 = vld [vmem:[#allocation99_spill] sm:$0xff]  ;;  %v21239_v4 = vld [vmem:[#allocation108_spill] sm:$0xff] }
 0xa9e   : > { %v9224_v24 = vpack.c.bf16 %v6898_v44, %v6765_v11  ;;  %v21232_v15 = vunpack.i.h.bf16 %v21231_v49  ;;  %9393 = vmatprep.subr.bf16.mxu1 %v9392_v13  ;;  %v7347_v11 = vsel %vm7335_vm6, %v11337_v52, %v18942_v54  ;;  %v7359_v44 = vsel %vm7335_vm6, %v7310_v1, %v18942_v54 }
 0xa9f   : > { %v7210_v58 = vsel %vm4702_vm3, %v21234_v2, %v11333_v41  ;;  %9395 = vmatpush1.bf16.msra.mxu1 %v9394_v17  ;;  %v21235_v0 = vunpack.i.l.bf16 %v21231_v49  ;;  %v21237_v48 = vunpack.i.h.bf16 %v21236_v47  ;;  %v7222_v41 = vsel %vm4702_vm3, %v18546_v22, %v7187_v57  ;;  %v7334_v2 = vpop.permute.xlu1 %7333  ;;  %v21243_v57 = vld [vmem:[#allocation112_spill] sm:$0xff] }
 0xaa0   : > { %9223 = vmatpush1.bf16.msra.mxu0 %v21228_v5  ;;  %v6924_v25 = vsel %vm6892_vm8, %v21232_v15, %v21230_v9  ;;  %9397 = vmatprep.subr.bf16.mxu1 %v9396_v34  ;;  %v9398_v13 = vpack.c.bf16 %v7222_v41, %v7210_v58  ;;  %v21241_v9 = vunpack.i.h.bf16 %v18427_v10  ;;  %v9400_v15 = vpack.c.bf16 %v7359_v44, %v7347_v11  ;;  %v21249_v11 = vld [vmem:[#allocation129_spill] sm:$0xff]  ;;  %v21250_v44 = vld [vmem:[#allocation131_spill] sm:$0xff] }
 0xaa1   : > { %9225 = vmatprep.subr.bf16.mxu0 %v9224_v24  ;;  %v6911_v5 = vsel %vm6892_vm8, %v21237_v48, %v21235_v0  ;;  %v21238_v24 = vld [vmem:[#allocation106_spill] sm:$0xff]  ;;  %v21242_v49 = vunpack.i.h.bf16 %v18501_v12  ;;  %v21246_v34 = vunpack.i.l.bf16 %v17753_v45  ;;  %v21247_v0 = vld [vmem:[#allocation113_spill] sm:$0xff]  ;;  %v21251_v47 = vpack.c.bf16 %v21249_v11, %v21250_v44  ;;  %v21273_v11 = vld [vmem:[#allocation132_spill] sm:$0xff] }
 0xaa2   : > { %v9228_v8 = vpack.c.bf16 %v6924_v25, %v6911_v5  ;;  %v21240_v31 = vpack.c.bf16 %v21238_v24, %v21239_v4  ;;  %v7346_v17 = vsel %vm7335_vm6, %v21241_v9, %v11337_v52  ;;  %v21244_v25 = vld [vmem:[#allocation111_spill] sm:$0xff]  ;;  %v21248_v10 = vunpack.i.h.bf16 %v21247_v0  ;;  %v21254_v5 = vld [vmem:[#allocation48_spill] sm:$0xff]  ;;  %v21257_v24 = vld [vmem:[#allocation54_spill] sm:$0xff] }
 0xaa3   : > { %9399 = vmatpush1.bf16.msra.mxu1 %v9398_v13  ;;  %v7358_v14 = vsel %vm7335_vm6, %v21242_v49, %v7310_v1  ;;  %v21245_v58 = vpack.c.bf16 %v21243_v57, %v21244_v25  ;;  %v7371_v12 = vsel %vm7335_vm6, %v7334_v2, %v18942_v54  ;;  %v21252_v1 = vld [vmem:[#allocation126_spill] sm:$0xff]  ;;  %v21255_v41 = vunpack.i.h.bf16 %v21254_v5  ;;  %v21256_v13 = vld [vmem:[#allocation76_spill] sm:$0xff]  ;;  %v21274_v44 = vld [vmem:[#allocation125_spill] sm:$0xff] }
 0xaa4   : > { %9227 = vmatpush1.bf16.msra.mxu0 %v21240_v31  ;;  %9401 = vmatprep.subr.bf16.mxu1 %v9400_v15  ;;  %v9402_v22 = vpack.c.bf16 %v7358_v14, %v7346_v17  ;;  %v7072_v52 = vsel %vm1750_vm13, %v21248_v10, %v21246_v34  ;;  %v21253_v48 = vunpack.i.l.bf16 %v21252_v1  ;;  %v21258_v4 = vpack.c.bf16 %v21256_v13, %v21257_v24  ;;  %v21262_v14 = vld [vmem:[#allocation115_spill] sm:$0xff]  ;;  %v21270_v0 = vld [vmem:[#allocation134_spill] sm:$0xff]  ;;  %v21271_v10 = vld [vmem:[#allocation133_spill] sm:$0xff] }
 0xaa5   : > { %9229 = vmatprep.subr.bf16.mxu0 %v9228_v8  ;;  %v21259_v31 = vunpack.i.l.bf16 %v21067_v28  ;;  %v21260_v9 = vunpack.i.h.bf16 %v21062_v16  ;;  %v7370_v15 = vsel %vm7335_vm6, %v18644_v38, %v7334_v2  ;;  %v21261_v49 = vunpack.i.l.bf16 %v21062_v16  ;;  %v21264_v28 = vld [vmem:[#allocation59_spill] sm:$0xff]  ;;  %v21267_v16 = vld [vmem:[#allocation128_spill] sm:$0xff]  ;;  %v21268_v38 = vld [vmem:[#allocation57_spill] sm:$0xff] }
 0xaa6   : > { %v7193_v8 = vsel %vm4702_vm3, %v21255_v41, %v21253_v48  ;;  %v21269_v2 = vpack.c.bf16 %v21267_v16, %v21268_v38  ;;  %v21277_v48 = vld [vmem:[#allocation31_spill] sm:$0xff]  ;;  %v21278_v41 = vld [vmem:[#allocation65_spill] sm:$0xff]  ;;  %v21282_v24 = vld [vmem:[#allocation162_spill] sm:$0xff]  ;;  %v9438_v53 = vpack.c.bf16 %v21218_v61, %v21218_v61  ;;  %v9441_v37 = vpack.c.bf16 %v18942_v54, %v18942_v54 }
 0xaa7   : > { %9403 = vmatpush1.bf16.msra.mxu1 %v9402_v22  ;;  %v9236_v45 = vpack.c.bf16 %v7193_v8, %v7072_v52  ;;  %v7217_v17 = vsel %vm4702_vm3, %v21260_v9, %v21259_v31  ;;  %v21263_v22 = vunpack.i.h.bf16 %v21262_v14  ;;  %v21272_v52 = vpack.c.bf16 %v21270_v0, %v21271_v10  ;;  %v21279_v8 = vld [vmem:[#allocation27_spill] sm:$0xff]  ;;  %v21281_v13 = vld [vmem:[#allocation25_spill] sm:$0xff]  ;;  %v21283_v31 = vld [vmem:[#allocation24_spill] sm:$0xff] }
 0xaa8   : > { %9231 = vmatpush1.bf16.msra.mxu0 %v21245_v58  ;;  %7909 = vmatprep.subr.mxu1 %v7371_v12  ;;  %v21265_v58 = vld [vmem:[#allocation117_spill] sm:$0xff]  ;;  %v21276_v12 = vld [vmem:[#allocation118_spill] sm:$0xff]  ;;  %v21284_v9 = vld [vmem:[#allocation23_spill] sm:$0xff] }
 0xaa9   : > { %9233 = vmatprep.subr.bf16.mxu0 %v21251_v47  ;;  %v7205_v57 = vsel %vm4702_vm3, %v21263_v22, %v21261_v49  ;;  %v21266_v34 = vpack.c.bf16 %v21264_v28, %v21265_v58  ;;  %v21275_v47 = vpack.c.bf16 %v21273_v11, %v21274_v44  ;;  %v7365_v1 = vsel %vm7335_vm6, %v21276_v12, %v21119_v55  ;;  %v21286_v55 = vld [vmem:[#allocation36_spill] sm:$0xff]  ;;  %v21288_v14 = vld [vmem:[#allocation157_spill] sm:$0xff]  ;;  %v21298_v0 = vld [vmem:[#allocation138_spill] sm:$0xff] }
 0xaaa   : > { %v9240_v25 = vpack.c.bf16 %v7217_v17, %v7205_v57  ;;  %v7364_v5 = vsel %vm7335_vm6, %v21277_v48, %v21276_v12  ;;  %v21285_v17 = vpack.c.bf16 %v21283_v31, %v21284_v9  ;;  %v21289_v22 = vld [vmem:[#allocation156_spill] sm:$0xff]  ;;  %v21301_v11 = vld [vmem:[#allocation155_spill] sm:$0xff]  ;;  %v21304_v12 = vld [vmem:[#allocation146_spill] sm:$0xff] }
 0xaab   : > { %7910 = vmatpush1.msra.mxu1 %v7370_v15  ;;  %v21287_v15 = vld [vmem:[#allocation142_spill] sm:$0xff]  ;;  %v21290_v57 = vpack.c.bf16 %v21288_v14, %v21289_v22  ;;  %v21292_v28 = vld [vmem:[#allocation144_spill] sm:$0xff]  ;;  %v21306_v48 = vld [vmem:[#allocation161_spill] sm:$0xff] }
 0xaac   : > { %9235 = vmatpush1.bf16.msra.mxu0 %v21258_v4  ;;  %7922 = vmatmul.mubr.f32.vlgmr.msra.gmra.mrb[72].mxu1 %v18772_v26  ;;  %v9304_v4 = vpack.c.bf16 %v21282_v24, %v21281_v13  ;;  %v9306_v49 = vpack.c.bf16 %v21287_v15, %v21286_v55  ;;  %v21295_v16 = vld [vmem:[#allocation148_spill] sm:$0xff]  ;;  %v21312_v24 = vld [vmem:[#allocation154_spill] sm:$0xff]  ;;  %v21315_v9 = vld [vmem:[#allocation77_spill] sm:$0xff] }
 0xaad   : > { %9237 = vmatprep.subr.bf16.mxu0 %v9236_v45  ;;  %8338 = vmatprep.mubr.msk.f32.mxu1 %vm4702_vm3, %v18792_v18  ;;  %v21280_v45 = vpack.c.bf16 %v21278_v41, %v21279_v8  ;;  %v21309_v8 = vld [vmem:[#allocation149_spill] sm:$0xff]  ;;  %v21318_v15 = vld [vmem:[#allocation158_spill] sm:$0xff]  ;;  %v21321_v22 = vld [vmem:[#allocation143_spill] sm:$0xff] }
 0xab0   : > { %9239 = vmatpush1.bf16.msra.mxu0 %v21266_v34  ;;  %7928 = vmatmul.mubr.f32.gmra.mrb[74].mxu1 %v18812_v36  ;;  %v21294_v34 = vld [vmem:[#allocation150_spill] sm:$0xff] }
 0xab1   : > { %9241 = vmatprep.subr.bf16.mxu0 %v9240_v25  ;;  %8339 = vmatprep.mubr.msk.f32.mxu1 %vm4702_vm3, %v18822_v29  ;;  %v21291_v25 = vld [vmem:[#allocation145_spill] sm:$0xff]  ;;  %v21296_v38 = vpack.c.bf16 %v21294_v34, %v21295_v16  ;;  %v21327_v16 = vld [vmem:[#allocation164_spill] sm:$0xff] }
 0xab2   : > { %v21293_v58 = vpack.c.bf16 %v21291_v25, %v21292_v28  ;;  %v21324_v28 = vld [vmem:[#allocation166_spill] sm:$0xff] }
 0xab4   : > { %9243 = vmatpush1.bf16.msra.mxu0 %v21269_v2  ;;  %7934 = vmatmul.mubr.f32.gmra.mrb[76].mxu1 %v18848_v59  ;;  %v21297_v2 = vld [vmem:[#allocation85_spill] sm:$0xff] }
 0xab5   : > { %9245 = vmatprep.subr.bf16.mxu0 %v21272_v52  ;;  %v21299_v10 = vpack.c.bf16 %v21297_v2, %v21298_v0  ;;  %v21300_v52 = vld [vmem:[#allocation152_spill] sm:$0xff]  ;;  %v21330_v0 = vld [vmem:[#allocation63_spill] sm:$0xff] }
 0xab6   : > { %v21302_v44 = vpack.c.bf16 %v21300_v52, %v21301_v11  ;;  %v21332_v52 = vld [vmem:[#allocation62_spill] sm:$0xff]  ;;  %v21333_v11 = vld [vmem:[#allocation72_spill] sm:$0xff] }
 0xab8   : > { %9247 = vmatpush1.bf16.msra.mxu0 %v21275_v47  ;;  %v21303_v47 = vld [vmem:[#allocation16_spill] sm:$0xff] }
 0xab9   : > { %7660 = vmatprep.subr.mxu0 %v7365_v1  ;;  %v21305_v1 = vpack.c.bf16 %v21303_v47, %v21304_v12  ;;  %v21335_v47 = vpack.c.bf16 %v18455_v23, %v18507_v30  ;;  %v21336_v12 = vld [vmem:[#allocation78_spill] sm:$0xff] }
 0xabc   : > { %7661 = vmatpush1.msra.mxu0 %v7364_v5  ;;  %v21307_v5 = vld [vmem:[#allocation160_spill] sm:$0xff] }
 0xabd   : > { %7673 = vmatmul.mubr.f32.vlgmr.msra.gmra.mrb[54].mxu0 %v18772_v26  ;;  %9301 = vmatprep.subr.bf16.mxu0 %v21280_v45  ;;  %v21308_v41 = vpack.c.bf16 %v21306_v48, %v21307_v5  ;;  %v21310_v45 = vld [vmem:[#allocation147_spill] sm:$0xff] }
 0xabe   : > { %9303 = vmatpush1.bf16.msra.mxu0 %v21285_v17  ;;  %8329 = vmatprep.mubr.msk.f32.mxu0 %vm4702_vm3, %v18792_v18  ;;  %v21311_v13 = vpack.c.bf16 %v21309_v8, %v21310_v45  ;;  %v21316_v17 = vld [vmem:[#allocation140_spill] sm:$0xff]  ;;  %v21339_v5 = vld [vmem:[#allocation67_spill] sm:$0xff]  ;;  %v21341_v45 = vld [vmem:[#allocation26_spill] sm:$0xff] }
 0xabf   : > { %9305 = vmatprep.subr.bf16.mxu0 %v9304_v4  ;;  %v21313_v4 = vld [vmem:[#allocation153_spill] sm:$0xff]  ;;  %v21317_v55 = vpack.c.bf16 %v21315_v9, %v21316_v17  ;;  %v21347_v17 = vld [vmem:[#allocation68_spill] sm:$0xff] }
 0xac0   : > { %v21314_v31 = vpack.c.bf16 %v21312_v24, %v21313_v4  ;;  %v21344_v4 = vld [vmem:[#allocation127_spill] sm:$0xff] }
 0xac1   : > { %7679 = vmatmul.mubr.f32.gmra.mrb[56].mxu0 %v18812_v36 }
 0xac2   : > { %9307 = vmatpush1.bf16.msra.mxu0 %v9306_v49  ;;  %8330 = vmatprep.mubr.msk.f32.mxu0 %vm4702_vm3, %v18822_v29  ;;  %v21319_v49 = vld [vmem:[#allocation159_spill] sm:$0xff] }
 0xac3   : > { %9309 = vmatprep.subr.bf16.mxu0 %v21290_v57  ;;  %v21320_v14 = vpack.c.bf16 %v21318_v15, %v21319_v49  ;;  %v21322_v57 = vld [vmem:[#allocation151_spill] sm:$0xff] }
 0xac4   : > { %v21323_v25 = vpack.c.bf16 %v21321_v22, %v21322_v57  ;;  %v21351_v22 = vld [vmem:[#allocation79_spill] sm:$0xff] }
 0xac5   : > { %7685 = vmatmul.mubr.f32.gmra.mrb[58].mxu0 %v18848_v59  ;;  %v21352_v57 = vld [vmem:[#allocation71_spill] sm:$0xff] }
 0xac6   : > { %9311 = vmatpush1.bf16.msra.mxu0 %v21293_v58  ;;  %8334 = vmatprep.mubr.msk.f32.mxu0 %vm4702_vm3, %v18864_v3  ;;  %v21325_v58 = vld [vmem:[#allocation165_spill] sm:$0xff] }
 0xac7   : > { %9313 = vmatprep.subr.bf16.mxu0 %v21296_v38  ;;  %v21326_v34 = vpack.c.bf16 %v21324_v28, %v21325_v58  ;;  %v21328_v38 = vld [vmem:[#allocation163_spill] sm:$0xff]  ;;  %v21353_v28 = vld [vmem:[#allocation17_spill] sm:$0xff] }
 0xac8   : > { %v21329_v2 = vpack.c.bf16 %v21327_v16, %v21328_v38  ;;  %v21354_v58 = vunpack.i.l.bf16 %v21353_v28  ;;  %v21355_v16 = vmov 0.0|0.0  }
 0xaca   : > { %9315 = vmatpush1.bf16.msra.mxu0 %v21299_v10  ;;  %v21331_v10 = vpack.c.bf16 %v18498_v39, %v21330_v0 }
 0xacb   : > { %9317 = vmatprep.subr.bf16.mxu0 %v21302_v44  ;;  %v21334_v44 = vpack.c.bf16 %v21332_v52, %v21333_v11  ;;  %v21364_v11 = vld [vmem:[#allocation5_spill] sm:$0xff] }
 0xace   : > { %9319 = vmatpush1.bf16.msra.mxu0 %v21305_v1  ;;  %v21337_v1 = vld [vmem:[#allocation167_spill] sm:$0xff] }
 0xacf   : > { %9321 = vmatprep.subr.bf16.mxu0 %v21308_v41  ;;  %v21338_v48 = vpack.c.bf16 %v21336_v12, %v21337_v1  ;;  %v21340_v41 = vpack.c.bf16 %v18552_v6, %v21339_v5 }
 0xad2   : > { %9323 = vmatpush1.bf16.msra.mxu0 %v21311_v13  ;;  %v21342_v13 = vld [vmem:[#allocation58_spill] sm:$0xff] }
 0xad3   : > { %9325 = vmatprep.subr.bf16.mxu0 %v21314_v31  ;;  %v21343_v24 = vpack.c.bf16 %v21341_v45, %v21342_v13  ;;  %v21345_v31 = vld [vmem:[#allocation84_spill] sm:$0xff] }
 0xad4   : > { %v21346_v30 = vpack.c.bf16 %v21344_v4, %v21345_v31 }
 0xad6   : > { %9327 = vmatpush1.bf16.msra.mxu0 %v21317_v55  ;;  %v21348_v55 = vld [vmem:[#allocation34_spill] sm:$0xff] }
 0xad7   : > { %9329 = vmatprep.subr.bf16.mxu0 %v21320_v14  ;;  %v21349_v6 = vpack.c.bf16 %v21347_v17, %v21348_v55  ;;  %v21350_v14 = vld [vmem:[#allocation135_spill] sm:$0xff] }
 0xada   : > { %9331 = vmatpush1.bf16.msra.mxu0 %v21323_v25  ;;  %v9405_v25 = vpack.c.bf16 %v21352_v57, %v21351_v22 }
 0xadb   : > { %9333 = vmatprep.subr.bf16.mxu0 %v21326_v34  ;;  %v6272_v34 = vsel %vm3215_vm15, %v21354_v58, %v21144_v7  ;;  %v21357_v7 = vpack.c.bf16 %v18703_v51, %v18693_v19  ;;  %v21359_v19 = vpack.c.bf16 %v18784_v63, %v18738_v21  ;;  %v21360_v51 = vpack.c.bf16 %v18804_v56, %v18801_v35 }
 0xadc   : > { %v21361_v21 = vmov 0.0  }
 0xadd   : > { %v19113_v8 = vpop.f32.mrb[60].mxu1 }
 0xade   : > { %9335 = vmatpush1.bf16.msra.mxu0 %v21329_v2  ;;  %v19115_v39 = vpop.f32.mrb[61].mxu1  ;;  %v21358_v2 = vpack.c.bf16 %v18668_v46, %v18674_v27  ;;  %v9432_v46 = vpack.c.bf16 %v21208_v62, %v21208_v62  ;;  %v9435_v27 = vpack.c.bf16 %v21218_v61, %v21208_v62  ;;  %v21363_v61 = vld [vmem:[#allocation4_spill] sm:$0xff] }
 0xadf   : > { %9337 = vmatprep.subr.bf16.mxu0 %v21331_v10 }
 0xae1   : > { %v19123_v23 = vpop.f32.mrb[62].mxu1 }
 0xae2   : > { %9339 = vmatpush1.bf16.msra.mxu0 %v21334_v44  ;;  %v19125_v9 = vpop.f32.mrb[63].mxu1 }
 0xae3   : > { %9341 = vmatprep.subr.bf16.mxu0 %v21335_v47  ;;  %v21365_v47 = vld [vmem:[#allocation6_spill] sm:$0xff] }
 0xae5   : > { %v19131_v15 = vpop.f32.mrb[64].mxu1 }
 0xae6   : > { %9343 = vmatpush1.bf16.msra.mxu0 %v21338_v48  ;;  %v19133_v49 = vpop.f32.mrb[65].mxu1 }
 0xae7   : > { %9345 = vmatprep.subr.bf16.mxu0 %v21340_v41 }
 0xaea   : > { %9347 = vmatpush1.bf16.msra.mxu0 %v21343_v24 }
 0xaeb   : > { %9349 = vmatprep.subr.bf16.mxu0 %v21346_v30 }
 0xaee   : > { %9351 = vmatpush1.bf16.msra.mxu0 %v21349_v6 }
 0xaef   : > { %7826 = vmatprep.subr.mxu0 %v18662_v33  ;;  %v21356_v33 = vld [vmem:[#allocation124_spill] sm:$0xff] }
 0xaf0   : > { %v9408_v38 = vpack.c.bf16 %v6272_v34, %v21356_v33 }
 0xaf2   : > { %7827 = vmatpush1.msra.mxu0 %v21350_v14 }
 0xaf3   : > { %7839 = vmatmul.mubr.f32.vlgmr.msra.gmra.mrb[60].mxu0 %v18772_v26  ;;  %9404 = vmatprep.subr.bf16.mxu0 %v21355_v16 }
 0xaf4   : > { %9406 = vmatpush1.bf16.msra.mxu0 %v9405_v25  ;;  %8335 = vmatprep.mubr.msk.f32.mxu0 %vm4702_vm3, %v18792_v18 }
 0xaf5   : > { %9407 = vmatprep.subr.bf16.mxu0 %v21355_v16 }
 0xaf7   : > { %7845 = vmatmul.mubr.f32.gmra.mrb[62].mxu0 %v18812_v36 }
 0xaf8   : > { %9409 = vmatpush1.bf16.msra.mxu0 %v9408_v38  ;;  %8336 = vmatprep.mubr.msk.f32.mxu0 %vm4702_vm3, %v18822_v29 }
 0xaf9   : > { %9410 = vmatprep.subr.bf16.mxu0 %v21355_v16 }
 0xafb   : > { %7851 = vmatmul.mubr.f32.gmra.mrb[64].mxu0 %v18848_v59 }
 0xafc   : > { %9412 = vmatpush1.bf16.msra.mxu0 %v21357_v7  ;;  %8340 = vmatprep.mubr.msk.f32.mxu0 %vm4702_vm3, %v18864_v3 }
 0xafd   : > { %9413 = vmatprep.subr.bf16.mxu0 %v21355_v16 }
 0xb00   : > { %9415 = vmatpush1.bf16.msra.mxu0 %v21358_v2 }
 0xb01   : > { %9416 = vmatprep.subr.bf16.mxu0 %v21355_v16 }
 0xb04   : > { %9418 = vmatpush1.bf16.msra.mxu0 %v9417_v50 }
 0xb05   : > { %9419 = vmatprep.subr.bf16.mxu0 %v21355_v16 }
 0xb08   : > { %9421 = vmatpush1.bf16.msra.mxu0 %v21359_v19 }
 0xb09   : > { %9422 = vmatprep.subr.bf16.mxu0 %v21355_v16 }
 0xb0c   : > { %9424 = vmatpush1.bf16.msra.mxu0 %v21360_v51 }
 0xb0d   : > { %9425 = vmatprep.subr.bf16.mxu0 %v21355_v16 }
 0xb10   : > { %9427 = vmatpush1.bf16.msra.mxu0 %v9426_v42 }
 0xb11   : > { %9428 = vmatprep.subr.bf16.mxu0 %v21355_v16 }
 0xb14   : > { %9430 = vmatpush1.bf16.msra.mxu0 %v9429_v60  ;;  %v19229_v60 = vpop.permute.xlu1 %7425 }
 0xb15   : > { %9431 = vmatprep.subr.bf16.mxu0 %v21355_v16  ;;  %v7598_v0 = vadd.f32 %v19123_v23, %v19229_v60  ;;  %v7600_v41 = vadd.f32 %v19125_v9, %v19229_v60 }
 0xb17   : > { %v8035_v31 = vmax.f32 %v7598_v0, 0.0  ;;  %v8036_v9 = vmax.f32 %v7600_v41, 0.0 }
 0xb18   : > { %9433 = vmatpush1.bf16.msra.mxu0 %v9432_v46 }
 0xb19   : > { %9434 = vmatprep.subr.bf16.mxu0 %v21355_v16 }
 0xb1c   : > { %9436 = vmatpush1.bf16.msra.mxu0 %v9435_v27 }
 0xb1d   : > { %9437 = vmatprep.subr.bf16.mxu0 %v21355_v16 }
 0xb20   : > { %9439 = vmatpush1.bf16.msra.mxu0 %v9438_v53 }
 0xb21   : > { %9440 = vmatprep.subr.bf16.mxu0 %v21355_v16 }
 0xb24   : > { %9442 = vmatpush1.bf16.msra.mxu0 %v9441_v37 }
 0xb25   : > { %7992 = vmatprep.subr.mxu0 %v21361_v21 }
 0xb28   : > { %7993 = vmatpush1.msra.mxu0 %v18942_v54 }
 0xb29   : > { %8005 = vmatmul.mubr.f32.vlgmr.msra.gmra.mrb[66].mxu0 %v18772_v26 }
 0xb2a   : > { %8341 = vmatprep.mubr.msk.f32.mxu0 %vm4702_vm3, %v18792_v18  ;;  %v19215_v18 = vpop.permute.xlu0 %7420 }
 0xb2b   : > { %v7594_v3 = vadd.f32 %v19115_v39, %v19215_v18 }
 0xb2d   : > { %8010 = vmatmul.mubr.f32.gmra.mrb[68].mxu0 %v18812_v36  ;;  %v7592_v36 = vadd.f32 %v19113_v8, %v19215_v18  ;;  %v8023_v5 = vmax.f32 %v7594_v3, 0.0 }
 0xb2e   : > { %8342 = vmatprep.mubr.msk.f32.mxu0 %vm4702_vm3, %v18822_v29  ;;  %v19222_v29 = vld [vmem:[%s19350_s15] sm:$0xff]  ;;  %v19244_v4 = vpop.permute.xlu0 %7430 }
 0xb2f   : > { %v8066_v42 = vrot.slane %v19222_v29, %v21362_v32  ;;  %v8070_v54 = vrot.slane %v19222_v29, %v21363_v61  ;;  %v8022_v52 = vmax.f32 %v7592_v36, 0.0  ;;  %v8074_v44 = vrot.slane %v19222_v29, %v21364_v11 }
 0xb30   : > { %v8078_v12 = vrot.slane %v19222_v29, %v21365_v47  ;;  %v7604_v17 = vadd.f32 %v19131_v15, %v19244_v4  ;;  %v7606_v58 = vadd.f32 %v19133_v49, %v19244_v4 }
 0xb31   : > { %8015 = vmatmul.mubr.f32.gmra.mrb[70].mxu0 %v18848_v59  ;;  %v8130_v23 = vmul.f32 %v8074_v44, %v8022_v52  ;;  %v8143_v38 = vmul.f32 %v8074_v44, %v8035_v31 }
 0xb32   : > { %v8131_v22 = vmul.f32 %v8078_v12, %v8023_v5  ;;  %v8048_v2 = vmax.f32 %v7604_v17, 0.0  ;;  %v8144_v27 = vmul.f32 %v8078_v12, %v8036_v9  ;;  %v8049_v53 = vmax.f32 %v7606_v58, 0.0 }
 0xb34   : > { %v8156_v36 = vmul.f32 %v8074_v44, %v8048_v2 }
 0xb42   : > { %v19203_v50 = vpop.f32.mrb[66].mxu1 }
 0xb43   : > { %v19205_v63 = vpop.f32.mrb[67].mxu1 }
 0xb48   : > { %v19207_v35 = vpop.f32.mrb[68].mxu1 }
 0xb49   : > { %v19209_v56 = vpop.f32.mrb[69].mxu1 }
 0xb4c   : > { %v19211_v20 = vpop.f32.mrb[70].mxu1 }
 0xb4d   : > { %v19213_v26 = vpop.f32.mrb[71].mxu1 }
 0xb57   : > { %v7508_v59 = vpop.f32.mrb[48].mxu0 }
 0xb58   : > { %v7509_v40 = vadd.f32 %v7508_v59, %v19215_v18  ;;  %v7510_v43 = vpop.f32.mrb[49].mxu0 }
 0xb59   : > { %v7511_v62 = vadd.f32 %v7510_v43, %v19215_v18 }
 0xb5a   : > { %v8020_v10 = vmax.f32 %v7509_v40, 0.0  ;;  %v8157_v40 = vmul.f32 %v8078_v12, %v8049_v53 }
 0xb5b   : > { %v8021_v1 = vmax.f32 %v7511_v62, 0.0  ;;  %v7514_v48 = vpop.f32.mrb[50].mxu0 }
 0xb5c   : > { %v8128_v8 = vmul.f32 %v8066_v42, %v8020_v10  ;;  %v7515_v39 = vadd.f32 %v7514_v48, %v19229_v60  ;;  %v7516_v45 = vpop.f32.mrb[51].mxu0  ;;  %v21366_v48 = vld [vmem:[#allocation8_spill] sm:$0xff] }
 0xb5d   : > { %v8129_v13 = vmul.f32 %v8070_v54, %v8021_v1  ;;  %v7517_v24 = vadd.f32 %v7516_v45, %v19229_v60  ;;  %v8082_v5 = vrot.slane %v19222_v29, %v21366_v48  ;;  %v21367_v45 = vld [vmem:[#allocation7_spill] sm:$0xff] }
 0xb5e   : > { %v8033_v30 = vmax.f32 %v7515_v39, 0.0 }
 0xb5f   : > { %v8167_v55 = vadd.f32 %v8129_v13, %v8128_v8  ;;  %v8034_v6 = vmax.f32 %v7517_v24, 0.0  ;;  %v7760_v8 = vadd.f32 %v19205_v63, %v19215_v18  ;;  %v8086_v13 = vrot.slane %v19222_v29, %v21367_v45 }
 0xb60   : > { %v7520_v14 = vpop.f32.mrb[52].mxu0  ;;  %v8141_v57 = vmul.f32 %v8066_v42, %v8033_v30  ;;  %v21368_v30 = vld [vmem:[#allocation9_spill] sm:$0xff] }
 0xb61   : > { %v7521_v25 = vadd.f32 %v7520_v14, %v19244_v4  ;;  %v7522_v28 = vpop.f32.mrb[53].mxu0  ;;  %v8168_v34 = vadd.f32 %v8167_v55, %v8130_v23  ;;  %v8142_v16 = vmul.f32 %v8070_v54, %v8034_v6  ;;  %v7764_v23 = vadd.f32 %v19207_v35, %v19229_v60  ;;  %v21369_v6 = vld [vmem:[#allocation10_spill] sm:$0xff] }
 0xb62   : > { %v7523_v33 = vadd.f32 %v7522_v28, %v19244_v4  ;;  %v8094_v14 = vrot.slane %v19222_v29, %v21369_v6  ;;  %v8060_v6 = vld [vmem:[%s19350_s15 + $0x8] sm:$0x1f] }
 0xb63   : > { %v8046_v7 = vmax.f32 %v7521_v25, 0.0  ;;  %v8181_v15 = vadd.f32 %v8142_v16, %v8141_v57  ;;  %v8169_v51 = vadd.f32 %v8168_v34, %v8131_v22  ;;  %v8027_v57 = vmax.f32 %v7760_v8, 0.0 }
 0xb64   : > { %v8047_v19 = vmax.f32 %v7523_v33, 0.0  ;;  %v7766_v25 = vadd.f32 %v19209_v56, %v19229_v60  ;;  %v8039_v35 = vmax.f32 %v7764_v23, 0.0 }
 0xb65   : > { %v8154_v46 = vmul.f32 %v8066_v42, %v8046_v7  ;;  %v8182_v37 = vadd.f32 %v8181_v15, %v8143_v38 }
 0xb66   : > { %v8155_v21 = vmul.f32 %v8070_v54, %v8047_v19  ;;  %v7758_v54 = vadd.f32 %v19203_v50, %v19215_v18  ;;  %v8090_v50 = vrot.slane %v19222_v29, %v21368_v30  ;;  %v7770_v29 = vadd.f32 %v19211_v20, %v19244_v4 }
 0xb67   : > { %v8183_v3 = vadd.f32 %v8182_v37, %v8144_v27  ;;  %v8135_v27 = vmul.f32 %v8094_v14, %v8027_v57  ;;  %v8040_v53 = vmax.f32 %v7766_v25, 0.0 }
 0xb68   : > { %v8195_v59 = vadd.f32 %v8155_v21, %v8154_v46  ;;  %v8026_v31 = vmax.f32 %v7758_v54, 0.0  ;;  %v8052_v54 = vmax.f32 %v7770_v29, 0.0 }
 0xb69   : > { %v8148_v8 = vmul.f32 %v8094_v14, %v8040_v53 }
 0xb6a   : > { %v8196_v49 = vadd.f32 %v8195_v59, %v8156_v36  ;;  %v8134_v33 = vmul.f32 %v8090_v50, %v8026_v31  ;;  %v8160_v31 = vmul.f32 %v8090_v50, %v8052_v54 }
 0xb6c   : > { %v8197_v43 = vadd.f32 %v8196_v49, %v8157_v40  ;;  %v8147_v40 = vmul.f32 %v8090_v50, %v8039_v35 }
 0xb7f   : > { %v19252_v62 = vpop.f32.mrb[72].mxu1 }
 0xb80   : > { %v19254_v0 = vpop.f32.mrb[73].mxu1 }
 0xb83   : > { %v19256_v10 = vpop.f32.mrb[74].mxu1 }
 0xb84   : > { %v19258_v52 = vpop.f32.mrb[75].mxu1  ;;  %v7930_v25 = vadd.f32 %v19256_v10, %v19229_v60 }
 0xb85   : > { %v7932_v35 = vadd.f32 %v19258_v52, %v19229_v60 }
 0xb87   : > { %v19260_v1 = vpop.f32.mrb[76].mxu1 }
 0xb88   : > { %v19262_v42 = vpop.f32.mrb[77].mxu1 }
 0xb90   : > { %v7674_v44 = vpop.f32.mrb[54].mxu0 }
 0xb91   : > { %v7675_v12 = vadd.f32 %v7674_v44, %v19215_v18  ;;  %v7676_v41 = vpop.f32.mrb[55].mxu0 }
 0xb92   : > { %v7677_v39 = vadd.f32 %v7676_v41, %v19215_v18 }
 0xb93   : > { %v8024_v24 = vmax.f32 %v7675_v12, 0.0 }
 0xb94   : > { %v8025_v17 = vmax.f32 %v7677_v39, 0.0  ;;  %v7680_v55 = vpop.f32.mrb[56].mxu0 }
 0xb95   : > { %v8132_v22 = vmul.f32 %v8082_v5, %v8024_v24  ;;  %v7681_v63 = vadd.f32 %v7680_v55, %v19229_v60  ;;  %v7682_v9 = vpop.f32.mrb[57].mxu0 }
 0xb96   : > { %v8133_v28 = vmul.f32 %v8086_v13, %v8025_v17  ;;  %v7683_v58 = vadd.f32 %v7682_v9, %v19229_v60 }
 0xb97   : > { %v8170_v34 = vadd.f32 %v8169_v51, %v8132_v22  ;;  %v8037_v16 = vmax.f32 %v7681_v63, 0.0  ;;  %v7772_v51 = vadd.f32 %v19213_v26, %v19244_v4  ;;  %v8098_v22 = vrot.slane %v8060_v6, %v21362_v32 }
 0xb98   : > { %v8038_v38 = vmax.f32 %v7683_v58, 0.0  ;;  %v7686_v7 = vpop.f32.mrb[58].mxu0 }
 0xb99   : > { %v8171_v2 = vadd.f32 %v8170_v34, %v8133_v28  ;;  %v8145_v15 = vmul.f32 %v8082_v5, %v8037_v16  ;;  %v7687_v19 = vadd.f32 %v7686_v7, %v19244_v4  ;;  %v7688_v46 = vpop.f32.mrb[59].mxu0  ;;  %v8053_v39 = vmax.f32 %v7772_v51, 0.0 }
 0xb9a   : > { %v8146_v56 = vmul.f32 %v8086_v13, %v8038_v38  ;;  %v7689_v37 = vadd.f32 %v7688_v46, %v19244_v4  ;;  %v8110_v34 = vrot.slane %v8060_v6, %v21365_v47  ;;  %v7936_v47 = vadd.f32 %v19260_v1, %v19244_v4 }
 0xb9b   : > { %v8172_v21 = vadd.f32 %v8171_v2, %v8134_v33  ;;  %v8184_v36 = vadd.f32 %v8183_v3, %v8145_v15  ;;  %v8050_v59 = vmax.f32 %v7687_v19, 0.0  ;;  %v8161_v17 = vmul.f32 %v8094_v14, %v8053_v39 }
 0xb9c   : > { %v8051_v49 = vmax.f32 %v7689_v37, 0.0  ;;  %v7924_v3 = vadd.f32 %v19252_v62, %v19215_v18  ;;  %v8102_v14 = vrot.slane %v8060_v6, %v21363_v61  ;;  %v8106_v62 = vrot.slane %v8060_v6, %v21364_v11 }
 0xb9d   : > { %v8185_v20 = vadd.f32 %v8184_v36, %v8146_v56  ;;  %v8158_v44 = vmul.f32 %v8082_v5, %v8050_v59  ;;  %v8173_v12 = vadd.f32 %v8172_v21, %v8135_v27  ;;  %v8043_v2 = vmax.f32 %v7930_v25, 0.0 }
 0xb9e   : > { %v8159_v41 = vmul.f32 %v8086_v13, %v8051_v49  ;;  %v8030_v57 = vmax.f32 %v7924_v3, 0.0  ;;  %v8044_v37 = vmax.f32 %v7932_v35, 0.0  ;;  %v7938_v21 = vadd.f32 %v19262_v42, %v19244_v4  ;;  %v8211_v35 = vld [vmem:[%s19351_s16 + $0x10] sm:$0xff] }
 0xb9f   : > { %v8186_v45 = vadd.f32 %v8185_v20, %v8147_v40  ;;  %v8198_v24 = vadd.f32 %v8197_v43, %v8158_v44  ;;  %v7926_v43 = vadd.f32 %v19254_v0, %v19215_v18  ;;  %v8151_v49 = vmul.f32 %v8106_v62, %v8043_v2 }
 0xba0   : > { %v8138_v29 = vmul.f32 %v8106_v62, %v8030_v57  ;;  %v8056_v20 = vmax.f32 %v7936_v47, 0.0  ;;  %v8057_v39 = vmax.f32 %v7938_v21, 0.0 }
 0xba1   : > { %v8199_v30 = vadd.f32 %v8198_v24, %v8159_v41  ;;  %v8187_v23 = vadd.f32 %v8186_v45, %v8148_v8  ;;  %v8031_v0 = vmax.f32 %v7926_v43, 0.0  ;;  %v8152_v8 = vmul.f32 %v8110_v34, %v8044_v37 }
 0xba3   : > { %v8200_v55 = vadd.f32 %v8199_v30, %v8160_v31  ;;  %v8139_v56 = vmul.f32 %v8110_v34, %v8031_v0  ;;  %v8164_v31 = vmul.f32 %v8106_v62, %v8056_v20 }
 0xba5   : > { %v8201_v26 = vadd.f32 %v8200_v55, %v8161_v17  ;;  %v8165_v55 = vmul.f32 %v8110_v34, %v8057_v39 }
 0xbc6   : > { %v7840_v5 = vpop.f32.mrb[60].mxu0 }
 0xbc7   : > { %v7841_v13 = vadd.f32 %v7840_v5, %v19215_v18  ;;  %v7842_v63 = vpop.f32.mrb[61].mxu0 }
 0xbc8   : > { %v7843_v50 = vadd.f32 %v7842_v63, %v19215_v18 }
 0xbc9   : > { %v8028_v9 = vmax.f32 %v7841_v13, 0.0  ;;  %v8114_v13 = vrot.slane %v8060_v6, %v21366_v48  ;;  %v8209_v6 = vld [vmem:[%s19351_s16] sm:$0xff] }
 0xbca   : > { %v8029_v28 = vmax.f32 %v7843_v50, 0.0  ;;  %v7846_v58 = vpop.f32.mrb[62].mxu0 }
 0xbcb   : > { %v8136_v32 = vmul.f32 %v8098_v22, %v8028_v9  ;;  %v7847_v16 = vadd.f32 %v7846_v58, %v19229_v60  ;;  %v7848_v33 = vpop.f32.mrb[63].mxu0 }
 0xbcc   : > { %v8137_v61 = vmul.f32 %v8102_v14, %v8029_v28  ;;  %v7849_v38 = vadd.f32 %v7848_v33, %v19229_v60 }
 0xbcd   : > { %v8174_v7 = vadd.f32 %v8173_v12, %v8136_v32  ;;  %v8041_v11 = vmax.f32 %v7847_v16, 0.0  ;;  %v8210_v16 = vld [vmem:[%s19351_s16 + $0x8] sm:$0xff] }
 0xbce   : > { %v8042_v10 = vmax.f32 %v7849_v38, 0.0  ;;  %v7852_v15 = vpop.f32.mrb[64].mxu0 }
 0xbcf   : > { %v8175_v19 = vadd.f32 %v8174_v7, %v8137_v61  ;;  %v8149_v46 = vmul.f32 %v8098_v22, %v8041_v11  ;;  %v7853_v27 = vadd.f32 %v7852_v15, %v19244_v4  ;;  %v7854_v53 = vpop.f32.mrb[65].mxu0 }
 0xbd0   : > { %v8150_v52 = vmul.f32 %v8102_v14, %v8042_v10  ;;  %v7855_v51 = vadd.f32 %v7854_v53, %v19244_v4  ;;  %v8227_v53 = vld [vmem:[#allocation2] sm:$0x1] }
 0xbd1   : > { %v8176_v36 = vadd.f32 %v8175_v19, %v8138_v29  ;;  %v8188_v59 = vadd.f32 %v8187_v23, %v8149_v46  ;;  %v8054_v40 = vmax.f32 %v7853_v27, 0.0 }
 0xbd2   : > { %v8055_v54 = vmax.f32 %v7855_v51, 0.0 }
 0xbd3   : > { %v8189_v1 = vadd.f32 %v8188_v59, %v8150_v52  ;;  %v8162_v44 = vmul.f32 %v8098_v22, %v8054_v40  ;;  %v8177_v12 = vadd.f32 %v8176_v36, %v8139_v56 }
 0xbd4   : > { %v8163_v41 = vmul.f32 %v8102_v14, %v8055_v54 }
 0xbd5   : > { %v8190_v45 = vadd.f32 %v8189_v1, %v8151_v49  ;;  %v8202_v24 = vadd.f32 %v8201_v26, %v8162_v44 }
 0xbd7   : > { %v8203_v30 = vadd.f32 %v8202_v24, %v8163_v41  ;;  %v8191_v17 = vadd.f32 %v8190_v45, %v8152_v8 }
 0xbd9   : > { %v8204_v3 = vadd.f32 %v8203_v30, %v8164_v31 }
 0xbdb   : > { %v8205_v42 = vadd.f32 %v8204_v3, %v8165_v55 }
 0xbfc   : > { %v8006_v5 = vpop.f32.mrb[66].mxu0 }
 0xbfd   : > { %v8007_v23 = vadd.f32 %v8006_v5, %v19215_v18  ;;  %v8008_v63 = vpop.f32.mrb[67].mxu0 }
 0xbff   : > { %v8032_v43 = vmax.f32 %v8007_v23, 0.0 }
 0xc00   : > { %v8011_v22 = vpop.f32.mrb[68].mxu0 }
 0xc01   : > { %v8140_v50 = vmul.f32 %v8114_v13, %v8032_v43  ;;  %v8012_v14 = vadd.f32 %v8011_v22, %v19229_v60  ;;  %v8013_v9 = vpop.f32.mrb[69].mxu0 }
 0xc03   : > { %v8045_v57 = vmax.f32 %v8012_v14, 0.0  ;;  %v8178_v26 = vadd.f32 %v8177_v12, %v8140_v50 }
 0xc04   : > { %v8016_v62 = vpop.f32.mrb[70].mxu0 }
 0xc05   : > { %v8153_v25 = vmul.f32 %v8114_v13, %v8045_v57  ;;  %v8017_v28 = vadd.f32 %v8016_v62, %v19244_v4  ;;  %v8018_v58 = vpop.f32.mrb[71].mxu0  ;;  %8179 = vadd.xlane.f32.xlu1 %v8178_v26 }
 0xc07   : > { %v8058_v34 = vmax.f32 %v8017_v28, 0.0  ;;  %v8192_v32 = vadd.f32 %v8191_v17, %v8153_v25 }
 0xc09   : > { %v8166_v18 = vmul.f32 %v8114_v13, %v8058_v34  ;;  %8193 = vadd.xlane.f32.xlu0 %v8192_v32 }
 0xc0b   : > { %v8206_v48 = vadd.f32 %v8205_v42, %v8166_v18 }
 0xc0d   : > { %8207 = vadd.xlane.f32.xlu0 %v8206_v48 }
 0xc92   : > { %v8180_v60 = vpop.xlane.xlu1 %8179 }
 0xc93   : > { %v8212_v0 = vmul.f32 %v8209_v6, %v8180_v60 }
 0xc95   : > { %v8216_v7 = vsel %vm8215_vm9, %v8212_v0, 0.0 }
 0xc96   : > { %v8194_v33 = vpop.xlane.xlu0 %8193 }
 0xc97   : > { %v8213_v4 = vmul.f32 %v8210_v16, %v8194_v33 }
 0xc99   : > { %v8217_v61 = vsel %vm8215_vm9, %v8213_v4, 0.0 }
 0xc9a   : > { %v8208_v38 = vpop.xlane.xlu0 %8207  ;;  %v8218_v29 = vadd.f32 %v8217_v61, %v8216_v7 }
 0xc9b   : > { %v8214_v11 = vmul.f32 %v8211_v35, %v8208_v38 }
 0xc9d   : > { %v8219_v2 = vsel %vm8215_vm9, %v8214_v11, 0.0 }
 0xc9e   : > { %v8220_v10 = vadd.f32 %v8219_v2, %v8218_v29 }
 0xca0   : > { %v8221_v15 = vrot.slane %v8220_v10, 4 }
 0xca2   : > { %v8222_v47 = vadd.f32 %v8221_v15, %v8220_v10 }
 0xca4   : > { %v8223_v19 = vrot.slane %v8222_v47, 2 }
 0xca6   : > { %v8224_v46 = vadd.f32 %v8223_v19, %v8222_v47 }
 0xca8   : > { %v8225_v27 = vrot.slane %v8224_v46, 1 }
 0xcaa   : > { %v8226_v56 = vadd.f32 %v8225_v27, %v8224_v46 }
 0xcac   : > { %v8228_v37 = vadd.f32 %v8227_v53, %v8226_v56 }
 0xcae   : > { %v8229_v52 = vmul.f32 0.5, %v8228_v37 }
 0xcb0   : > { %11339 = vtanh.f32 %v8229_v52 }
 0xcba   : > { %v11340_v51 = vpop.eup %11339 }
 0xcbb   : > { %v8231_v21 = vadd.f32 1.0, %v11340_v51 }
 0xcbd   : > { %v8232_v36 = vmul.f32 0.5, %v8231_v21 }
 0xcbf   : > { %8234 = vst.msk [vmem:[%s573_s28] sm:$0x1] %vm8233_vm10, %v8232_v36 }
 0xcc0 PF: > { %s30_s29 = sadd.s32 1, %s11354_s29  }
 0xcc1   : > { %p27_p4 = scmp.ge.s32.totalorder %s30_s29, 4  }
 0xcc3   :  { %29 = sbr.rel (!%p27_p4) target bundleno = 4 (0x4), region = 122 }

</bundles_post_ra>
